<compile_context>
chip_gen: v6e
topology: v6e:2x2x1
jax: 0.10.0
libtpu: 0.0.40
codegen_flags: <defaults>
</compile_context>

<pallas_src>
import functools

import jax
import jax.numpy as jnp
from jax.experimental import pallas as pl
from jax.experimental.pallas import tpu as pltpu


# --------------------------------------------------------------------------
# PathSelector / seperate_conv:
#   Conv2d(C, C, 3, padding=1) -> ReLU -> BatchNorm2d(C) (eval stats, folded
#   into conv2) -> Conv2d(C, 1, 3, padding=1) -> Sigmoid, on the flattened
#   (B*N, C, H, W) batch.  Kernel layout is NHWC so C rides the lane axis.
# --------------------------------------------------------------------------
def _path_selector_kernel(H, W, Wp, C, x_ref, w1_ref, b1_ref, w2_ref, b2_ref,
                          o_ref, pad_ref, col_ref):
    blk = x_ref.shape[0]
    R = blk * H * W

    # Re-zero only the 1-pixel halo border each step (the interior is fully
    # overwritten below).  Done unconditionally (NOT under pl.when(pid==0)) so
    # the kernel stays correct when the 'parallel' axis is split across
    # TensorCores on megacore parts.
    pad_ref[:, 0:1, :, :] = jnp.zeros((blk, 1, Wp, C), jnp.float32)
    pad_ref[:, H + 1:H + 2, :, :] = jnp.zeros((blk, 1, Wp, C), jnp.float32)
    pad_ref[:, :, 0:1, :] = jnp.zeros((blk, H + 2, 1, C), jnp.float32)
    pad_ref[:, :, W + 1:Wp, :] = jnp.zeros((blk, H + 2, Wp - W - 1, C),
                                           jnp.float32)

    def build_slab():
        # im2col: col[..., k*C:(k+1)*C] = shifted halo view, k = 3*dh + dw,
        # cast to bf16 on write (slab feeds the bf16 MXU matmul).
        for dh in range(3):
            for dw in range(3):
                k = 3 * dh + dw
                col_ref[:, :, :, k * C:(k + 1) * C] = (
                    pad_ref[:, dh:dh + H, dw:dw + W, :].astype(jnp.bfloat16))

    # ---- conv #1 : 3x3, C -> C : one im2col bf16 MXU matmul (K = 9C) --------
    pad_ref[:, 1:H + 1, 1:W + 1, :] = x_ref[...]
    build_slab()
    slab = col_ref[...].reshape(R, 9 * C)
    h = jnp.dot(slab, w1_ref[...], preferred_element_type=jnp.float32)
    h = jnp.maximum(h + b1_ref[...], 0.0)     # ReLU (eval-BN folded into conv2)

    # ---- conv #2 : 3x3, C -> 1 : VPU multiply + lane reduce over 9C ---------
    pad_ref[:, 1:H + 1, 1:W + 1, :] = h.reshape(blk, H, W, C)
    build_slab()
    slab2 = col_ref[...].reshape(1, R, 9 * C)
    y = jnp.sum(slab2 * w2_ref[...], axis=-1)       # (1, R): pixels on lanes
    o_ref[...] = jax.nn.sigmoid(y + b2_ref[0])      # unmasked lane-dense store


def _largest_divisor_leq(n, cap):
    for d in range(min(n, cap), 0, -1):
        if n % d == 0:
            return d
    return 1


def path_selector(x, p, blk=None, max_blk=16):
    """x: (B, N, C, H, W) float32 -> (B, N, 1, H, W) float32."""
    B, N, C, H, W = x.shape
    BN = B * N
    # TODO(synk): have the CamEncode producer emit NHWC directly so this
    # (small) HBM transpose disappears.
    xf = x.reshape(BN, C, H, W).transpose(0, 2, 3, 1)          # NCHW -> NHWC

    if blk is None:
        # Largest divisor of B*N: no padded images and one (v5e/v6e) or a few
        # balanced grid steps.  On v7x pass max_blk=BN//2 so each TensorCore
        # gets one step.
        blk = _largest_divisor_leq(BN, max_blk)
    bn_pad = -(-BN // blk) * blk
    if bn_pad != BN:
        xf = jnp.pad(xf, ((0, bn_pad - BN), (0, 0), (0, 0), (0, 0)))

    Wp = -(-(W + 2) // 8) * 8          # halo scratch width, sublane-aligned
    kern = functools.partial(_path_selector_kernel, H, W, Wp, C)
    out = pl.pallas_call(
        kern,
        grid=(bn_pad // blk,),
        in_specs=[
            pl.BlockSpec((blk, H, W, C), lambda b: (b, 0, 0, 0)),
            pl.BlockSpec((9 * C, C), lambda b: (0, 0)),
            pl.BlockSpec((1, C), lambda b: (0, 0)),
            pl.BlockSpec((1, 9 * C), lambda b: (0, 0)),
            pl.BlockSpec(memory_space=pltpu.MemorySpace.SMEM),   # b2 scalar
        ],
        out_specs=pl.BlockSpec((1, blk * H * W), lambda b: (b, 0)),
        out_shape=jax.ShapeDtypeStruct((bn_pad // blk, blk * H * W),
                                       jnp.float32),
        scratch_shapes=[
            pltpu.VMEM((blk, H + 2, Wp, C), jnp.float32),    # halo'd x / h
            pltpu.VMEM((blk, H, W, 9 * C), jnp.bfloat16),    # im2col slab
        ],
        compiler_params=pltpu.CompilerParams(dimension_semantics=("parallel",)),
    )(xf, p["w1"], p["b1"], p["w2"], p["b2"])

    return out.reshape(bn_pad, H * W)[:BN].reshape(B, N, 1, H, W)


# --------------------------------------------------------------------------
# ViewTransformation / view_fusion:
#   per-view MLP over the flattened spatial dim:
#   Linear(fv_dim, bv_dim) -> ReLU -> Linear(bv_dim, bv_dim) -> ReLU
#   (weights stored pre-transposed as (in, out), bf16; f32 accumulation)
# --------------------------------------------------------------------------
def _view_transform_kernel(x_ref, w1_ref, b1_ref, w2_ref, b2_ref, o_ref, h_ref):
    B = x_ref.shape[0]
    C = x_ref.shape[2]

    # Compute the hidden layer once per view (j == 0), store it in bf16, and
    # reuse it across the bv_dim output tiles (grid axis 1 is 'arbitrary' and
    # iterates innermost, so the scratch persists across j).
    @pl.when(pl.program_id(1) == 0)
    def _():
        xv = x_ref[...].reshape(B * C, x_ref.shape[3]).astype(jnp.bfloat16)
        h = jnp.dot(xv, w1_ref[0], preferred_element_type=jnp.float32)
        h_ref[...] = jnp.maximum(h + b1_ref[0], 0.0).astype(jnp.bfloat16)

    y = jnp.dot(h_ref[...], w2_ref[0],
                preferred_element_type=jnp.float32) + b2_ref[0]
    tn = y.shape[1]
    o_ref[...] = jnp.maximum(y, 0.0).reshape(B, 1, C, tn)


def view_transformation(x, p, bv_size, max_tn=1024):
    """x: (B, N, C, H, W) -> (B, N, C, bvH, bvW)."""
    B, N, C, H, W = x.shape
    fv_dim = H * W
    bvH, bvW = bv_size
    bv_dim = bvH * bvW
    M = B * C
    feat = x.reshape(B, N, C, fv_dim)      # free view of contiguous NCHW

    # Tile the bv_dim output columns so the W2 block stays small in VMEM.
    # max_tn=1024 keeps the double/triple-buffered W2 tiles inside v7x's
    # 64 MiB VMEM at production bv_dim.
    tn = bv_dim
    for cand in (max_tn, 512, 256, 128):
        if cand <= max_tn and cand <= bv_dim and bv_dim % cand == 0:
            tn = cand
            break
    n_j = bv_dim // tn

    if n_j >= 3:
        w2_spec = pl.BlockSpec((1, bv_dim, tn), lambda i, j: (i, 0, j),
                               pipeline_mode=pl.Buffered(3))
    else:
        w2_spec = pl.BlockSpec((1, bv_dim, tn), lambda i, j: (i, 0, j))

    cp = dict(dimension_semantics=("parallel", "arbitrary"))
    if n_j >= 3:
        cp["vmem_limit_bytes"] = 64 * 1024 * 1024

    out = pl.pallas_call(
        _view_transform_kernel,
        grid=(N, n_j),
        in_specs=[
            pl.BlockSpec((B, 1, C, fv_dim), lambda i, j: (0, i, 0, 0)),
            pl.BlockSpec((1, fv_dim, bv_dim), lambda i, j: (i, 0, 0)),
            pl.BlockSpec((1, 1, bv_dim), lambda i, j: (i, 0, 0)),
            w2_spec,
            pl.BlockSpec((1, 1, tn), lambda i, j: (i, 0, j)),
        ],
        out_specs=pl.BlockSpec((B, 1, C, tn), lambda i, j: (0, i, 0, j)),
        out_shape=jax.ShapeDtypeStruct((B, N, C, bv_dim), jnp.float32),
        scratch_shapes=[pltpu.VMEM((M, bv_dim), jnp.bfloat16)],
        compiler_params=pltpu.CompilerParams(**cp),
    )(feat, p["w1"], p["b1"], p["w2"], p["b2"])

    # torch.stack(outputs, 1) -> (B, N, C, bvH, bvW); already (B, N, C, bv_dim).
    return out.reshape(B, N, C, bvH, bvW)


# --------------------------------------------------------------------------
# get_Ks_RTs_and_post_RTs : small 4x4 matrix glue (plain JAX)
# --------------------------------------------------------------------------
def get_Ks_RTs_and_post_RTs(intrins, rots, trans, post_rots, post_trans, scale=1):
    B, N = rots.shape[:2]
    base = jnp.broadcast_to(jnp.eye(4, dtype=jnp.float32), (B, N, 4, 4))

    intr = jnp.broadcast_to(intrins, (B, N, 3, 3))
    Ks = base.at[:, :, :3, :3].set(intr)
    Ks = Ks.at[:, :, :2, :].set(Ks[:, :, :2, :] / scale)

    Rs = base.at[:, :, :3, :3].set(jnp.swapaxes(rots, -1, -2))
    Ts = base.at[:, :, :3, 3].set(-trans)
    RTs = Rs @ Ts

    post_RTs = base.at[:, :, :3, :3].set(post_rots)
    post_RTs = post_RTs.at[:, :, :3, 3].set(post_trans)
    return Ks, RTs, post_RTs


# --------------------------------------------------------------------------
# FusionNet forward (implementable portion)
# --------------------------------------------------------------------------
def fusion_net_forward(cam_feats, trans, rots, intrins, post_trans, post_rots,
                       car_trans, yaw_pitch_roll, conv_p, vt_p, bv_size,
                       downsample=16):
    # TODO(synk): CamEncode (EfficientNet backbone) is not part of the reference
    #             source; `cam_feats` is the already-encoded
    #             (B, N, camC, imH/downsample, imW/downsample) feature map.
    x = cam_feats

    path_sel = path_selector(x, conv_p)                 # seperate_conv
    x_neural = view_transformation(x, vt_p, bv_size)    # view_fusion

    eye3 = jnp.eye(3, dtype=jnp.float32)
    Ks_n, RTs_n, pRTs_n = get_Ks_RTs_and_post_RTs(
        eye3, rots, trans, post_rots, post_trans, scale=downsample)
    Ks_g, RTs_g, pRTs_g = get_Ks_RTs_and_post_RTs(
        intrins, rots, trans, post_rots, post_trans, scale=downsample)

    # TODO(synk): neural_ipm / geometric_ipm (IPM), the bilinear up_sampler on
    #             their sum, and BevEncode are external modules not included in
    #             the provided source, so the topdown / bevencode outputs are
    #             not produced here.
    return path_sel, x_neural, (Ks_n, RTs_n, pRTs_n), (Ks_g, RTs_g, pRTs_g)


# --------------------------------------------------------------------------
# Deterministic parameter init + driver
# --------------------------------------------------------------------------
def init_params(key, C, fv_dim, bv_dim, n_views):
    ks = jax.random.split(key, 8)
    s = 0.05
    eps = 1e-5
    # BatchNorm2d eval-mode stats at default init:
    # weight=1, bias=0, running_mean=0, running_var=1.
    gamma = jnp.ones((C,), jnp.float32)
    beta = jnp.zeros((C,), jnp.float32)
    rmean = jnp.zeros((C,), jnp.float32)
    rvar = jnp.ones((C,), jnp.float32)
    bn_scale = gamma / jnp.sqrt(rvar + eps)
    bn_shift = beta - rmean * bn_scale

    # Fold the eval-mode BN affine into conv2 (BN sits between ReLU and conv2,
    # and conv2 is linear).  The bias fold is exact here because bn_shift == 0
    # for default eval stats; a nonzero shift would need a border correction.
    w2_raw = (jax.random.normal(ks[2], (3, 3, C)) * s).astype(jnp.float32)
    b2_raw = (jax.random.normal(ks[3], (1,)) * s).astype(jnp.float32)
    w2_eff = w2_raw * bn_scale[None, None, :]
    b2_eff = b2_raw + jnp.sum(w2_raw * bn_shift[None, None, :])

    w1_conv = jax.random.normal(ks[0], (3, 3, C, C)) * s   # (kh, kw, Cin, Cout)
    conv_p = dict(
        w1=w1_conv.reshape(9 * C, C).astype(jnp.bfloat16),   # im2col layout
        b1=(jax.random.normal(ks[1], (1, C)) * s).astype(jnp.float32),
        w2=w2_eff.reshape(1, 9 * C).astype(jnp.float32),
        b2=b2_eff.astype(jnp.float32),                        # (1,) SMEM scalar
    )
    vt_p = dict(
        w1=(jax.random.normal(ks[4], (n_views, fv_dim, bv_dim)) * s).astype(jnp.bfloat16),
        b1=(jax.random.normal(ks[5], (n_views, 1, bv_dim)) * s).astype(jnp.float32),
        w2=(jax.random.normal(ks[6], (n_views, bv_dim, bv_dim)) * s).astype(jnp.bfloat16),
        b2=(jax.random.normal(ks[7], (n_views, 1, bv_dim)) * s).astype(jnp.float32),
    )
    return conv_p, vt_p


if __name__ == "__main__":
    key = jax.random.PRNGKey(0)

    # Small shapes consistent with the module's forward:
    B, N = 2, 6           # batch, n_views (module hard-codes 6 views)
    C = 8                 # camC (64 in the original; shrunk for the demo)
    H, W = 4, 8           # fv_size = image_size // downsample
    bv_size = (8, 16)     # bv_size = (final_H // 5, final_W // 5)
    fv_dim, bv_dim = H * W, bv_size[0] * bv_size[1]

    k_in, k_p = jax.random.split(key)
    ks = jax.random.split(k_in, 8)
    cam_feats = jax.random.normal(ks[0], (B, N, C, H, W), jnp.float32)
    rots = jax.random.normal(ks[1], (B, N, 3, 3), jnp.float32)
    trans = jax.random.normal(ks[2], (B, N, 3), jnp.float32)
    intrins = jax.random.normal(ks[3], (B, N, 3, 3), jnp.float32)
    post_rots = jax.random.normal(ks[4], (B, N, 3, 3), jnp.float32)
    post_trans = jax.random.normal(ks[5], (B, N, 3), jnp.float32)
    car_trans = jax.random.normal(ks[6], (B, 3), jnp.float32)
    yaw_pitch_roll = jax.random.normal(ks[7], (B, 3), jnp.float32)

    conv_p, vt_p = init_params(k_p, C, fv_dim, bv_dim, N)

    outs = fusion_net_forward(cam_feats, trans, rots, intrins, post_trans,
                              post_rots, car_trans, yaw_pitch_roll,
                              conv_p, vt_p, bv_size, downsample=16)
    outs = jax.block_until_ready(outs)

    path_sel, x_neural, geom_n, geom_g = outs
    assert path_sel.shape == (B, N, 1, H, W)
    assert x_neural.shape == (B, N, C, bv_size[0], bv_size[1])
    assert geom_n[0].shape == (B, N, 4, 4)
    print("KERNEL_OK")
</pallas_src>

<mosaic_0001>
module attributes {stable_mosaic.version = 11 : i64} {
  func.func @_path_selector_kernel(%arg0: i32, %arg1: memref<12x4x8x8xf32, #tpu.memory_space<vmem>>, %arg2: memref<72x8xbf16, #tpu.memory_space<vmem>>, %arg3: memref<1x8xf32, #tpu.memory_space<vmem>>, %arg4: memref<1x72xf32, #tpu.memory_space<vmem>>, %arg5: memref<1xf32, #tpu.memory_space<smem>>, %arg6: memref<1x384xf32, #tpu.memory_space<vmem>>, %arg7: memref<12x6x16x8xf32, #tpu.memory_space<vmem>>, %arg8: memref<12x4x8x72xbf16, #tpu.memory_space<vmem>>) attributes {dimension_semantics = [#tpu.dimension_semantics<parallel>], iteration_bounds = array<i64: 1>, scalar_prefetch = 0 : i64, scratch_operands = 2 : i64, tpu.core_type = #tpu.core_type<tc>, window_params = [{transform_indices = @transform_0, window_bounds = array<i64: 12, 4, 8, 8>}, {pipeline_mode = #tpu.pipeline_mode<synchronous>, transform_indices = @transform_1, window_bounds = array<i64: 72, 8>}, {pipeline_mode = #tpu.pipeline_mode<synchronous>, transform_indices = @transform_2, window_bounds = array<i64: 1, 8>}, {pipeline_mode = #tpu.pipeline_mode<synchronous>, transform_indices = @transform_3, window_bounds = array<i64: 1, 72>}, {transform_indices = @transform_4, window_bounds = array<i64: 1>}, {transform_indices = @transform_5, window_bounds = array<i64: 1, 384>}]} {
    %cst = arith.constant 0.000000e+00 : f32
    %0 = vector.broadcast %cst : f32 to vector<12x1x16x8xf32>
    %c0 = arith.constant 0 : index
    %c0_0 = arith.constant 0 : index
    %c0_1 = arith.constant 0 : index
    %c0_2 = arith.constant 0 : index
    %1 = vector.load %arg7[%c0, %c0_0, %c0_1, %c0_2] : memref<12x6x16x8xf32, #tpu.memory_space<vmem>>, vector<12x1x16x8xf32>
    tpu.vector_store %arg7[%c0, %c0_0, %c0_1, %c0_2], %0 {strides = array<i32>} : memref<12x6x16x8xf32, #tpu.memory_space<vmem>>, vector<12x1x16x8xf32>,
    %cst_3 = arith.constant 0.000000e+00 : f32
    %2 = vector.broadcast %cst_3 : f32 to vector<12x1x16x8xf32>
    %c0_4 = arith.constant 0 : index
    %c5 = arith.constant 5 : index
    %c0_5 = arith.constant 0 : index
    %c0_6 = arith.constant 0 : index
    %3 = vector.load %arg7[%c0_4, %c5, %c0_5, %c0_6] : memref<12x6x16x8xf32, #tpu.memory_space<vmem>>, vector<12x1x16x8xf32>
    tpu.vector_store %arg7[%c0_4, %c5, %c0_5, %c0_6], %2 {strides = array<i32>} : memref<12x6x16x8xf32, #tpu.memory_space<vmem>>, vector<12x1x16x8xf32>,
    %cst_7 = arith.constant 0.000000e+00 : f32
    %4 = vector.broadcast %cst_7 : f32 to vector<12x6x1x8xf32>
    %c0_8 = arith.constant 0 : index
    %c0_9 = arith.constant 0 : index
    %c0_10 = arith.constant 0 : index
    %c0_11 = arith.constant 0 : index
    %5 = vector.load %arg7[%c0_8, %c0_9, %c0_10, %c0_11] : memref<12x6x16x8xf32, #tpu.memory_space<vmem>>, vector<12x6x1x8xf32>
    tpu.vector_store %arg7[%c0_8, %c0_9, %c0_10, %c0_11], %4 {strides = array<i32>} : memref<12x6x16x8xf32, #tpu.memory_space<vmem>>, vector<12x6x1x8xf32>,
    %cst_12 = arith.constant 0.000000e+00 : f32
    %6 = vector.broadcast %cst_12 : f32 to vector<12x6x7x8xf32>
    %c0_13 = arith.constant 0 : index
    %c0_14 = arith.constant 0 : index
    %c9 = arith.constant 9 : index
    %c0_15 = arith.constant 0 : index
    %7 = vector.load %arg7[%c0_13, %c0_14, %c9, %c0_15] : memref<12x6x16x8xf32, #tpu.memory_space<vmem>>, vector<12x6x7x8xf32>
    tpu.vector_store %arg7[%c0_13, %c0_14, %c9, %c0_15], %6 {strides = array<i32>} : memref<12x6x16x8xf32, #tpu.memory_space<vmem>>, vector<12x6x7x8xf32>,
    %c0_16 = arith.constant 0 : index
    %c0_17 = arith.constant 0 : index
    %c0_18 = arith.constant 0 : index
    %c0_19 = arith.constant 0 : index
    %8 = vector.load %arg1[%c0_16, %c0_17, %c0_18, %c0_19] : memref<12x4x8x8xf32, #tpu.memory_space<vmem>>, vector<12x4x8x8xf32>
    %c0_20 = arith.constant 0 : index
    %c1 = arith.constant 1 : index
    %c1_21 = arith.constant 1 : index
    %c0_22 = arith.constant 0 : index
    %9 = vector.load %arg7[%c0_20, %c1, %c1_21, %c0_22] : memref<12x6x16x8xf32, #tpu.memory_space<vmem>>, vector<12x4x8x8xf32>
    tpu.vector_store %arg7[%c0_20, %c1, %c1_21, %c0_22], %8 {strides = array<i32>} : memref<12x6x16x8xf32, #tpu.memory_space<vmem>>, vector<12x4x8x8xf32>,
    %c0_23 = arith.constant 0 : index
    %c0_24 = arith.constant 0 : index
    %c0_25 = arith.constant 0 : index
    %c0_26 = arith.constant 0 : index
    %10 = vector.load %arg7[%c0_23, %c0_24, %c0_25, %c0_26] : memref<12x6x16x8xf32, #tpu.memory_space<vmem>>, vector<12x4x8x8xf32>
    %11 = arith.truncf %10 : vector<12x4x8x8xf32> to vector<12x4x8x8xbf16>
    %c0_27 = arith.constant 0 : index
    %c0_28 = arith.constant 0 : index
    %c0_29 = arith.constant 0 : index
    %c0_30 = arith.constant 0 : index
    %12 = vector.load %arg8[%c0_27, %c0_28, %c0_29, %c0_30] : memref<12x4x8x72xbf16, #tpu.memory_space<vmem>>, vector<12x4x8x8xbf16>
    tpu.vector_store %arg8[%c0_27, %c0_28, %c0_29, %c0_30], %11 {strides = array<i32>} : memref<12x4x8x72xbf16, #tpu.memory_space<vmem>>, vector<12x4x8x8xbf16>,
    %c0_31 = arith.constant 0 : index
    %c0_32 = arith.constant 0 : index
    %c1_33 = arith.constant 1 : index
    %c0_34 = arith.constant 0 : index
    %13 = vector.load %arg7[%c0_31, %c0_32, %c1_33, %c0_34] : memref<12x6x16x8xf32, #tpu.memory_space<vmem>>, vector<12x4x8x8xf32>
    %14 = arith.truncf %13 : vector<12x4x8x8xf32> to vector<12x4x8x8xbf16>
    %c0_35 = arith.constant 0 : index
    %c0_36 = arith.constant 0 : index
    %c0_37 = arith.constant 0 : index
    %c8 = arith.constant 8 : index
    %15 = vector.load %arg8[%c0_35, %c0_36, %c0_37, %c8] : memref<12x4x8x72xbf16, #tpu.memory_space<vmem>>, vector<12x4x8x8xbf16>
    tpu.vector_store %arg8[%c0_35, %c0_36, %c0_37, %c8], %14 {strides = array<i32>} : memref<12x4x8x72xbf16, #tpu.memory_space<vmem>>, vector<12x4x8x8xbf16>,
    %c0_38 = arith.constant 0 : index
    %c0_39 = arith.constant 0 : index
    %c2 = arith.constant 2 : index
    %c0_40 = arith.constant 0 : index
    %16 = vector.load %arg7[%c0_38, %c0_39, %c2, %c0_40] : memref<12x6x16x8xf32, #tpu.memory_space<vmem>>, vector<12x4x8x8xf32>
    %17 = arith.truncf %16 : vector<12x4x8x8xf32> to vector<12x4x8x8xbf16>
    %c0_41 = arith.constant 0 : index
    %c0_42 = arith.constant 0 : index
    %c0_43 = arith.constant 0 : index
    %c16 = arith.constant 16 : index
    %18 = vector.load %arg8[%c0_41, %c0_42, %c0_43, %c16] : memref<12x4x8x72xbf16, #tpu.memory_space<vmem>>, vector<12x4x8x8xbf16>
    tpu.vector_store %arg8[%c0_41, %c0_42, %c0_43, %c16], %17 {strides = array<i32>} : memref<12x4x8x72xbf16, #tpu.memory_space<vmem>>, vector<12x4x8x8xbf16>,
    %c0_44 = arith.constant 0 : index
    %c1_45 = arith.constant 1 : index
    %c0_46 = arith.constant 0 : index
    %c0_47 = arith.constant 0 : index
    %19 = vector.load %arg7[%c0_44, %c1_45, %c0_46, %c0_47] : memref<12x6x16x8xf32, #tpu.memory_space<vmem>>, vector<12x4x8x8xf32>
    %20 = arith.truncf %19 : vector<12x4x8x8xf32> to vector<12x4x8x8xbf16>
    %c0_48 = arith.constant 0 : index
    %c0_49 = arith.constant 0 : index
    %c0_50 = arith.constant 0 : index
    %c24 = arith.constant 24 : index
    %21 = vector.load %arg8[%c0_48, %c0_49, %c0_50, %c24] : memref<12x4x8x72xbf16, #tpu.memory_space<vmem>>, vector<12x4x8x8xbf16>
    tpu.vector_store %arg8[%c0_48, %c0_49, %c0_50, %c24], %20 {strides = array<i32>} : memref<12x4x8x72xbf16, #tpu.memory_space<vmem>>, vector<12x4x8x8xbf16>,
    %c0_51 = arith.constant 0 : index
    %c1_52 = arith.constant 1 : index
    %c1_53 = arith.constant 1 : index
    %c0_54 = arith.constant 0 : index
    %22 = vector.load %arg7[%c0_51, %c1_52, %c1_53, %c0_54] : memref<12x6x16x8xf32, #tpu.memory_space<vmem>>, vector<12x4x8x8xf32>
    %23 = arith.truncf %22 : vector<12x4x8x8xf32> to vector<12x4x8x8xbf16>
    %c0_55 = arith.constant 0 : index
    %c0_56 = arith.constant 0 : index
    %c0_57 = arith.constant 0 : index
    %c32 = arith.constant 32 : index
    %24 = vector.load %arg8[%c0_55, %c0_56, %c0_57, %c32] : memref<12x4x8x72xbf16, #tpu.memory_space<vmem>>, vector<12x4x8x8xbf16>
    tpu.vector_store %arg8[%c0_55, %c0_56, %c0_57, %c32], %23 {strides = array<i32>} : memref<12x4x8x72xbf16, #tpu.memory_space<vmem>>, vector<12x4x8x8xbf16>,
    %c0_58 = arith.constant 0 : index
    %c1_59 = arith.constant 1 : index
    %c2_60 = arith.constant 2 : index
    %c0_61 = arith.constant 0 : index
    %25 = vector.load %arg7[%c0_58, %c1_59, %c2_60, %c0_61] : memref<12x6x16x8xf32, #tpu.memory_space<vmem>>, vector<12x4x8x8xf32>
    %26 = arith.truncf %25 : vector<12x4x8x8xf32> to vector<12x4x8x8xbf16>
    %c0_62 = arith.constant 0 : index
    %c0_63 = arith.constant 0 : index
    %c0_64 = arith.constant 0 : index
    %c40 = arith.constant 40 : index
    %27 = vector.load %arg8[%c0_62, %c0_63, %c0_64, %c40] : memref<12x4x8x72xbf16, #tpu.memory_space<vmem>>, vector<12x4x8x8xbf16>
    tpu.vector_store %arg8[%c0_62, %c0_63, %c0_64, %c40], %26 {strides = array<i32>} : memref<12x4x8x72xbf16, #tpu.memory_space<vmem>>, vector<12x4x8x8xbf16>,
    %c0_65 = arith.constant 0 : index
    %c2_66 = arith.constant 2 : index
    %c0_67 = arith.constant 0 : index
    %c0_68 = arith.constant 0 : index
    %28 = vector.load %arg7[%c0_65, %c2_66, %c0_67, %c0_68] : memref<12x6x16x8xf32, #tpu.memory_space<vmem>>, vector<12x4x8x8xf32>
    %29 = arith.truncf %28 : vector<12x4x8x8xf32> to vector<12x4x8x8xbf16>
    %c0_69 = arith.constant 0 : index
    %c0_70 = arith.constant 0 : index
    %c0_71 = arith.constant 0 : index
    %c48 = arith.constant 48 : index
    %30 = vector.load %arg8[%c0_69, %c0_70, %c0_71, %c48] : memref<12x4x8x72xbf16, #tpu.memory_space<vmem>>, vector<12x4x8x8xbf16>
    tpu.vector_store %arg8[%c0_69, %c0_70, %c0_71, %c48], %29 {strides = array<i32>} : memref<12x4x8x72xbf16, #tpu.memory_space<vmem>>, vector<12x4x8x8xbf16>,
    %c0_72 = arith.constant 0 : index
    %c2_73 = arith.constant 2 : index
    %c1_74 = arith.constant 1 : index
    %c0_75 = arith.constant 0 : index
    %31 = vector.load %arg7[%c0_72, %c2_73, %c1_74, %c0_75] : memref<12x6x16x8xf32, #tpu.memory_space<vmem>>, vector<12x4x8x8xf32>
    %32 = arith.truncf %31 : vector<12x4x8x8xf32> to vector<12x4x8x8xbf16>
    %c0_76 = arith.constant 0 : index
    %c0_77 = arith.constant 0 : index
    %c0_78 = arith.constant 0 : index
    %c56 = arith.constant 56 : index
    %33 = vector.load %arg8[%c0_76, %c0_77, %c0_78, %c56] : memref<12x4x8x72xbf16, #tpu.memory_space<vmem>>, vector<12x4x8x8xbf16>
    tpu.vector_store %arg8[%c0_76, %c0_77, %c0_78, %c56], %32 {strides = array<i32>} : memref<12x4x8x72xbf16, #tpu.memory_space<vmem>>, vector<12x4x8x8xbf16>,
    %c0_79 = arith.constant 0 : index
    %c2_80 = arith.constant 2 : index
    %c2_81 = arith.constant 2 : index
    %c0_82 = arith.constant 0 : index
    %34 = vector.load %arg7[%c0_79, %c2_80, %c2_81, %c0_82] : memref<12x6x16x8xf32, #tpu.memory_space<vmem>>, vector<12x4x8x8xf32>
    %35 = arith.truncf %34 : vector<12x4x8x8xf32> to vector<12x4x8x8xbf16>
    %c0_83 = arith.constant 0 : index
    %c0_84 = arith.constant 0 : index
    %c0_85 = arith.constant 0 : index
    %c64 = arith.constant 64 : index
    %36 = vector.load %arg8[%c0_83, %c0_84, %c0_85, %c64] : memref<12x4x8x72xbf16, #tpu.memory_space<vmem>>, vector<12x4x8x8xbf16>
    tpu.vector_store %arg8[%c0_83, %c0_84, %c0_85, %c64], %35 {strides = array<i32>} : memref<12x4x8x72xbf16, #tpu.memory_space<vmem>>, vector<12x4x8x8xbf16>,
    %c0_86 = arith.constant 0 : index
    %c0_87 = arith.constant 0 : index
    %c0_88 = arith.constant 0 : index
    %c0_89 = arith.constant 0 : index
    %37 = vector.load %arg8[%c0_86, %c0_87, %c0_88, %c0_89] : memref<12x4x8x72xbf16, #tpu.memory_space<vmem>>, vector<12x4x8x72xbf16>
    %38 = vector.shape_cast %37 : vector<12x4x8x72xbf16> to vector<384x72xbf16>
    %c0_90 = arith.constant 0 : index
    %c0_91 = arith.constant 0 : index
    %39 = vector.load %arg2[%c0_90, %c0_91] : memref<72x8xbf16, #tpu.memory_space<vmem>>, vector<72x8xbf16>
    %cst_92 = arith.constant dense<0.000000e+00> : vector<384x8xf32>
    %40 = tpu.matmul %38, %39, %cst_92 {dimension_numbers = #tpu.dot_dimension_numbers<[1], [0], [0], [1], [0, 0, 1, 1], [], []>} : vector<384x72xbf16>, vector<72x8xbf16>, vector<384x8xf32> -> vector<384x8xf32>
    %c0_93 = arith.constant 0 : index
    %c0_94 = arith.constant 0 : index
    %41 = vector.load %arg3[%c0_93, %c0_94] : memref<1x8xf32, #tpu.memory_space<vmem>>, vector<1x8xf32>
    %42 = vector.broadcast %41 : vector<1x8xf32> to vector<384x8xf32>
    %43 = arith.addf %40, %42 : vector<384x8xf32>
    %cst_95 = arith.constant 0.000000e+00 : f32
    %44 = vector.broadcast %cst_95 : f32 to vector<384x8xf32>
    %45 = arith.maximumf %43, %44 : vector<384x8xf32>
    %46 = vector.shape_cast %45 : vector<384x8xf32> to vector<12x4x8x8xf32>
    %c0_96 = arith.constant 0 : index
    %c1_97 = arith.constant 1 : index
    %c1_98 = arith.constant 1 : index
    %c0_99 = arith.constant 0 : index
    %47 = vector.load %arg7[%c0_96, %c1_97, %c1_98, %c0_99] : memref<12x6x16x8xf32, #tpu.memory_space<vmem>>, vector<12x4x8x8xf32>
    tpu.vector_store %arg7[%c0_96, %c1_97, %c1_98, %c0_99], %46 {strides = array<i32>} : memref<12x6x16x8xf32, #tpu.memory_space<vmem>>, vector<12x4x8x8xf32>,
    %c0_100 = arith.constant 0 : index
    %c0_101 = arith.constant 0 : index
    %c0_102 = arith.constant 0 : index
    %c0_103 = arith.constant 0 : index
    %48 = vector.load %arg7[%c0_100, %c0_101, %c0_102, %c0_103] : memref<12x6x16x8xf32, #tpu.memory_space<vmem>>, vector<12x4x8x8xf32>
    %49 = arith.truncf %48 : vector<12x4x8x8xf32> to vector<12x4x8x8xbf16>
    %c0_104 = arith.constant 0 : index
    %c0_105 = arith.constant 0 : index
    %c0_106 = arith.constant 0 : index
    %c0_107 = arith.constant 0 : index
    %50 = vector.load %arg8[%c0_104, %c0_105, %c0_106, %c0_107] : memref<12x4x8x72xbf16, #tpu.memory_space<vmem>>, vector<12x4x8x8xbf16>
    tpu.vector_store %arg8[%c0_104, %c0_105, %c0_106, %c0_107], %49 {strides = array<i32>} : memref<12x4x8x72xbf16, #tpu.memory_space<vmem>>, vector<12x4x8x8xbf16>,
    %c0_108 = arith.constant 0 : index
    %c0_109 = arith.constant 0 : index
    %c1_110 = arith.constant 1 : index
    %c0_111 = arith.constant 0 : index
    %51 = vector.load %arg7[%c0_108, %c0_109, %c1_110, %c0_111] : memref<12x6x16x8xf32, #tpu.memory_space<vmem>>, vector<12x4x8x8xf32>
    %52 = arith.truncf %51 : vector<12x4x8x8xf32> to vector<12x4x8x8xbf16>
    %c0_112 = arith.constant 0 : index
    %c0_113 = arith.constant 0 : index
    %c0_114 = arith.constant 0 : index
    %c8_115 = arith.constant 8 : index
    %53 = vector.load %arg8[%c0_112, %c0_113, %c0_114, %c8_115] : memref<12x4x8x72xbf16, #tpu.memory_space<vmem>>, vector<12x4x8x8xbf16>
    tpu.vector_store %arg8[%c0_112, %c0_113, %c0_114, %c8_115], %52 {strides = array<i32>} : memref<12x4x8x72xbf16, #tpu.memory_space<vmem>>, vector<12x4x8x8xbf16>,
    %c0_116 = arith.constant 0 : index
    %c0_117 = arith.constant 0 : index
    %c2_118 = arith.constant 2 : index
    %c0_119 = arith.constant 0 : index
    %54 = vector.load %arg7[%c0_116, %c0_117, %c2_118, %c0_119] : memref<12x6x16x8xf32, #tpu.memory_space<vmem>>, vector<12x4x8x8xf32>
    %55 = arith.truncf %54 : vector<12x4x8x8xf32> to vector<12x4x8x8xbf16>
    %c0_120 = arith.constant 0 : index
    %c0_121 = arith.constant 0 : index
    %c0_122 = arith.constant 0 : index
    %c16_123 = arith.constant 16 : index
    %56 = vector.load %arg8[%c0_120, %c0_121, %c0_122, %c16_123] : memref<12x4x8x72xbf16, #tpu.memory_space<vmem>>, vector<12x4x8x8xbf16>
    tpu.vector_store %arg8[%c0_120, %c0_121, %c0_122, %c16_123], %55 {strides = array<i32>} : memref<12x4x8x72xbf16, #tpu.memory_space<vmem>>, vector<12x4x8x8xbf16>,
    %c0_124 = arith.constant 0 : index
    %c1_125 = arith.constant 1 : index
    %c0_126 = arith.constant 0 : index
    %c0_127 = arith.constant 0 : index
    %57 = vector.load %arg7[%c0_124, %c1_125, %c0_126, %c0_127] : memref<12x6x16x8xf32, #tpu.memory_space<vmem>>, vector<12x4x8x8xf32>
    %58 = arith.truncf %57 : vector<12x4x8x8xf32> to vector<12x4x8x8xbf16>
    %c0_128 = arith.constant 0 : index
    %c0_129 = arith.constant 0 : index
    %c0_130 = arith.constant 0 : index
    %c24_131 = arith.constant 24 : index
    %59 = vector.load %arg8[%c0_128, %c0_129, %c0_130, %c24_131] : memref<12x4x8x72xbf16, #tpu.memory_space<vmem>>, vector<12x4x8x8xbf16>
    tpu.vector_store %arg8[%c0_128, %c0_129, %c0_130, %c24_131], %58 {strides = array<i32>} : memref<12x4x8x72xbf16, #tpu.memory_space<vmem>>, vector<12x4x8x8xbf16>,
    %c0_132 = arith.constant 0 : index
    %c1_133 = arith.constant 1 : index
    %c1_134 = arith.constant 1 : index
    %c0_135 = arith.constant 0 : index
    %60 = vector.load %arg7[%c0_132, %c1_133, %c1_134, %c0_135] : memref<12x6x16x8xf32, #tpu.memory_space<vmem>>, vector<12x4x8x8xf32>
    %61 = arith.truncf %60 : vector<12x4x8x8xf32> to vector<12x4x8x8xbf16>
    %c0_136 = arith.constant 0 : index
    %c0_137 = arith.constant 0 : index
    %c0_138 = arith.constant 0 : index
    %c32_139 = arith.constant 32 : index
    %62 = vector.load %arg8[%c0_136, %c0_137, %c0_138, %c32_139] : memref<12x4x8x72xbf16, #tpu.memory_space<vmem>>, vector<12x4x8x8xbf16>
    tpu.vector_store %arg8[%c0_136, %c0_137, %c0_138, %c32_139], %61 {strides = array<i32>} : memref<12x4x8x72xbf16, #tpu.memory_space<vmem>>, vector<12x4x8x8xbf16>,
    %c0_140 = arith.constant 0 : index
    %c1_141 = arith.constant 1 : index
    %c2_142 = arith.constant 2 : index
    %c0_143 = arith.constant 0 : index
    %63 = vector.load %arg7[%c0_140, %c1_141, %c2_142, %c0_143] : memref<12x6x16x8xf32, #tpu.memory_space<vmem>>, vector<12x4x8x8xf32>
    %64 = arith.truncf %63 : vector<12x4x8x8xf32> to vector<12x4x8x8xbf16>
    %c0_144 = arith.constant 0 : index
    %c0_145 = arith.constant 0 : index
    %c0_146 = arith.constant 0 : index
    %c40_147 = arith.constant 40 : index
    %65 = vector.load %arg8[%c0_144, %c0_145, %c0_146, %c40_147] : memref<12x4x8x72xbf16, #tpu.memory_space<vmem>>, vector<12x4x8x8xbf16>
    tpu.vector_store %arg8[%c0_144, %c0_145, %c0_146, %c40_147], %64 {strides = array<i32>} : memref<12x4x8x72xbf16, #tpu.memory_space<vmem>>, vector<12x4x8x8xbf16>,
    %c0_148 = arith.constant 0 : index
    %c2_149 = arith.constant 2 : index
    %c0_150 = arith.constant 0 : index
    %c0_151 = arith.constant 0 : index
    %66 = vector.load %arg7[%c0_148, %c2_149, %c0_150, %c0_151] : memref<12x6x16x8xf32, #tpu.memory_space<vmem>>, vector<12x4x8x8xf32>
    %67 = arith.truncf %66 : vector<12x4x8x8xf32> to vector<12x4x8x8xbf16>
    %c0_152 = arith.constant 0 : index
    %c0_153 = arith.constant 0 : index
    %c0_154 = arith.constant 0 : index
    %c48_155 = arith.constant 48 : index
    %68 = vector.load %arg8[%c0_152, %c0_153, %c0_154, %c48_155] : memref<12x4x8x72xbf16, #tpu.memory_space<vmem>>, vector<12x4x8x8xbf16>
    tpu.vector_store %arg8[%c0_152, %c0_153, %c0_154, %c48_155], %67 {strides = array<i32>} : memref<12x4x8x72xbf16, #tpu.memory_space<vmem>>, vector<12x4x8x8xbf16>,
    %c0_156 = arith.constant 0 : index
    %c2_157 = arith.constant 2 : index
    %c1_158 = arith.constant 1 : index
    %c0_159 = arith.constant 0 : index
    %69 = vector.load %arg7[%c0_156, %c2_157, %c1_158, %c0_159] : memref<12x6x16x8xf32, #tpu.memory_space<vmem>>, vector<12x4x8x8xf32>
    %70 = arith.truncf %69 : vector<12x4x8x8xf32> to vector<12x4x8x8xbf16>
    %c0_160 = arith.constant 0 : index
    %c0_161 = arith.constant 0 : index
    %c0_162 = arith.constant 0 : index
    %c56_163 = arith.constant 56 : index
    %71 = vector.load %arg8[%c0_160, %c0_161, %c0_162, %c56_163] : memref<12x4x8x72xbf16, #tpu.memory_space<vmem>>, vector<12x4x8x8xbf16>
    tpu.vector_store %arg8[%c0_160, %c0_161, %c0_162, %c56_163], %70 {strides = array<i32>} : memref<12x4x8x72xbf16, #tpu.memory_space<vmem>>, vector<12x4x8x8xbf16>,
    %c0_164 = arith.constant 0 : index
    %c2_165 = arith.constant 2 : index
    %c2_166 = arith.constant 2 : index
    %c0_167 = arith.constant 0 : index
    %72 = vector.load %arg7[%c0_164, %c2_165, %c2_166, %c0_167] : memref<12x6x16x8xf32, #tpu.memory_space<vmem>>, vector<12x4x8x8xf32>
    %73 = arith.truncf %72 : vector<12x4x8x8xf32> to vector<12x4x8x8xbf16>
    %c0_168 = arith.constant 0 : index
    %c0_169 = arith.constant 0 : index
    %c0_170 = arith.constant 0 : index
    %c64_171 = arith.constant 64 : index
    %74 = vector.load %arg8[%c0_168, %c0_169, %c0_170, %c64_171] : memref<12x4x8x72xbf16, #tpu.memory_space<vmem>>, vector<12x4x8x8xbf16>
    tpu.vector_store %arg8[%c0_168, %c0_169, %c0_170, %c64_171], %73 {strides = array<i32>} : memref<12x4x8x72xbf16, #tpu.memory_space<vmem>>, vector<12x4x8x8xbf16>,
    %c0_172 = arith.constant 0 : index
    %c0_173 = arith.constant 0 : index
    %c0_174 = arith.constant 0 : index
    %c0_175 = arith.constant 0 : index
    %75 = vector.load %arg8[%c0_172, %c0_173, %c0_174, %c0_175] : memref<12x4x8x72xbf16, #tpu.memory_space<vmem>>, vector<12x4x8x72xbf16>
    %76 = vector.shape_cast %75 : vector<12x4x8x72xbf16> to vector<1x384x72xbf16>
    %c0_176 = arith.constant 0 : index
    %c0_177 = arith.constant 0 : index
    %77 = vector.load %arg4[%c0_176, %c0_177] : memref<1x72xf32, #tpu.memory_space<vmem>>, vector<1x72xf32>
    %78 = arith.extf %76 : vector<1x384x72xbf16> to vector<1x384x72xf32>
    %79 = vector.shape_cast %77 : vector<1x72xf32> to vector<1x1x72xf32>
    %80 = vector.broadcast %79 : vector<1x1x72xf32> to vector<1x384x72xf32>
    %81 = arith.mulf %78, %80 : vector<1x384x72xf32>
    %cst_178 = arith.constant dense<0.000000e+00> : vector<1x384xf32>
    %82 = vector.multi_reduction <add>, %81, %cst_178 [2] : vector<1x384x72xf32> to vector<1x384xf32>
    %c0_179 = arith.constant 0 : index
    %83 = memref.load %arg5[%c0_179] : memref<1xf32, #tpu.memory_space<smem>>
    %84 = vector.broadcast %83 : f32 to vector<1x384xf32>
    %85 = arith.addf %82, %84 : vector<1x384xf32>
    %86 = arith.negf %85 : vector<1x384xf32>
    %87 = math.exp %86 : vector<1x384xf32>
    %cst_180 = arith.constant 1.000000e+00 : f32
    %88 = vector.broadcast %cst_180 : f32 to vector<1x384xf32>
    %89 = arith.addf %88, %87 : vector<1x384xf32>
    %90 = arith.divf %88, %89 : vector<1x384xf32>
    %c0_181 = arith.constant 0 : index
    %c0_182 = arith.constant 0 : index
    %91 = vector.load %arg6[%c0_181, %c0_182] : memref<1x384xf32, #tpu.memory_space<vmem>>, vector<1x384xf32>
    tpu.vector_store %arg6[%c0_181, %c0_182], %90 {strides = array<i32>} : memref<1x384xf32, #tpu.memory_space<vmem>>, vector<1x384xf32>,
    return
  }
  func.func @transform_0(%arg0: i32) -> (i32, i32, i32, i32) {
    %c0_i32 = arith.constant 0 : i32
    %c0_i32_0 = arith.constant 0 : i32
    %c0_i32_1 = arith.constant 0 : i32
    %c0_i32_2 = arith.constant 0 : i32
    return %arg0, %c0_i32, %c0_i32_0, %c0_i32_1 : i32, i32, i32, i32
  }
  func.func @transform_1(%arg0: i32) -> (i32, i32) {
    %c0_i32 = arith.constant 0 : i32
    %c0_i32_0 = arith.constant 0 : i32
    %c0_i32_1 = arith.constant 0 : i32
    return %c0_i32, %c0_i32_0 : i32, i32
  }
  func.func @transform_2(%arg0: i32) -> (i32, i32) {
    %c0_i32 = arith.constant 0 : i32
    %c0_i32_0 = arith.constant 0 : i32
    %c0_i32_1 = arith.constant 0 : i32
    return %c0_i32, %c0_i32_0 : i32, i32
  }
  func.func @transform_3(%arg0: i32) -> (i32, i32) {
    %c0_i32 = arith.constant 0 : i32
    %c0_i32_0 = arith.constant 0 : i32
    %c0_i32_1 = arith.constant 0 : i32
    return %c0_i32, %c0_i32_0 : i32, i32
  }
  func.func @transform_4(%arg0: i32) -> i32 {
    %c0_i32 = arith.constant 0 : i32
    %c0_i32_0 = arith.constant 0 : i32
    return %c0_i32 : i32
  }
  func.func @transform_5(%arg0: i32) -> (i32, i32) {
    %c0_i32 = arith.constant 0 : i32
    %c0_i32_0 = arith.constant 0 : i32
    return %arg0, %c0_i32 : i32, i32
  }
}

</mosaic_0001>

<bundles_post_ra>
// kernel: tpu_custom_call.1
= control target key start
LH: loop header
LB: loop body
LE: loop exit
PB: predicated region body
PF: predicated region fallthrough
CT: control target
= control target key end

     0   :  { %vm23_vm0 = vcmask 64512   ;;  %v15274_v3 = vmov 0.0   ;;  %vm146_vm1 = vcmask 63488   ;;  %vm73_vm2 = vcmask 57344   ;;  %s15275_s16 = smov 8   ;;  %s19483_s0 = inlined_call_operand.vmem [shape: f32[12,4,8,8], index: 0, kind: input, shape index: {}]   ;;  %s19484_s1 = inlined_call_operand.vmem [shape: bf16[72,8], index: 1, kind: input, shape index: {}]   ;;  %s19485_s2 = inlined_call_operand.vmem [shape: f32[1,8], index: 2, kind: input, shape index: {}]   ;;  %s19486_s3 = inlined_call_operand.vmem [shape: f32[1,72], index: 3, kind: input, shape index: {}]   ;;  %s19487_s4 = inlined_call_operand.<no memory space> [shape: f32[1], index: 4, kind: input, shape index: {}]   ;;  %s19488_s5 = inlined_call_operand.hbm [shape: f32[1,384], index: 5, kind: output, shape index: {}]  }
   0x1   :  { %v220_v0 = vld [vmem:[%s19483_s0 + $0x8] sm:$0xff]  ;;  %v221_v1 = vld [vmem:[%s19483_s0 + $0x10] sm:$0xff]  ;;  %v219_v2 = vld [vmem:[%s19483_s0] sm:$0xff]  ;;  %24 = vst.msk [vmem:[#allocation2] sm:$0xff] %vm23_vm0, %v15274_v3  ;;  %vm412_vm3 = vcmask 60416  }
   0x2   :  { %269 = vst.msk [vmem:[#allocation2 + $0x21] sm:$0xff] %vm23_vm0, %v220_v0  ;;  %25 = vst.msk [vmem:[#allocation2 + $0x8] sm:$0xff] %vm23_vm0, %v15274_v3  ;;  %v223_v4 = vld [vmem:[%s19483_s0 + $0x20] sm:$0xff]  ;;  %v225_v5 = vld [vmem:[%s19483_s0 + $0x30] sm:$0xff] }
   0x3   :  { %26 = vst.msk [vmem:[#allocation2 + $0x60] sm:$0xff] %vm23_vm0, %v15274_v3  ;;  %27 = vst.msk [vmem:[#allocation2 + $0x68] sm:$0xff] %vm23_vm0, %v15274_v3  ;;  %v224_v6 = vld [vmem:[%s19483_s0 + $0x28] sm:$0xff]  ;;  %v15439_v7 = vld [vmem:[%s19483_s0 + $0x40] sm:$0xff] }
   0x4   :  { %28 = vst.msk [vmem:[#allocation2 + $0xc0] sm:$0xff] %vm23_vm0, %v15274_v3  ;;  %29 = vst.msk [vmem:[#allocation2 + $0xc8] sm:$0xff] %vm23_vm0, %v15274_v3  ;;  %v15444_v8 = vld [vmem:[%s19483_s0 + $0x50] sm:$0xff]  ;;  %v15449_v9 = vld [vmem:[%s19483_s0 + $0x48] sm:$0xff] }
   0x5   :  { %30 = vst.msk [vmem:[#allocation2 + $0x120] sm:$0xff] %vm23_vm0, %v15274_v3  ;;  %31 = vst.msk [vmem:[#allocation2 + $0x128] sm:$0xff] %vm23_vm0, %v15274_v3  ;;  %v231_v10 = vld [vmem:[%s19483_s0 + $0x60] sm:$0xff]  ;;  %v233_v11 = vld [vmem:[%s19483_s0 + $0x70] sm:$0xff] }
   0x6   :  { %32 = vst.msk [vmem:[#allocation2 + $0x180] sm:$0xff] %vm23_vm0, %v15274_v3  ;;  %33 = vst.msk [vmem:[#allocation2 + $0x188] sm:$0xff] %vm23_vm0, %v15274_v3  ;;  %v232_v12 = vld [vmem:[%s19483_s0 + $0x68] sm:$0xff]  ;;  %v235_v13 = vld [vmem:[%s19483_s0 + $0x80] sm:$0xff] }
   0x7   :  { %34 = vst.msk [vmem:[#allocation2 + $0x1e0] sm:$0xff] %vm23_vm0, %v15274_v3  ;;  %35 = vst.msk [vmem:[#allocation2 + $0x1e8] sm:$0xff] %vm23_vm0, %v15274_v3  ;;  %v237_v14 = vld [vmem:[%s19483_s0 + $0x90] sm:$0xff]  ;;  %v236_v15 = vld [vmem:[%s19483_s0 + $0x88] sm:$0xff] }
   0x8   :  { %36 = vst.msk [vmem:[#allocation2 + $0x240] sm:$0xff] %vm23_vm0, %v15274_v3  ;;  %37 = vst.msk [vmem:[#allocation2 + $0x248] sm:$0xff] %vm23_vm0, %v15274_v3  ;;  %v239_v16 = vld [vmem:[%s19483_s0 + $0xa0] sm:$0xff]  ;;  %v241_v17 = vld [vmem:[%s19483_s0 + $0xb0] sm:$0xff] }
   0x9   :  { %38 = vst.msk [vmem:[#allocation2 + $0x2a0] sm:$0xff] %vm23_vm0, %v15274_v3  ;;  %39 = vst.msk [vmem:[#allocation2 + $0x2a8] sm:$0xff] %vm23_vm0, %v15274_v3  ;;  %v240_v18 = vld [vmem:[%s19483_s0 + $0xa8] sm:$0xff]  ;;  %v243_v19 = vld [vmem:[%s19483_s0 + $0xc0] sm:$0xff] }
   0xa   :  { %40 = vst.msk [vmem:[#allocation2 + $0x300] sm:$0xff] %vm23_vm0, %v15274_v3  ;;  %41 = vst.msk [vmem:[#allocation2 + $0x308] sm:$0xff] %vm23_vm0, %v15274_v3  ;;  %v245_v20 = vld [vmem:[%s19483_s0 + $0xd0] sm:$0xff]  ;;  %v244_v21 = vld [vmem:[%s19483_s0 + $0xc8] sm:$0xff] }
   0xb   :  { %42 = vst.msk [vmem:[#allocation2 + $0x360] sm:$0xff] %vm23_vm0, %v15274_v3  ;;  %43 = vst.msk [vmem:[#allocation2 + $0x368] sm:$0xff] %vm23_vm0, %v15274_v3  ;;  %v247_v22 = vld [vmem:[%s19483_s0 + $0xe0] sm:$0xff]  ;;  %v249_v23 = vld [vmem:[%s19483_s0 + $0xf0] sm:$0xff] }
   0xc   :  { %44 = vst.msk [vmem:[#allocation2 + $0x3c0] sm:$0xff] %vm23_vm0, %v15274_v3  ;;  %45 = vst.msk [vmem:[#allocation2 + $0x3c8] sm:$0xff] %vm23_vm0, %v15274_v3  ;;  %v248_v24 = vld [vmem:[%s19483_s0 + $0xe8] sm:$0xff]  ;;  %v251_v39 = vld [vmem:[%s19483_s0 + $0x100] sm:$0xff] }
   0xd   :  { %46 = vst.msk [vmem:[#allocation2 + $0x420] sm:$0xff] %vm23_vm0, %v15274_v3  ;;  %47 = vst.msk [vmem:[#allocation2 + $0x428] sm:$0xff] %vm23_vm0, %v15274_v3  ;;  %v463_v25 = vld [vmem:[#allocation2 + $0x21] sm:$0xff]  ;;  %v253_v43 = vld [vmem:[%s19483_s0 + $0x110] sm:$0xff] }
   0xe   :  { %49 = vst.msk [vmem:[#allocation2 + $0x50] sm:$0xff] %vm23_vm0, %v15274_v3  ;;  %50 = vst.msk [vmem:[#allocation2 + $0x58] sm:$0xff] %vm23_vm0, %v15274_v3  ;;  %v461_v26 = vld [vmem:[#allocation2 + $0x1] sm:$0xff]  ;;  %v14033_v28 = vpack.c.bf16 %v463_v25, %v463_v25  ;;  %v257_v47 = vld [vmem:[%s19483_s0 + $0x130] sm:$0xff] }
   0xf   :  { %51 = vst.msk [vmem:[#allocation2 + $0xb0] sm:$0xff] %vm23_vm0, %v15274_v3  ;;  %52 = vst.msk [vmem:[#allocation2 + $0xb8] sm:$0xff] %vm23_vm0, %v15274_v3  ;;  %v14031_v29 = vpack.c.bf16 %v461_v26, %v461_v26  ;;  %v465_v34 = vld [vmem:[#allocation2 + $0x61] sm:$0xff]  ;;  %v261_v50 = vld [vmem:[%s19483_s0 + $0x150] sm:$0xff] }
  0x10   :  { %53 = vst.msk [vmem:[#allocation2 + $0x110] sm:$0xff] %vm23_vm0, %v15274_v3  ;;  %54 = vst.msk [vmem:[#allocation2 + $0x118] sm:$0xff] %vm23_vm0, %v15274_v3  ;;  %705 = vrot.lane.b32.xlu1 %v14033_v28, %s15275_s16  ;;  %v14035_v36 = vpack.c.bf16 %v465_v34, %v465_v34  ;;  %v252_v44 = vld [vmem:[%s19483_s0 + $0x108] sm:$0xff]  ;;  %v255_v46 = vld [vmem:[%s19483_s0 + $0x120] sm:$0xff] }
  0x11   :  { %55 = vst.msk [vmem:[#allocation2 + $0x170] sm:$0xff] %vm23_vm0, %v15274_v3  ;;  %56 = vst.msk [vmem:[#allocation2 + $0x178] sm:$0xff] %vm23_vm0, %v15274_v3  ;;  %701 = vrot.lane.b32.xlu0 %v14031_v29, %s15275_s16  ;;  %v469_v45 = vld [vmem:[#allocation2 + $0xc1] sm:$0xff]  ;;  %v265_v55 = vld [vmem:[%s19483_s0 + $0x170] sm:$0xff] }
  0x12   :  { %57 = vst.msk [vmem:[#allocation2 + $0x1d0] sm:$0xff] %vm23_vm0, %v15274_v3  ;;  %58 = vst.msk [vmem:[#allocation2 + $0x1d8] sm:$0xff] %vm23_vm0, %v15274_v3  ;;  %v256_v48 = vld [vmem:[%s19483_s0 + $0x128] sm:$0xff]  ;;  %v259_v49 = vld [vmem:[%s19483_s0 + $0x140] sm:$0xff]  ;;  %v14039_v54 = vpack.c.bf16 %v469_v45, %v469_v45 }
  0x13   :  { %59 = vst.msk [vmem:[#allocation2 + $0x230] sm:$0xff] %vm23_vm0, %v15274_v3  ;;  %60 = vst.msk [vmem:[#allocation2 + $0x238] sm:$0xff] %vm23_vm0, %v15274_v3  ;;  %v260_v51 = vld [vmem:[%s19483_s0 + $0x148] sm:$0xff]  ;;  %v263_v52 = vld [vmem:[%s19483_s0 + $0x160] sm:$0xff] }
  0x14   :  { %61 = vst.msk [vmem:[#allocation2 + $0x290] sm:$0xff] %vm23_vm0, %v15274_v3  ;;  %62 = vst.msk [vmem:[#allocation2 + $0x298] sm:$0xff] %vm23_vm0, %v15274_v3  ;;  %v264_v56 = vld [vmem:[%s19483_s0 + $0x168] sm:$0xff] }
  0x15   :  { %63 = vst.msk [vmem:[#allocation2 + $0x2f0] sm:$0xff] %vm23_vm0, %v15274_v3  ;;  %64 = vst.msk [vmem:[#allocation2 + $0x2f8] sm:$0xff] %vm23_vm0, %v15274_v3  ;;  %v473_v62 = vld [vmem:[#allocation2 + $0x121] sm:$0xff] }
  0x16   :  { %65 = vst.msk [vmem:[#allocation2 + $0x350] sm:$0xff] %vm23_vm0, %v15274_v3  ;;  %66 = vst.msk [vmem:[#allocation2 + $0x358] sm:$0xff] %vm23_vm0, %v15274_v3 }
  0x17   :  { %67 = vst.msk [vmem:[#allocation2 + $0x3b0] sm:$0xff] %vm23_vm0, %v15274_v3  ;;  %68 = vst.msk [vmem:[#allocation2 + $0x3b8] sm:$0xff] %vm23_vm0, %v15274_v3 }
  0x18   :  { %69 = vst.msk [vmem:[#allocation2 + $0x410] sm:$0xff] %vm23_vm0, %v15274_v3  ;;  %70 = vst.msk [vmem:[#allocation2 + $0x418] sm:$0xff] %vm23_vm0, %v15274_v3 }
  0x19   :  { %71 = vst.msk [vmem:[#allocation2 + $0x470] sm:$0xff] %vm23_vm0, %v15274_v3  ;;  %72 = vst.msk [vmem:[#allocation2 + $0x478] sm:$0xff] %vm23_vm0, %v15274_v3 }
  0x1a   :  { %270 = vst.msk [vmem:[#allocation2 + $0x31] sm:$0xff] %vm23_vm0, %v221_v1  ;;  %268 = vst.msk [vmem:[#allocation2 + $0x11] sm:$0xff] %vm23_vm0, %v219_v2  ;;  %v14043_v2 = vpack.c.bf16 %v473_v62, %v473_v62 }
  0x1b   :  { %272 = vst.msk [vmem:[#allocation2 + $0x71] sm:$0xff] %vm23_vm0, %v223_v4  ;;  %274 = vst.msk [vmem:[#allocation2 + $0x91] sm:$0xff] %vm23_vm0, %v225_v5 }
  0x1c   :  { %273 = vst.msk [vmem:[#allocation2 + $0x81] sm:$0xff] %vm23_vm0, %v224_v6  ;;  %276 = vst.msk [vmem:[#allocation2 + $0xd1] sm:$0xff] %vm23_vm0, %v15439_v7 }
  0x1d   :  { %148 = vst.msk [vmem:[#allocation2 + $0x19] sm:$0x7f] %vm146_vm1, %v15274_v3  ;;  %147 = vst.msk [vmem:[#allocation2 + $0x9] sm:$0x7f] %vm146_vm1, %v15274_v3 }
  0x1e   :  { %149 = vst.msk [vmem:[#allocation2 + $0x29] sm:$0x7f] %vm146_vm1, %v15274_v3  ;;  %150 = vst.msk [vmem:[#allocation2 + $0x39] sm:$0x7f] %vm146_vm1, %v15274_v3 }
  0x1f   :  { %151 = vst.msk [vmem:[#allocation2 + $0x49] sm:$0x7f] %vm146_vm1, %v15274_v3  ;;  %152 = vst.msk [vmem:[#allocation2 + $0x59] sm:$0x7f] %vm146_vm1, %v15274_v3 }
  0x20   :  { %153 = vst.msk [vmem:[#allocation2 + $0x69] sm:$0x7f] %vm146_vm1, %v15274_v3  ;;  %154 = vst.msk [vmem:[#allocation2 + $0x79] sm:$0x7f] %vm146_vm1, %v15274_v3 }
  0x21   :  { %155 = vst.msk [vmem:[#allocation2 + $0x89] sm:$0x7f] %vm146_vm1, %v15274_v3  ;;  %156 = vst.msk [vmem:[#allocation2 + $0x99] sm:$0x7f] %vm146_vm1, %v15274_v3  ;;  %v464_v27 = vld [vmem:[#allocation2 + $0x31] sm:$0xff] }
  0x22   :  { %157 = vst.msk [vmem:[#allocation2 + $0xa9] sm:$0x7f] %vm146_vm1, %v15274_v3  ;;  %158 = vst.msk [vmem:[#allocation2 + $0xb9] sm:$0x7f] %vm146_vm1, %v15274_v3  ;;  %v462_v30 = vld [vmem:[#allocation2 + $0x11] sm:$0xff]  ;;  %v14034_v31 = vpack.c.bf16 %v464_v27, %v464_v27 }
  0x23   :  { %159 = vst.msk [vmem:[#allocation2 + $0xc9] sm:$0x7f] %vm146_vm1, %v15274_v3  ;;  %160 = vst.msk [vmem:[#allocation2 + $0xd9] sm:$0x7f] %vm146_vm1, %v15274_v3  ;;  %v14032_v32 = vpack.c.bf16 %v462_v30, %v462_v30  ;;  %v466_v33 = vld [vmem:[#allocation2 + $0x71] sm:$0xff]  ;;  %v467_v38 = vld [vmem:[#allocation2 + $0x81] sm:$0xff] }
  0x24   :  { %161 = vst.msk [vmem:[#allocation2 + $0xe9] sm:$0x7f] %vm146_vm1, %v15274_v3  ;;  %162 = vst.msk [vmem:[#allocation2 + $0xf9] sm:$0x7f] %vm146_vm1, %v15274_v3  ;;  %707 = vrot.lane.b32.xlu1 %v14034_v31, %s15275_s16  ;;  %v14036_v35 = vpack.c.bf16 %v466_v33, %v466_v33  ;;  %v468_v37 = vld [vmem:[#allocation2 + $0x91] sm:$0xff]  ;;  %v14037_v41 = vpack.c.bf16 %v467_v38, %v467_v38 }
  0x25   :  { %163 = vst.msk [vmem:[#allocation2 + $0x109] sm:$0x7f] %vm146_vm1, %v15274_v3  ;;  %164 = vst.msk [vmem:[#allocation2 + $0x119] sm:$0x7f] %vm146_vm1, %v15274_v3  ;;  %703 = vrot.lane.b32.xlu0 %v14032_v32, %s15275_s16  ;;  %v14038_v40 = vpack.c.bf16 %v468_v37, %v468_v37  ;;  %v470_v42 = vld [vmem:[#allocation2 + $0xd1] sm:$0xff] }
  0x26   :  { %165 = vst.msk [vmem:[#allocation2 + $0x129] sm:$0x7f] %vm146_vm1, %v15274_v3  ;;  %166 = vst.msk [vmem:[#allocation2 + $0x139] sm:$0x7f] %vm146_vm1, %v15274_v3  ;;  %v14040_v53 = vpack.c.bf16 %v470_v42, %v470_v42 }
  0x27   :  { %167 = vst.msk [vmem:[#allocation2 + $0x149] sm:$0x7f] %vm146_vm1, %v15274_v3  ;;  %168 = vst.msk [vmem:[#allocation2 + $0x159] sm:$0x7f] %vm146_vm1, %v15274_v3 }
  0x28   :  { %169 = vst.msk [vmem:[#allocation2 + $0x169] sm:$0x7f] %vm146_vm1, %v15274_v3  ;;  %170 = vst.msk [vmem:[#allocation2 + $0x179] sm:$0x7f] %vm146_vm1, %v15274_v3  ;;  %711 = vrot.lane.b32.xlu1 %v14036_v35, %s15275_s16 }
  0x29   :  { %171 = vst.msk [vmem:[#allocation2 + $0x189] sm:$0x7f] %vm146_vm1, %v15274_v3  ;;  %172 = vst.msk [vmem:[#allocation2 + $0x199] sm:$0x7f] %vm146_vm1, %v15274_v3  ;;  %709 = vrot.lane.b32.xlu0 %v14035_v36, %s15275_s16 }
  0x2a   :  { %173 = vst.msk [vmem:[#allocation2 + $0x1a9] sm:$0x7f] %vm146_vm1, %v15274_v3  ;;  %174 = vst.msk [vmem:[#allocation2 + $0x1b9] sm:$0x7f] %vm146_vm1, %v15274_v3 }
  0x2b   :  { %175 = vst.msk [vmem:[#allocation2 + $0x1c9] sm:$0x7f] %vm146_vm1, %v15274_v3  ;;  %176 = vst.msk [vmem:[#allocation2 + $0x1d9] sm:$0x7f] %vm146_vm1, %v15274_v3 }
  0x2c   :  { %177 = vst.msk [vmem:[#allocation2 + $0x1e9] sm:$0x7f] %vm146_vm1, %v15274_v3  ;;  %178 = vst.msk [vmem:[#allocation2 + $0x1f9] sm:$0x7f] %vm146_vm1, %v15274_v3  ;;  %715 = vrot.lane.b32.xlu1 %v14038_v40, %s15275_s16 }
  0x2d   :  { %179 = vst.msk [vmem:[#allocation2 + $0x209] sm:$0x7f] %vm146_vm1, %v15274_v3  ;;  %180 = vst.msk [vmem:[#allocation2 + $0x219] sm:$0x7f] %vm146_vm1, %v15274_v3  ;;  %713 = vrot.lane.b32.xlu0 %v14037_v41, %s15275_s16 }
  0x2e   :  { %181 = vst.msk [vmem:[#allocation2 + $0x229] sm:$0x7f] %vm146_vm1, %v15274_v3  ;;  %182 = vst.msk [vmem:[#allocation2 + $0x239] sm:$0x7f] %vm146_vm1, %v15274_v3 }
  0x2f   :  { %183 = vst.msk [vmem:[#allocation2 + $0x249] sm:$0x7f] %vm146_vm1, %v15274_v3  ;;  %184 = vst.msk [vmem:[#allocation2 + $0x259] sm:$0x7f] %vm146_vm1, %v15274_v3 }
  0x30   :  { %185 = vst.msk [vmem:[#allocation2 + $0x269] sm:$0x7f] %vm146_vm1, %v15274_v3  ;;  %186 = vst.msk [vmem:[#allocation2 + $0x279] sm:$0x7f] %vm146_vm1, %v15274_v3  ;;  %719 = vrot.lane.b32.xlu1 %v14040_v53, %s15275_s16 }
  0x31   :  { %187 = vst.msk [vmem:[#allocation2 + $0x289] sm:$0x7f] %vm146_vm1, %v15274_v3  ;;  %188 = vst.msk [vmem:[#allocation2 + $0x299] sm:$0x7f] %vm146_vm1, %v15274_v3  ;;  %717 = vrot.lane.b32.xlu0 %v14039_v54, %s15275_s16 }
  0x32   :  { %189 = vst.msk [vmem:[#allocation2 + $0x2a9] sm:$0x7f] %vm146_vm1, %v15274_v3  ;;  %190 = vst.msk [vmem:[#allocation2 + $0x2b9] sm:$0x7f] %vm146_vm1, %v15274_v3 }
  0x33   :  { %191 = vst.msk [vmem:[#allocation2 + $0x2c9] sm:$0x7f] %vm146_vm1, %v15274_v3  ;;  %192 = vst.msk [vmem:[#allocation2 + $0x2d9] sm:$0x7f] %vm146_vm1, %v15274_v3 }
  0x34   :  { %193 = vst.msk [vmem:[#allocation2 + $0x2e9] sm:$0x7f] %vm146_vm1, %v15274_v3  ;;  %194 = vst.msk [vmem:[#allocation2 + $0x2f9] sm:$0x7f] %vm146_vm1, %v15274_v3 }
  0x35   :  { %195 = vst.msk [vmem:[#allocation2 + $0x309] sm:$0x7f] %vm146_vm1, %v15274_v3  ;;  %196 = vst.msk [vmem:[#allocation2 + $0x319] sm:$0x7f] %vm146_vm1, %v15274_v3 }
  0x36   :  { %197 = vst.msk [vmem:[#allocation2 + $0x329] sm:$0x7f] %vm146_vm1, %v15274_v3  ;;  %198 = vst.msk [vmem:[#allocation2 + $0x339] sm:$0x7f] %vm146_vm1, %v15274_v3 }
  0x37   :  { %199 = vst.msk [vmem:[#allocation2 + $0x349] sm:$0x7f] %vm146_vm1, %v15274_v3  ;;  %200 = vst.msk [vmem:[#allocation2 + $0x359] sm:$0x7f] %vm146_vm1, %v15274_v3 }
  0x38   :  { %201 = vst.msk [vmem:[#allocation2 + $0x369] sm:$0x7f] %vm146_vm1, %v15274_v3  ;;  %202 = vst.msk [vmem:[#allocation2 + $0x379] sm:$0x7f] %vm146_vm1, %v15274_v3 }
  0x39   :  { %203 = vst.msk [vmem:[#allocation2 + $0x389] sm:$0x7f] %vm146_vm1, %v15274_v3  ;;  %204 = vst.msk [vmem:[#allocation2 + $0x399] sm:$0x7f] %vm146_vm1, %v15274_v3 }
  0x3a   :  { %205 = vst.msk [vmem:[#allocation2 + $0x3a9] sm:$0x7f] %vm146_vm1, %v15274_v3  ;;  %206 = vst.msk [vmem:[#allocation2 + $0x3b9] sm:$0x7f] %vm146_vm1, %v15274_v3 }
  0x3b   :  { %207 = vst.msk [vmem:[#allocation2 + $0x3c9] sm:$0x7f] %vm146_vm1, %v15274_v3  ;;  %208 = vst.msk [vmem:[#allocation2 + $0x3d9] sm:$0x7f] %vm146_vm1, %v15274_v3 }
  0x3c   :  { %209 = vst.msk [vmem:[#allocation2 + $0x3e9] sm:$0x7f] %vm146_vm1, %v15274_v3  ;;  %210 = vst.msk [vmem:[#allocation2 + $0x3f9] sm:$0x7f] %vm146_vm1, %v15274_v3 }
  0x3d   :  { %211 = vst.msk [vmem:[#allocation2 + $0x409] sm:$0x7f] %vm146_vm1, %v15274_v3  ;;  %212 = vst.msk [vmem:[#allocation2 + $0x419] sm:$0x7f] %vm146_vm1, %v15274_v3 }
  0x3e   :  { %213 = vst.msk [vmem:[#allocation2 + $0x429] sm:$0x7f] %vm146_vm1, %v15274_v3  ;;  %214 = vst.msk [vmem:[#allocation2 + $0x439] sm:$0x7f] %vm146_vm1, %v15274_v3 }
  0x3f   :  { %215 = vst.msk [vmem:[#allocation2 + $0x449] sm:$0x7f] %vm146_vm1, %v15274_v3  ;;  %216 = vst.msk [vmem:[#allocation2 + $0x459] sm:$0x7f] %vm146_vm1, %v15274_v3 }
  0x40   :  { %217 = vst.msk [vmem:[#allocation2 + $0x469] sm:$0x7f] %vm146_vm1, %v15274_v3  ;;  %218 = vst.msk [vmem:[#allocation2 + $0x479] sm:$0x7f] %vm146_vm1, %v15274_v3 }
  0x41   :  { %76 = vst.msk [vmem:[#allocation2 + $0x20] sm:$0x1] %vm73_vm2, %v15274_v3  ;;  %74 = vst.msk [vmem:[#allocation2] sm:$0x1] %vm73_vm2, %v15274_v3 }
  0x42   :  { %75 = vst.msk [vmem:[#allocation2 + $0x10] sm:$0x1] %vm73_vm2, %v15274_v3  ;;  %77 = vst.msk [vmem:[#allocation2 + $0x30] sm:$0x1] %vm73_vm2, %v15274_v3 }
  0x43   :  { %78 = vst.msk [vmem:[#allocation2 + $0x40] sm:$0x1] %vm73_vm2, %v15274_v3  ;;  %79 = vst.msk [vmem:[#allocation2 + $0x50] sm:$0x1] %vm73_vm2, %v15274_v3 }
  0x44   :  { %80 = vst.msk [vmem:[#allocation2 + $0x60] sm:$0x1] %vm73_vm2, %v15274_v3  ;;  %81 = vst.msk [vmem:[#allocation2 + $0x70] sm:$0x1] %vm73_vm2, %v15274_v3 }
  0x45   :  { %82 = vst.msk [vmem:[#allocation2 + $0x80] sm:$0x1] %vm73_vm2, %v15274_v3  ;;  %83 = vst.msk [vmem:[#allocation2 + $0x90] sm:$0x1] %vm73_vm2, %v15274_v3 }
  0x46   :  { %84 = vst.msk [vmem:[#allocation2 + $0xa0] sm:$0x1] %vm73_vm2, %v15274_v3  ;;  %85 = vst.msk [vmem:[#allocation2 + $0xb0] sm:$0x1] %vm73_vm2, %v15274_v3 }
  0x47   :  { %86 = vst.msk [vmem:[#allocation2 + $0xc0] sm:$0x1] %vm73_vm2, %v15274_v3  ;;  %87 = vst.msk [vmem:[#allocation2 + $0xd0] sm:$0x1] %vm73_vm2, %v15274_v3 }
  0x48   :  { %88 = vst.msk [vmem:[#allocation2 + $0xe0] sm:$0x1] %vm73_vm2, %v15274_v3  ;;  %89 = vst.msk [vmem:[#allocation2 + $0xf0] sm:$0x1] %vm73_vm2, %v15274_v3  ;;  %v318_v63 = vld [vmem:[#allocation2 + $0x20] sm:$0xff] }
  0x49   :  { %90 = vst.msk [vmem:[#allocation2 + $0x100] sm:$0x1] %vm73_vm2, %v15274_v3  ;;  %91 = vst.msk [vmem:[#allocation2 + $0x110] sm:$0x1] %vm73_vm2, %v15274_v3  ;;  %v15863_v0 = vpack.c.bf16 %v318_v63, %v318_v63  ;;  %v316_v4 = vld [vmem:[#allocation2] sm:$0xff]  ;;  %v319_v7 = vld [vmem:[#allocation2 + $0x30] sm:$0xff] }
  0x4a   :  { %92 = vst.msk [vmem:[#allocation2 + $0x120] sm:$0x1] %vm73_vm2, %v15274_v3  ;;  %93 = vst.msk [vmem:[#allocation2 + $0x130] sm:$0x1] %vm73_vm2, %v15274_v3  ;;  %v364_v6 = vpack.c.bf16 %v316_v4, %v316_v4 }
  0x4b   :  { %94 = vst.msk [vmem:[#allocation2 + $0x140] sm:$0x1] %vm73_vm2, %v15274_v3  ;;  %95 = vst.msk [vmem:[#allocation2 + $0x150] sm:$0x1] %vm73_vm2, %v15274_v3 }
  0x4c   :  { %96 = vst.msk [vmem:[#allocation2 + $0x160] sm:$0x1] %vm73_vm2, %v15274_v3  ;;  %97 = vst.msk [vmem:[#allocation2 + $0x170] sm:$0x1] %vm73_vm2, %v15274_v3 }
  0x4d   :  { %98 = vst.msk [vmem:[#allocation2 + $0x180] sm:$0x1] %vm73_vm2, %v15274_v3  ;;  %99 = vst.msk [vmem:[#allocation2 + $0x190] sm:$0x1] %vm73_vm2, %v15274_v3 }
  0x4e   :  { %100 = vst.msk [vmem:[#allocation2 + $0x1a0] sm:$0x1] %vm73_vm2, %v15274_v3  ;;  %101 = vst.msk [vmem:[#allocation2 + $0x1b0] sm:$0x1] %vm73_vm2, %v15274_v3  ;;  %v324_v25 = vld [vmem:[#allocation2 + $0xc0] sm:$0xff] }
  0x4f   :  { %102 = vst.msk [vmem:[#allocation2 + $0x1c0] sm:$0x1] %vm73_vm2, %v15274_v3  ;;  %103 = vst.msk [vmem:[#allocation2 + $0x1d0] sm:$0x1] %vm73_vm2, %v15274_v3  ;;  %v372_v27 = vpack.c.bf16 %v324_v25, %v324_v25  ;;  %v485_v25 = vld [vmem:[#allocation2 + $0x241] sm:$0xff] }
  0x50   :  { %104 = vst.msk [vmem:[#allocation2 + $0x1e0] sm:$0x1] %vm73_vm2, %v15274_v3  ;;  %105 = vst.msk [vmem:[#allocation2 + $0x1f0] sm:$0x1] %vm73_vm2, %v15274_v3 }
  0x51   :  { %106 = vst.msk [vmem:[#allocation2 + $0x200] sm:$0x1] %vm73_vm2, %v15274_v3  ;;  %107 = vst.msk [vmem:[#allocation2 + $0x210] sm:$0x1] %vm73_vm2, %v15274_v3  ;;  %v328_v35 = vld [vmem:[#allocation2 + $0x120] sm:$0xff] }
  0x52   :  { %108 = vst.msk [vmem:[#allocation2 + $0x220] sm:$0x1] %vm73_vm2, %v15274_v3  ;;  %109 = vst.msk [vmem:[#allocation2 + $0x230] sm:$0x1] %vm73_vm2, %v15274_v3  ;;  %v376_v38 = vpack.c.bf16 %v328_v35, %v328_v35 }
  0x53   :  { %110 = vst.msk [vmem:[#allocation2 + $0x240] sm:$0x1] %vm73_vm2, %v15274_v3  ;;  %111 = vst.msk [vmem:[#allocation2 + $0x250] sm:$0x1] %vm73_vm2, %v15274_v3 }
  0x54   :  { %112 = vst.msk [vmem:[#allocation2 + $0x260] sm:$0x1] %vm73_vm2, %v15274_v3  ;;  %113 = vst.msk [vmem:[#allocation2 + $0x270] sm:$0x1] %vm73_vm2, %v15274_v3  ;;  %v332_v45 = vld [vmem:[#allocation2 + $0x180] sm:$0xff] }
  0x55   :  { %114 = vst.msk [vmem:[#allocation2 + $0x280] sm:$0x1] %vm73_vm2, %v15274_v3  ;;  %115 = vst.msk [vmem:[#allocation2 + $0x290] sm:$0x1] %vm73_vm2, %v15274_v3 }
  0x56   :  { %116 = vst.msk [vmem:[#allocation2 + $0x2a0] sm:$0x1] %vm73_vm2, %v15274_v3  ;;  %117 = vst.msk [vmem:[#allocation2 + $0x2b0] sm:$0x1] %vm73_vm2, %v15274_v3 }
  0x57   :  { %118 = vst.msk [vmem:[#allocation2 + $0x2c0] sm:$0x1] %vm73_vm2, %v15274_v3  ;;  %119 = vst.msk [vmem:[#allocation2 + $0x2d0] sm:$0x1] %vm73_vm2, %v15274_v3 }
  0x58   :  { %120 = vst.msk [vmem:[#allocation2 + $0x2e0] sm:$0x1] %vm73_vm2, %v15274_v3  ;;  %121 = vst.msk [vmem:[#allocation2 + $0x2f0] sm:$0x1] %vm73_vm2, %v15274_v3 }
  0x59   :  { %122 = vst.msk [vmem:[#allocation2 + $0x300] sm:$0x1] %vm73_vm2, %v15274_v3  ;;  %123 = vst.msk [vmem:[#allocation2 + $0x310] sm:$0x1] %vm73_vm2, %v15274_v3 }
  0x5a   :  { %124 = vst.msk [vmem:[#allocation2 + $0x320] sm:$0x1] %vm73_vm2, %v15274_v3  ;;  %125 = vst.msk [vmem:[#allocation2 + $0x330] sm:$0x1] %vm73_vm2, %v15274_v3  ;;  %v340_v4 = vld [vmem:[#allocation2 + $0x240] sm:$0xff] }
  0x5b   :  { %126 = vst.msk [vmem:[#allocation2 + $0x340] sm:$0x1] %vm73_vm2, %v15274_v3  ;;  %127 = vst.msk [vmem:[#allocation2 + $0x350] sm:$0x1] %vm73_vm2, %v15274_v3 }
  0x5c   :  { %128 = vst.msk [vmem:[#allocation2 + $0x360] sm:$0x1] %vm73_vm2, %v15274_v3  ;;  %129 = vst.msk [vmem:[#allocation2 + $0x370] sm:$0x1] %vm73_vm2, %v15274_v3 }
  0x5d   :  { %130 = vst.msk [vmem:[#allocation2 + $0x380] sm:$0x1] %vm73_vm2, %v15274_v3  ;;  %131 = vst.msk [vmem:[#allocation2 + $0x390] sm:$0x1] %vm73_vm2, %v15274_v3 }
  0x5e   :  { %132 = vst.msk [vmem:[#allocation2 + $0x3a0] sm:$0x1] %vm73_vm2, %v15274_v3  ;;  %133 = vst.msk [vmem:[#allocation2 + $0x3b0] sm:$0x1] %vm73_vm2, %v15274_v3 }
  0x5f   :  { %134 = vst.msk [vmem:[#allocation2 + $0x3c0] sm:$0x1] %vm73_vm2, %v15274_v3  ;;  %135 = vst.msk [vmem:[#allocation2 + $0x3d0] sm:$0x1] %vm73_vm2, %v15274_v3 }
  0x60   :  { %136 = vst.msk [vmem:[#allocation2 + $0x3e0] sm:$0x1] %vm73_vm2, %v15274_v3  ;;  %137 = vst.msk [vmem:[#allocation2 + $0x3f0] sm:$0x1] %vm73_vm2, %v15274_v3 }
  0x61   :  { %138 = vst.msk [vmem:[#allocation2 + $0x400] sm:$0x1] %vm73_vm2, %v15274_v3  ;;  %139 = vst.msk [vmem:[#allocation2 + $0x410] sm:$0x1] %vm73_vm2, %v15274_v3 }
  0x62   :  { %140 = vst.msk [vmem:[#allocation2 + $0x420] sm:$0x1] %vm73_vm2, %v15274_v3  ;;  %141 = vst.msk [vmem:[#allocation2 + $0x430] sm:$0x1] %vm73_vm2, %v15274_v3 }
  0x63   :  { %142 = vst.msk [vmem:[#allocation2 + $0x440] sm:$0x1] %vm73_vm2, %v15274_v3  ;;  %143 = vst.msk [vmem:[#allocation2 + $0x450] sm:$0x1] %vm73_vm2, %v15274_v3 }
  0x64   :  { %144 = vst.msk [vmem:[#allocation2 + $0x460] sm:$0x1] %vm73_vm2, %v15274_v3  ;;  %145 = vst.msk [vmem:[#allocation2 + $0x470] sm:$0x1] %vm73_vm2, %v15274_v3 }
  0x65   :  { %278 = vst.msk [vmem:[#allocation2 + $0xf1] sm:$0xff] %vm23_vm0, %v15444_v8  ;;  %277 = vst.msk [vmem:[#allocation2 + $0xe1] sm:$0xff] %vm23_vm0, %v15449_v9  ;;  %v15869_v8 = vpack.c.bf16 %v319_v7, %v319_v7  ;;  %v317_v9 = vld [vmem:[#allocation2 + $0x10] sm:$0xff]  ;;  %v388_v7 = vpack.c.bf16 %v340_v4, %v340_v4 }
  0x66   :  { %280 = vst.msk [vmem:[#allocation2 + $0x131] sm:$0xff] %vm23_vm0, %v231_v10  ;;  %282 = vst.msk [vmem:[#allocation2 + $0x151] sm:$0xff] %vm23_vm0, %v233_v11  ;;  %v15872_v11 = vpack.c.bf16 %v317_v9, %v317_v9 }
  0x67   :  { %281 = vst.msk [vmem:[#allocation2 + $0x141] sm:$0xff] %vm23_vm0, %v232_v12  ;;  %284 = vst.msk [vmem:[#allocation2 + $0x191] sm:$0xff] %vm23_vm0, %v235_v13  ;;  %v321_v12 = vld [vmem:[#allocation2 + $0x70] sm:$0xff]  ;;  %v320_v13 = vld [vmem:[#allocation2 + $0x60] sm:$0xff] }
  0x68   :  { %286 = vst.msk [vmem:[#allocation2 + $0x1b1] sm:$0xff] %vm23_vm0, %v237_v14  ;;  %285 = vst.msk [vmem:[#allocation2 + $0x1a1] sm:$0xff] %vm23_vm0, %v236_v15 }
  0x69   :  { %288 = vst.msk [vmem:[#allocation2 + $0x1f1] sm:$0xff] %vm23_vm0, %v239_v16  ;;  %290 = vst.msk [vmem:[#allocation2 + $0x211] sm:$0xff] %vm23_vm0, %v241_v17  ;;  %v15878_v16 = vpack.c.bf16 %v321_v12, %v321_v12  ;;  %v368_v17 = vpack.c.bf16 %v320_v13, %v320_v13 }
  0x6a   :  { %289 = vst.msk [vmem:[#allocation2 + $0x201] sm:$0xff] %vm23_vm0, %v240_v18  ;;  %292 = vst.msk [vmem:[#allocation2 + $0x251] sm:$0xff] %vm23_vm0, %v243_v19  ;;  %v323_v18 = vld [vmem:[#allocation2 + $0x90] sm:$0xff]  ;;  %v322_v19 = vld [vmem:[#allocation2 + $0x80] sm:$0xff] }
  0x6b   :  { %294 = vst.msk [vmem:[#allocation2 + $0x271] sm:$0xff] %vm23_vm0, %v245_v20  ;;  %293 = vst.msk [vmem:[#allocation2 + $0x261] sm:$0xff] %vm23_vm0, %v244_v21  ;;  %v477_v20 = vld [vmem:[#allocation2 + $0x181] sm:$0xff]  ;;  %v15882_v21 = vpack.c.bf16 %v323_v18, %v323_v18 }
  0x6c   :  { %296 = vst.msk [vmem:[#allocation2 + $0x2b1] sm:$0xff] %vm23_vm0, %v247_v22  ;;  %298 = vst.msk [vmem:[#allocation2 + $0x2d1] sm:$0xff] %vm23_vm0, %v249_v23  ;;  %v472_v57 = vld [vmem:[#allocation2 + $0xf1] sm:$0xff]  ;;  %v471_v58 = vld [vmem:[#allocation2 + $0xe1] sm:$0xff]  ;;  %v15884_v22 = vpack.c.bf16 %v322_v19, %v322_v19  ;;  %v14047_v30 = vpack.c.bf16 %v477_v20, %v477_v20 }
  0x6d   :  { %297 = vst.msk [vmem:[#allocation2 + $0x2c1] sm:$0xff] %vm23_vm0, %v248_v24  ;;  %300 = vst.msk [vmem:[#allocation2 + $0x311] sm:$0xff] %vm23_vm0, %v251_v39  ;;  %v14042_v59 = vpack.c.bf16 %v472_v57, %v472_v57  ;;  %v14041_v60 = vpack.c.bf16 %v471_v58, %v471_v58  ;;  %v474_v61 = vld [vmem:[#allocation2 + $0x131] sm:$0xff]  ;;  %v326_v29 = vld [vmem:[#allocation2 + $0xe0] sm:$0xff] }
  0x6e   :  { %302 = vst.msk [vmem:[#allocation2 + $0x331] sm:$0xff] %vm23_vm0, %v253_v43  ;;  %301 = vst.msk [vmem:[#allocation2 + $0x321] sm:$0xff] %vm23_vm0, %v252_v44  ;;  %v14044_v1 = vpack.c.bf16 %v474_v61, %v474_v61  ;;  %v476_v3 = vld [vmem:[#allocation2 + $0x151] sm:$0xff]  ;;  %v475_v5 = vld [vmem:[#allocation2 + $0x141] sm:$0xff]  ;;  %v15901_v33 = vpack.c.bf16 %v326_v29, %v326_v29  ;;  %v14055_v29 = vpack.c.bf16 %v485_v25, %v485_v25 }
  0x6f   :  { %304 = vst.msk [vmem:[#allocation2 + $0x371] sm:$0xff] %vm23_vm0, %v255_v46  ;;  %306 = vst.msk [vmem:[#allocation2 + $0x391] sm:$0xff] %vm23_vm0, %v257_v47  ;;  %723 = vrot.lane.b32.xlu1 %v14042_v59, %s15275_s16  ;;  %721 = vrot.lane.b32.xlu0 %v14041_v60, %s15275_s16  ;;  %v14046_v10 = vpack.c.bf16 %v476_v3, %v476_v3  ;;  %v14045_v14 = vpack.c.bf16 %v475_v5, %v475_v5  ;;  %v478_v15 = vld [vmem:[#allocation2 + $0x191] sm:$0xff]  ;;  %v479_v36 = vld [vmem:[#allocation2 + $0x1a1] sm:$0xff] }
  0x70   :  { %305 = vst.msk [vmem:[#allocation2 + $0x381] sm:$0xff] %vm23_vm0, %v256_v48  ;;  %308 = vst.msk [vmem:[#allocation2 + $0x3d1] sm:$0xff] %vm23_vm0, %v259_v49  ;;  %v325_v23 = vld [vmem:[#allocation2 + $0xd0] sm:$0xff]  ;;  %v14048_v26 = vpack.c.bf16 %v478_v15, %v478_v15  ;;  %v330_v41 = vld [vmem:[#allocation2 + $0x140] sm:$0xff]  ;;  %v14049_v46 = vpack.c.bf16 %v479_v36, %v479_v36  ;;  %v380_v49 = vpack.c.bf16 %v332_v45, %v332_v45 }
  0x71   :  { %310 = vst.msk [vmem:[#allocation2 + $0x3f1] sm:$0xff] %vm23_vm0, %v261_v50  ;;  %309 = vst.msk [vmem:[#allocation2 + $0x3e1] sm:$0xff] %vm23_vm0, %v260_v51  ;;  %v15889_v24 = vpack.c.bf16 %v325_v23, %v325_v23  ;;  %v327_v28 = vld [vmem:[#allocation2 + $0xf0] sm:$0xff]  ;;  %v15915_v43 = vpack.c.bf16 %v330_v41, %v330_v41  ;;  %v334_v51 = vld [vmem:[#allocation2 + $0x1a0] sm:$0xff] }
  0x72   :  { %312 = vst.msk [vmem:[#allocation2 + $0x431] sm:$0xff] %vm23_vm0, %v263_v52  ;;  %314 = vst.msk [vmem:[#allocation2 + $0x451] sm:$0xff] %vm23_vm0, %v265_v55  ;;  %v480_v31 = vld [vmem:[#allocation2 + $0x1b1] sm:$0xff]  ;;  %v15899_v32 = vpack.c.bf16 %v327_v28, %v327_v28  ;;  %v481_v52 = vld [vmem:[#allocation2 + $0x1e1] sm:$0xff]  ;;  %v15927_v54 = vpack.c.bf16 %v334_v51, %v334_v51 }
  0x73   :  { %313 = vst.msk [vmem:[#allocation2 + $0x441] sm:$0xff] %vm23_vm0, %v264_v56  ;;  %727 = vrot.lane.b32.xlu1 %v14044_v1, %s15275_s16  ;;  %725 = vrot.lane.b32.xlu0 %v14043_v2, %s15275_s16  ;;  %v329_v34 = vld [vmem:[#allocation2 + $0x130] sm:$0xff]  ;;  %v14050_v42 = vpack.c.bf16 %v480_v31, %v480_v31  ;;  %v336_v57 = vld [vmem:[#allocation2 + $0x1e0] sm:$0xff]  ;;  %v14051_v62 = vpack.c.bf16 %v481_v52, %v481_v52 }
  0x74   :  { %415 = vst.msk [vmem:[#allocation3 + $0x8] sm:$0xf] %vm412_vm3, %v15863_v0  ;;  %413 = vst.msk [vmem:[#allocation3] sm:$0xf] %vm412_vm3, %v364_v6  ;;  %v15904_v37 = vpack.c.bf16 %v329_v34, %v329_v34  ;;  %v331_v39 = vld [vmem:[#allocation2 + $0x150] sm:$0xff]  ;;  %v384_v59 = vpack.c.bf16 %v336_v57, %v336_v57  ;;  %v338_v61 = vld [vmem:[#allocation2 + $0x200] sm:$0xff] }
  0x75   :  { %416 = vst.msk [vmem:[#allocation3 + $0xc] sm:$0xf] %vm412_vm3, %v15869_v8  ;;  %414 = vst.msk [vmem:[#allocation3 + $0x4] sm:$0xf] %vm412_vm3, %v15872_v11  ;;  %v15910_v40 = vpack.c.bf16 %v331_v39, %v331_v39  ;;  %v333_v44 = vld [vmem:[#allocation2 + $0x190] sm:$0xff]  ;;  %v15944_v2 = vpack.c.bf16 %v338_v61, %v338_v61  ;;  %v483_v5 = vld [vmem:[#allocation2 + $0x201] sm:$0xff] }
  0x76   :  { %418 = vst.msk [vmem:[#allocation3 + $0x14] sm:$0xf] %vm412_vm3, %v15878_v16  ;;  %417 = vst.msk [vmem:[#allocation3 + $0x10] sm:$0xf] %vm412_vm3, %v368_v17  ;;  %v482_v47 = vld [vmem:[#allocation2 + $0x1f1] sm:$0xff]  ;;  %v15921_v48 = vpack.c.bf16 %v333_v44, %v333_v44  ;;  %v342_v12 = vld [vmem:[#allocation2 + $0x260] sm:$0xff]  ;;  %v14053_v18 = vpack.c.bf16 %v483_v5, %v483_v5 }
  0x77   :  { %420 = vst.msk [vmem:[#allocation3 + $0x1c] sm:$0xf] %vm412_vm3, %v15882_v21  ;;  %419 = vst.msk [vmem:[#allocation3 + $0x18] sm:$0xf] %vm412_vm3, %v15884_v22  ;;  %731 = vrot.lane.b32.xlu1 %v14046_v10, %s15275_s16  ;;  %729 = vrot.lane.b32.xlu0 %v14045_v14, %s15275_s16  ;;  %v335_v50 = vld [vmem:[#allocation2 + $0x1b0] sm:$0xff]  ;;  %v14052_v58 = vpack.c.bf16 %v482_v47, %v482_v47  ;;  %v15958_v14 = vpack.c.bf16 %v342_v12, %v342_v12  ;;  %v344_v17 = vld [vmem:[#allocation2 + $0x2a0] sm:$0xff] }
  0x78   :  { %422 = vst.msk [vmem:[#allocation3 + $0x24] sm:$0xf] %vm412_vm3, %v15889_v24  ;;  %421 = vst.msk [vmem:[#allocation3 + $0x20] sm:$0xf] %vm412_vm3, %v372_v27  ;;  %v15925_v53 = vpack.c.bf16 %v335_v50, %v335_v50  ;;  %v337_v55 = vld [vmem:[#allocation2 + $0x1f0] sm:$0xff]  ;;  %v392_v23 = vpack.c.bf16 %v344_v17, %v344_v17  ;;  %v346_v28 = vld [vmem:[#allocation2 + $0x2c0] sm:$0xff] }
  0x79   :  { %424 = vst.msk [vmem:[#allocation3 + $0x2c] sm:$0xf] %vm412_vm3, %v15899_v32  ;;  %423 = vst.msk [vmem:[#allocation3 + $0x28] sm:$0xf] %vm412_vm3, %v15901_v33  ;;  %v15932_v56 = vpack.c.bf16 %v337_v55, %v337_v55  ;;  %v339_v60 = vld [vmem:[#allocation2 + $0x210] sm:$0xff]  ;;  %v15975_v34 = vpack.c.bf16 %v346_v28, %v346_v28 }
  0x7a   :  { %426 = vst.msk [vmem:[#allocation3 + $0x34] sm:$0xf] %vm412_vm3, %v15904_v37  ;;  %425 = vst.msk [vmem:[#allocation3 + $0x30] sm:$0xf] %vm412_vm3, %v376_v38  ;;  %v484_v63 = vld [vmem:[#allocation2 + $0x211] sm:$0xff]  ;;  %v15942_v1 = vpack.c.bf16 %v339_v60, %v339_v60 }
  0x7b   :  { %735 = vrot.lane.b32.xlu1 %v14048_v26, %s15275_s16  ;;  %733 = vrot.lane.b32.xlu0 %v14047_v30, %s15275_s16  ;;  %428 = vst.msk [vmem:[#allocation3 + $0x3c] sm:$0xf] %vm412_vm3, %v15910_v40  ;;  %427 = vst.msk [vmem:[#allocation3 + $0x38] sm:$0xf] %vm412_vm3, %v15915_v43  ;;  %v341_v3 = vld [vmem:[#allocation2 + $0x250] sm:$0xff]  ;;  %v14054_v13 = vpack.c.bf16 %v484_v63, %v484_v63 }
  0x7c   :  { %430 = vst.msk [vmem:[#allocation3 + $0x44] sm:$0xf] %vm412_vm3, %v15921_v48  ;;  %429 = vst.msk [vmem:[#allocation3 + $0x40] sm:$0xf] %vm412_vm3, %v380_v49  ;;  %v15947_v6 = vpack.c.bf16 %v341_v3, %v341_v3  ;;  %v343_v9 = vld [vmem:[#allocation2 + $0x270] sm:$0xff] }
  0x7d   :  { %432 = vst.msk [vmem:[#allocation3 + $0x4c] sm:$0xf] %vm412_vm3, %v15925_v53  ;;  %431 = vst.msk [vmem:[#allocation3 + $0x48] sm:$0xf] %vm412_vm3, %v15927_v54  ;;  %v15953_v10 = vpack.c.bf16 %v343_v9, %v343_v9  ;;  %v345_v15 = vld [vmem:[#allocation2 + $0x2b0] sm:$0xff] }
  0x7e   :  { %434 = vst.msk [vmem:[#allocation3 + $0x54] sm:$0xf] %vm412_vm3, %v15932_v56  ;;  %433 = vst.msk [vmem:[#allocation3 + $0x50] sm:$0xf] %vm412_vm3, %v384_v59  ;;  %v486_v19 = vld [vmem:[#allocation2 + $0x251] sm:$0xff]  ;;  %v15964_v20 = vpack.c.bf16 %v345_v15, %v345_v15 }
  0x7f   :  { %739 = vrot.lane.b32.xlu1 %v14050_v42, %s15275_s16  ;;  %737 = vrot.lane.b32.xlu0 %v14049_v46, %s15275_s16  ;;  %436 = vst.msk [vmem:[#allocation3 + $0x5c] sm:$0xf] %vm412_vm3, %v15942_v1  ;;  %435 = vst.msk [vmem:[#allocation3 + $0x58] sm:$0xf] %vm412_vm3, %v15944_v2  ;;  %v14056_v26 = vpack.c.bf16 %v486_v19, %v486_v19  ;;  %v347_v27 = vld [vmem:[#allocation2 + $0x2d0] sm:$0xff] }
  0x80   :  { %438 = vst.msk [vmem:[#allocation3 + $0x64] sm:$0xf] %vm412_vm3, %v15947_v6  ;;  %437 = vst.msk [vmem:[#allocation3 + $0x60] sm:$0xf] %vm412_vm3, %v388_v7  ;;  %v488_v30 = vld [vmem:[#allocation2 + $0x271] sm:$0xff]  ;;  %v15973_v31 = vpack.c.bf16 %v347_v27, %v347_v27 }
  0x81   :  { %440 = vst.msk [vmem:[#allocation3 + $0x6c] sm:$0xf] %vm412_vm3, %v15953_v10  ;;  %439 = vst.msk [vmem:[#allocation3 + $0x68] sm:$0xf] %vm412_vm3, %v15958_v14 }
  0x82   :  { %442 = vst.msk [vmem:[#allocation3 + $0x74] sm:$0xf] %vm412_vm3, %v15964_v20  ;;  %441 = vst.msk [vmem:[#allocation3 + $0x70] sm:$0xf] %vm412_vm3, %v392_v23 }
  0x83   :  { %743 = vrot.lane.b32.xlu1 %v14052_v58, %s15275_s16  ;;  %741 = vrot.lane.b32.xlu0 %v14051_v62, %s15275_s16 }
  0x87   :  { %747 = vrot.lane.b32.xlu1 %v14054_v13, %s15275_s16  ;;  %745 = vrot.lane.b32.xlu0 %v14053_v18, %s15275_s16 }
  0x88   :  { %11 = vsyncpa [#allocation6], 0  ;;  %v487_v35 = vld [vmem:[#allocation2 + $0x261] sm:$0xff]  ;;  %444 = vst.msk [vmem:[#allocation3 + $0x7c] sm:$0xf] %vm412_vm3, %v15973_v31  ;;  %v14058_v36 = vpack.c.bf16 %v488_v30, %v488_v30  ;;  %v349_v38 = vld [vmem:[#allocation2 + $0x310] sm:$0xff] }
  0x89   :  { %443 = vst.msk [vmem:[#allocation3 + $0x78] sm:$0xf] %vm412_vm3, %v15975_v34  ;;  %v348_v39 = vld [vmem:[#allocation2 + $0x300] sm:$0xff]  ;;  %v14057_v41 = vpack.c.bf16 %v487_v35, %v487_v35  ;;  %v490_v42 = vld [vmem:[#allocation2 + $0x2b1] sm:$0xff]  ;;  %v15983_v44 = vpack.c.bf16 %v349_v38, %v349_v38  ;;  %s15276_s27 = smov 16   ;;  %vm845_vm4 = vcmask 126016  }
  0x8a   :  { %v396_v45 = vpack.c.bf16 %v348_v39, %v348_v39  ;;  %v489_v46 = vld [vmem:[#allocation2 + $0x2a1] sm:$0xff]  ;;  %v14060_v47 = vpack.c.bf16 %v490_v42, %v490_v42  ;;  %v351_v49 = vld [vmem:[#allocation2 + $0x330] sm:$0xff]  ;;  %v222_v7 = vld [vmem:[%s19483_s0 + $0x18] sm:$0xff]  ;;  %vm1278_vm5 = vcmask 191616   ;;  %s15278_s18 = smov 32   ;;  %vm1711_vm6 = vcmask 257216  }
  0x8b   :  { %751 = vrot.lane.b32.xlu1 %v14056_v26, %s15275_s16  ;;  %749 = vrot.lane.b32.xlu0 %v14055_v29, %s15275_s16  ;;  %446 = vst.msk [vmem:[#allocation3 + $0x84] sm:$0xf] %vm412_vm3, %v15983_v44  ;;  %v350_v50 = vld [vmem:[#allocation2 + $0x320] sm:$0xff]  ;;  %v14059_v51 = vpack.c.bf16 %v489_v46, %v489_v46  ;;  %v492_v52 = vld [vmem:[#allocation2 + $0x2d1] sm:$0xff]  ;;  %v15990_v55 = vpack.c.bf16 %v351_v49, %v351_v49  ;;  %s15279_s19 = smov 40   ;;  %vm2144_vm7 = vcmask 322816  }
  0x8c   :  { %445 = vst.msk [vmem:[#allocation3 + $0x80] sm:$0xf] %vm412_vm3, %v396_v45  ;;  %v15992_v57 = vpack.c.bf16 %v350_v50, %v350_v50  ;;  %v491_v58 = vld [vmem:[#allocation2 + $0x2c1] sm:$0xff]  ;;  %v14062_v59 = vpack.c.bf16 %v492_v52, %v492_v52  ;;  %v353_v60 = vld [vmem:[#allocation2 + $0x370] sm:$0xff]  ;;  %v226_v38 = vld [vmem:[%s19483_s0 + $0x38] sm:$0xff]  ;;  %s15280_s20 = smov 48  }
  0x8d   :  { %448 = vst.msk [vmem:[#allocation3 + $0x8c] sm:$0xf] %vm412_vm3, %v15990_v55  ;;  %v352_v61 = vld [vmem:[#allocation2 + $0x360] sm:$0xff]  ;;  %v14061_v62 = vpack.c.bf16 %v491_v58, %v491_v58  ;;  %v16000_v3 = vpack.c.bf16 %v353_v60, %v353_v60  ;;  %v494_v5 = vld [vmem:[#allocation2 + $0x311] sm:$0xff]  ;;  %vm2577_vm8 = vcmask 388416   ;;  %s15281_s21 = smov 56  }
  0x8e   :  { %447 = vst.msk [vmem:[#allocation3 + $0x88] sm:$0xf] %vm412_vm3, %v15992_v57  ;;  %v493_v63 = vld [vmem:[#allocation2 + $0x301] sm:$0xff]  ;;  %v400_v4 = vpack.c.bf16 %v352_v61, %v352_v61  ;;  %v355_v12 = vld [vmem:[#allocation2 + $0x390] sm:$0xff]  ;;  %v14064_v15 = vpack.c.bf16 %v494_v5, %v494_v5  ;;  %vm3011_vm9 = vcmask 454016   ;;  %vm4210_vm10 = vcmask 1043456  }
  0x8f   :  { %755 = vrot.lane.b32.xlu1 %v14058_v36, %s15275_s16  ;;  %753 = vrot.lane.b32.xlu0 %v14057_v41, %s15275_s16  ;;  %450 = vst.msk [vmem:[#allocation3 + $0x94] sm:$0xf] %vm412_vm3, %v16000_v3  ;;  %v14063_v9 = vpack.c.bf16 %v493_v63, %v493_v63  ;;  %v354_v13 = vld [vmem:[#allocation2 + $0x380] sm:$0xff]  ;;  %v496_v17 = vld [vmem:[#allocation2 + $0x331] sm:$0xff]  ;;  %v16011_v18 = vpack.c.bf16 %v355_v12, %v355_v12  ;;  %vm3444_vm11 = vcmask 519616   ;;  %vm3877_vm12 = vcmask 585216  }
  0x90   :  { %449 = vst.msk [vmem:[#allocation3 + $0x90] sm:$0xf] %vm412_vm3, %v400_v4  ;;  %v16013_v19 = vpack.c.bf16 %v354_v13, %v354_v13  ;;  %v495_v23 = vld [vmem:[#allocation2 + $0x321] sm:$0xff]  ;;  %v14066_v25 = vpack.c.bf16 %v496_v17, %v496_v17  ;;  %v357_v26 = vld [vmem:[#allocation2 + $0x3d0] sm:$0xff]  ;;  %v230_v4 = vld [vmem:[%s19483_s0 + $0x58] sm:$0xff]  ;;  %vm4137_vm13 = vcmask 588800  }
  0x91   :  { %271 = vst.msk [vmem:[#allocation2 + $0x41] sm:$0xff] %vm23_vm0, %v222_v7  ;;  %v356_v27 = vld [vmem:[#allocation2 + $0x3c0] sm:$0xff]  ;;  %v14065_v28 = vpack.c.bf16 %v495_v23, %v495_v23  ;;  %v16021_v30 = vpack.c.bf16 %v357_v26, %v357_v26  ;;  %v498_v36 = vld [vmem:[#allocation2 + $0x371] sm:$0xff]  ;;  %275 = vst.msk [vmem:[#allocation2 + $0xa1] sm:$0xff] %vm23_vm0, %v226_v38  ;;  %vm12859_vm14 = vcmask 130112   ;;  %vm12866_vm15 = vcmask 195712  }
  0x92   :  { %452 = vst.msk [vmem:[#allocation3 + $0x9c] sm:$0xf] %vm412_vm3, %v16011_v18  ;;  %451 = vst.msk [vmem:[#allocation3 + $0x98] sm:$0xf] %vm412_vm3, %v16013_v19  ;;  %v497_v29 = vld [vmem:[#allocation2 + $0x361] sm:$0xff]  ;;  %v404_v35 = vpack.c.bf16 %v356_v27, %v356_v27  ;;  %v359_v41 = vld [vmem:[#allocation2 + $0x3f0] sm:$0xff]  ;;  %v14068_v45 = vpack.c.bf16 %v498_v36, %v498_v36 }
  0x93   :  { %759 = vrot.lane.b32.xlu1 %v14060_v47, %s15275_s16  ;;  %757 = vrot.lane.b32.xlu0 %v14059_v51, %s15275_s16  ;;  %454 = vst.msk [vmem:[#allocation3 + $0xa4] sm:$0xf] %vm412_vm3, %v16021_v30  ;;  %v14067_v39 = vpack.c.bf16 %v497_v29, %v497_v29  ;;  %v358_v42 = vld [vmem:[#allocation2 + $0x3e0] sm:$0xff]  ;;  %v500_v46 = vld [vmem:[#allocation2 + $0x391] sm:$0xff]  ;;  %v16032_v47 = vpack.c.bf16 %v359_v41, %v359_v41  ;;  %vm12880_vm1 = vcmask 326912   ;;  %vm12887_vm2 = vcmask 392512  }
  0x94   :  { %453 = vst.msk [vmem:[#allocation3 + $0xa0] sm:$0xf] %vm412_vm3, %v404_v35  ;;  %v16034_v49 = vpack.c.bf16 %v358_v42, %v358_v42  ;;  %v499_v50 = vld [vmem:[#allocation2 + $0x381] sm:$0xff]  ;;  %v14070_v51 = vpack.c.bf16 %v500_v46, %v500_v46  ;;  %v361_v52 = vld [vmem:[#allocation2 + $0x430] sm:$0xff]  ;;  %v234_v29 = vld [vmem:[%s19483_s0 + $0x78] sm:$0xff] }
  0x95   :  { %456 = vst.msk [vmem:[#allocation3 + $0xac] sm:$0xf] %vm412_vm3, %v16032_v47  ;;  %v360_v58 = vld [vmem:[#allocation2 + $0x420] sm:$0xff]  ;;  %v16042_v61 = vpack.c.bf16 %v361_v52, %v361_v52  ;;  %v502_v63 = vld [vmem:[#allocation2 + $0x3d1] sm:$0xff] }
  0x96   :  { %455 = vst.msk [vmem:[#allocation3 + $0xa8] sm:$0xf] %vm412_vm3, %v16034_v49  ;;  %v501_v60 = vld [vmem:[#allocation2 + $0x3c1] sm:$0xff]  ;;  %v363_v7 = vld [vmem:[#allocation2 + $0x450] sm:$0xff]  ;;  %v14072_v12 = vpack.c.bf16 %v502_v63, %v502_v63 }
  0x97   :  { %763 = vrot.lane.b32.xlu1 %v14062_v59, %s15275_s16  ;;  %761 = vrot.lane.b32.xlu0 %v14061_v62, %s15275_s16  ;;  %v14069_v59 = vpack.c.bf16 %v499_v50, %v499_v50  ;;  %v408_v62 = vpack.c.bf16 %v360_v58, %v360_v58  ;;  %458 = vst.msk [vmem:[#allocation3 + $0xb4] sm:$0xf] %vm412_vm3, %v16042_v61  ;;  %v504_v17 = vld [vmem:[#allocation2 + $0x3f1] sm:$0xff]  ;;  %v503_v23 = vld [vmem:[#allocation2 + $0x3e1] sm:$0xff] }
  0x98   :  { %279 = vst.msk [vmem:[#allocation2 + $0x101] sm:$0xff] %vm23_vm0, %v230_v4  ;;  %v14071_v5 = vpack.c.bf16 %v501_v60, %v501_v60  ;;  %v16053_v13 = vpack.c.bf16 %v363_v7, %v363_v7  ;;  %v14073_v26 = vpack.c.bf16 %v503_v23, %v503_v23  ;;  %v506_v27 = vld [vmem:[#allocation2 + $0x431] sm:$0xff]  ;;  %283 = vst.msk [vmem:[#allocation2 + $0x161] sm:$0xff] %vm23_vm0, %v234_v29  ;;  %v894_v46 = vld [vmem:[#allocation2 + $0x2] sm:$0xff] }
  0x99   :  { %457 = vst.msk [vmem:[#allocation3 + $0xb0] sm:$0xf] %vm412_vm3, %v408_v62  ;;  %v14076_v35 = vpack.c.bf16 %v506_v27, %v506_v27  ;;  %v508_v38 = vld [vmem:[#allocation2 + $0x451] sm:$0xff]  ;;  %v14079_v52 = vpack.c.bf16 %v894_v46, %v894_v46  ;;  %v898_v4 = vld [vmem:[#allocation2 + $0x62] sm:$0xff] }
  0x9a   :  { %460 = vst.msk [vmem:[#allocation3 + $0xbc] sm:$0xf] %vm412_vm3, %v16053_v13  ;;  %v14078_v41 = vpack.c.bf16 %v508_v38, %v508_v38  ;;  %v238_v50 = vld [vmem:[%s19483_s0 + $0x98] sm:$0xff]  ;;  %v902_v27 = vld [vmem:[#allocation2 + $0xc2] sm:$0xff] }
  0x9b   :  { %767 = vrot.lane.b32.xlu1 %v14064_v15, %s15275_s16  ;;  %765 = vrot.lane.b32.xlu0 %v14063_v9, %s15275_s16  ;;  %v362_v9 = vld [vmem:[#allocation2 + $0x440] sm:$0xff]  ;;  %287 = vst.msk [vmem:[#allocation2 + $0x1c1] sm:$0xff] %vm23_vm0, %v238_v50  ;;  %v897_v58 = vld [vmem:[#allocation2 + $0x32] sm:$0xff]  ;;  %v706_v50 = vpop.permute.xlu1 %705 }
  0x9c   :  { %v16055_v15 = vpack.c.bf16 %v362_v9, %v362_v9  ;;  %v14082_v60 = vpack.c.bf16 %v897_v58, %v897_v58  ;;  %v899_v63 = vld [vmem:[#allocation2 + $0x72] sm:$0xff]  ;;  %v14083_v9 = vpack.c.bf16 %v898_v4, %v898_v4  ;;  %v904_v38 = vld [vmem:[#allocation2 + $0xe2] sm:$0xff]  ;;  %848 = vst.msk [vmem:[#allocation3 + $0x8] sm:$0xf] %vm845_vm4, %v706_v50 }
  0x9d   :  { %v14084_v7 = vpack.c.bf16 %v899_v63, %v899_v63  ;;  %v250_v46 = vld [vmem:[%s19483_s0 + $0xf8] sm:$0xff] }
  0x9e   :  { %459 = vst.msk [vmem:[#allocation3 + $0xb8] sm:$0xf] %vm412_vm3, %v16055_v15 }
  0x9f   :  { %771 = vrot.lane.b32.xlu1 %v14066_v25, %s15275_s16  ;;  %769 = vrot.lane.b32.xlu0 %v14065_v28, %s15275_s16  ;;  %v14074_v25 = vpack.c.bf16 %v504_v17, %v504_v17  ;;  %v505_v28 = vld [vmem:[#allocation2 + $0x421] sm:$0xff]  ;;  %299 = vst.msk [vmem:[#allocation2 + $0x2e1] sm:$0xff] %vm23_vm0, %v250_v46 }
  0xa0   :  { %v14075_v36 = vpack.c.bf16 %v505_v28, %v505_v28  ;;  %v900_v17 = vld [vmem:[#allocation2 + $0x82] sm:$0xff]  ;;  %v246_v28 = vld [vmem:[%s19483_s0 + $0xd8] sm:$0xff] }
  0xa1   :  { %295 = vst.msk [vmem:[#allocation2 + $0x281] sm:$0xff] %vm23_vm0, %v246_v28  ;;  %v912_v28 = vld [vmem:[#allocation2 + $0x1a2] sm:$0xff] }
  0xa3   :  { %775 = vrot.lane.b32.xlu1 %v14068_v45, %s15275_s16  ;;  %773 = vrot.lane.b32.xlu0 %v14067_v39, %s15275_s16  ;;  %v507_v39 = vld [vmem:[#allocation2 + $0x441] sm:$0xff]  ;;  %v895_v45 = vld [vmem:[#allocation2 + $0x12] sm:$0xff] }
  0xa4   :  { %v14077_v42 = vpack.c.bf16 %v507_v39, %v507_v39 }
  0xa7   :  { %779 = vrot.lane.b32.xlu1 %v14070_v51, %s15275_s16  ;;  %777 = vrot.lane.b32.xlu0 %v14069_v59, %s15275_s16  ;;  %v14080_v51 = vpack.c.bf16 %v895_v45, %v895_v45  ;;  %v896_v59 = vld [vmem:[#allocation2 + $0x22] sm:$0xff] }
  0xa8   :  { %v14081_v62 = vpack.c.bf16 %v896_v59, %v896_v59  ;;  %v906_v45 = vld [vmem:[#allocation2 + $0x122] sm:$0xff]  ;;  %v909_v59 = vld [vmem:[#allocation2 + $0x152] sm:$0xff] }
  0xa9   :  { %v14091_v58 = vpack.c.bf16 %v906_v45, %v906_v45  ;;  %v14094_v4 = vpack.c.bf16 %v909_v59, %v909_v59 }
  0xab   :  { %783 = vrot.lane.b32.xlu1 %v14072_v12, %s15275_s16  ;;  %781 = vrot.lane.b32.xlu0 %v14071_v5, %s15275_s16  ;;  %v242_v5 = vld [vmem:[%s19483_s0 + $0xb8] sm:$0xff] }
  0xac   :  { %291 = vst.msk [vmem:[#allocation2 + $0x221] sm:$0xff] %vm23_vm0, %v242_v5  ;;  %v901_v12 = vld [vmem:[#allocation2 + $0x92] sm:$0xff] }
  0xad   :  { %v14086_v23 = vpack.c.bf16 %v901_v12, %v901_v12  ;;  %v254_v12 = vld [vmem:[%s19483_s0 + $0x118] sm:$0xff] }
  0xae   :  { %303 = vst.msk [vmem:[#allocation2 + $0x341] sm:$0xff] %vm23_vm0, %v254_v12 }
  0xaf   :  { %787 = vrot.lane.b32.xlu1 %v14074_v25, %s15275_s16  ;;  %785 = vrot.lane.b32.xlu0 %v14073_v26, %s15275_s16  ;;  %v14085_v25 = vpack.c.bf16 %v900_v17, %v900_v17  ;;  %v903_v26 = vld [vmem:[#allocation2 + $0xd2] sm:$0xff] }
  0xb0   :  { %v14088_v29 = vpack.c.bf16 %v903_v26, %v903_v26 }
  0xb3   :  { %791 = vrot.lane.b32.xlu1 %v14076_v35, %s15275_s16  ;;  %789 = vrot.lane.b32.xlu0 %v14075_v36, %s15275_s16  ;;  %v14087_v35 = vpack.c.bf16 %v902_v27, %v902_v27  ;;  %v905_v36 = vld [vmem:[#allocation2 + $0xf2] sm:$0xff] }
  0xb4   :  { %v14090_v39 = vpack.c.bf16 %v905_v36, %v905_v36  ;;  %v913_v27 = vld [vmem:[#allocation2 + $0x1b2] sm:$0xff] }
  0xb5   :  { %v14098_v36 = vpack.c.bf16 %v913_v27, %v913_v27 }
  0xb7   :  { %795 = vrot.lane.b32.xlu1 %v14078_v41, %s15275_s16  ;;  %793 = vrot.lane.b32.xlu0 %v14077_v42, %s15275_s16  ;;  %v14089_v41 = vpack.c.bf16 %v904_v38, %v904_v38  ;;  %v907_v42 = vld [vmem:[#allocation2 + $0x132] sm:$0xff]  ;;  %v14097_v38 = vpack.c.bf16 %v912_v28, %v912_v28 }
  0xbb   :  { %1136 = vrot.lane.b32.xlu1 %v14080_v51, %s15276_s27  ;;  %1134 = vrot.lane.b32.xlu0 %v14079_v52, %s15276_s27  ;;  %v702_v51 = vpop.permute.xlu0 %701  ;;  %v14092_v52 = vpack.c.bf16 %v907_v42, %v907_v42  ;;  %v258_v42 = vld [vmem:[%s19483_s0 + $0x138] sm:$0xff] }
  0xbc   :  { %846 = vst.msk [vmem:[#allocation3] sm:$0xf] %vm845_vm4, %v702_v51 }
  0xbd   :  { %307 = vst.msk [vmem:[#allocation2 + $0x3a1] sm:$0xff] %vm23_vm0, %v258_v42 }
  0xbf   :  { %1140 = vrot.lane.b32.xlu1 %v14082_v60, %s15276_s27  ;;  %1138 = vrot.lane.b32.xlu0 %v14081_v62, %s15276_s27  ;;  %v908_v60 = vld [vmem:[#allocation2 + $0x142] sm:$0xff]  ;;  %v708_v62 = vpop.permute.xlu1 %707  ;;  %v704_v63 = vpop.permute.xlu0 %703 }
  0xc0   :  { %849 = vst.msk [vmem:[#allocation3 + $0xc] sm:$0xf] %vm845_vm4, %v708_v62  ;;  %847 = vst.msk [vmem:[#allocation3 + $0x4] sm:$0xf] %vm845_vm4, %v704_v63  ;;  %v14093_v5 = vpack.c.bf16 %v908_v60, %v908_v60 }
  0xc3   :  { %1144 = vrot.lane.b32.xlu1 %v14084_v7, %s15276_s27  ;;  %1142 = vrot.lane.b32.xlu0 %v14083_v9, %s15276_s27  ;;  %v911_v7 = vld [vmem:[#allocation2 + $0x192] sm:$0xff]  ;;  %v910_v9 = vld [vmem:[#allocation2 + $0x182] sm:$0xff]  ;;  %v712_v17 = vpop.permute.xlu1 %711 }
  0xc4   :  { %851 = vst.msk [vmem:[#allocation3 + $0x14] sm:$0xf] %vm845_vm4, %v712_v17  ;;  %v14095_v26 = vpack.c.bf16 %v910_v9, %v910_v9 }
  0xc7   :  { %1148 = vrot.lane.b32.xlu1 %v14086_v23, %s15276_s27  ;;  %1146 = vrot.lane.b32.xlu0 %v14085_v25, %s15276_s27  ;;  %v710_v23 = vpop.permute.xlu0 %709  ;;  %v14096_v25 = vpack.c.bf16 %v911_v7, %v911_v7  ;;  %v262_v7 = vld [vmem:[%s19483_s0 + $0x158] sm:$0xff] }
  0xc8   :  { %850 = vst.msk [vmem:[#allocation3 + $0x10] sm:$0xf] %vm845_vm4, %v710_v23 }
  0xc9   :  { %311 = vst.msk [vmem:[#allocation2 + $0x401] sm:$0xff] %vm23_vm0, %v262_v7 }
  0xcb   :  { %1152 = vrot.lane.b32.xlu1 %v14088_v29, %s15276_s27  ;;  %1150 = vrot.lane.b32.xlu0 %v14087_v35, %s15276_s27  ;;  %v716_v29 = vpop.permute.xlu1 %715  ;;  %v714_v35 = vpop.permute.xlu0 %713 }
  0xcc   :  { %853 = vst.msk [vmem:[#allocation3 + $0x1c] sm:$0xf] %vm845_vm4, %v716_v29  ;;  %852 = vst.msk [vmem:[#allocation3 + $0x18] sm:$0xf] %vm845_vm4, %v714_v35 }
  0xcf   :  { %1156 = vrot.lane.b32.xlu1 %v14090_v39, %s15276_s27  ;;  %1154 = vrot.lane.b32.xlu0 %v14089_v41, %s15276_s27  ;;  %v915_v39 = vld [vmem:[#allocation2 + $0x1f2] sm:$0xff]  ;;  %v914_v41 = vld [vmem:[#allocation2 + $0x1e2] sm:$0xff]  ;;  %v720_v45 = vpop.permute.xlu1 %719  ;;  %v718_v46 = vpop.permute.xlu0 %717 }
  0xd0   :  { %855 = vst.msk [vmem:[#allocation3 + $0x24] sm:$0xf] %vm845_vm4, %v720_v45  ;;  %854 = vst.msk [vmem:[#allocation3 + $0x20] sm:$0xf] %vm845_vm4, %v718_v46  ;;  %v14100_v50 = vpack.c.bf16 %v915_v39, %v915_v39  ;;  %v14099_v51 = vpack.c.bf16 %v914_v41, %v914_v41  ;;  %v266_v39 = vld [vmem:[%s19483_s0 + $0x178] sm:$0xff]  ;;  %s15277_s0 = smov 24  }
  0xd1   :  { %315 = vst.msk [vmem:[#allocation2 + $0x461] sm:$0xff] %vm23_vm0, %v266_v39 }
  0xd3   :  { %1160 = vrot.lane.b32.xlu1 %v14092_v52, %s15276_s27  ;;  %1158 = vrot.lane.b32.xlu0 %v14091_v58, %s15276_s27  ;;  %v917_v52 = vld [vmem:[#allocation2 + $0x212] sm:$0xff]  ;;  %v916_v58 = vld [vmem:[#allocation2 + $0x202] sm:$0xff] }
  0xd4   :  { %v14102_v62 = vpack.c.bf16 %v917_v52, %v917_v52  ;;  %v14101_v63 = vpack.c.bf16 %v916_v58, %v916_v58 }
  0xd7   :  { %1164 = vrot.lane.b32.xlu1 %v14094_v4, %s15276_s27  ;;  %1162 = vrot.lane.b32.xlu0 %v14093_v5, %s15276_s27  ;;  %v919_v4 = vld [vmem:[#allocation2 + $0x252] sm:$0xff]  ;;  %v918_v5 = vld [vmem:[#allocation2 + $0x242] sm:$0xff] }
  0xd8   :  { %v14104_v17 = vpack.c.bf16 %v919_v4, %v919_v4  ;;  %v14103_v23 = vpack.c.bf16 %v918_v5, %v918_v5 }
  0xdb   :  { %1168 = vrot.lane.b32.xlu1 %v14096_v25, %s15276_s27  ;;  %1166 = vrot.lane.b32.xlu0 %v14095_v26, %s15276_s27  ;;  %v921_v25 = vld [vmem:[#allocation2 + $0x272] sm:$0xff]  ;;  %v920_v26 = vld [vmem:[#allocation2 + $0x262] sm:$0xff] }
  0xdc   :  { %v14106_v29 = vpack.c.bf16 %v921_v25, %v921_v25  ;;  %v14105_v35 = vpack.c.bf16 %v920_v26, %v920_v26 }
  0xdf   :  { %1172 = vrot.lane.b32.xlu1 %v14098_v36, %s15276_s27  ;;  %1170 = vrot.lane.b32.xlu0 %v14097_v38, %s15276_s27  ;;  %v923_v36 = vld [vmem:[#allocation2 + $0x2b2] sm:$0xff]  ;;  %v922_v38 = vld [vmem:[#allocation2 + $0x2a2] sm:$0xff] }
  0xe0   :  { %v14108_v45 = vpack.c.bf16 %v923_v36, %v923_v36  ;;  %v14107_v46 = vpack.c.bf16 %v922_v38, %v922_v38 }
  0xe1   :  { %v724_v59 = vpop.permute.xlu1 %723  ;;  %v722_v60 = vpop.permute.xlu0 %721 }
  0xe2   :  { %857 = vst.msk [vmem:[#allocation3 + $0x2c] sm:$0xf] %vm845_vm4, %v724_v59  ;;  %856 = vst.msk [vmem:[#allocation3 + $0x28] sm:$0xf] %vm845_vm4, %v722_v60 }
  0xe3   :  { %1176 = vrot.lane.b32.xlu1 %v14100_v50, %s15276_s27  ;;  %1174 = vrot.lane.b32.xlu0 %v14099_v51, %s15276_s27  ;;  %v925_v50 = vld [vmem:[#allocation2 + $0x2d2] sm:$0xff]  ;;  %v924_v51 = vld [vmem:[#allocation2 + $0x2c2] sm:$0xff] }
  0xe4   :  { %v14110_v59 = vpack.c.bf16 %v925_v50, %v925_v50  ;;  %v14109_v60 = vpack.c.bf16 %v924_v51, %v924_v51 }
  0xe5   :  { %v728_v9 = vpop.permute.xlu1 %727  ;;  %v726_v12 = vpop.permute.xlu0 %725 }
  0xe6   :  { %859 = vst.msk [vmem:[#allocation3 + $0x34] sm:$0xf] %vm845_vm4, %v728_v9  ;;  %858 = vst.msk [vmem:[#allocation3 + $0x30] sm:$0xf] %vm845_vm4, %v726_v12  ;;  %v929_v12 = vld [vmem:[#allocation2 + $0x332] sm:$0xff] }
  0xe7   :  { %1180 = vrot.lane.b32.xlu1 %v14102_v62, %s15276_s27  ;;  %1178 = vrot.lane.b32.xlu0 %v14101_v63, %s15276_s27  ;;  %v927_v62 = vld [vmem:[#allocation2 + $0x312] sm:$0xff]  ;;  %v926_v63 = vld [vmem:[#allocation2 + $0x302] sm:$0xff]  ;;  %v14114_v26 = vpack.c.bf16 %v929_v12, %v929_v12 }
  0xe8   :  { %v14112_v7 = vpack.c.bf16 %v927_v62, %v927_v62  ;;  %v14111_v9 = vpack.c.bf16 %v926_v63, %v926_v63 }
  0xe9   :  { %v732_v27 = vpop.permute.xlu1 %731  ;;  %v730_v28 = vpop.permute.xlu0 %729 }
  0xea   :  { %861 = vst.msk [vmem:[#allocation3 + $0x3c] sm:$0xf] %vm845_vm4, %v732_v27  ;;  %860 = vst.msk [vmem:[#allocation3 + $0x38] sm:$0xf] %vm845_vm4, %v730_v28  ;;  %v931_v28 = vld [vmem:[#allocation2 + $0x372] sm:$0xff] }
  0xeb   :  { %1184 = vrot.lane.b32.xlu1 %v14104_v17, %s15276_s27  ;;  %1182 = vrot.lane.b32.xlu0 %v14103_v23, %s15276_s27  ;;  %v928_v17 = vld [vmem:[#allocation2 + $0x322] sm:$0xff]  ;;  %v14116_v38 = vpack.c.bf16 %v931_v28, %v931_v28 }
  0xec   :  { %v14113_v27 = vpack.c.bf16 %v928_v17, %v928_v17 }
  0xed   :  { %v736_v41 = vpop.permute.xlu1 %735  ;;  %v734_v42 = vpop.permute.xlu0 %733 }
  0xee   :  { %863 = vst.msk [vmem:[#allocation3 + $0x44] sm:$0xf] %vm845_vm4, %v736_v41  ;;  %862 = vst.msk [vmem:[#allocation3 + $0x40] sm:$0xf] %vm845_vm4, %v734_v42  ;;  %v933_v41 = vld [vmem:[#allocation2 + $0x392] sm:$0xff]  ;;  %v932_v42 = vld [vmem:[#allocation2 + $0x382] sm:$0xff] }
  0xef   :  { %1188 = vrot.lane.b32.xlu1 %v14106_v29, %s15276_s27  ;;  %1186 = vrot.lane.b32.xlu0 %v14105_v35, %s15276_s27  ;;  %v930_v29 = vld [vmem:[#allocation2 + $0x362] sm:$0xff]  ;;  %v14118_v50 = vpack.c.bf16 %v933_v41, %v933_v41  ;;  %v14117_v51 = vpack.c.bf16 %v932_v42, %v932_v42 }
  0xf0   :  { %v14115_v39 = vpack.c.bf16 %v930_v29, %v930_v29 }
  0xf1   :  { %v740_v52 = vpop.permute.xlu1 %739  ;;  %v738_v58 = vpop.permute.xlu0 %737 }
  0xf2   :  { %865 = vst.msk [vmem:[#allocation3 + $0x4c] sm:$0xf] %vm845_vm4, %v740_v52  ;;  %864 = vst.msk [vmem:[#allocation3 + $0x48] sm:$0xf] %vm845_vm4, %v738_v58  ;;  %v935_v52 = vld [vmem:[#allocation2 + $0x3d2] sm:$0xff]  ;;  %v934_v58 = vld [vmem:[#allocation2 + $0x3c2] sm:$0xff] }
  0xf3   :  { %1192 = vrot.lane.b32.xlu1 %v14108_v45, %s15276_s27  ;;  %1190 = vrot.lane.b32.xlu0 %v14107_v46, %s15276_s27  ;;  %v14120_v62 = vpack.c.bf16 %v935_v52, %v935_v52  ;;  %v14119_v63 = vpack.c.bf16 %v934_v58, %v934_v58 }
  0xf5   :  { %v744_v4 = vpop.permute.xlu1 %743  ;;  %v742_v5 = vpop.permute.xlu0 %741 }
  0xf6   :  { %867 = vst.msk [vmem:[#allocation3 + $0x54] sm:$0xf] %vm845_vm4, %v744_v4  ;;  %866 = vst.msk [vmem:[#allocation3 + $0x50] sm:$0xf] %vm845_vm4, %v742_v5  ;;  %v937_v4 = vld [vmem:[#allocation2 + $0x3f2] sm:$0xff]  ;;  %v936_v5 = vld [vmem:[#allocation2 + $0x3e2] sm:$0xff] }
  0xf7   :  { %1196 = vrot.lane.b32.xlu1 %v14110_v59, %s15276_s27  ;;  %1194 = vrot.lane.b32.xlu0 %v14109_v60, %s15276_s27  ;;  %v14122_v12 = vpack.c.bf16 %v937_v4, %v937_v4  ;;  %v14121_v17 = vpack.c.bf16 %v936_v5, %v936_v5 }
  0xf9   :  { %v748_v23 = vpop.permute.xlu1 %747  ;;  %v746_v25 = vpop.permute.xlu0 %745 }
  0xfa   :  { %869 = vst.msk [vmem:[#allocation3 + $0x5c] sm:$0xf] %vm845_vm4, %v748_v23  ;;  %868 = vst.msk [vmem:[#allocation3 + $0x58] sm:$0xf] %vm845_vm4, %v746_v25  ;;  %v939_v23 = vld [vmem:[#allocation2 + $0x432] sm:$0xff]  ;;  %v938_v25 = vld [vmem:[#allocation2 + $0x422] sm:$0xff] }
  0xfb   :  { %1200 = vrot.lane.b32.xlu1 %v14112_v7, %s15276_s27  ;;  %1198 = vrot.lane.b32.xlu0 %v14111_v9, %s15276_s27  ;;  %v14124_v28 = vpack.c.bf16 %v939_v23, %v939_v23  ;;  %v14123_v29 = vpack.c.bf16 %v938_v25, %v938_v25 }
  0xfd   :  { %v752_v35 = vpop.permute.xlu1 %751  ;;  %v750_v36 = vpop.permute.xlu0 %749 }
  0xfe   :  { %871 = vst.msk [vmem:[#allocation3 + $0x64] sm:$0xf] %vm845_vm4, %v752_v35  ;;  %870 = vst.msk [vmem:[#allocation3 + $0x60] sm:$0xf] %vm845_vm4, %v750_v36  ;;  %v941_v35 = vld [vmem:[#allocation2 + $0x452] sm:$0xff]  ;;  %v940_v36 = vld [vmem:[#allocation2 + $0x442] sm:$0xff] }
  0xff   :  { %1204 = vrot.lane.b32.xlu1 %v14114_v26, %s15276_s27  ;;  %1202 = vrot.lane.b32.xlu0 %v14113_v27, %s15276_s27  ;;  %v14126_v41 = vpack.c.bf16 %v941_v35, %v941_v35  ;;  %v14125_v42 = vpack.c.bf16 %v940_v36, %v940_v36 }
 0x101   :  { %v756_v45 = vpop.permute.xlu1 %755  ;;  %v754_v46 = vpop.permute.xlu0 %753 }
 0x102   :  { %873 = vst.msk [vmem:[#allocation3 + $0x6c] sm:$0xf] %vm845_vm4, %v756_v45  ;;  %872 = vst.msk [vmem:[#allocation3 + $0x68] sm:$0xf] %vm845_vm4, %v754_v46 }
 0x103   :  { %1208 = vrot.lane.b32.xlu1 %v14116_v38, %s15276_s27  ;;  %1206 = vrot.lane.b32.xlu0 %v14115_v39, %s15276_s27 }
 0x105   :  { %v760_v59 = vpop.permute.xlu1 %759  ;;  %v758_v60 = vpop.permute.xlu0 %757 }
 0x106   :  { %875 = vst.msk [vmem:[#allocation3 + $0x74] sm:$0xf] %vm845_vm4, %v760_v59  ;;  %874 = vst.msk [vmem:[#allocation3 + $0x70] sm:$0xf] %vm845_vm4, %v758_v60 }
 0x107   :  { %1212 = vrot.lane.b32.xlu1 %v14118_v50, %s15276_s27  ;;  %1210 = vrot.lane.b32.xlu0 %v14117_v51, %s15276_s27  ;;  %v1330_v50 = vld [vmem:[#allocation2 + $0x40] sm:$0xff] }
 0x108   :  { %v14130_v58 = vpack.c.bf16 %v1330_v50, %v1330_v50 }
 0x109   :  { %v764_v7 = vpop.permute.xlu1 %763  ;;  %v762_v9 = vpop.permute.xlu0 %761 }
 0x10a   :  { %877 = vst.msk [vmem:[#allocation3 + $0x7c] sm:$0xf] %vm845_vm4, %v764_v7  ;;  %876 = vst.msk [vmem:[#allocation3 + $0x78] sm:$0xf] %vm845_vm4, %v762_v9 }
 0x10b   :  { %1216 = vrot.lane.b32.xlu1 %v14120_v62, %s15276_s27  ;;  %1214 = vrot.lane.b32.xlu0 %v14119_v63, %s15276_s27  ;;  %v1334_v62 = vld [vmem:[#allocation2 + $0xa0] sm:$0xff] }
 0x10d   :  { %v768_v26 = vpop.permute.xlu1 %767  ;;  %v766_v27 = vpop.permute.xlu0 %765 }
 0x10e   :  { %879 = vst.msk [vmem:[#allocation3 + $0x84] sm:$0xf] %vm845_vm4, %v768_v26  ;;  %878 = vst.msk [vmem:[#allocation3 + $0x80] sm:$0xf] %vm845_vm4, %v766_v27 }
 0x10f   :  { %1220 = vrot.lane.b32.xlu1 %v14122_v12, %s15276_s27  ;;  %1218 = vrot.lane.b32.xlu0 %v14121_v17, %s15276_s27 }
 0x111   :  { %v772_v38 = vpop.permute.xlu1 %771  ;;  %v770_v39 = vpop.permute.xlu0 %769 }
 0x112   :  { %881 = vst.msk [vmem:[#allocation3 + $0x8c] sm:$0xf] %vm845_vm4, %v772_v38  ;;  %880 = vst.msk [vmem:[#allocation3 + $0x88] sm:$0xf] %vm845_vm4, %v770_v39 }
 0x113   :  { %1224 = vrot.lane.b32.xlu1 %v14124_v28, %s15276_s27  ;;  %1222 = vrot.lane.b32.xlu0 %v14123_v29, %s15276_s27 }
 0x115   :  { %v776_v45 = vpop.permute.xlu1 %775  ;;  %v774_v46 = vpop.permute.xlu0 %773 }
 0x116   :  { %883 = vst.msk [vmem:[#allocation3 + $0x94] sm:$0xf] %vm845_vm4, %v776_v45  ;;  %882 = vst.msk [vmem:[#allocation3 + $0x90] sm:$0xf] %vm845_vm4, %v774_v46 }
 0x117   :  { %1228 = vrot.lane.b32.xlu1 %v14126_v41, %s15276_s27  ;;  %1226 = vrot.lane.b32.xlu0 %v14125_v42, %s15276_s27 }
 0x119   :  { %v780_v51 = vpop.permute.xlu1 %779  ;;  %v778_v52 = vpop.permute.xlu0 %777 }
 0x11a   :  { %885 = vst.msk [vmem:[#allocation3 + $0x9c] sm:$0xf] %vm845_vm4, %v780_v51  ;;  %884 = vst.msk [vmem:[#allocation3 + $0x98] sm:$0xf] %vm845_vm4, %v778_v52 }
 0x11b   :  { %1569 = vrot.lane.b32.xlu1 %v15863_v0, %s15277_s0  ;;  %1567 = vrot.lane.b32.xlu0 %v15872_v11, %s15277_s0  ;;  %v14134_v0 = vpack.c.bf16 %v1334_v62, %v1334_v62 }
 0x11d   :  { %v784_v59 = vpop.permute.xlu1 %783  ;;  %v782_v60 = vpop.permute.xlu0 %781 }
 0x11e   :  { %887 = vst.msk [vmem:[#allocation3 + $0xa4] sm:$0xf] %vm845_vm4, %v784_v59  ;;  %886 = vst.msk [vmem:[#allocation3 + $0xa0] sm:$0xf] %vm845_vm4, %v782_v60 }
 0x11f   :  { %1573 = vrot.lane.b32.xlu1 %v14130_v58, %s15277_s0  ;;  %1571 = vrot.lane.b32.xlu0 %v15869_v8, %s15277_s0  ;;  %v1338_v8 = vld [vmem:[#allocation2 + $0x100] sm:$0xff] }
 0x121   :  { %v788_v63 = vpop.permute.xlu1 %787  ;;  %v786_v4 = vpop.permute.xlu0 %785 }
 0x122   :  { %889 = vst.msk [vmem:[#allocation3 + $0xac] sm:$0xf] %vm845_vm4, %v788_v63  ;;  %888 = vst.msk [vmem:[#allocation3 + $0xa8] sm:$0xf] %vm845_vm4, %v786_v4 }
 0x123   :  { %1577 = vrot.lane.b32.xlu1 %v15884_v22, %s15277_s0  ;;  %1575 = vrot.lane.b32.xlu0 %v15878_v16, %s15277_s0  ;;  %v14138_v16 = vpack.c.bf16 %v1338_v8, %v1338_v8 }
 0x125   :  { %v792_v11 = vpop.permute.xlu1 %791  ;;  %v790_v5 = vpop.permute.xlu0 %789 }
 0x126   :  { %891 = vst.msk [vmem:[#allocation3 + $0xb4] sm:$0xf] %vm845_vm4, %v792_v11  ;;  %890 = vst.msk [vmem:[#allocation3 + $0xb0] sm:$0xf] %vm845_vm4, %v790_v5  ;;  %v1760_v5 = vld [vmem:[#allocation2 + $0x11] sm:$0xff] }
 0x127   :  { %1581 = vrot.lane.b32.xlu1 %v14134_v0, %s15277_s0  ;;  %1579 = vrot.lane.b32.xlu0 %v15882_v21, %s15277_s0  ;;  %v1342_v21 = vld [vmem:[#allocation2 + $0x160] sm:$0xff] }
 0x129   :  { %v796_v7 = vpop.permute.xlu1 %795  ;;  %v794_v9 = vpop.permute.xlu0 %793 }
 0x12a   :  { %893 = vst.msk [vmem:[#allocation3 + $0xbc] sm:$0xf] %vm845_vm4, %v796_v7  ;;  %892 = vst.msk [vmem:[#allocation3 + $0xb8] sm:$0xf] %vm845_vm4, %v794_v9  ;;  %v14175_v9 = vpack.c.bf16 %v1760_v5, %v1760_v5 }
 0x12b   :  { %1585 = vrot.lane.b32.xlu1 %v15901_v33, %s15277_s0  ;;  %1583 = vrot.lane.b32.xlu0 %v15889_v24, %s15277_s0  ;;  %v14142_v24 = vpack.c.bf16 %v1342_v21, %v1342_v21 }
 0x12d   :  { %v1137_v22 = vpop.permute.xlu1 %1136  ;;  %v1135_v12 = vpop.permute.xlu0 %1134 }
 0x12e   :  { %1280 = vst.msk [vmem:[#allocation3 + $0x4] sm:$0xf] %vm1278_vm5, %v1137_v22  ;;  %1279 = vst.msk [vmem:[#allocation3] sm:$0xf] %vm1278_vm5, %v1135_v12 }
 0x12f   :  { %1589 = vrot.lane.b32.xlu1 %v14138_v16, %s15277_s0  ;;  %1587 = vrot.lane.b32.xlu0 %v15899_v32, %s15277_s0  ;;  %v1346_v32 = vld [vmem:[#allocation2 + $0x1c0] sm:$0xff]  ;;  %v1762_v16 = vld [vmem:[#allocation2 + $0x31] sm:$0xff] }
 0x130   :  { %v14177_v21 = vpack.c.bf16 %v1762_v16, %v1762_v16 }
 0x131   :  { %v1141_v17 = vpop.permute.xlu1 %1140  ;;  %v1139_v23 = vpop.permute.xlu0 %1138 }
 0x132   :  { %1282 = vst.msk [vmem:[#allocation3 + $0xc] sm:$0xf] %vm1278_vm5, %v1141_v17  ;;  %1281 = vst.msk [vmem:[#allocation3 + $0x8] sm:$0xf] %vm1278_vm5, %v1139_v23  ;;  %v1765_v17 = vld [vmem:[#allocation2 + $0x81] sm:$0xff]  ;;  %v1764_v23 = vld [vmem:[#allocation2 + $0x71] sm:$0xff] }
 0x133   :  { %1593 = vrot.lane.b32.xlu1 %v15915_v43, %s15277_s0  ;;  %1591 = vrot.lane.b32.xlu0 %v15904_v37, %s15277_s0  ;;  %v14146_v37 = vpack.c.bf16 %v1346_v32, %v1346_v32  ;;  %v1767_v32 = vld [vmem:[#allocation2 + $0xa1] sm:$0xff] }
 0x135   :  { %v1145_v33 = vpop.permute.xlu1 %1144  ;;  %v1143_v25 = vpop.permute.xlu0 %1142 }
 0x136   :  { %1284 = vst.msk [vmem:[#allocation3 + $0x14] sm:$0xf] %vm1278_vm5, %v1145_v33  ;;  %1283 = vst.msk [vmem:[#allocation3 + $0x10] sm:$0xf] %vm1278_vm5, %v1143_v25  ;;  %v14180_v33 = vpack.c.bf16 %v1765_v17, %v1765_v17  ;;  %v14179_v25 = vpack.c.bf16 %v1764_v23, %v1764_v23 }
 0x137   :  { %1597 = vrot.lane.b32.xlu1 %v14142_v24, %s15277_s0  ;;  %1595 = vrot.lane.b32.xlu0 %v15910_v40, %s15277_s0  ;;  %v1350_v40 = vld [vmem:[#allocation2 + $0x220] sm:$0xff] }
 0x139   :  { %v1149_v26 = vpop.permute.xlu1 %1148  ;;  %v1147_v27 = vpop.permute.xlu0 %1146 }
 0x13a   :  { %1286 = vst.msk [vmem:[#allocation3 + $0x1c] sm:$0xf] %vm1278_vm5, %v1149_v26  ;;  %1285 = vst.msk [vmem:[#allocation3 + $0x18] sm:$0xf] %vm1278_vm5, %v1147_v27  ;;  %v1766_v26 = vld [vmem:[#allocation2 + $0x91] sm:$0xff] }
 0x13b   :  { %1601 = vrot.lane.b32.xlu1 %v15927_v54, %s15277_s0  ;;  %1599 = vrot.lane.b32.xlu0 %v15921_v48, %s15277_s0  ;;  %v14150_v48 = vpack.c.bf16 %v1350_v40, %v1350_v40  ;;  %v1769_v40 = vld [vmem:[#allocation2 + $0xe1] sm:$0xff] }
 0x13d   :  { %v1153_v43 = vpop.permute.xlu1 %1152  ;;  %v1151_v28 = vpop.permute.xlu0 %1150 }
 0x13e   :  { %1288 = vst.msk [vmem:[#allocation3 + $0x24] sm:$0xf] %vm1278_vm5, %v1153_v43  ;;  %1287 = vst.msk [vmem:[#allocation3 + $0x20] sm:$0xf] %vm1278_vm5, %v1151_v28  ;;  %v14182_v43 = vpack.c.bf16 %v1767_v32, %v1767_v32  ;;  %v14181_v28 = vpack.c.bf16 %v1766_v26, %v1766_v26 }
 0x13f   :  { %1605 = vrot.lane.b32.xlu1 %v14146_v37, %s15277_s0  ;;  %1603 = vrot.lane.b32.xlu0 %v15925_v53, %s15277_s0  ;;  %v1354_v53 = vld [vmem:[#allocation2 + $0x280] sm:$0xff] }
 0x141   :  { %v1157_v29 = vpop.permute.xlu1 %1156  ;;  %v1155_v35 = vpop.permute.xlu0 %1154 }
 0x142   :  { %1290 = vst.msk [vmem:[#allocation3 + $0x2c] sm:$0xf] %vm1278_vm5, %v1157_v29  ;;  %1289 = vst.msk [vmem:[#allocation3 + $0x28] sm:$0xf] %vm1278_vm5, %v1155_v35  ;;  %v1768_v29 = vld [vmem:[#allocation2 + $0xd1] sm:$0xff] }
 0x143   :  { %1609 = vrot.lane.b32.xlu1 %v15944_v2, %s15277_s0  ;;  %1607 = vrot.lane.b32.xlu0 %v15932_v56, %s15277_s0  ;;  %v14154_v56 = vpack.c.bf16 %v1354_v53, %v1354_v53  ;;  %v1771_v53 = vld [vmem:[#allocation2 + $0x101] sm:$0xff] }
 0x145   :  { %v1161_v54 = vpop.permute.xlu1 %1160  ;;  %v1159_v36 = vpop.permute.xlu0 %1158 }
 0x146   :  { %1292 = vst.msk [vmem:[#allocation3 + $0x34] sm:$0xf] %vm1278_vm5, %v1161_v54  ;;  %1291 = vst.msk [vmem:[#allocation3 + $0x30] sm:$0xf] %vm1278_vm5, %v1159_v36  ;;  %v14184_v54 = vpack.c.bf16 %v1769_v40, %v1769_v40  ;;  %v14183_v36 = vpack.c.bf16 %v1768_v29, %v1768_v29 }
 0x147   :  { %1613 = vrot.lane.b32.xlu1 %v14150_v48, %s15277_s0  ;;  %1611 = vrot.lane.b32.xlu0 %v15942_v1, %s15277_s0  ;;  %v1358_v1 = vld [vmem:[#allocation2 + $0x2e0] sm:$0xff] }
 0x149   :  { %v1165_v38 = vpop.permute.xlu1 %1164  ;;  %v1163_v39 = vpop.permute.xlu0 %1162 }
 0x14a   :  { %1294 = vst.msk [vmem:[#allocation3 + $0x3c] sm:$0xf] %vm1278_vm5, %v1165_v38  ;;  %1293 = vst.msk [vmem:[#allocation3 + $0x38] sm:$0xf] %vm1278_vm5, %v1163_v39  ;;  %v1770_v38 = vld [vmem:[#allocation2 + $0xf1] sm:$0xff] }
 0x14b   :  { %1617 = vrot.lane.b32.xlu1 %v15958_v14, %s15277_s0  ;;  %1615 = vrot.lane.b32.xlu0 %v15947_v6, %s15277_s0  ;;  %v14158_v6 = vpack.c.bf16 %v1358_v1, %v1358_v1  ;;  %v1773_v1 = vld [vmem:[#allocation2 + $0x141] sm:$0xff] }
 0x14d   :  { %v1169_v2 = vpop.permute.xlu1 %1168  ;;  %v1167_v41 = vpop.permute.xlu0 %1166 }
 0x14e   :  { %1296 = vst.msk [vmem:[#allocation3 + $0x44] sm:$0xf] %vm1278_vm5, %v1169_v2  ;;  %1295 = vst.msk [vmem:[#allocation3 + $0x40] sm:$0xf] %vm1278_vm5, %v1167_v41  ;;  %v14186_v2 = vpack.c.bf16 %v1771_v53, %v1771_v53  ;;  %v14185_v41 = vpack.c.bf16 %v1770_v38, %v1770_v38 }
 0x14f   :  { %1621 = vrot.lane.b32.xlu1 %v14154_v56, %s15277_s0  ;;  %1619 = vrot.lane.b32.xlu0 %v15953_v10, %s15277_s0  ;;  %v1362_v10 = vld [vmem:[#allocation2 + $0x340] sm:$0xff] }
 0x151   :  { %v1173_v42 = vpop.permute.xlu1 %1172  ;;  %v1171_v45 = vpop.permute.xlu0 %1170 }
 0x152   :  { %1298 = vst.msk [vmem:[#allocation3 + $0x4c] sm:$0xf] %vm1278_vm5, %v1173_v42  ;;  %1297 = vst.msk [vmem:[#allocation3 + $0x48] sm:$0xf] %vm1278_vm5, %v1171_v45  ;;  %v1772_v42 = vld [vmem:[#allocation2 + $0x131] sm:$0xff] }
 0x153   :  { %1625 = vrot.lane.b32.xlu1 %v15975_v34, %s15277_s0  ;;  %1623 = vrot.lane.b32.xlu0 %v15964_v20, %s15277_s0  ;;  %v14162_v20 = vpack.c.bf16 %v1362_v10, %v1362_v10  ;;  %v1775_v10 = vld [vmem:[#allocation2 + $0x161] sm:$0xff] }
 0x155   :  { %v1177_v14 = vpop.permute.xlu1 %1176  ;;  %v1175_v46 = vpop.permute.xlu0 %1174 }
 0x156   :  { %1300 = vst.msk [vmem:[#allocation3 + $0x54] sm:$0xf] %vm1278_vm5, %v1177_v14  ;;  %1299 = vst.msk [vmem:[#allocation3 + $0x50] sm:$0xf] %vm1278_vm5, %v1175_v46  ;;  %v14188_v14 = vpack.c.bf16 %v1773_v1, %v1773_v1  ;;  %v14187_v46 = vpack.c.bf16 %v1772_v42, %v1772_v42 }
 0x157   :  { %1629 = vrot.lane.b32.xlu1 %v14158_v6, %s15277_s0  ;;  %1627 = vrot.lane.b32.xlu0 %v15973_v31, %s15277_s0  ;;  %v1366_v31 = vld [vmem:[#allocation2 + $0x3a0] sm:$0xff] }
 0x159   :  { %v1181_v50 = vpop.permute.xlu1 %1180  ;;  %v1179_v51 = vpop.permute.xlu0 %1178 }
 0x15a   :  { %1302 = vst.msk [vmem:[#allocation3 + $0x5c] sm:$0xf] %vm1278_vm5, %v1181_v50  ;;  %1301 = vst.msk [vmem:[#allocation3 + $0x58] sm:$0xf] %vm1278_vm5, %v1179_v51  ;;  %v1774_v50 = vld [vmem:[#allocation2 + $0x151] sm:$0xff] }
 0x15b   :  { %1633 = vrot.lane.b32.xlu1 %v15992_v57, %s15277_s0  ;;  %1631 = vrot.lane.b32.xlu0 %v15983_v44, %s15277_s0  ;;  %v14166_v44 = vpack.c.bf16 %v1366_v31, %v1366_v31  ;;  %v1777_v31 = vld [vmem:[#allocation2 + $0x1a1] sm:$0xff] }
 0x15d   :  { %v1185_v34 = vpop.permute.xlu1 %1184  ;;  %v1183_v52 = vpop.permute.xlu0 %1182 }
 0x15e   :  { %1304 = vst.msk [vmem:[#allocation3 + $0x64] sm:$0xf] %vm1278_vm5, %v1185_v34  ;;  %1303 = vst.msk [vmem:[#allocation3 + $0x60] sm:$0xf] %vm1278_vm5, %v1183_v52  ;;  %v14190_v34 = vpack.c.bf16 %v1775_v10, %v1775_v10  ;;  %v14189_v52 = vpack.c.bf16 %v1774_v50, %v1774_v50 }
 0x15f   :  { %1637 = vrot.lane.b32.xlu1 %v14162_v20, %s15277_s0  ;;  %1635 = vrot.lane.b32.xlu0 %v15990_v55, %s15277_s0  ;;  %v1370_v55 = vld [vmem:[#allocation2 + $0x400] sm:$0xff] }
 0x161   :  { %v1189_v58 = vpop.permute.xlu1 %1188  ;;  %v1187_v59 = vpop.permute.xlu0 %1186 }
 0x162   :  { %1306 = vst.msk [vmem:[#allocation3 + $0x6c] sm:$0xf] %vm1278_vm5, %v1189_v58  ;;  %1305 = vst.msk [vmem:[#allocation3 + $0x68] sm:$0xf] %vm1278_vm5, %v1187_v59  ;;  %v1776_v58 = vld [vmem:[#allocation2 + $0x191] sm:$0xff] }
 0x163   :  { %1641 = vrot.lane.b32.xlu1 %v16013_v19, %s15277_s0  ;;  %1639 = vrot.lane.b32.xlu0 %v16000_v3, %s15277_s0  ;;  %v14170_v3 = vpack.c.bf16 %v1370_v55, %v1370_v55  ;;  %v1779_v55 = vld [vmem:[#allocation2 + $0x1c1] sm:$0xff] }
 0x165   :  { %v1193_v57 = vpop.permute.xlu1 %1192  ;;  %v1191_v60 = vpop.permute.xlu0 %1190 }
 0x166   :  { %1308 = vst.msk [vmem:[#allocation3 + $0x74] sm:$0xf] %vm1278_vm5, %v1193_v57  ;;  %1307 = vst.msk [vmem:[#allocation3 + $0x70] sm:$0xf] %vm1278_vm5, %v1191_v60  ;;  %v14192_v57 = vpack.c.bf16 %v1777_v31, %v1777_v31  ;;  %v14191_v60 = vpack.c.bf16 %v1776_v58, %v1776_v58 }
 0x167   :  { %1645 = vrot.lane.b32.xlu1 %v14166_v44, %s15277_s0  ;;  %1643 = vrot.lane.b32.xlu0 %v16011_v18, %s15277_s0  ;;  %v1374_v18 = vld [vmem:[#allocation2 + $0x460] sm:$0xff] }
 0x169   :  { %v1197_v62 = vpop.permute.xlu1 %1196  ;;  %v1195_v63 = vpop.permute.xlu0 %1194 }
 0x16a   :  { %1310 = vst.msk [vmem:[#allocation3 + $0x7c] sm:$0xf] %vm1278_vm5, %v1197_v62  ;;  %1309 = vst.msk [vmem:[#allocation3 + $0x78] sm:$0xf] %vm1278_vm5, %v1195_v63  ;;  %v1778_v62 = vld [vmem:[#allocation2 + $0x1b1] sm:$0xff] }
 0x16b   :  { %1649 = vrot.lane.b32.xlu1 %v16034_v49, %s15277_s0  ;;  %1647 = vrot.lane.b32.xlu0 %v16021_v30, %s15277_s0  ;;  %v14174_v30 = vpack.c.bf16 %v1374_v18, %v1374_v18  ;;  %v1761_v49 = vld [vmem:[#allocation2 + $0x21] sm:$0xff] }
 0x16c   :  { %v1781_v18 = vld [vmem:[#allocation2 + $0x201] sm:$0xff] }
 0x16d   :  { %v1201_v19 = vpop.permute.xlu1 %1200  ;;  %v1199_v4 = vpop.permute.xlu0 %1198 }
 0x16e   :  { %1312 = vst.msk [vmem:[#allocation3 + $0x84] sm:$0xf] %vm1278_vm5, %v1201_v19  ;;  %1311 = vst.msk [vmem:[#allocation3 + $0x80] sm:$0xf] %vm1278_vm5, %v1199_v4  ;;  %v14194_v19 = vpack.c.bf16 %v1779_v55, %v1779_v55  ;;  %v14193_v4 = vpack.c.bf16 %v1778_v62, %v1778_v62 }
 0x16f   :  { %1653 = vrot.lane.b32.xlu1 %v14170_v3, %s15277_s0  ;;  %1651 = vrot.lane.b32.xlu0 %v16032_v47, %s15277_s0  ;;  %v14176_v47 = vpack.c.bf16 %v1761_v49, %v1761_v49  ;;  %v14196_v49 = vpack.c.bf16 %v1781_v18, %v1781_v18 }
 0x171   :  { %v1205_v0 = vpop.permute.xlu1 %1204  ;;  %v1203_v11 = vpop.permute.xlu0 %1202 }
 0x172   :  { %1314 = vst.msk [vmem:[#allocation3 + $0x8c] sm:$0xf] %vm1278_vm5, %v1205_v0  ;;  %1313 = vst.msk [vmem:[#allocation3 + $0x88] sm:$0xf] %vm1278_vm5, %v1203_v11  ;;  %v1780_v0 = vld [vmem:[#allocation2 + $0x1f1] sm:$0xff] }
 0x173   :  { %1657 = vrot.lane.b32.xlu1 %v16055_v15, %s15277_s0  ;;  %1655 = vrot.lane.b32.xlu0 %v16042_v61, %s15277_s0  ;;  %v1763_v15 = vld [vmem:[#allocation2 + $0x41] sm:$0xff]  ;;  %v14195_v5 = vpack.c.bf16 %v1780_v0, %v1780_v0 }
 0x174   :  { %v14178_v12 = vpack.c.bf16 %v1763_v15, %v1763_v15 }
 0x175   :  { %v1209_v8 = vpop.permute.xlu1 %1208  ;;  %v1207_v7 = vpop.permute.xlu0 %1206 }
 0x176   :  { %1316 = vst.msk [vmem:[#allocation3 + $0x94] sm:$0xf] %vm1278_vm5, %v1209_v8  ;;  %1315 = vst.msk [vmem:[#allocation3 + $0x90] sm:$0xf] %vm1278_vm5, %v1207_v7  ;;  %v1783_v8 = vld [vmem:[#allocation2 + $0x221] sm:$0xff]  ;;  %v1782_v7 = vld [vmem:[#allocation2 + $0x211] sm:$0xff] }
 0x177   :  { %1661 = vrot.lane.b32.xlu1 %v14174_v30, %s15277_s0  ;;  %1659 = vrot.lane.b32.xlu0 %v16053_v13, %s15277_s0  ;;  %v14198_v15 = vpack.c.bf16 %v1783_v8, %v1783_v8  ;;  %v14197_v16 = vpack.c.bf16 %v1782_v7, %v1782_v7 }
 0x179   :  { %v1213_v22 = vpop.permute.xlu1 %1212  ;;  %v1211_v61 = vpop.permute.xlu0 %1210 }
 0x17a   :  { %1318 = vst.msk [vmem:[#allocation3 + $0x9c] sm:$0xf] %vm1278_vm5, %v1213_v22  ;;  %1317 = vst.msk [vmem:[#allocation3 + $0x98] sm:$0xf] %vm1278_vm5, %v1211_v61  ;;  %v1785_v22 = vld [vmem:[#allocation2 + $0x261] sm:$0xff]  ;;  %v1784_v61 = vld [vmem:[#allocation2 + $0x251] sm:$0xff] }
 0x17b   :  { %2002 = vrot.lane.b32.xlu1 %v14176_v47, %s15278_s18  ;;  %2000 = vrot.lane.b32.xlu0 %v14175_v9, %s15278_s18  ;;  %v14200_v17 = vpack.c.bf16 %v1785_v22, %v1785_v22  ;;  %v14199_v23 = vpack.c.bf16 %v1784_v61, %v1784_v61 }
 0x17d   :  { %v1217_v13 = vpop.permute.xlu1 %1216  ;;  %v1215_v24 = vpop.permute.xlu0 %1214 }
 0x17e   :  { %1320 = vst.msk [vmem:[#allocation3 + $0xa4] sm:$0xf] %vm1278_vm5, %v1217_v13  ;;  %1319 = vst.msk [vmem:[#allocation3 + $0xa0] sm:$0xf] %vm1278_vm5, %v1215_v24  ;;  %v1787_v13 = vld [vmem:[#allocation2 + $0x281] sm:$0xff]  ;;  %v1786_v24 = vld [vmem:[#allocation2 + $0x271] sm:$0xff] }
 0x17f   :  { %2006 = vrot.lane.b32.xlu1 %v14178_v12, %s15278_s18  ;;  %2004 = vrot.lane.b32.xlu0 %v14177_v21, %s15278_s18  ;;  %v14202_v32 = vpack.c.bf16 %v1787_v13, %v1787_v13  ;;  %v14201_v26 = vpack.c.bf16 %v1786_v24, %v1786_v24 }
 0x181   :  { %v1221_v27 = vpop.permute.xlu1 %1220  ;;  %v1219_v37 = vpop.permute.xlu0 %1218 }
 0x182   :  { %1322 = vst.msk [vmem:[#allocation3 + $0xac] sm:$0xf] %vm1278_vm5, %v1221_v27  ;;  %1321 = vst.msk [vmem:[#allocation3 + $0xa8] sm:$0xf] %vm1278_vm5, %v1219_v37  ;;  %v1789_v27 = vld [vmem:[#allocation2 + $0x2c1] sm:$0xff]  ;;  %v1788_v37 = vld [vmem:[#allocation2 + $0x2b1] sm:$0xff] }
 0x183   :  { %2010 = vrot.lane.b32.xlu1 %v14180_v33, %s15278_s18  ;;  %2008 = vrot.lane.b32.xlu0 %v14179_v25, %s15278_s18  ;;  %v14204_v40 = vpack.c.bf16 %v1789_v27, %v1789_v27  ;;  %v14203_v29 = vpack.c.bf16 %v1788_v37, %v1788_v37 }
 0x185   :  { %v1225_v35 = vpop.permute.xlu1 %1224  ;;  %v1223_v48 = vpop.permute.xlu0 %1222 }
 0x186   :  { %1324 = vst.msk [vmem:[#allocation3 + $0xb4] sm:$0xf] %vm1278_vm5, %v1225_v35  ;;  %1323 = vst.msk [vmem:[#allocation3 + $0xb0] sm:$0xf] %vm1278_vm5, %v1223_v48  ;;  %v1791_v35 = vld [vmem:[#allocation2 + $0x2e1] sm:$0xff]  ;;  %v1790_v48 = vld [vmem:[#allocation2 + $0x2d1] sm:$0xff] }
 0x187   :  { %2014 = vrot.lane.b32.xlu1 %v14182_v43, %s15278_s18  ;;  %2012 = vrot.lane.b32.xlu0 %v14181_v28, %s15278_s18  ;;  %v14206_v53 = vpack.c.bf16 %v1791_v35, %v1791_v35  ;;  %v14205_v38 = vpack.c.bf16 %v1790_v48, %v1790_v48 }
 0x189   :  { %v1229_v39 = vpop.permute.xlu1 %1228  ;;  %v1227_v56 = vpop.permute.xlu0 %1226 }
 0x18a   :  { %1326 = vst.msk [vmem:[#allocation3 + $0xbc] sm:$0xf] %vm1278_vm5, %v1229_v39  ;;  %1325 = vst.msk [vmem:[#allocation3 + $0xb8] sm:$0xf] %vm1278_vm5, %v1227_v56  ;;  %v1793_v39 = vld [vmem:[#allocation2 + $0x321] sm:$0xff]  ;;  %v1792_v56 = vld [vmem:[#allocation2 + $0x311] sm:$0xff] }
 0x18b   :  { %2018 = vrot.lane.b32.xlu1 %v14184_v54, %s15278_s18  ;;  %2016 = vrot.lane.b32.xlu0 %v14183_v36, %s15278_s18  ;;  %v14208_v1 = vpack.c.bf16 %v1793_v39, %v1793_v39  ;;  %v14207_v42 = vpack.c.bf16 %v1792_v56, %v1792_v56 }
 0x18d   :  { %v1570_v45 = vpop.permute.xlu1 %1569  ;;  %v1568_v6 = vpop.permute.xlu0 %1567 }
 0x18e   :  { %1713 = vst.msk [vmem:[#allocation3 + $0x4] sm:$0xf] %vm1711_vm6, %v1570_v45  ;;  %1712 = vst.msk [vmem:[#allocation3] sm:$0xf] %vm1711_vm6, %v1568_v6  ;;  %v1795_v45 = vld [vmem:[#allocation2 + $0x341] sm:$0xff]  ;;  %v1794_v6 = vld [vmem:[#allocation2 + $0x331] sm:$0xff] }
 0x18f   :  { %2022 = vrot.lane.b32.xlu1 %v14186_v2, %s15278_s18  ;;  %2020 = vrot.lane.b32.xlu0 %v14185_v41, %s15278_s18  ;;  %v14210_v10 = vpack.c.bf16 %v1795_v45, %v1795_v45  ;;  %v14209_v50 = vpack.c.bf16 %v1794_v6, %v1794_v6 }
 0x191   :  { %v1574_v51 = vpop.permute.xlu1 %1573  ;;  %v1572_v20 = vpop.permute.xlu0 %1571 }
 0x192   :  { %1715 = vst.msk [vmem:[#allocation3 + $0xc] sm:$0xf] %vm1711_vm6, %v1574_v51  ;;  %1714 = vst.msk [vmem:[#allocation3 + $0x8] sm:$0xf] %vm1711_vm6, %v1572_v20  ;;  %v1797_v51 = vld [vmem:[#allocation2 + $0x381] sm:$0xff]  ;;  %v1796_v20 = vld [vmem:[#allocation2 + $0x371] sm:$0xff] }
 0x193   :  { %2026 = vrot.lane.b32.xlu1 %v14188_v14, %s15278_s18  ;;  %2024 = vrot.lane.b32.xlu0 %v14187_v46, %s15278_s18  ;;  %v14212_v31 = vpack.c.bf16 %v1797_v51, %v1797_v51  ;;  %v14211_v58 = vpack.c.bf16 %v1796_v20, %v1796_v20 }
 0x195   :  { %v1578_v59 = vpop.permute.xlu1 %1577  ;;  %v1576_v44 = vpop.permute.xlu0 %1575 }
 0x196   :  { %1717 = vst.msk [vmem:[#allocation3 + $0x14] sm:$0xf] %vm1711_vm6, %v1578_v59  ;;  %1716 = vst.msk [vmem:[#allocation3 + $0x10] sm:$0xf] %vm1711_vm6, %v1576_v44  ;;  %v1799_v59 = vld [vmem:[#allocation2 + $0x3a1] sm:$0xff]  ;;  %v1798_v44 = vld [vmem:[#allocation2 + $0x391] sm:$0xff] }
 0x197   :  { %2030 = vrot.lane.b32.xlu1 %v14190_v34, %s15278_s18  ;;  %2028 = vrot.lane.b32.xlu0 %v14189_v52, %s15278_s18  ;;  %v14214_v55 = vpack.c.bf16 %v1799_v59, %v1799_v59  ;;  %v14213_v62 = vpack.c.bf16 %v1798_v44, %v1798_v44 }
 0x199   :  { %v1582_v63 = vpop.permute.xlu1 %1581  ;;  %v1580_v3 = vpop.permute.xlu0 %1579 }
 0x19a   :  { %1719 = vst.msk [vmem:[#allocation3 + $0x1c] sm:$0xf] %vm1711_vm6, %v1582_v63  ;;  %1718 = vst.msk [vmem:[#allocation3 + $0x18] sm:$0xf] %vm1711_vm6, %v1580_v3  ;;  %v1801_v63 = vld [vmem:[#allocation2 + $0x3e1] sm:$0xff]  ;;  %v1800_v3 = vld [vmem:[#allocation2 + $0x3d1] sm:$0xff] }
 0x19b   :  { %2034 = vrot.lane.b32.xlu1 %v14192_v57, %s15278_s18  ;;  %2032 = vrot.lane.b32.xlu0 %v14191_v60, %s15278_s18  ;;  %v14216_v18 = vpack.c.bf16 %v1801_v63, %v1801_v63  ;;  %v14215_v0 = vpack.c.bf16 %v1800_v3, %v1800_v3 }
 0x19d   :  { %v1586_v11 = vpop.permute.xlu1 %1585  ;;  %v1584_v30 = vpop.permute.xlu0 %1583 }
 0x19e   :  { %1721 = vst.msk [vmem:[#allocation3 + $0x24] sm:$0xf] %vm1711_vm6, %v1586_v11  ;;  %1720 = vst.msk [vmem:[#allocation3 + $0x20] sm:$0xf] %vm1711_vm6, %v1584_v30  ;;  %v1803_v11 = vld [vmem:[#allocation2 + $0x401] sm:$0xff]  ;;  %v1802_v30 = vld [vmem:[#allocation2 + $0x3f1] sm:$0xff] }
 0x19f   :  { %2038 = vrot.lane.b32.xlu1 %v14194_v19, %s15278_s18  ;;  %2036 = vrot.lane.b32.xlu0 %v14193_v4, %s15278_s18  ;;  %v14218_v8 = vpack.c.bf16 %v1803_v11, %v1803_v11  ;;  %v14217_v7 = vpack.c.bf16 %v1802_v30, %v1802_v30 }
 0x1a1   :  { %v1590_v47 = vpop.permute.xlu1 %1589  ;;  %v1588_v9 = vpop.permute.xlu0 %1587 }
 0x1a2   :  { %1723 = vst.msk [vmem:[#allocation3 + $0x2c] sm:$0xf] %vm1711_vm6, %v1590_v47  ;;  %1722 = vst.msk [vmem:[#allocation3 + $0x28] sm:$0xf] %vm1711_vm6, %v1588_v9  ;;  %v1805_v47 = vld [vmem:[#allocation2 + $0x441] sm:$0xff]  ;;  %v1804_v9 = vld [vmem:[#allocation2 + $0x431] sm:$0xff] }
 0x1a3   :  { %2042 = vrot.lane.b32.xlu1 %v14196_v49, %s15278_s18  ;;  %2040 = vrot.lane.b32.xlu0 %v14195_v5, %s15278_s18  ;;  %v14220_v22 = vpack.c.bf16 %v1805_v47, %v1805_v47  ;;  %v14219_v61 = vpack.c.bf16 %v1804_v9, %v1804_v9 }
 0x1a5   :  { %v1594_v12 = vpop.permute.xlu1 %1593  ;;  %v1592_v21 = vpop.permute.xlu0 %1591 }
 0x1a6   :  { %1725 = vst.msk [vmem:[#allocation3 + $0x34] sm:$0xf] %vm1711_vm6, %v1594_v12  ;;  %1724 = vst.msk [vmem:[#allocation3 + $0x30] sm:$0xf] %vm1711_vm6, %v1592_v21  ;;  %v1807_v12 = vld [vmem:[#allocation2 + $0x461] sm:$0xff]  ;;  %v1806_v21 = vld [vmem:[#allocation2 + $0x451] sm:$0xff] }
 0x1a7   :  { %2046 = vrot.lane.b32.xlu1 %v14198_v15, %s15278_s18  ;;  %2044 = vrot.lane.b32.xlu0 %v14197_v16, %s15278_s18  ;;  %v14222_v13 = vpack.c.bf16 %v1807_v12, %v1807_v12  ;;  %v14221_v24 = vpack.c.bf16 %v1806_v21, %v1806_v21 }
 0x1a9   :  { %v1598_v33 = vpop.permute.xlu1 %1597  ;;  %v1596_v25 = vpop.permute.xlu0 %1595 }
 0x1aa   :  { %1727 = vst.msk [vmem:[#allocation3 + $0x3c] sm:$0xf] %vm1711_vm6, %v1598_v33  ;;  %1726 = vst.msk [vmem:[#allocation3 + $0x38] sm:$0xf] %vm1711_vm6, %v1596_v25  ;;  %v2194_v33 = vld [vmem:[#allocation2 + $0x22] sm:$0xff]  ;;  %v2193_v25 = vld [vmem:[#allocation2 + $0x12] sm:$0xff] }
 0x1ab   :  { %2050 = vrot.lane.b32.xlu1 %v14200_v17, %s15278_s18  ;;  %2048 = vrot.lane.b32.xlu0 %v14199_v23, %s15278_s18  ;;  %v14224_v27 = vpack.c.bf16 %v2194_v33, %v2194_v33  ;;  %v14223_v37 = vpack.c.bf16 %v2193_v25, %v2193_v25 }
 0x1ad   :  { %v1602_v43 = vpop.permute.xlu1 %1601  ;;  %v1600_v28 = vpop.permute.xlu0 %1599 }
 0x1ae   :  { %1729 = vst.msk [vmem:[#allocation3 + $0x44] sm:$0xf] %vm1711_vm6, %v1602_v43  ;;  %1728 = vst.msk [vmem:[#allocation3 + $0x40] sm:$0xf] %vm1711_vm6, %v1600_v28  ;;  %v2196_v43 = vld [vmem:[#allocation2 + $0x42] sm:$0xff]  ;;  %v2195_v28 = vld [vmem:[#allocation2 + $0x32] sm:$0xff] }
 0x1af   :  { %2054 = vrot.lane.b32.xlu1 %v14202_v32, %s15278_s18  ;;  %2052 = vrot.lane.b32.xlu0 %v14201_v26, %s15278_s18  ;;  %v14226_v35 = vpack.c.bf16 %v2196_v43, %v2196_v43  ;;  %v14225_v48 = vpack.c.bf16 %v2195_v28, %v2195_v28 }
 0x1b1   :  { %v1606_v54 = vpop.permute.xlu1 %1605  ;;  %v1604_v36 = vpop.permute.xlu0 %1603 }
 0x1b2   :  { %1731 = vst.msk [vmem:[#allocation3 + $0x4c] sm:$0xf] %vm1711_vm6, %v1606_v54  ;;  %1730 = vst.msk [vmem:[#allocation3 + $0x48] sm:$0xf] %vm1711_vm6, %v1604_v36  ;;  %v2198_v54 = vld [vmem:[#allocation2 + $0x82] sm:$0xff]  ;;  %v2197_v36 = vld [vmem:[#allocation2 + $0x72] sm:$0xff] }
 0x1b3   :  { %2058 = vrot.lane.b32.xlu1 %v14204_v40, %s15278_s18  ;;  %2056 = vrot.lane.b32.xlu0 %v14203_v29, %s15278_s18  ;;  %v14228_v39 = vpack.c.bf16 %v2198_v54, %v2198_v54  ;;  %v14227_v56 = vpack.c.bf16 %v2197_v36, %v2197_v36 }
 0x1b5   :  { %v1610_v2 = vpop.permute.xlu1 %1609  ;;  %v1608_v41 = vpop.permute.xlu0 %1607 }
 0x1b6   :  { %1733 = vst.msk [vmem:[#allocation3 + $0x54] sm:$0xf] %vm1711_vm6, %v1610_v2  ;;  %1732 = vst.msk [vmem:[#allocation3 + $0x50] sm:$0xf] %vm1711_vm6, %v1608_v41  ;;  %v2200_v2 = vld [vmem:[#allocation2 + $0xa2] sm:$0xff]  ;;  %v2199_v41 = vld [vmem:[#allocation2 + $0x92] sm:$0xff] }
 0x1b7   :  { %2062 = vrot.lane.b32.xlu1 %v14206_v53, %s15278_s18  ;;  %2060 = vrot.lane.b32.xlu0 %v14205_v38, %s15278_s18  ;;  %v14230_v45 = vpack.c.bf16 %v2200_v2, %v2200_v2  ;;  %v14229_v6 = vpack.c.bf16 %v2199_v41, %v2199_v41 }
 0x1b9   :  { %v1614_v14 = vpop.permute.xlu1 %1613  ;;  %v1612_v46 = vpop.permute.xlu0 %1611 }
 0x1ba   :  { %1735 = vst.msk [vmem:[#allocation3 + $0x5c] sm:$0xf] %vm1711_vm6, %v1614_v14  ;;  %1734 = vst.msk [vmem:[#allocation3 + $0x58] sm:$0xf] %vm1711_vm6, %v1612_v46  ;;  %v2202_v14 = vld [vmem:[#allocation2 + $0xe2] sm:$0xff]  ;;  %v2201_v46 = vld [vmem:[#allocation2 + $0xd2] sm:$0xff] }
 0x1bb   :  { %2066 = vrot.lane.b32.xlu1 %v14208_v1, %s15278_s18  ;;  %2064 = vrot.lane.b32.xlu0 %v14207_v42, %s15278_s18  ;;  %v14232_v51 = vpack.c.bf16 %v2202_v14, %v2202_v14  ;;  %v14231_v20 = vpack.c.bf16 %v2201_v46, %v2201_v46 }
 0x1bd   :  { %v1618_v34 = vpop.permute.xlu1 %1617  ;;  %v1616_v52 = vpop.permute.xlu0 %1615 }
 0x1be   :  { %1737 = vst.msk [vmem:[#allocation3 + $0x64] sm:$0xf] %vm1711_vm6, %v1618_v34  ;;  %1736 = vst.msk [vmem:[#allocation3 + $0x60] sm:$0xf] %vm1711_vm6, %v1616_v52  ;;  %v2204_v34 = vld [vmem:[#allocation2 + $0x102] sm:$0xff]  ;;  %v2203_v52 = vld [vmem:[#allocation2 + $0xf2] sm:$0xff] }
 0x1bf   :  { %2070 = vrot.lane.b32.xlu1 %v14210_v10, %s15278_s18  ;;  %2068 = vrot.lane.b32.xlu0 %v14209_v50, %s15278_s18  ;;  %v14234_v59 = vpack.c.bf16 %v2204_v34, %v2204_v34  ;;  %v14233_v44 = vpack.c.bf16 %v2203_v52, %v2203_v52 }
 0x1c1   :  { %v1622_v57 = vpop.permute.xlu1 %1621  ;;  %v1620_v60 = vpop.permute.xlu0 %1619 }
 0x1c2   :  { %1739 = vst.msk [vmem:[#allocation3 + $0x6c] sm:$0xf] %vm1711_vm6, %v1622_v57  ;;  %1738 = vst.msk [vmem:[#allocation3 + $0x68] sm:$0xf] %vm1711_vm6, %v1620_v60  ;;  %v2206_v57 = vld [vmem:[#allocation2 + $0x142] sm:$0xff]  ;;  %v2205_v60 = vld [vmem:[#allocation2 + $0x132] sm:$0xff] }
 0x1c3   :  { %2074 = vrot.lane.b32.xlu1 %v14212_v31, %s15278_s18  ;;  %2072 = vrot.lane.b32.xlu0 %v14211_v58, %s15278_s18  ;;  %v14236_v63 = vpack.c.bf16 %v2206_v57, %v2206_v57  ;;  %v14235_v3 = vpack.c.bf16 %v2205_v60, %v2205_v60 }
 0x1c5   :  { %v1626_v19 = vpop.permute.xlu1 %1625  ;;  %v1624_v4 = vpop.permute.xlu0 %1623 }
 0x1c6   :  { %1741 = vst.msk [vmem:[#allocation3 + $0x74] sm:$0xf] %vm1711_vm6, %v1626_v19  ;;  %1740 = vst.msk [vmem:[#allocation3 + $0x70] sm:$0xf] %vm1711_vm6, %v1624_v4  ;;  %v2208_v19 = vld [vmem:[#allocation2 + $0x162] sm:$0xff]  ;;  %v2207_v4 = vld [vmem:[#allocation2 + $0x152] sm:$0xff] }
 0x1c7   :  { %2078 = vrot.lane.b32.xlu1 %v14214_v55, %s15278_s18  ;;  %2076 = vrot.lane.b32.xlu0 %v14213_v62, %s15278_s18  ;;  %v14238_v11 = vpack.c.bf16 %v2208_v19, %v2208_v19  ;;  %v14237_v30 = vpack.c.bf16 %v2207_v4, %v2207_v4 }
 0x1c9   :  { %v1630_v49 = vpop.permute.xlu1 %1629  ;;  %v1628_v5 = vpop.permute.xlu0 %1627 }
 0x1ca   :  { %1743 = vst.msk [vmem:[#allocation3 + $0x7c] sm:$0xf] %vm1711_vm6, %v1630_v49  ;;  %1742 = vst.msk [vmem:[#allocation3 + $0x78] sm:$0xf] %vm1711_vm6, %v1628_v5  ;;  %v2210_v49 = vld [vmem:[#allocation2 + $0x1a2] sm:$0xff]  ;;  %v2209_v5 = vld [vmem:[#allocation2 + $0x192] sm:$0xff] }
 0x1cb   :  { %2082 = vrot.lane.b32.xlu1 %v14216_v18, %s15278_s18  ;;  %2080 = vrot.lane.b32.xlu0 %v14215_v0, %s15278_s18  ;;  %v14240_v47 = vpack.c.bf16 %v2210_v49, %v2210_v49  ;;  %v14239_v9 = vpack.c.bf16 %v2209_v5, %v2209_v5 }
 0x1cd   :  { %v1634_v15 = vpop.permute.xlu1 %1633  ;;  %v1632_v16 = vpop.permute.xlu0 %1631 }
 0x1ce   :  { %1745 = vst.msk [vmem:[#allocation3 + $0x84] sm:$0xf] %vm1711_vm6, %v1634_v15  ;;  %1744 = vst.msk [vmem:[#allocation3 + $0x80] sm:$0xf] %vm1711_vm6, %v1632_v16  ;;  %v2212_v15 = vld [vmem:[#allocation2 + $0x1c2] sm:$0xff]  ;;  %v2211_v16 = vld [vmem:[#allocation2 + $0x1b2] sm:$0xff] }
 0x1cf   :  { %2086 = vrot.lane.b32.xlu1 %v14218_v8, %s15278_s18  ;;  %2084 = vrot.lane.b32.xlu0 %v14217_v7, %s15278_s18  ;;  %v14242_v12 = vpack.c.bf16 %v2212_v15, %v2212_v15  ;;  %v14241_v21 = vpack.c.bf16 %v2211_v16, %v2211_v16 }
 0x1d1   :  { %v1638_v17 = vpop.permute.xlu1 %1637  ;;  %v1636_v23 = vpop.permute.xlu0 %1635 }
 0x1d2   :  { %1747 = vst.msk [vmem:[#allocation3 + $0x8c] sm:$0xf] %vm1711_vm6, %v1638_v17  ;;  %1746 = vst.msk [vmem:[#allocation3 + $0x88] sm:$0xf] %vm1711_vm6, %v1636_v23  ;;  %v2214_v17 = vld [vmem:[#allocation2 + $0x202] sm:$0xff]  ;;  %v2213_v23 = vld [vmem:[#allocation2 + $0x1f2] sm:$0xff] }
 0x1d3   :  { %2090 = vrot.lane.b32.xlu1 %v14220_v22, %s15278_s18  ;;  %2088 = vrot.lane.b32.xlu0 %v14219_v61, %s15278_s18  ;;  %v14244_v33 = vpack.c.bf16 %v2214_v17, %v2214_v17  ;;  %v14243_v25 = vpack.c.bf16 %v2213_v23, %v2213_v23 }
 0x1d5   :  { %v1642_v32 = vpop.permute.xlu1 %1641  ;;  %v1640_v26 = vpop.permute.xlu0 %1639 }
 0x1d6   :  { %1749 = vst.msk [vmem:[#allocation3 + $0x94] sm:$0xf] %vm1711_vm6, %v1642_v32  ;;  %1748 = vst.msk [vmem:[#allocation3 + $0x90] sm:$0xf] %vm1711_vm6, %v1640_v26  ;;  %v2216_v32 = vld [vmem:[#allocation2 + $0x222] sm:$0xff]  ;;  %v2215_v26 = vld [vmem:[#allocation2 + $0x212] sm:$0xff] }
 0x1d7   :  { %2094 = vrot.lane.b32.xlu1 %v14222_v13, %s15278_s18  ;;  %2092 = vrot.lane.b32.xlu0 %v14221_v24, %s15278_s18  ;;  %v14246_v43 = vpack.c.bf16 %v2216_v32, %v2216_v32  ;;  %v14245_v28 = vpack.c.bf16 %v2215_v26, %v2215_v26 }
 0x1d9   :  { %v1646_v40 = vpop.permute.xlu1 %1645  ;;  %v1644_v29 = vpop.permute.xlu0 %1643 }
 0x1da   :  { %1751 = vst.msk [vmem:[#allocation3 + $0x9c] sm:$0xf] %vm1711_vm6, %v1646_v40  ;;  %1750 = vst.msk [vmem:[#allocation3 + $0x98] sm:$0xf] %vm1711_vm6, %v1644_v29  ;;  %v2218_v40 = vld [vmem:[#allocation2 + $0x262] sm:$0xff]  ;;  %v2217_v29 = vld [vmem:[#allocation2 + $0x252] sm:$0xff] }
 0x1db   :  { %2435 = vrot.lane.b32.xlu1 %v14224_v27, %s15279_s19  ;;  %2433 = vrot.lane.b32.xlu0 %v14223_v37, %s15279_s19  ;;  %v14248_v54 = vpack.c.bf16 %v2218_v40, %v2218_v40  ;;  %v14247_v36 = vpack.c.bf16 %v2217_v29, %v2217_v29 }
 0x1dd   :  { %v1650_v53 = vpop.permute.xlu1 %1649  ;;  %v1648_v38 = vpop.permute.xlu0 %1647 }
 0x1de   :  { %1753 = vst.msk [vmem:[#allocation3 + $0xa4] sm:$0xf] %vm1711_vm6, %v1650_v53  ;;  %1752 = vst.msk [vmem:[#allocation3 + $0xa0] sm:$0xf] %vm1711_vm6, %v1648_v38  ;;  %v2220_v53 = vld [vmem:[#allocation2 + $0x282] sm:$0xff]  ;;  %v2219_v38 = vld [vmem:[#allocation2 + $0x272] sm:$0xff] }
 0x1df   :  { %2439 = vrot.lane.b32.xlu1 %v14226_v35, %s15279_s19  ;;  %2437 = vrot.lane.b32.xlu0 %v14225_v48, %s15279_s19  ;;  %v14250_v2 = vpack.c.bf16 %v2220_v53, %v2220_v53  ;;  %v14249_v41 = vpack.c.bf16 %v2219_v38, %v2219_v38 }
 0x1e1   :  { %v1654_v1 = vpop.permute.xlu1 %1653  ;;  %v1652_v42 = vpop.permute.xlu0 %1651 }
 0x1e2   :  { %1755 = vst.msk [vmem:[#allocation3 + $0xac] sm:$0xf] %vm1711_vm6, %v1654_v1  ;;  %1754 = vst.msk [vmem:[#allocation3 + $0xa8] sm:$0xf] %vm1711_vm6, %v1652_v42  ;;  %v2222_v1 = vld [vmem:[#allocation2 + $0x2c2] sm:$0xff]  ;;  %v2221_v42 = vld [vmem:[#allocation2 + $0x2b2] sm:$0xff] }
 0x1e3   :  { %2443 = vrot.lane.b32.xlu1 %v14228_v39, %s15279_s19  ;;  %2441 = vrot.lane.b32.xlu0 %v14227_v56, %s15279_s19  ;;  %v14252_v14 = vpack.c.bf16 %v2222_v1, %v2222_v1  ;;  %v14251_v46 = vpack.c.bf16 %v2221_v42, %v2221_v42 }
 0x1e5   :  { %v1658_v10 = vpop.permute.xlu1 %1657  ;;  %v1656_v50 = vpop.permute.xlu0 %1655 }
 0x1e6   :  { %1757 = vst.msk [vmem:[#allocation3 + $0xb4] sm:$0xf] %vm1711_vm6, %v1658_v10  ;;  %1756 = vst.msk [vmem:[#allocation3 + $0xb0] sm:$0xf] %vm1711_vm6, %v1656_v50  ;;  %v2224_v10 = vld [vmem:[#allocation2 + $0x2e2] sm:$0xff]  ;;  %v2223_v50 = vld [vmem:[#allocation2 + $0x2d2] sm:$0xff] }
 0x1e7   :  { %2447 = vrot.lane.b32.xlu1 %v14230_v45, %s15279_s19  ;;  %2445 = vrot.lane.b32.xlu0 %v14229_v6, %s15279_s19  ;;  %v14254_v34 = vpack.c.bf16 %v2224_v10, %v2224_v10  ;;  %v14253_v52 = vpack.c.bf16 %v2223_v50, %v2223_v50 }
 0x1e9   :  { %v1662_v31 = vpop.permute.xlu1 %1661  ;;  %v1660_v58 = vpop.permute.xlu0 %1659 }
 0x1ea   :  { %1759 = vst.msk [vmem:[#allocation3 + $0xbc] sm:$0xf] %vm1711_vm6, %v1662_v31  ;;  %1758 = vst.msk [vmem:[#allocation3 + $0xb8] sm:$0xf] %vm1711_vm6, %v1660_v58  ;;  %v2226_v31 = vld [vmem:[#allocation2 + $0x322] sm:$0xff]  ;;  %v2225_v58 = vld [vmem:[#allocation2 + $0x312] sm:$0xff] }
 0x1eb   :  { %2451 = vrot.lane.b32.xlu1 %v14232_v51, %s15279_s19  ;;  %2449 = vrot.lane.b32.xlu0 %v14231_v20, %s15279_s19  ;;  %v14256_v57 = vpack.c.bf16 %v2226_v31, %v2226_v31  ;;  %v14255_v60 = vpack.c.bf16 %v2225_v58, %v2225_v58 }
 0x1ed   :  { %v2003_v55 = vpop.permute.xlu1 %2002  ;;  %v2001_v62 = vpop.permute.xlu0 %2000 }
 0x1ee   :  { %2146 = vst.msk [vmem:[#allocation3 + $0x4] sm:$0xf] %vm2144_vm7, %v2003_v55  ;;  %2145 = vst.msk [vmem:[#allocation3] sm:$0xf] %vm2144_vm7, %v2001_v62  ;;  %v2228_v55 = vld [vmem:[#allocation2 + $0x342] sm:$0xff]  ;;  %v2227_v62 = vld [vmem:[#allocation2 + $0x332] sm:$0xff] }
 0x1ef   :  { %2455 = vrot.lane.b32.xlu1 %v14234_v59, %s15279_s19  ;;  %2453 = vrot.lane.b32.xlu0 %v14233_v44, %s15279_s19  ;;  %v14258_v19 = vpack.c.bf16 %v2228_v55, %v2228_v55  ;;  %v14257_v4 = vpack.c.bf16 %v2227_v62, %v2227_v62 }
 0x1f1   :  { %v2007_v18 = vpop.permute.xlu1 %2006  ;;  %v2005_v0 = vpop.permute.xlu0 %2004 }
 0x1f2   :  { %2148 = vst.msk [vmem:[#allocation3 + $0xc] sm:$0xf] %vm2144_vm7, %v2007_v18  ;;  %2147 = vst.msk [vmem:[#allocation3 + $0x8] sm:$0xf] %vm2144_vm7, %v2005_v0  ;;  %v2230_v18 = vld [vmem:[#allocation2 + $0x382] sm:$0xff]  ;;  %v2229_v0 = vld [vmem:[#allocation2 + $0x372] sm:$0xff] }
 0x1f3   :  { %2459 = vrot.lane.b32.xlu1 %v14236_v63, %s15279_s19  ;;  %2457 = vrot.lane.b32.xlu0 %v14235_v3, %s15279_s19  ;;  %v14260_v49 = vpack.c.bf16 %v2230_v18, %v2230_v18  ;;  %v14259_v5 = vpack.c.bf16 %v2229_v0, %v2229_v0 }
 0x1f5   :  { %v2011_v8 = vpop.permute.xlu1 %2010  ;;  %v2009_v7 = vpop.permute.xlu0 %2008 }
 0x1f6   :  { %2150 = vst.msk [vmem:[#allocation3 + $0x14] sm:$0xf] %vm2144_vm7, %v2011_v8  ;;  %2149 = vst.msk [vmem:[#allocation3 + $0x10] sm:$0xf] %vm2144_vm7, %v2009_v7  ;;  %v2232_v8 = vld [vmem:[#allocation2 + $0x3a2] sm:$0xff]  ;;  %v2231_v7 = vld [vmem:[#allocation2 + $0x392] sm:$0xff] }
 0x1f7   :  { %2463 = vrot.lane.b32.xlu1 %v14238_v11, %s15279_s19  ;;  %2461 = vrot.lane.b32.xlu0 %v14237_v30, %s15279_s19  ;;  %v14262_v15 = vpack.c.bf16 %v2232_v8, %v2232_v8  ;;  %v14261_v16 = vpack.c.bf16 %v2231_v7, %v2231_v7 }
 0x1f9   :  { %v2015_v22 = vpop.permute.xlu1 %2014  ;;  %v2013_v61 = vpop.permute.xlu0 %2012 }
 0x1fa   :  { %2152 = vst.msk [vmem:[#allocation3 + $0x1c] sm:$0xf] %vm2144_vm7, %v2015_v22  ;;  %2151 = vst.msk [vmem:[#allocation3 + $0x18] sm:$0xf] %vm2144_vm7, %v2013_v61  ;;  %v2234_v22 = vld [vmem:[#allocation2 + $0x3e2] sm:$0xff]  ;;  %v2233_v61 = vld [vmem:[#allocation2 + $0x3d2] sm:$0xff] }
 0x1fb   :  { %2467 = vrot.lane.b32.xlu1 %v14240_v47, %s15279_s19  ;;  %2465 = vrot.lane.b32.xlu0 %v14239_v9, %s15279_s19  ;;  %v14264_v17 = vpack.c.bf16 %v2234_v22, %v2234_v22  ;;  %v14263_v23 = vpack.c.bf16 %v2233_v61, %v2233_v61 }
 0x1fd   :  { %v2019_v13 = vpop.permute.xlu1 %2018  ;;  %v2017_v24 = vpop.permute.xlu0 %2016 }
 0x1fe   :  { %2154 = vst.msk [vmem:[#allocation3 + $0x24] sm:$0xf] %vm2144_vm7, %v2019_v13  ;;  %2153 = vst.msk [vmem:[#allocation3 + $0x20] sm:$0xf] %vm2144_vm7, %v2017_v24  ;;  %v2236_v13 = vld [vmem:[#allocation2 + $0x402] sm:$0xff]  ;;  %v2235_v24 = vld [vmem:[#allocation2 + $0x3f2] sm:$0xff] }
 0x1ff   :  { %2471 = vrot.lane.b32.xlu1 %v14242_v12, %s15279_s19  ;;  %2469 = vrot.lane.b32.xlu0 %v14241_v21, %s15279_s19  ;;  %v14266_v32 = vpack.c.bf16 %v2236_v13, %v2236_v13  ;;  %v14265_v26 = vpack.c.bf16 %v2235_v24, %v2235_v24 }
 0x201   :  { %v2023_v27 = vpop.permute.xlu1 %2022  ;;  %v2021_v37 = vpop.permute.xlu0 %2020 }
 0x202   :  { %2156 = vst.msk [vmem:[#allocation3 + $0x2c] sm:$0xf] %vm2144_vm7, %v2023_v27  ;;  %2155 = vst.msk [vmem:[#allocation3 + $0x28] sm:$0xf] %vm2144_vm7, %v2021_v37  ;;  %v2238_v27 = vld [vmem:[#allocation2 + $0x442] sm:$0xff]  ;;  %v2237_v37 = vld [vmem:[#allocation2 + $0x432] sm:$0xff] }
 0x203   :  { %2475 = vrot.lane.b32.xlu1 %v14244_v33, %s15279_s19  ;;  %2473 = vrot.lane.b32.xlu0 %v14243_v25, %s15279_s19  ;;  %v14268_v40 = vpack.c.bf16 %v2238_v27, %v2238_v27  ;;  %v14267_v29 = vpack.c.bf16 %v2237_v37, %v2237_v37 }
 0x205   :  { %v2027_v35 = vpop.permute.xlu1 %2026  ;;  %v2025_v48 = vpop.permute.xlu0 %2024 }
 0x206   :  { %2158 = vst.msk [vmem:[#allocation3 + $0x34] sm:$0xf] %vm2144_vm7, %v2027_v35  ;;  %2157 = vst.msk [vmem:[#allocation3 + $0x30] sm:$0xf] %vm2144_vm7, %v2025_v48  ;;  %v2240_v35 = vld [vmem:[#allocation2 + $0x462] sm:$0xff]  ;;  %v2239_v48 = vld [vmem:[#allocation2 + $0x452] sm:$0xff] }
 0x207   :  { %2479 = vrot.lane.b32.xlu1 %v14246_v43, %s15279_s19  ;;  %2477 = vrot.lane.b32.xlu0 %v14245_v28, %s15279_s19  ;;  %v14270_v53 = vpack.c.bf16 %v2240_v35, %v2240_v35  ;;  %v14269_v38 = vpack.c.bf16 %v2239_v48, %v2239_v48 }
 0x209   :  { %v2031_v39 = vpop.permute.xlu1 %2030  ;;  %v2029_v56 = vpop.permute.xlu0 %2028 }
 0x20a   :  { %2160 = vst.msk [vmem:[#allocation3 + $0x3c] sm:$0xf] %vm2144_vm7, %v2031_v39  ;;  %2159 = vst.msk [vmem:[#allocation3 + $0x38] sm:$0xf] %vm2144_vm7, %v2029_v56  ;;  %v2628_v39 = vld [vmem:[#allocation2 + $0x30] sm:$0xff]  ;;  %v2627_v56 = vld [vmem:[#allocation2 + $0x20] sm:$0xff] }
 0x20b   :  { %2483 = vrot.lane.b32.xlu1 %v14248_v54, %s15279_s19  ;;  %2481 = vrot.lane.b32.xlu0 %v14247_v36, %s15279_s19  ;;  %v14272_v1 = vpack.c.bf16 %v2628_v39, %v2628_v39  ;;  %v14271_v42 = vpack.c.bf16 %v2627_v56, %v2627_v56 }
 0x20d   :  { %v2035_v45 = vpop.permute.xlu1 %2034  ;;  %v2033_v6 = vpop.permute.xlu0 %2032 }
 0x20e   :  { %2162 = vst.msk [vmem:[#allocation3 + $0x44] sm:$0xf] %vm2144_vm7, %v2035_v45  ;;  %2161 = vst.msk [vmem:[#allocation3 + $0x40] sm:$0xf] %vm2144_vm7, %v2033_v6  ;;  %v2630_v45 = vld [vmem:[#allocation2 + $0x50] sm:$0xff]  ;;  %v2629_v6 = vld [vmem:[#allocation2 + $0x40] sm:$0xff] }
 0x20f   :  { %2487 = vrot.lane.b32.xlu1 %v14250_v2, %s15279_s19  ;;  %2485 = vrot.lane.b32.xlu0 %v14249_v41, %s15279_s19  ;;  %v14274_v10 = vpack.c.bf16 %v2630_v45, %v2630_v45  ;;  %v14273_v50 = vpack.c.bf16 %v2629_v6, %v2629_v6 }
 0x211   :  { %v2039_v51 = vpop.permute.xlu1 %2038  ;;  %v2037_v20 = vpop.permute.xlu0 %2036 }
 0x212   :  { %2164 = vst.msk [vmem:[#allocation3 + $0x4c] sm:$0xf] %vm2144_vm7, %v2039_v51  ;;  %2163 = vst.msk [vmem:[#allocation3 + $0x48] sm:$0xf] %vm2144_vm7, %v2037_v20  ;;  %v2632_v51 = vld [vmem:[#allocation2 + $0x90] sm:$0xff]  ;;  %v2631_v20 = vld [vmem:[#allocation2 + $0x80] sm:$0xff] }
 0x213   :  { %2491 = vrot.lane.b32.xlu1 %v14252_v14, %s15279_s19  ;;  %2489 = vrot.lane.b32.xlu0 %v14251_v46, %s15279_s19  ;;  %v14276_v31 = vpack.c.bf16 %v2632_v51, %v2632_v51  ;;  %v14275_v58 = vpack.c.bf16 %v2631_v20, %v2631_v20 }
 0x215   :  { %v2043_v59 = vpop.permute.xlu1 %2042  ;;  %v2041_v44 = vpop.permute.xlu0 %2040 }
 0x216   :  { %2166 = vst.msk [vmem:[#allocation3 + $0x54] sm:$0xf] %vm2144_vm7, %v2043_v59  ;;  %2165 = vst.msk [vmem:[#allocation3 + $0x50] sm:$0xf] %vm2144_vm7, %v2041_v44  ;;  %v2634_v59 = vld [vmem:[#allocation2 + $0xb0] sm:$0xff]  ;;  %v2633_v44 = vld [vmem:[#allocation2 + $0xa0] sm:$0xff] }
 0x217   :  { %2495 = vrot.lane.b32.xlu1 %v14254_v34, %s15279_s19  ;;  %2493 = vrot.lane.b32.xlu0 %v14253_v52, %s15279_s19  ;;  %v14278_v55 = vpack.c.bf16 %v2634_v59, %v2634_v59  ;;  %v14277_v62 = vpack.c.bf16 %v2633_v44, %v2633_v44 }
 0x219   :  { %v2047_v63 = vpop.permute.xlu1 %2046  ;;  %v2045_v3 = vpop.permute.xlu0 %2044 }
 0x21a   :  { %2168 = vst.msk [vmem:[#allocation3 + $0x5c] sm:$0xf] %vm2144_vm7, %v2047_v63  ;;  %2167 = vst.msk [vmem:[#allocation3 + $0x58] sm:$0xf] %vm2144_vm7, %v2045_v3  ;;  %v2636_v63 = vld [vmem:[#allocation2 + $0xf0] sm:$0xff]  ;;  %v2635_v3 = vld [vmem:[#allocation2 + $0xe0] sm:$0xff] }
 0x21b   :  { %2499 = vrot.lane.b32.xlu1 %v14256_v57, %s15279_s19  ;;  %2497 = vrot.lane.b32.xlu0 %v14255_v60, %s15279_s19  ;;  %v14280_v18 = vpack.c.bf16 %v2636_v63, %v2636_v63  ;;  %v14279_v0 = vpack.c.bf16 %v2635_v3, %v2635_v3 }
 0x21d   :  { %v2051_v11 = vpop.permute.xlu1 %2050  ;;  %v2049_v30 = vpop.permute.xlu0 %2048 }
 0x21e   :  { %2170 = vst.msk [vmem:[#allocation3 + $0x64] sm:$0xf] %vm2144_vm7, %v2051_v11  ;;  %2169 = vst.msk [vmem:[#allocation3 + $0x60] sm:$0xf] %vm2144_vm7, %v2049_v30  ;;  %v2638_v11 = vld [vmem:[#allocation2 + $0x110] sm:$0xff]  ;;  %v2637_v30 = vld [vmem:[#allocation2 + $0x100] sm:$0xff] }
 0x21f   :  { %2503 = vrot.lane.b32.xlu1 %v14258_v19, %s15279_s19  ;;  %2501 = vrot.lane.b32.xlu0 %v14257_v4, %s15279_s19  ;;  %v14282_v8 = vpack.c.bf16 %v2638_v11, %v2638_v11  ;;  %v14281_v7 = vpack.c.bf16 %v2637_v30, %v2637_v30 }
 0x221   :  { %v2055_v47 = vpop.permute.xlu1 %2054  ;;  %v2053_v9 = vpop.permute.xlu0 %2052 }
 0x222   :  { %2172 = vst.msk [vmem:[#allocation3 + $0x6c] sm:$0xf] %vm2144_vm7, %v2055_v47  ;;  %2171 = vst.msk [vmem:[#allocation3 + $0x68] sm:$0xf] %vm2144_vm7, %v2053_v9  ;;  %v2640_v47 = vld [vmem:[#allocation2 + $0x150] sm:$0xff]  ;;  %v2639_v9 = vld [vmem:[#allocation2 + $0x140] sm:$0xff] }
 0x223   :  { %2507 = vrot.lane.b32.xlu1 %v14260_v49, %s15279_s19  ;;  %2505 = vrot.lane.b32.xlu0 %v14259_v5, %s15279_s19  ;;  %v14284_v22 = vpack.c.bf16 %v2640_v47, %v2640_v47  ;;  %v14283_v61 = vpack.c.bf16 %v2639_v9, %v2639_v9 }
 0x225   :  { %v2059_v12 = vpop.permute.xlu1 %2058  ;;  %v2057_v21 = vpop.permute.xlu0 %2056 }
 0x226   :  { %2174 = vst.msk [vmem:[#allocation3 + $0x74] sm:$0xf] %vm2144_vm7, %v2059_v12  ;;  %2173 = vst.msk [vmem:[#allocation3 + $0x70] sm:$0xf] %vm2144_vm7, %v2057_v21  ;;  %v2642_v12 = vld [vmem:[#allocation2 + $0x170] sm:$0xff]  ;;  %v2641_v21 = vld [vmem:[#allocation2 + $0x160] sm:$0xff] }
 0x227   :  { %2511 = vrot.lane.b32.xlu1 %v14262_v15, %s15279_s19  ;;  %2509 = vrot.lane.b32.xlu0 %v14261_v16, %s15279_s19  ;;  %v14286_v13 = vpack.c.bf16 %v2642_v12, %v2642_v12  ;;  %v14285_v24 = vpack.c.bf16 %v2641_v21, %v2641_v21 }
 0x229   :  { %v2063_v33 = vpop.permute.xlu1 %2062  ;;  %v2061_v25 = vpop.permute.xlu0 %2060 }
 0x22a   :  { %2176 = vst.msk [vmem:[#allocation3 + $0x7c] sm:$0xf] %vm2144_vm7, %v2063_v33  ;;  %2175 = vst.msk [vmem:[#allocation3 + $0x78] sm:$0xf] %vm2144_vm7, %v2061_v25  ;;  %v2644_v33 = vld [vmem:[#allocation2 + $0x1b0] sm:$0xff]  ;;  %v2643_v25 = vld [vmem:[#allocation2 + $0x1a0] sm:$0xff] }
 0x22b   :  { %2515 = vrot.lane.b32.xlu1 %v14264_v17, %s15279_s19  ;;  %2513 = vrot.lane.b32.xlu0 %v14263_v23, %s15279_s19  ;;  %v14288_v27 = vpack.c.bf16 %v2644_v33, %v2644_v33  ;;  %v14287_v37 = vpack.c.bf16 %v2643_v25, %v2643_v25 }
 0x22d   :  { %v2067_v43 = vpop.permute.xlu1 %2066  ;;  %v2065_v28 = vpop.permute.xlu0 %2064 }
 0x22e   :  { %2178 = vst.msk [vmem:[#allocation3 + $0x84] sm:$0xf] %vm2144_vm7, %v2067_v43  ;;  %2177 = vst.msk [vmem:[#allocation3 + $0x80] sm:$0xf] %vm2144_vm7, %v2065_v28  ;;  %v2646_v43 = vld [vmem:[#allocation2 + $0x1d0] sm:$0xff]  ;;  %v2645_v28 = vld [vmem:[#allocation2 + $0x1c0] sm:$0xff] }
 0x22f   :  { %2519 = vrot.lane.b32.xlu1 %v14266_v32, %s15279_s19  ;;  %2517 = vrot.lane.b32.xlu0 %v14265_v26, %s15279_s19  ;;  %v14290_v35 = vpack.c.bf16 %v2646_v43, %v2646_v43  ;;  %v14289_v48 = vpack.c.bf16 %v2645_v28, %v2645_v28 }
 0x231   :  { %v2071_v54 = vpop.permute.xlu1 %2070  ;;  %v2069_v36 = vpop.permute.xlu0 %2068 }
 0x232   :  { %2180 = vst.msk [vmem:[#allocation3 + $0x8c] sm:$0xf] %vm2144_vm7, %v2071_v54  ;;  %2179 = vst.msk [vmem:[#allocation3 + $0x88] sm:$0xf] %vm2144_vm7, %v2069_v36  ;;  %v2648_v54 = vld [vmem:[#allocation2 + $0x210] sm:$0xff]  ;;  %v2647_v36 = vld [vmem:[#allocation2 + $0x200] sm:$0xff] }
 0x233   :  { %2523 = vrot.lane.b32.xlu1 %v14268_v40, %s15279_s19  ;;  %2521 = vrot.lane.b32.xlu0 %v14267_v29, %s15279_s19  ;;  %v14292_v39 = vpack.c.bf16 %v2648_v54, %v2648_v54  ;;  %v14291_v56 = vpack.c.bf16 %v2647_v36, %v2647_v36 }
 0x235   :  { %v2075_v2 = vpop.permute.xlu1 %2074  ;;  %v2073_v41 = vpop.permute.xlu0 %2072 }
 0x236   :  { %2182 = vst.msk [vmem:[#allocation3 + $0x94] sm:$0xf] %vm2144_vm7, %v2075_v2  ;;  %2181 = vst.msk [vmem:[#allocation3 + $0x90] sm:$0xf] %vm2144_vm7, %v2073_v41  ;;  %v2650_v2 = vld [vmem:[#allocation2 + $0x230] sm:$0xff]  ;;  %v2649_v41 = vld [vmem:[#allocation2 + $0x220] sm:$0xff] }
 0x237   :  { %2527 = vrot.lane.b32.xlu1 %v14270_v53, %s15279_s19  ;;  %2525 = vrot.lane.b32.xlu0 %v14269_v38, %s15279_s19  ;;  %v14294_v45 = vpack.c.bf16 %v2650_v2, %v2650_v2  ;;  %v14293_v6 = vpack.c.bf16 %v2649_v41, %v2649_v41 }
 0x239   :  { %v2079_v14 = vpop.permute.xlu1 %2078  ;;  %v2077_v46 = vpop.permute.xlu0 %2076 }
 0x23a   :  { %2184 = vst.msk [vmem:[#allocation3 + $0x9c] sm:$0xf] %vm2144_vm7, %v2079_v14  ;;  %2183 = vst.msk [vmem:[#allocation3 + $0x98] sm:$0xf] %vm2144_vm7, %v2077_v46  ;;  %v2652_v14 = vld [vmem:[#allocation2 + $0x270] sm:$0xff]  ;;  %v2651_v46 = vld [vmem:[#allocation2 + $0x260] sm:$0xff] }
 0x23b   :  { %2869 = vrot.lane.b32.xlu1 %v14272_v1, %s15280_s20  ;;  %2867 = vrot.lane.b32.xlu0 %v14271_v42, %s15280_s20  ;;  %v14296_v51 = vpack.c.bf16 %v2652_v14, %v2652_v14  ;;  %v14295_v20 = vpack.c.bf16 %v2651_v46, %v2651_v46 }
 0x23d   :  { %v2083_v34 = vpop.permute.xlu1 %2082  ;;  %v2081_v52 = vpop.permute.xlu0 %2080 }
 0x23e   :  { %2186 = vst.msk [vmem:[#allocation3 + $0xa4] sm:$0xf] %vm2144_vm7, %v2083_v34  ;;  %2185 = vst.msk [vmem:[#allocation3 + $0xa0] sm:$0xf] %vm2144_vm7, %v2081_v52  ;;  %v2654_v34 = vld [vmem:[#allocation2 + $0x290] sm:$0xff]  ;;  %v2653_v52 = vld [vmem:[#allocation2 + $0x280] sm:$0xff] }
 0x23f   :  { %2873 = vrot.lane.b32.xlu1 %v14274_v10, %s15280_s20  ;;  %2871 = vrot.lane.b32.xlu0 %v14273_v50, %s15280_s20  ;;  %v14298_v59 = vpack.c.bf16 %v2654_v34, %v2654_v34  ;;  %v14297_v44 = vpack.c.bf16 %v2653_v52, %v2653_v52 }
 0x241   :  { %v2087_v57 = vpop.permute.xlu1 %2086  ;;  %v2085_v60 = vpop.permute.xlu0 %2084 }
 0x242   :  { %2188 = vst.msk [vmem:[#allocation3 + $0xac] sm:$0xf] %vm2144_vm7, %v2087_v57  ;;  %2187 = vst.msk [vmem:[#allocation3 + $0xa8] sm:$0xf] %vm2144_vm7, %v2085_v60  ;;  %v2656_v57 = vld [vmem:[#allocation2 + $0x2d0] sm:$0xff]  ;;  %v2655_v60 = vld [vmem:[#allocation2 + $0x2c0] sm:$0xff] }
 0x243   :  { %2877 = vrot.lane.b32.xlu1 %v14276_v31, %s15280_s20  ;;  %2875 = vrot.lane.b32.xlu0 %v14275_v58, %s15280_s20  ;;  %v14300_v63 = vpack.c.bf16 %v2656_v57, %v2656_v57  ;;  %v14299_v3 = vpack.c.bf16 %v2655_v60, %v2655_v60 }
 0x245   :  { %v2091_v19 = vpop.permute.xlu1 %2090  ;;  %v2089_v4 = vpop.permute.xlu0 %2088 }
 0x246   :  { %2190 = vst.msk [vmem:[#allocation3 + $0xb4] sm:$0xf] %vm2144_vm7, %v2091_v19  ;;  %2189 = vst.msk [vmem:[#allocation3 + $0xb0] sm:$0xf] %vm2144_vm7, %v2089_v4  ;;  %v2658_v19 = vld [vmem:[#allocation2 + $0x2f0] sm:$0xff]  ;;  %v2657_v4 = vld [vmem:[#allocation2 + $0x2e0] sm:$0xff] }
 0x247   :  { %2881 = vrot.lane.b32.xlu1 %v14278_v55, %s15280_s20  ;;  %2879 = vrot.lane.b32.xlu0 %v14277_v62, %s15280_s20  ;;  %v14302_v11 = vpack.c.bf16 %v2658_v19, %v2658_v19  ;;  %v14301_v30 = vpack.c.bf16 %v2657_v4, %v2657_v4 }
 0x249   :  { %v2095_v49 = vpop.permute.xlu1 %2094  ;;  %v2093_v5 = vpop.permute.xlu0 %2092 }
 0x24a   :  { %2192 = vst.msk [vmem:[#allocation3 + $0xbc] sm:$0xf] %vm2144_vm7, %v2095_v49  ;;  %2191 = vst.msk [vmem:[#allocation3 + $0xb8] sm:$0xf] %vm2144_vm7, %v2093_v5  ;;  %v2660_v49 = vld [vmem:[#allocation2 + $0x330] sm:$0xff]  ;;  %v2659_v5 = vld [vmem:[#allocation2 + $0x320] sm:$0xff] }
 0x24b   :  { %2885 = vrot.lane.b32.xlu1 %v14280_v18, %s15280_s20  ;;  %2883 = vrot.lane.b32.xlu0 %v14279_v0, %s15280_s20  ;;  %v14304_v47 = vpack.c.bf16 %v2660_v49, %v2660_v49  ;;  %v14303_v9 = vpack.c.bf16 %v2659_v5, %v2659_v5 }
 0x24d   :  { %v2436_v15 = vpop.permute.xlu1 %2435  ;;  %v2434_v16 = vpop.permute.xlu0 %2433 }
 0x24e   :  { %2579 = vst.msk [vmem:[#allocation3 + $0x4] sm:$0xf] %vm2577_vm8, %v2436_v15  ;;  %2578 = vst.msk [vmem:[#allocation3] sm:$0xf] %vm2577_vm8, %v2434_v16  ;;  %v2662_v15 = vld [vmem:[#allocation2 + $0x350] sm:$0xff]  ;;  %v2661_v16 = vld [vmem:[#allocation2 + $0x340] sm:$0xff] }
 0x24f   :  { %2889 = vrot.lane.b32.xlu1 %v14282_v8, %s15280_s20  ;;  %2887 = vrot.lane.b32.xlu0 %v14281_v7, %s15280_s20  ;;  %v14306_v12 = vpack.c.bf16 %v2662_v15, %v2662_v15  ;;  %v14305_v21 = vpack.c.bf16 %v2661_v16, %v2661_v16 }
 0x251   :  { %v2440_v17 = vpop.permute.xlu1 %2439  ;;  %v2438_v23 = vpop.permute.xlu0 %2437 }
 0x252   :  { %2581 = vst.msk [vmem:[#allocation3 + $0xc] sm:$0xf] %vm2577_vm8, %v2440_v17  ;;  %2580 = vst.msk [vmem:[#allocation3 + $0x8] sm:$0xf] %vm2577_vm8, %v2438_v23  ;;  %v2664_v17 = vld [vmem:[#allocation2 + $0x390] sm:$0xff]  ;;  %v2663_v23 = vld [vmem:[#allocation2 + $0x380] sm:$0xff] }
 0x253   :  { %2893 = vrot.lane.b32.xlu1 %v14284_v22, %s15280_s20  ;;  %2891 = vrot.lane.b32.xlu0 %v14283_v61, %s15280_s20  ;;  %v14308_v33 = vpack.c.bf16 %v2664_v17, %v2664_v17  ;;  %v14307_v25 = vpack.c.bf16 %v2663_v23, %v2663_v23 }
 0x255   :  { %v2444_v32 = vpop.permute.xlu1 %2443  ;;  %v2442_v26 = vpop.permute.xlu0 %2441 }
 0x256   :  { %2583 = vst.msk [vmem:[#allocation3 + $0x14] sm:$0xf] %vm2577_vm8, %v2444_v32  ;;  %2582 = vst.msk [vmem:[#allocation3 + $0x10] sm:$0xf] %vm2577_vm8, %v2442_v26  ;;  %v2666_v32 = vld [vmem:[#allocation2 + $0x3b0] sm:$0xff]  ;;  %v2665_v26 = vld [vmem:[#allocation2 + $0x3a0] sm:$0xff] }
 0x257   :  { %2897 = vrot.lane.b32.xlu1 %v14286_v13, %s15280_s20  ;;  %2895 = vrot.lane.b32.xlu0 %v14285_v24, %s15280_s20  ;;  %v14310_v43 = vpack.c.bf16 %v2666_v32, %v2666_v32  ;;  %v14309_v28 = vpack.c.bf16 %v2665_v26, %v2665_v26 }
 0x259   :  { %v2448_v40 = vpop.permute.xlu1 %2447  ;;  %v2446_v29 = vpop.permute.xlu0 %2445 }
 0x25a   :  { %2585 = vst.msk [vmem:[#allocation3 + $0x1c] sm:$0xf] %vm2577_vm8, %v2448_v40  ;;  %2584 = vst.msk [vmem:[#allocation3 + $0x18] sm:$0xf] %vm2577_vm8, %v2446_v29  ;;  %v2668_v40 = vld [vmem:[#allocation2 + $0x3f0] sm:$0xff]  ;;  %v2667_v29 = vld [vmem:[#allocation2 + $0x3e0] sm:$0xff] }
 0x25b   :  { %2901 = vrot.lane.b32.xlu1 %v14288_v27, %s15280_s20  ;;  %2899 = vrot.lane.b32.xlu0 %v14287_v37, %s15280_s20  ;;  %v14312_v54 = vpack.c.bf16 %v2668_v40, %v2668_v40  ;;  %v14311_v36 = vpack.c.bf16 %v2667_v29, %v2667_v29 }
 0x25d   :  { %v2452_v53 = vpop.permute.xlu1 %2451  ;;  %v2450_v38 = vpop.permute.xlu0 %2449 }
 0x25e   :  { %2587 = vst.msk [vmem:[#allocation3 + $0x24] sm:$0xf] %vm2577_vm8, %v2452_v53  ;;  %2586 = vst.msk [vmem:[#allocation3 + $0x20] sm:$0xf] %vm2577_vm8, %v2450_v38  ;;  %v2670_v53 = vld [vmem:[#allocation2 + $0x410] sm:$0xff]  ;;  %v2669_v38 = vld [vmem:[#allocation2 + $0x400] sm:$0xff] }
 0x25f   :  { %2905 = vrot.lane.b32.xlu1 %v14290_v35, %s15280_s20  ;;  %2903 = vrot.lane.b32.xlu0 %v14289_v48, %s15280_s20  ;;  %v14314_v2 = vpack.c.bf16 %v2670_v53, %v2670_v53  ;;  %v14313_v41 = vpack.c.bf16 %v2669_v38, %v2669_v38 }
 0x261   :  { %v2456_v1 = vpop.permute.xlu1 %2455  ;;  %v2454_v42 = vpop.permute.xlu0 %2453 }
 0x262   :  { %2589 = vst.msk [vmem:[#allocation3 + $0x2c] sm:$0xf] %vm2577_vm8, %v2456_v1  ;;  %2588 = vst.msk [vmem:[#allocation3 + $0x28] sm:$0xf] %vm2577_vm8, %v2454_v42  ;;  %v2672_v1 = vld [vmem:[#allocation2 + $0x450] sm:$0xff]  ;;  %v2671_v42 = vld [vmem:[#allocation2 + $0x440] sm:$0xff] }
 0x263   :  { %2909 = vrot.lane.b32.xlu1 %v14292_v39, %s15280_s20  ;;  %2907 = vrot.lane.b32.xlu0 %v14291_v56, %s15280_s20  ;;  %v14316_v14 = vpack.c.bf16 %v2672_v1, %v2672_v1  ;;  %v14315_v46 = vpack.c.bf16 %v2671_v42, %v2671_v42 }
 0x265   :  { %v2460_v10 = vpop.permute.xlu1 %2459  ;;  %v2458_v50 = vpop.permute.xlu0 %2457 }
 0x266   :  { %2591 = vst.msk [vmem:[#allocation3 + $0x34] sm:$0xf] %vm2577_vm8, %v2460_v10  ;;  %2590 = vst.msk [vmem:[#allocation3 + $0x30] sm:$0xf] %vm2577_vm8, %v2458_v50  ;;  %v2674_v10 = vld [vmem:[#allocation2 + $0x470] sm:$0xff]  ;;  %v2673_v50 = vld [vmem:[#allocation2 + $0x460] sm:$0xff] }
 0x267   :  { %2913 = vrot.lane.b32.xlu1 %v14294_v45, %s15280_s20  ;;  %2911 = vrot.lane.b32.xlu0 %v14293_v6, %s15280_s20  ;;  %v14318_v34 = vpack.c.bf16 %v2674_v10, %v2674_v10  ;;  %v14317_v52 = vpack.c.bf16 %v2673_v50, %v2673_v50 }
 0x269   :  { %v2464_v31 = vpop.permute.xlu1 %2463  ;;  %v2462_v58 = vpop.permute.xlu0 %2461 }
 0x26a   :  { %2593 = vst.msk [vmem:[#allocation3 + $0x3c] sm:$0xf] %vm2577_vm8, %v2464_v31  ;;  %2592 = vst.msk [vmem:[#allocation3 + $0x38] sm:$0xf] %vm2577_vm8, %v2462_v58  ;;  %v3061_v31 = vld [vmem:[#allocation2 + $0x31] sm:$0xff]  ;;  %v3060_v58 = vld [vmem:[#allocation2 + $0x21] sm:$0xff] }
 0x26b   :  { %2917 = vrot.lane.b32.xlu1 %v14296_v51, %s15280_s20  ;;  %2915 = vrot.lane.b32.xlu0 %v14295_v20, %s15280_s20  ;;  %v14320_v57 = vpack.c.bf16 %v3061_v31, %v3061_v31  ;;  %v14319_v60 = vpack.c.bf16 %v3060_v58, %v3060_v58 }
 0x26d   :  { %v2468_v55 = vpop.permute.xlu1 %2467  ;;  %v2466_v62 = vpop.permute.xlu0 %2465 }
 0x26e   :  { %2595 = vst.msk [vmem:[#allocation3 + $0x44] sm:$0xf] %vm2577_vm8, %v2468_v55  ;;  %2594 = vst.msk [vmem:[#allocation3 + $0x40] sm:$0xf] %vm2577_vm8, %v2466_v62  ;;  %v3063_v55 = vld [vmem:[#allocation2 + $0x51] sm:$0xff]  ;;  %v3062_v62 = vld [vmem:[#allocation2 + $0x41] sm:$0xff] }
 0x26f   :  { %2921 = vrot.lane.b32.xlu1 %v14298_v59, %s15280_s20  ;;  %2919 = vrot.lane.b32.xlu0 %v14297_v44, %s15280_s20  ;;  %v14322_v19 = vpack.c.bf16 %v3063_v55, %v3063_v55  ;;  %v14321_v4 = vpack.c.bf16 %v3062_v62, %v3062_v62 }
 0x271   :  { %v2472_v18 = vpop.permute.xlu1 %2471  ;;  %v2470_v0 = vpop.permute.xlu0 %2469 }
 0x272   :  { %2597 = vst.msk [vmem:[#allocation3 + $0x4c] sm:$0xf] %vm2577_vm8, %v2472_v18  ;;  %2596 = vst.msk [vmem:[#allocation3 + $0x48] sm:$0xf] %vm2577_vm8, %v2470_v0  ;;  %v3065_v18 = vld [vmem:[#allocation2 + $0x91] sm:$0xff]  ;;  %v3064_v0 = vld [vmem:[#allocation2 + $0x81] sm:$0xff] }
 0x273   :  { %2925 = vrot.lane.b32.xlu1 %v14300_v63, %s15280_s20  ;;  %2923 = vrot.lane.b32.xlu0 %v14299_v3, %s15280_s20  ;;  %v14324_v49 = vpack.c.bf16 %v3065_v18, %v3065_v18  ;;  %v14323_v5 = vpack.c.bf16 %v3064_v0, %v3064_v0 }
 0x275   :  { %v2476_v8 = vpop.permute.xlu1 %2475  ;;  %v2474_v7 = vpop.permute.xlu0 %2473 }
 0x276   :  { %2599 = vst.msk [vmem:[#allocation3 + $0x54] sm:$0xf] %vm2577_vm8, %v2476_v8  ;;  %2598 = vst.msk [vmem:[#allocation3 + $0x50] sm:$0xf] %vm2577_vm8, %v2474_v7  ;;  %v3067_v8 = vld [vmem:[#allocation2 + $0xb1] sm:$0xff]  ;;  %v3066_v7 = vld [vmem:[#allocation2 + $0xa1] sm:$0xff] }
 0x277   :  { %2929 = vrot.lane.b32.xlu1 %v14302_v11, %s15280_s20  ;;  %2927 = vrot.lane.b32.xlu0 %v14301_v30, %s15280_s20  ;;  %v14326_v15 = vpack.c.bf16 %v3067_v8, %v3067_v8  ;;  %v14325_v16 = vpack.c.bf16 %v3066_v7, %v3066_v7 }
 0x279   :  { %v2480_v22 = vpop.permute.xlu1 %2479  ;;  %v2478_v61 = vpop.permute.xlu0 %2477 }
 0x27a   :  { %2601 = vst.msk [vmem:[#allocation3 + $0x5c] sm:$0xf] %vm2577_vm8, %v2480_v22  ;;  %2600 = vst.msk [vmem:[#allocation3 + $0x58] sm:$0xf] %vm2577_vm8, %v2478_v61  ;;  %v3069_v22 = vld [vmem:[#allocation2 + $0xf1] sm:$0xff]  ;;  %v3068_v61 = vld [vmem:[#allocation2 + $0xe1] sm:$0xff] }
 0x27b   :  { %2933 = vrot.lane.b32.xlu1 %v14304_v47, %s15280_s20  ;;  %2931 = vrot.lane.b32.xlu0 %v14303_v9, %s15280_s20  ;;  %v14328_v17 = vpack.c.bf16 %v3069_v22, %v3069_v22  ;;  %v14327_v23 = vpack.c.bf16 %v3068_v61, %v3068_v61 }
 0x27d   :  { %v2484_v13 = vpop.permute.xlu1 %2483  ;;  %v2482_v24 = vpop.permute.xlu0 %2481 }
 0x27e   :  { %2603 = vst.msk [vmem:[#allocation3 + $0x64] sm:$0xf] %vm2577_vm8, %v2484_v13  ;;  %2602 = vst.msk [vmem:[#allocation3 + $0x60] sm:$0xf] %vm2577_vm8, %v2482_v24  ;;  %v3071_v13 = vld [vmem:[#allocation2 + $0x111] sm:$0xff]  ;;  %v3070_v24 = vld [vmem:[#allocation2 + $0x101] sm:$0xff] }
 0x27f   :  { %2937 = vrot.lane.b32.xlu1 %v14306_v12, %s15280_s20  ;;  %2935 = vrot.lane.b32.xlu0 %v14305_v21, %s15280_s20  ;;  %v14330_v32 = vpack.c.bf16 %v3071_v13, %v3071_v13  ;;  %v14329_v26 = vpack.c.bf16 %v3070_v24, %v3070_v24 }
 0x281   :  { %v2488_v27 = vpop.permute.xlu1 %2487  ;;  %v2486_v37 = vpop.permute.xlu0 %2485 }
 0x282   :  { %2605 = vst.msk [vmem:[#allocation3 + $0x6c] sm:$0xf] %vm2577_vm8, %v2488_v27  ;;  %2604 = vst.msk [vmem:[#allocation3 + $0x68] sm:$0xf] %vm2577_vm8, %v2486_v37  ;;  %v3073_v27 = vld [vmem:[#allocation2 + $0x151] sm:$0xff]  ;;  %v3072_v37 = vld [vmem:[#allocation2 + $0x141] sm:$0xff] }
 0x283   :  { %2941 = vrot.lane.b32.xlu1 %v14308_v33, %s15280_s20  ;;  %2939 = vrot.lane.b32.xlu0 %v14307_v25, %s15280_s20  ;;  %v14332_v40 = vpack.c.bf16 %v3073_v27, %v3073_v27  ;;  %v14331_v29 = vpack.c.bf16 %v3072_v37, %v3072_v37 }
 0x285   :  { %v2492_v35 = vpop.permute.xlu1 %2491  ;;  %v2490_v48 = vpop.permute.xlu0 %2489 }
 0x286   :  { %2607 = vst.msk [vmem:[#allocation3 + $0x74] sm:$0xf] %vm2577_vm8, %v2492_v35  ;;  %2606 = vst.msk [vmem:[#allocation3 + $0x70] sm:$0xf] %vm2577_vm8, %v2490_v48  ;;  %v3075_v35 = vld [vmem:[#allocation2 + $0x171] sm:$0xff]  ;;  %v3074_v48 = vld [vmem:[#allocation2 + $0x161] sm:$0xff] }
 0x287   :  { %2945 = vrot.lane.b32.xlu1 %v14310_v43, %s15280_s20  ;;  %2943 = vrot.lane.b32.xlu0 %v14309_v28, %s15280_s20  ;;  %v14334_v53 = vpack.c.bf16 %v3075_v35, %v3075_v35  ;;  %v14333_v38 = vpack.c.bf16 %v3074_v48, %v3074_v48 }
 0x289   :  { %v2496_v39 = vpop.permute.xlu1 %2495  ;;  %v2494_v56 = vpop.permute.xlu0 %2493 }
 0x28a   :  { %2609 = vst.msk [vmem:[#allocation3 + $0x7c] sm:$0xf] %vm2577_vm8, %v2496_v39  ;;  %2608 = vst.msk [vmem:[#allocation3 + $0x78] sm:$0xf] %vm2577_vm8, %v2494_v56  ;;  %v3077_v39 = vld [vmem:[#allocation2 + $0x1b1] sm:$0xff]  ;;  %v3076_v56 = vld [vmem:[#allocation2 + $0x1a1] sm:$0xff] }
 0x28b   :  { %2949 = vrot.lane.b32.xlu1 %v14312_v54, %s15280_s20  ;;  %2947 = vrot.lane.b32.xlu0 %v14311_v36, %s15280_s20  ;;  %v14336_v1 = vpack.c.bf16 %v3077_v39, %v3077_v39  ;;  %v14335_v42 = vpack.c.bf16 %v3076_v56, %v3076_v56 }
 0x28d   :  { %v2500_v45 = vpop.permute.xlu1 %2499  ;;  %v2498_v6 = vpop.permute.xlu0 %2497 }
 0x28e   :  { %2611 = vst.msk [vmem:[#allocation3 + $0x84] sm:$0xf] %vm2577_vm8, %v2500_v45  ;;  %2610 = vst.msk [vmem:[#allocation3 + $0x80] sm:$0xf] %vm2577_vm8, %v2498_v6  ;;  %v3079_v45 = vld [vmem:[#allocation2 + $0x1d1] sm:$0xff]  ;;  %v3078_v6 = vld [vmem:[#allocation2 + $0x1c1] sm:$0xff] }
 0x28f   :  { %2953 = vrot.lane.b32.xlu1 %v14314_v2, %s15280_s20  ;;  %2951 = vrot.lane.b32.xlu0 %v14313_v41, %s15280_s20  ;;  %v14338_v10 = vpack.c.bf16 %v3079_v45, %v3079_v45  ;;  %v14337_v50 = vpack.c.bf16 %v3078_v6, %v3078_v6 }
 0x291   :  { %v2504_v51 = vpop.permute.xlu1 %2503  ;;  %v2502_v20 = vpop.permute.xlu0 %2501 }
 0x292   :  { %2613 = vst.msk [vmem:[#allocation3 + $0x8c] sm:$0xf] %vm2577_vm8, %v2504_v51  ;;  %2612 = vst.msk [vmem:[#allocation3 + $0x88] sm:$0xf] %vm2577_vm8, %v2502_v20  ;;  %v3081_v51 = vld [vmem:[#allocation2 + $0x211] sm:$0xff]  ;;  %v3080_v20 = vld [vmem:[#allocation2 + $0x201] sm:$0xff] }
 0x293   :  { %2957 = vrot.lane.b32.xlu1 %v14316_v14, %s15280_s20  ;;  %2955 = vrot.lane.b32.xlu0 %v14315_v46, %s15280_s20  ;;  %v14340_v31 = vpack.c.bf16 %v3081_v51, %v3081_v51  ;;  %v14339_v58 = vpack.c.bf16 %v3080_v20, %v3080_v20  ;;  %v15031_v51 = vld [vmem:[%s19484_s1 + $0x20] ss:$0 sps:$4 sm:$0xff]  }
 0x294   :  { %15015 = vmatprep.subr.msk.bf16.mxu0 %vm4210_vm10, %v15031_v51  ;;  %15016 = vmatprep.subr.msk.bf16.mxu1 %vm4210_vm10, %v15031_v51 }
 0x295   :  { %v2508_v59 = vpop.permute.xlu1 %2507  ;;  %v2506_v44 = vpop.permute.xlu0 %2505 }
 0x296   :  { %2615 = vst.msk [vmem:[#allocation3 + $0x94] sm:$0xf] %vm2577_vm8, %v2508_v59  ;;  %2614 = vst.msk [vmem:[#allocation3 + $0x90] sm:$0xf] %vm2577_vm8, %v2506_v44  ;;  %v3083_v59 = vld [vmem:[#allocation2 + $0x231] sm:$0xff]  ;;  %v3082_v44 = vld [vmem:[#allocation2 + $0x221] sm:$0xff] }
 0x297   :  { %2961 = vrot.lane.b32.xlu1 %v14318_v34, %s15280_s20  ;;  %2959 = vrot.lane.b32.xlu0 %v14317_v52, %s15280_s20  ;;  %v14342_v55 = vpack.c.bf16 %v3083_v59, %v3083_v59  ;;  %v14341_v62 = vpack.c.bf16 %v3082_v44, %v3082_v44 }
 0x299   :  { %v2512_v63 = vpop.permute.xlu1 %2511  ;;  %v2510_v3 = vpop.permute.xlu0 %2509 }
 0x29a   :  { %2617 = vst.msk [vmem:[#allocation3 + $0x9c] sm:$0xf] %vm2577_vm8, %v2512_v63  ;;  %2616 = vst.msk [vmem:[#allocation3 + $0x98] sm:$0xf] %vm2577_vm8, %v2510_v3  ;;  %v3085_v63 = vld [vmem:[#allocation2 + $0x271] sm:$0xff]  ;;  %v3084_v3 = vld [vmem:[#allocation2 + $0x261] sm:$0xff] }
 0x29b   :  { %3302 = vrot.lane.b32.xlu1 %v14320_v57, %s15281_s21  ;;  %3300 = vrot.lane.b32.xlu0 %v14319_v60, %s15281_s21  ;;  %v14344_v18 = vpack.c.bf16 %v3085_v63, %v3085_v63  ;;  %v14343_v0 = vpack.c.bf16 %v3084_v3, %v3084_v3  ;;  %v3104_v63 = vld [vmem:[#allocation2 + $0x441] sm:$0xff] }
 0x29d   :  { %v2516_v11 = vpop.permute.xlu1 %2515  ;;  %v2514_v30 = vpop.permute.xlu0 %2513 }
 0x29e   :  { %2619 = vst.msk [vmem:[#allocation3 + $0xa4] sm:$0xf] %vm2577_vm8, %v2516_v11  ;;  %2618 = vst.msk [vmem:[#allocation3 + $0xa0] sm:$0xf] %vm2577_vm8, %v2514_v30  ;;  %v3087_v11 = vld [vmem:[#allocation2 + $0x291] sm:$0xff]  ;;  %v3086_v30 = vld [vmem:[#allocation2 + $0x281] sm:$0xff] }
 0x29f   :  { %3306 = vrot.lane.b32.xlu1 %v14322_v19, %s15281_s21  ;;  %3304 = vrot.lane.b32.xlu0 %v14321_v4, %s15281_s21  ;;  %v14346_v8 = vpack.c.bf16 %v3087_v11, %v3087_v11  ;;  %v14345_v7 = vpack.c.bf16 %v3086_v30, %v3086_v30  ;;  %v3107_v11 = vld [vmem:[#allocation2 + $0x471] sm:$0xff]  ;;  %v3106_v30 = vld [vmem:[#allocation2 + $0x461] sm:$0xff] }
 0x2a1   :  { %v2520_v47 = vpop.permute.xlu1 %2519  ;;  %v2518_v9 = vpop.permute.xlu0 %2517 }
 0x2a2   :  { %2621 = vst.msk [vmem:[#allocation3 + $0xac] sm:$0xf] %vm2577_vm8, %v2520_v47  ;;  %2620 = vst.msk [vmem:[#allocation3 + $0xa8] sm:$0xf] %vm2577_vm8, %v2518_v9  ;;  %v3089_v47 = vld [vmem:[#allocation2 + $0x2d1] sm:$0xff]  ;;  %v3088_v9 = vld [vmem:[#allocation2 + $0x2c1] sm:$0xff] }
 0x2a3   :  { %3310 = vrot.lane.b32.xlu1 %v14324_v49, %s15281_s21  ;;  %3308 = vrot.lane.b32.xlu0 %v14323_v5, %s15281_s21  ;;  %v14348_v22 = vpack.c.bf16 %v3089_v47, %v3089_v47  ;;  %v14347_v61 = vpack.c.bf16 %v3088_v9, %v3088_v9  ;;  %v14365_v47 = vpack.c.bf16 %v3106_v30, %v3106_v30  ;;  %v3494_v9 = vld [vmem:[#allocation2 + $0x32] sm:$0xff] }
 0x2a5   :  { %v2524_v12 = vpop.permute.xlu1 %2523  ;;  %v2522_v21 = vpop.permute.xlu0 %2521 }
 0x2a6   :  { %2623 = vst.msk [vmem:[#allocation3 + $0xb4] sm:$0xf] %vm2577_vm8, %v2524_v12  ;;  %2622 = vst.msk [vmem:[#allocation3 + $0xb0] sm:$0xf] %vm2577_vm8, %v2522_v21  ;;  %v3091_v12 = vld [vmem:[#allocation2 + $0x2f1] sm:$0xff]  ;;  %v3090_v21 = vld [vmem:[#allocation2 + $0x2e1] sm:$0xff] }
 0x2a7   :  { %3314 = vrot.lane.b32.xlu1 %v14326_v15, %s15281_s21  ;;  %3312 = vrot.lane.b32.xlu0 %v14325_v16, %s15281_s21  ;;  %v14350_v13 = vpack.c.bf16 %v3091_v12, %v3091_v12  ;;  %v14349_v24 = vpack.c.bf16 %v3090_v21, %v3090_v21  ;;  %v14368_v12 = vpack.c.bf16 %v3494_v9, %v3494_v9 }
 0x2a9   :  { %v2528_v33 = vpop.permute.xlu1 %2527  ;;  %v2526_v25 = vpop.permute.xlu0 %2525 }
 0x2aa   :  { %2625 = vst.msk [vmem:[#allocation3 + $0xbc] sm:$0xf] %vm2577_vm8, %v2528_v33  ;;  %2624 = vst.msk [vmem:[#allocation3 + $0xb8] sm:$0xf] %vm2577_vm8, %v2526_v25  ;;  %v3093_v33 = vld [vmem:[#allocation2 + $0x331] sm:$0xff]  ;;  %v3092_v25 = vld [vmem:[#allocation2 + $0x321] sm:$0xff] }
 0x2ab   :  { %3318 = vrot.lane.b32.xlu1 %v14328_v17, %s15281_s21  ;;  %3316 = vrot.lane.b32.xlu0 %v14327_v23, %s15281_s21  ;;  %v14352_v27 = vpack.c.bf16 %v3093_v33, %v3093_v33  ;;  %v14351_v37 = vpack.c.bf16 %v3092_v25, %v3092_v25 }
 0x2ad   :  { %v2870_v43 = vpop.permute.xlu1 %2869  ;;  %v2868_v28 = vpop.permute.xlu0 %2867 }
 0x2ae   :  { %3013 = vst.msk [vmem:[#allocation3 + $0x4] sm:$0xf] %vm3011_vm9, %v2870_v43  ;;  %3012 = vst.msk [vmem:[#allocation3] sm:$0xf] %vm3011_vm9, %v2868_v28  ;;  %v3095_v43 = vld [vmem:[#allocation2 + $0x351] sm:$0xff]  ;;  %v3094_v28 = vld [vmem:[#allocation2 + $0x341] sm:$0xff] }
 0x2af   :  { %3322 = vrot.lane.b32.xlu1 %v14330_v32, %s15281_s21  ;;  %3320 = vrot.lane.b32.xlu0 %v14329_v26, %s15281_s21  ;;  %v14354_v35 = vpack.c.bf16 %v3095_v43, %v3095_v43  ;;  %v14353_v48 = vpack.c.bf16 %v3094_v28, %v3094_v28 }
 0x2b1   :  { %v2874_v54 = vpop.permute.xlu1 %2873  ;;  %v2872_v36 = vpop.permute.xlu0 %2871 }
 0x2b2   :  { %3015 = vst.msk [vmem:[#allocation3 + $0xc] sm:$0xf] %vm3011_vm9, %v2874_v54  ;;  %3014 = vst.msk [vmem:[#allocation3 + $0x8] sm:$0xf] %vm3011_vm9, %v2872_v36  ;;  %v3097_v54 = vld [vmem:[#allocation2 + $0x391] sm:$0xff]  ;;  %v3096_v36 = vld [vmem:[#allocation2 + $0x381] sm:$0xff] }
 0x2b3   :  { %3326 = vrot.lane.b32.xlu1 %v14332_v40, %s15281_s21  ;;  %3324 = vrot.lane.b32.xlu0 %v14331_v29, %s15281_s21  ;;  %v14356_v39 = vpack.c.bf16 %v3097_v54, %v3097_v54  ;;  %v14355_v56 = vpack.c.bf16 %v3096_v36, %v3096_v36 }
 0x2b5   :  { %v2878_v2 = vpop.permute.xlu1 %2877  ;;  %v2876_v41 = vpop.permute.xlu0 %2875 }
 0x2b6   :  { %3017 = vst.msk [vmem:[#allocation3 + $0x14] sm:$0xf] %vm3011_vm9, %v2878_v2  ;;  %3016 = vst.msk [vmem:[#allocation3 + $0x10] sm:$0xf] %vm3011_vm9, %v2876_v41  ;;  %v3099_v2 = vld [vmem:[#allocation2 + $0x3b1] sm:$0xff]  ;;  %v3098_v41 = vld [vmem:[#allocation2 + $0x3a1] sm:$0xff] }
 0x2b7   :  { %3330 = vrot.lane.b32.xlu1 %v14334_v53, %s15281_s21  ;;  %3328 = vrot.lane.b32.xlu0 %v14333_v38, %s15281_s21  ;;  %v14358_v45 = vpack.c.bf16 %v3099_v2, %v3099_v2  ;;  %v14357_v6 = vpack.c.bf16 %v3098_v41, %v3098_v41 }
 0x2b9   :  { %v2882_v14 = vpop.permute.xlu1 %2881  ;;  %v2880_v46 = vpop.permute.xlu0 %2879 }
 0x2ba   :  { %3019 = vst.msk [vmem:[#allocation3 + $0x1c] sm:$0xf] %vm3011_vm9, %v2882_v14  ;;  %3018 = vst.msk [vmem:[#allocation3 + $0x18] sm:$0xf] %vm3011_vm9, %v2880_v46  ;;  %v3101_v14 = vld [vmem:[#allocation2 + $0x3f1] sm:$0xff]  ;;  %v3100_v46 = vld [vmem:[#allocation2 + $0x3e1] sm:$0xff] }
 0x2bb   :  { %3334 = vrot.lane.b32.xlu1 %v14336_v1, %s15281_s21  ;;  %3332 = vrot.lane.b32.xlu0 %v14335_v42, %s15281_s21  ;;  %v14360_v20 = vpack.c.bf16 %v3101_v14, %v3101_v14 }
 0x2bd   :  { %v2886_v34 = vpop.permute.xlu1 %2885  ;;  %v2884_v52 = vpop.permute.xlu0 %2883 }
 0x2be   :  { %3021 = vst.msk [vmem:[#allocation3 + $0x24] sm:$0xf] %vm3011_vm9, %v2886_v34  ;;  %3020 = vst.msk [vmem:[#allocation3 + $0x20] sm:$0xf] %vm3011_vm9, %v2884_v52  ;;  %v14359_v34 = vpack.c.bf16 %v3100_v46, %v3100_v46  ;;  %v4212_v52 = vsel %vm4210_vm10, %v15031_v51, 0  ;;  %vm12943_vm10 = vcmask 917312  }
 0x2bf   :  { %3338 = vrot.lane.b32.xlu1 %v14338_v10, %s15281_s21  ;;  %3336 = vrot.lane.b32.xlu0 %v14337_v50, %s15281_s21 }
 0x2c0   :  { %14948 = vmatpush3.bf16.msra.mxu0 %v4212_v52  ;;  %15010 = vmatpush3.bf16.msra.mxu1 %v4212_v52 }
 0x2c1   :  { %v2890_v57 = vpop.permute.xlu1 %2889  ;;  %v2888_v60 = vpop.permute.xlu0 %2887 }
 0x2c2   :  { %3023 = vst.msk [vmem:[#allocation3 + $0x2c] sm:$0xf] %vm3011_vm9, %v2890_v57  ;;  %3022 = vst.msk [vmem:[#allocation3 + $0x28] sm:$0xf] %vm3011_vm9, %v2888_v60  ;;  %v15032_v57 = vld [vmem:[%s19484_s1 + $0x18] sm:$0xff]  }
 0x2c3   :  { %3342 = vrot.lane.b32.xlu1 %v14340_v31, %s15281_s21  ;;  %3340 = vrot.lane.b32.xlu0 %v14339_v58, %s15281_s21  ;;  %v3103_v31 = vld [vmem:[#allocation2 + $0x411] sm:$0xff]  ;;  %v3102_v58 = vld [vmem:[#allocation2 + $0x401] sm:$0xff] }
 0x2c4   :  { %v14362_v60 = vpack.c.bf16 %v3103_v31, %v3103_v31  ;;  %14949 = vmatprep.subr.bf16.mxu0 %v15032_v57  ;;  %15006 = vmatprep.subr.bf16.mxu1 %v15032_v57  ;;  %v3508_v31 = vld [vmem:[#allocation2 + $0x172] sm:$0xff] }
 0x2c5   :  { %v2894_v19 = vpop.permute.xlu1 %2893  ;;  %v2892_v4 = vpop.permute.xlu0 %2891  ;;  %14950 = vmatpush3.bf16.msra.mxu0 %v15032_v57  ;;  %15011 = vmatpush3.bf16.msra.mxu1 %v15032_v57  ;;  %v14382_v57 = vpack.c.bf16 %v3508_v31, %v3508_v31 }
 0x2c6   :  { %3025 = vst.msk [vmem:[#allocation3 + $0x34] sm:$0xf] %vm3011_vm9, %v2894_v19  ;;  %3024 = vst.msk [vmem:[#allocation3 + $0x30] sm:$0xf] %vm3011_vm9, %v2892_v4  ;;  %v15033_v4 = vld [vmem:[%s19484_s1 + $0x10] sm:$0xff]  }
 0x2c7   :  { %3346 = vrot.lane.b32.xlu1 %v14342_v55, %s15281_s21  ;;  %3344 = vrot.lane.b32.xlu0 %v14341_v62, %s15281_s21  ;;  %v14361_v55 = vpack.c.bf16 %v3102_v58, %v3102_v58  ;;  %v3105_v62 = vld [vmem:[#allocation2 + $0x451] sm:$0xff]  ;;  %v3507_v58 = vld [vmem:[#allocation2 + $0x162] sm:$0xff] }
 0x2c8   :  { %14951 = vmatprep.subr.bf16.mxu0 %v15033_v4  ;;  %15007 = vmatprep.subr.bf16.mxu1 %v15033_v4 }
 0x2c9   :  { %v2898_v49 = vpop.permute.xlu1 %2897  ;;  %v2896_v5 = vpop.permute.xlu0 %2895  ;;  %14952 = vmatpush3.bf16.msra.mxu0 %v15033_v4  ;;  %15012 = vmatpush3.bf16.msra.mxu1 %v15033_v4 }
 0x2ca   :  { %3027 = vst.msk [vmem:[#allocation3 + $0x3c] sm:$0xf] %vm3011_vm9, %v2898_v49  ;;  %3026 = vst.msk [vmem:[#allocation3 + $0x38] sm:$0xf] %vm3011_vm9, %v2896_v5 }
 0x2cb   :  { %3350 = vrot.lane.b32.xlu1 %v14344_v18, %s15281_s21  ;;  %3348 = vrot.lane.b32.xlu0 %v14343_v0, %s15281_s21  ;;  %v14364_v18 = vpack.c.bf16 %v3105_v62, %v3105_v62  ;;  %v14363_v0 = vpack.c.bf16 %v3104_v63, %v3104_v63  ;;  %v3509_v62 = vld [vmem:[#allocation2 + $0x1a2] sm:$0xff] }
 0x2cc   :  { %v14383_v4 = vpack.c.bf16 %v3509_v62, %v3509_v62 }
 0x2cd   :  { %v2902_v15 = vpop.permute.xlu1 %2901  ;;  %v2900_v16 = vpop.permute.xlu0 %2899 }
 0x2ce   :  { %3029 = vst.msk [vmem:[#allocation3 + $0x44] sm:$0xf] %vm3011_vm9, %v2902_v15  ;;  %3028 = vst.msk [vmem:[#allocation3 + $0x40] sm:$0xf] %vm3011_vm9, %v2900_v16  ;;  %v3493_v15 = vld [vmem:[#allocation2 + $0x22] sm:$0xff] }
 0x2cf   :  { %3354 = vrot.lane.b32.xlu1 %v14346_v8, %s15281_s21  ;;  %3352 = vrot.lane.b32.xlu0 %v14345_v7, %s15281_s21  ;;  %v15034_v8 = vld [vmem:[%s19484_s1 + $0x8] sm:$0xff]   ;;  %v14366_v7 = vpack.c.bf16 %v3107_v11, %v3107_v11  ;;  %v14367_v21 = vpack.c.bf16 %v3493_v15, %v3493_v15 }
 0x2d0   :  { %14953 = vmatprep.subr.bf16.mxu0 %v15034_v8  ;;  %15008 = vmatprep.subr.bf16.mxu1 %v15034_v8 }
 0x2d1   :  { %v2906_v17 = vpop.permute.xlu1 %2905  ;;  %v2904_v23 = vpop.permute.xlu0 %2903  ;;  %14954 = vmatpush3.bf16.msra.mxu0 %v15034_v8  ;;  %15013 = vmatpush3.bf16.msra.mxu1 %v15034_v8  ;;  %v3514_v8 = vld [vmem:[#allocation2 + $0x212] sm:$0xff] }
 0x2d2   :  { %3031 = vst.msk [vmem:[#allocation3 + $0x4c] sm:$0xf] %vm3011_vm9, %v2906_v17  ;;  %3030 = vst.msk [vmem:[#allocation3 + $0x48] sm:$0xf] %vm3011_vm9, %v2904_v23  ;;  %v3496_v17 = vld [vmem:[#allocation2 + $0x52] sm:$0xff]  ;;  %v3495_v23 = vld [vmem:[#allocation2 + $0x42] sm:$0xff]  ;;  %v14388_v15 = vpack.c.bf16 %v3514_v8, %v3514_v8 }
 0x2d3   :  { %3358 = vrot.lane.b32.xlu1 %v14348_v22, %s15281_s21  ;;  %3356 = vrot.lane.b32.xlu0 %v14347_v61, %s15281_s21  ;;  %v15035_v61 = vld [vmem:[%s19484_s1] sm:$0xff]   ;;  %s15282_s1 = smov 64   ;;  %v14370_v33 = vpack.c.bf16 %v3496_v17, %v3496_v17  ;;  %v14369_v25 = vpack.c.bf16 %v3495_v23, %v3495_v23 }
 0x2d4   :  { %14955 = vmatprep.subr.bf16.mxu0 %v15035_v61  ;;  %15009 = vmatprep.subr.bf16.mxu1 %v15035_v61 }
 0x2d5   :  { %v2910_v32 = vpop.permute.xlu1 %2909  ;;  %v2908_v26 = vpop.permute.xlu0 %2907  ;;  %14956 = vmatpush3.bf16.msra.mxu0 %v15035_v61  ;;  %15014 = vmatpush3.bf16.msra.mxu1 %v15035_v61  ;;  %v3515_v61 = vld [vmem:[#allocation2 + $0x222] sm:$0xff] }
 0x2d6   :  { %3033 = vst.msk [vmem:[#allocation3 + $0x54] sm:$0xf] %vm3011_vm9, %v2910_v32  ;;  %3032 = vst.msk [vmem:[#allocation3 + $0x50] sm:$0xf] %vm3011_vm9, %v2908_v26  ;;  %v3498_v32 = vld [vmem:[#allocation2 + $0x92] sm:$0xff]  ;;  %v3497_v26 = vld [vmem:[#allocation2 + $0x82] sm:$0xff]  ;;  %v14389_v23 = vpack.c.bf16 %v3515_v61, %v3515_v61 }
 0x2d7   :  { %3362 = vrot.lane.b32.xlu1 %v14350_v13, %s15281_s21  ;;  %3360 = vrot.lane.b32.xlu0 %v14349_v24, %s15281_s21  ;;  %v14372_v43 = vpack.c.bf16 %v3498_v32, %v3498_v32  ;;  %v14371_v28 = vpack.c.bf16 %v3497_v26, %v3497_v26 }
 0x2d9   :  { %v2914_v40 = vpop.permute.xlu1 %2913  ;;  %v2912_v29 = vpop.permute.xlu0 %2911 }
 0x2da   :  { %3035 = vst.msk [vmem:[#allocation3 + $0x5c] sm:$0xf] %vm3011_vm9, %v2914_v40  ;;  %3034 = vst.msk [vmem:[#allocation3 + $0x58] sm:$0xf] %vm3011_vm9, %v2912_v29  ;;  %v3500_v40 = vld [vmem:[#allocation2 + $0xb2] sm:$0xff]  ;;  %v3499_v29 = vld [vmem:[#allocation2 + $0xa2] sm:$0xff] }
 0x2db   :  { %3366 = vrot.lane.b32.xlu1 %v14352_v27, %s15281_s21  ;;  %3364 = vrot.lane.b32.xlu0 %v14351_v37, %s15281_s21  ;;  %v14374_v54 = vpack.c.bf16 %v3500_v40, %v3500_v40  ;;  %v14373_v36 = vpack.c.bf16 %v3499_v29, %v3499_v29 }
 0x2dd   :  { %v2918_v53 = vpop.permute.xlu1 %2917  ;;  %v2916_v38 = vpop.permute.xlu0 %2915 }
 0x2de   :  { %3037 = vst.msk [vmem:[#allocation3 + $0x64] sm:$0xf] %vm3011_vm9, %v2918_v53  ;;  %3036 = vst.msk [vmem:[#allocation3 + $0x60] sm:$0xf] %vm3011_vm9, %v2916_v38  ;;  %v3502_v53 = vld [vmem:[#allocation2 + $0xf2] sm:$0xff]  ;;  %v3501_v38 = vld [vmem:[#allocation2 + $0xe2] sm:$0xff] }
 0x2df   :  { %3370 = vrot.lane.b32.xlu1 %v14354_v35, %s15281_s21  ;;  %3368 = vrot.lane.b32.xlu0 %v14353_v48, %s15281_s21  ;;  %v14376_v2 = vpack.c.bf16 %v3502_v53, %v3502_v53  ;;  %v14375_v41 = vpack.c.bf16 %v3501_v38, %v3501_v38 }
 0x2e1   :  { %v2922_v1 = vpop.permute.xlu1 %2921  ;;  %v2920_v42 = vpop.permute.xlu0 %2919 }
 0x2e2   :  { %3039 = vst.msk [vmem:[#allocation3 + $0x6c] sm:$0xf] %vm3011_vm9, %v2922_v1  ;;  %3038 = vst.msk [vmem:[#allocation3 + $0x68] sm:$0xf] %vm3011_vm9, %v2920_v42  ;;  %v3504_v1 = vld [vmem:[#allocation2 + $0x112] sm:$0xff]  ;;  %v3503_v42 = vld [vmem:[#allocation2 + $0x102] sm:$0xff] }
 0x2e3   :  { %3374 = vrot.lane.b32.xlu1 %v14356_v39, %s15281_s21  ;;  %3372 = vrot.lane.b32.xlu0 %v14355_v56, %s15281_s21  ;;  %v14378_v14 = vpack.c.bf16 %v3504_v1, %v3504_v1  ;;  %v14377_v46 = vpack.c.bf16 %v3503_v42, %v3503_v42 }
 0x2e5   :  { %v2926_v10 = vpop.permute.xlu1 %2925  ;;  %v2924_v50 = vpop.permute.xlu0 %2923 }
 0x2e6   :  { %3041 = vst.msk [vmem:[#allocation3 + $0x74] sm:$0xf] %vm3011_vm9, %v2926_v10  ;;  %3040 = vst.msk [vmem:[#allocation3 + $0x70] sm:$0xf] %vm3011_vm9, %v2924_v50  ;;  %v3506_v10 = vld [vmem:[#allocation2 + $0x152] sm:$0xff]  ;;  %v3505_v50 = vld [vmem:[#allocation2 + $0x142] sm:$0xff] }
 0x2e7   :  { %3378 = vrot.lane.b32.xlu1 %v14358_v45, %s15281_s21  ;;  %3376 = vrot.lane.b32.xlu0 %v14357_v6, %s15281_s21  ;;  %v14379_v52 = vpack.c.bf16 %v3505_v50, %v3505_v50 }
 0x2e9   :  { %v2930_v59 = vpop.permute.xlu1 %2929  ;;  %v2928_v44 = vpop.permute.xlu0 %2927 }
 0x2ea   :  { %3043 = vst.msk [vmem:[#allocation3 + $0x7c] sm:$0xf] %vm3011_vm9, %v2930_v59  ;;  %3042 = vst.msk [vmem:[#allocation3 + $0x78] sm:$0xf] %vm3011_vm9, %v2928_v44 }
 0x2eb   :  { %3382 = vrot.lane.b32.xlu1 %v14360_v20, %s15281_s21  ;;  %3380 = vrot.lane.b32.xlu0 %v14359_v34, %s15281_s21  ;;  %v14380_v34 = vpack.c.bf16 %v3506_v10, %v3506_v10 }
 0x2ed   :  { %v2934_v3 = vpop.permute.xlu1 %2933  ;;  %v2932_v19 = vpop.permute.xlu0 %2931 }
 0x2ee   :  { %3045 = vst.msk [vmem:[#allocation3 + $0x84] sm:$0xf] %vm3011_vm9, %v2934_v3  ;;  %3044 = vst.msk [vmem:[#allocation3 + $0x80] sm:$0xf] %vm3011_vm9, %v2932_v19 }
 0x2ef   :  { %3386 = vrot.lane.b32.xlu1 %v14362_v60, %s15281_s21  ;;  %3384 = vrot.lane.b32.xlu0 %v14361_v55, %s15281_s21  ;;  %v14381_v60 = vpack.c.bf16 %v3507_v58, %v3507_v58  ;;  %v3510_v55 = vld [vmem:[#allocation2 + $0x1b2] sm:$0xff] }
 0x2f0   :  { %v14384_v19 = vpack.c.bf16 %v3510_v55, %v3510_v55 }
 0x2f1   :  { %v2938_v49 = vpop.permute.xlu1 %2937  ;;  %v2936_v5 = vpop.permute.xlu0 %2935 }
 0x2f2   :  { %3047 = vst.msk [vmem:[#allocation3 + $0x8c] sm:$0xf] %vm3011_vm9, %v2938_v49  ;;  %3046 = vst.msk [vmem:[#allocation3 + $0x88] sm:$0xf] %vm3011_vm9, %v2936_v5 }
 0x2f3   :  { %3390 = vrot.lane.b32.xlu1 %v14364_v18, %s15281_s21  ;;  %3388 = vrot.lane.b32.xlu0 %v14363_v0, %s15281_s21  ;;  %v3512_v18 = vld [vmem:[#allocation2 + $0x1d2] sm:$0xff]  ;;  %v3511_v0 = vld [vmem:[#allocation2 + $0x1c2] sm:$0xff] }
 0x2f4   :  { %v14386_v49 = vpack.c.bf16 %v3512_v18, %v3512_v18  ;;  %v14385_v5 = vpack.c.bf16 %v3511_v0, %v3511_v0 }
 0x2f5   :  { %v2942_v16 = vpop.permute.xlu1 %2941  ;;  %v2940_v22 = vpop.permute.xlu0 %2939 }
 0x2f6   :  { %3049 = vst.msk [vmem:[#allocation3 + $0x94] sm:$0xf] %vm3011_vm9, %v2942_v16  ;;  %3048 = vst.msk [vmem:[#allocation3 + $0x90] sm:$0xf] %vm3011_vm9, %v2940_v22  ;;  %v3516_v22 = vld [vmem:[#allocation2 + $0x232] sm:$0xff] }
 0x2f7   :  { %3394 = vrot.lane.b32.xlu1 %v14366_v7, %s15281_s21  ;;  %3392 = vrot.lane.b32.xlu0 %v14365_v47, %s15281_s21  ;;  %v3513_v7 = vld [vmem:[#allocation2 + $0x202] sm:$0xff]  ;;  %v14390_v17 = vpack.c.bf16 %v3516_v22, %v3516_v22 }
 0x2f8   :  { %v14387_v16 = vpack.c.bf16 %v3513_v7, %v3513_v7 }
 0x2f9   :  { %v2946_v13 = vpop.permute.xlu1 %2945  ;;  %v2944_v24 = vpop.permute.xlu0 %2943 }
 0x2fa   :  { %3051 = vst.msk [vmem:[#allocation3 + $0x9c] sm:$0xf] %vm3011_vm9, %v2946_v13  ;;  %3050 = vst.msk [vmem:[#allocation3 + $0x98] sm:$0xf] %vm3011_vm9, %v2944_v24  ;;  %v3518_v13 = vld [vmem:[#allocation2 + $0x272] sm:$0xff]  ;;  %v3517_v24 = vld [vmem:[#allocation2 + $0x262] sm:$0xff] }
 0x2fb   :  { %3735 = vrot.lane.b32.xlu1 %v14368_v12, %s15282_s1  ;;  %3733 = vrot.lane.b32.xlu0 %v14367_v21, %s15282_s1  ;;  %v14392_v32 = vpack.c.bf16 %v3518_v13, %v3518_v13  ;;  %v14391_v26 = vpack.c.bf16 %v3517_v24, %v3517_v24 }
 0x2fd   :  { %v2950_v27 = vpop.permute.xlu1 %2949  ;;  %v2948_v37 = vpop.permute.xlu0 %2947 }
 0x2fe   :  { %3053 = vst.msk [vmem:[#allocation3 + $0xa4] sm:$0xf] %vm3011_vm9, %v2950_v27  ;;  %3052 = vst.msk [vmem:[#allocation3 + $0xa0] sm:$0xf] %vm3011_vm9, %v2948_v37  ;;  %v3520_v27 = vld [vmem:[#allocation2 + $0x292] sm:$0xff]  ;;  %v3519_v37 = vld [vmem:[#allocation2 + $0x282] sm:$0xff] }
 0x2ff   :  { %3739 = vrot.lane.b32.xlu1 %v14370_v33, %s15282_s1  ;;  %3737 = vrot.lane.b32.xlu0 %v14369_v25, %s15282_s1  ;;  %v14394_v40 = vpack.c.bf16 %v3520_v27, %v3520_v27  ;;  %v14393_v29 = vpack.c.bf16 %v3519_v37, %v3519_v37 }
 0x301   :  { %v2954_v35 = vpop.permute.xlu1 %2953  ;;  %v2952_v48 = vpop.permute.xlu0 %2951 }
 0x302   :  { %3055 = vst.msk [vmem:[#allocation3 + $0xac] sm:$0xf] %vm3011_vm9, %v2954_v35  ;;  %3054 = vst.msk [vmem:[#allocation3 + $0xa8] sm:$0xf] %vm3011_vm9, %v2952_v48  ;;  %v3522_v35 = vld [vmem:[#allocation2 + $0x2d2] sm:$0xff]  ;;  %v3521_v48 = vld [vmem:[#allocation2 + $0x2c2] sm:$0xff] }
 0x303   :  { %3743 = vrot.lane.b32.xlu1 %v14372_v43, %s15282_s1  ;;  %3741 = vrot.lane.b32.xlu0 %v14371_v28, %s15282_s1  ;;  %v14396_v53 = vpack.c.bf16 %v3522_v35, %v3522_v35  ;;  %v14395_v38 = vpack.c.bf16 %v3521_v48, %v3521_v48 }
 0x305   :  { %v2958_v39 = vpop.permute.xlu1 %2957  ;;  %v2956_v56 = vpop.permute.xlu0 %2955 }
 0x306   :  { %3057 = vst.msk [vmem:[#allocation3 + $0xb4] sm:$0xf] %vm3011_vm9, %v2958_v39  ;;  %3056 = vst.msk [vmem:[#allocation3 + $0xb0] sm:$0xf] %vm3011_vm9, %v2956_v56  ;;  %v3524_v39 = vld [vmem:[#allocation2 + $0x2f2] sm:$0xff]  ;;  %v3523_v56 = vld [vmem:[#allocation2 + $0x2e2] sm:$0xff] }
 0x307   :  { %3747 = vrot.lane.b32.xlu1 %v14374_v54, %s15282_s1  ;;  %3745 = vrot.lane.b32.xlu0 %v14373_v36, %s15282_s1  ;;  %v14398_v1 = vpack.c.bf16 %v3524_v39, %v3524_v39  ;;  %v14397_v42 = vpack.c.bf16 %v3523_v56, %v3523_v56 }
 0x309   :  { %v2962_v45 = vpop.permute.xlu1 %2961  ;;  %v2960_v6 = vpop.permute.xlu0 %2959 }
 0x30a   :  { %3059 = vst.msk [vmem:[#allocation3 + $0xbc] sm:$0xf] %vm3011_vm9, %v2962_v45  ;;  %3058 = vst.msk [vmem:[#allocation3 + $0xb8] sm:$0xf] %vm3011_vm9, %v2960_v6  ;;  %v3526_v45 = vld [vmem:[#allocation2 + $0x332] sm:$0xff]  ;;  %v3525_v6 = vld [vmem:[#allocation2 + $0x322] sm:$0xff] }
 0x30b   :  { %3751 = vrot.lane.b32.xlu1 %v14376_v2, %s15282_s1  ;;  %3749 = vrot.lane.b32.xlu0 %v14375_v41, %s15282_s1  ;;  %v14400_v10 = vpack.c.bf16 %v3526_v45, %v3526_v45  ;;  %v14399_v50 = vpack.c.bf16 %v3525_v6, %v3525_v6 }
 0x30d   :  { %v3303_v51 = vpop.permute.xlu1 %3302  ;;  %v3301_v20 = vpop.permute.xlu0 %3300 }
 0x30e   :  { %3446 = vst.msk [vmem:[#allocation3 + $0x4] sm:$0xf] %vm3444_vm11, %v3303_v51  ;;  %3445 = vst.msk [vmem:[#allocation3] sm:$0xf] %vm3444_vm11, %v3301_v20  ;;  %v3528_v51 = vld [vmem:[#allocation2 + $0x352] sm:$0xff]  ;;  %v3527_v20 = vld [vmem:[#allocation2 + $0x342] sm:$0xff] }
 0x30f   :  { %3755 = vrot.lane.b32.xlu1 %v14378_v14, %s15282_s1  ;;  %3753 = vrot.lane.b32.xlu0 %v14377_v46, %s15282_s1  ;;  %v14402_v31 = vpack.c.bf16 %v3528_v51, %v3528_v51  ;;  %v14401_v58 = vpack.c.bf16 %v3527_v20, %v3527_v20 }
 0x311   :  { %v3307_v59 = vpop.permute.xlu1 %3306  ;;  %v3305_v44 = vpop.permute.xlu0 %3304 }
 0x312   :  { %3448 = vst.msk [vmem:[#allocation3 + $0xc] sm:$0xf] %vm3444_vm11, %v3307_v59  ;;  %3447 = vst.msk [vmem:[#allocation3 + $0x8] sm:$0xf] %vm3444_vm11, %v3305_v44  ;;  %v3530_v59 = vld [vmem:[#allocation2 + $0x392] sm:$0xff]  ;;  %v3529_v44 = vld [vmem:[#allocation2 + $0x382] sm:$0xff] }
 0x313   :  { %3759 = vrot.lane.b32.xlu1 %v14380_v34, %s15282_s1  ;;  %3757 = vrot.lane.b32.xlu0 %v14379_v52, %s15282_s1  ;;  %v14404_v55 = vpack.c.bf16 %v3530_v59, %v3530_v59  ;;  %v14403_v62 = vpack.c.bf16 %v3529_v44, %v3529_v44  ;;  %v4543_v44 = vld [vmem:[#allocation2 + $0xc0] sm:$0xff] }
 0x315   :  { %v3311_v63 = vpop.permute.xlu1 %3310  ;;  %v3309_v3 = vpop.permute.xlu0 %3308 }
 0x316   :  { %3450 = vst.msk [vmem:[#allocation3 + $0x14] sm:$0xf] %vm3444_vm11, %v3311_v63  ;;  %3449 = vst.msk [vmem:[#allocation3 + $0x10] sm:$0xf] %vm3444_vm11, %v3309_v3  ;;  %v3532_v63 = vld [vmem:[#allocation2 + $0x3b2] sm:$0xff]  ;;  %v3531_v3 = vld [vmem:[#allocation2 + $0x3a2] sm:$0xff] }
 0x317   :  { %3763 = vrot.lane.b32.xlu1 %v14382_v57, %s15282_s1  ;;  %3761 = vrot.lane.b32.xlu0 %v14381_v60, %s15282_s1  ;;  %v14406_v18 = vpack.c.bf16 %v3532_v63, %v3532_v63  ;;  %v14405_v0 = vpack.c.bf16 %v3531_v3, %v3531_v3 }
 0x319   :  { %v3315_v11 = vpop.permute.xlu1 %3314  ;;  %v3313_v30 = vpop.permute.xlu0 %3312 }
 0x31a   :  { %3452 = vst.msk [vmem:[#allocation3 + $0x1c] sm:$0xf] %vm3444_vm11, %v3315_v11  ;;  %3451 = vst.msk [vmem:[#allocation3 + $0x18] sm:$0xf] %vm3444_vm11, %v3313_v30  ;;  %v3534_v11 = vld [vmem:[#allocation2 + $0x3f2] sm:$0xff]  ;;  %v3533_v30 = vld [vmem:[#allocation2 + $0x3e2] sm:$0xff] }
 0x31b   :  { %3767 = vrot.lane.b32.xlu1 %v14384_v19, %s15282_s1  ;;  %3765 = vrot.lane.b32.xlu0 %v14383_v4, %s15282_s1  ;;  %v14408_v8 = vpack.c.bf16 %v3534_v11, %v3534_v11  ;;  %v14407_v7 = vpack.c.bf16 %v3533_v30, %v3533_v30 }
 0x31d   :  { %v3319_v47 = vpop.permute.xlu1 %3318  ;;  %v3317_v9 = vpop.permute.xlu0 %3316 }
 0x31e   :  { %3454 = vst.msk [vmem:[#allocation3 + $0x24] sm:$0xf] %vm3444_vm11, %v3319_v47  ;;  %3453 = vst.msk [vmem:[#allocation3 + $0x20] sm:$0xf] %vm3444_vm11, %v3317_v9  ;;  %v3536_v47 = vld [vmem:[#allocation2 + $0x412] sm:$0xff]  ;;  %v3535_v9 = vld [vmem:[#allocation2 + $0x402] sm:$0xff] }
 0x31f   :  { %3771 = vrot.lane.b32.xlu1 %v14386_v49, %s15282_s1  ;;  %3769 = vrot.lane.b32.xlu0 %v14385_v5, %s15282_s1  ;;  %v14410_v22 = vpack.c.bf16 %v3536_v47, %v3536_v47  ;;  %v14409_v61 = vpack.c.bf16 %v3535_v9, %v3535_v9 }
 0x321   :  { %v3323_v12 = vpop.permute.xlu1 %3322  ;;  %v3321_v21 = vpop.permute.xlu0 %3320 }
 0x322   :  { %3456 = vst.msk [vmem:[#allocation3 + $0x2c] sm:$0xf] %vm3444_vm11, %v3323_v12  ;;  %3455 = vst.msk [vmem:[#allocation3 + $0x28] sm:$0xf] %vm3444_vm11, %v3321_v21  ;;  %v3538_v12 = vld [vmem:[#allocation2 + $0x452] sm:$0xff]  ;;  %v3537_v21 = vld [vmem:[#allocation2 + $0x442] sm:$0xff] }
 0x323   :  { %3775 = vrot.lane.b32.xlu1 %v14388_v15, %s15282_s1  ;;  %3773 = vrot.lane.b32.xlu0 %v14387_v16, %s15282_s1  ;;  %v14412_v13 = vpack.c.bf16 %v3538_v12, %v3538_v12  ;;  %v14411_v24 = vpack.c.bf16 %v3537_v21, %v3537_v21  ;;  %v4555_v21 = vld [vmem:[#allocation2 + $0x1e0] sm:$0xff] }
 0x325   :  { %v3327_v33 = vpop.permute.xlu1 %3326  ;;  %v3325_v25 = vpop.permute.xlu0 %3324 }
 0x326   :  { %3458 = vst.msk [vmem:[#allocation3 + $0x34] sm:$0xf] %vm3444_vm11, %v3327_v33  ;;  %3457 = vst.msk [vmem:[#allocation3 + $0x30] sm:$0xf] %vm3444_vm11, %v3325_v25  ;;  %v3540_v33 = vld [vmem:[#allocation2 + $0x472] sm:$0xff]  ;;  %v3539_v25 = vld [vmem:[#allocation2 + $0x462] sm:$0xff] }
 0x327   :  { %3779 = vrot.lane.b32.xlu1 %v14390_v17, %s15282_s1  ;;  %3777 = vrot.lane.b32.xlu0 %v14389_v23, %s15282_s1  ;;  %v14414_v27 = vpack.c.bf16 %v3540_v33, %v3540_v33  ;;  %v14413_v37 = vpack.c.bf16 %v3539_v25, %v3539_v25 }
 0x329   :  { %v3331_v43 = vpop.permute.xlu1 %3330  ;;  %v3329_v28 = vpop.permute.xlu0 %3328 }
 0x32a   :  { %3460 = vst.msk [vmem:[#allocation3 + $0x3c] sm:$0xf] %vm3444_vm11, %v3331_v43  ;;  %3459 = vst.msk [vmem:[#allocation3 + $0x38] sm:$0xf] %vm3444_vm11, %v3329_v28 }
 0x32b   :  { %3783 = vrot.lane.b32.xlu1 %v14392_v32, %s15282_s1  ;;  %3781 = vrot.lane.b32.xlu0 %v14391_v26, %s15282_s1 }
 0x32d   :  { %v3335_v54 = vpop.permute.xlu1 %3334  ;;  %v3333_v36 = vpop.permute.xlu0 %3332 }
 0x32e   :  { %3462 = vst.msk [vmem:[#allocation3 + $0x44] sm:$0xf] %vm3444_vm11, %v3335_v54  ;;  %3461 = vst.msk [vmem:[#allocation3 + $0x40] sm:$0xf] %vm3444_vm11, %v3333_v36 }
 0x32f   :  { %3787 = vrot.lane.b32.xlu1 %v14394_v40, %s15282_s1  ;;  %3785 = vrot.lane.b32.xlu0 %v14393_v29, %s15282_s1 }
 0x331   :  { %v3339_v2 = vpop.permute.xlu1 %3338  ;;  %v3337_v41 = vpop.permute.xlu0 %3336 }
 0x332   :  { %3464 = vst.msk [vmem:[#allocation3 + $0x4c] sm:$0xf] %vm3444_vm11, %v3339_v2  ;;  %3463 = vst.msk [vmem:[#allocation3 + $0x48] sm:$0xf] %vm3444_vm11, %v3337_v41 }
 0x333   :  { %3791 = vrot.lane.b32.xlu1 %v14396_v53, %s15282_s1  ;;  %3789 = vrot.lane.b32.xlu0 %v14395_v38, %s15282_s1 }
 0x335   :  { %v3343_v14 = vpop.permute.xlu1 %3342  ;;  %v3341_v46 = vpop.permute.xlu0 %3340 }
 0x336   :  { %3466 = vst.msk [vmem:[#allocation3 + $0x54] sm:$0xf] %vm3444_vm11, %v3343_v14  ;;  %3465 = vst.msk [vmem:[#allocation3 + $0x50] sm:$0xf] %vm3444_vm11, %v3341_v46 }
 0x337   :  { %3795 = vrot.lane.b32.xlu1 %v14398_v1, %s15282_s1  ;;  %3793 = vrot.lane.b32.xlu0 %v14397_v42, %s15282_s1  ;;  %v4535_v1 = vld [vmem:[#allocation2] sm:$0xff] }
 0x338   :  { %v4583_v6 = vpack.c.bf16 %v4535_v1, %v4535_v1 }
 0x339   :  { %v3347_v34 = vpop.permute.xlu1 %3346  ;;  %v3345_v52 = vpop.permute.xlu0 %3344 }
 0x33a   :  { %3468 = vst.msk [vmem:[#allocation3 + $0x5c] sm:$0xf] %vm3444_vm11, %v3347_v34  ;;  %3467 = vst.msk [vmem:[#allocation3 + $0x58] sm:$0xf] %vm3444_vm11, %v3345_v52 }
 0x33b   :  { %3799 = vrot.lane.b32.xlu1 %v14400_v10, %s15282_s1  ;;  %3797 = vrot.lane.b32.xlu0 %v14399_v50, %s15282_s1  ;;  %v4539_v50 = vld [vmem:[#allocation2 + $0x60] sm:$0xff] }
 0x33c   :  { %v4587_v52 = vpack.c.bf16 %v4539_v50, %v4539_v50  ;;  %v4571_v50 = vld [vmem:[#allocation2 + $0x360] sm:$0xff] }
 0x33d   :  { %v3351_v57 = vpop.permute.xlu1 %3350  ;;  %v3349_v60 = vpop.permute.xlu0 %3348 }
 0x33e   :  { %3470 = vst.msk [vmem:[#allocation3 + $0x64] sm:$0xf] %vm3444_vm11, %v3351_v57  ;;  %3469 = vst.msk [vmem:[#allocation3 + $0x60] sm:$0xf] %vm3444_vm11, %v3349_v60 }
 0x33f   :  { %3803 = vrot.lane.b32.xlu1 %v14402_v31, %s15282_s1  ;;  %3801 = vrot.lane.b32.xlu0 %v14401_v58, %s15282_s1 }
 0x341   :  { %v3355_v19 = vpop.permute.xlu1 %3354  ;;  %v3353_v4 = vpop.permute.xlu0 %3352 }
 0x342   :  { %3472 = vst.msk [vmem:[#allocation3 + $0x6c] sm:$0xf] %vm3444_vm11, %v3355_v19  ;;  %3471 = vst.msk [vmem:[#allocation3 + $0x68] sm:$0xf] %vm3444_vm11, %v3353_v4  ;;  %v4547_v4 = vld [vmem:[#allocation2 + $0x120] sm:$0xff] }
 0x343   :  { %3807 = vrot.lane.b32.xlu1 %v14404_v55, %s15282_s1  ;;  %3805 = vrot.lane.b32.xlu0 %v14403_v62, %s15282_s1  ;;  %v4591_v62 = vpack.c.bf16 %v4543_v44, %v4543_v44  ;;  %v4595_v30 = vpack.c.bf16 %v4547_v4, %v4547_v4  ;;  %v4575_v44 = vld [vmem:[#allocation2 + $0x3c0] sm:$0xff] }
 0x344   :  { %v4579_v4 = vld [vmem:[#allocation2 + $0x420] sm:$0xff] }
 0x345   :  { %v3359_v49 = vpop.permute.xlu1 %3358  ;;  %v3357_v5 = vpop.permute.xlu0 %3356 }
 0x346   :  { %3474 = vst.msk [vmem:[#allocation3 + $0x74] sm:$0xf] %vm3444_vm11, %v3359_v49  ;;  %3473 = vst.msk [vmem:[#allocation3 + $0x70] sm:$0xf] %vm3444_vm11, %v3357_v5 }
 0x347   :  { %3811 = vrot.lane.b32.xlu1 %v14406_v18, %s15282_s1  ;;  %3809 = vrot.lane.b32.xlu0 %v14405_v0, %s15282_s1 }
 0x349   :  { %v3363_v15 = vpop.permute.xlu1 %3362  ;;  %v3361_v16 = vpop.permute.xlu0 %3360 }
 0x34a   :  { %3476 = vst.msk [vmem:[#allocation3 + $0x7c] sm:$0xf] %vm3444_vm11, %v3363_v15  ;;  %3475 = vst.msk [vmem:[#allocation3 + $0x78] sm:$0xf] %vm3444_vm11, %v3361_v16 }
 0x34b   :  { %3815 = vrot.lane.b32.xlu1 %v14408_v8, %s15282_s1  ;;  %3813 = vrot.lane.b32.xlu0 %v14407_v7, %s15282_s1  ;;  %v4551_v7 = vld [vmem:[#allocation2 + $0x180] sm:$0xff] }
 0x34c   :  { %v4599_v16 = vpack.c.bf16 %v4551_v7, %v4551_v7 }
 0x34d   :  { %v3367_v17 = vpop.permute.xlu1 %3366  ;;  %v3365_v23 = vpop.permute.xlu0 %3364 }
 0x34e   :  { %3478 = vst.msk [vmem:[#allocation3 + $0x84] sm:$0xf] %vm3444_vm11, %v3367_v17  ;;  %3477 = vst.msk [vmem:[#allocation3 + $0x80] sm:$0xf] %vm3444_vm11, %v3365_v23 }
 0x34f   :  { %3819 = vrot.lane.b32.xlu1 %v14410_v22, %s15282_s1  ;;  %3817 = vrot.lane.b32.xlu0 %v14409_v61, %s15282_s1 }
 0x351   :  { %v3371_v32 = vpop.permute.xlu1 %3370  ;;  %v3369_v26 = vpop.permute.xlu0 %3368 }
 0x352   :  { %3480 = vst.msk [vmem:[#allocation3 + $0x8c] sm:$0xf] %vm3444_vm11, %v3371_v32  ;;  %3479 = vst.msk [vmem:[#allocation3 + $0x88] sm:$0xf] %vm3444_vm11, %v3369_v26  ;;  %v4559_v26 = vld [vmem:[#allocation2 + $0x240] sm:$0xff] }
 0x353   :  { %3823 = vrot.lane.b32.xlu1 %v14412_v13, %s15282_s1  ;;  %3821 = vrot.lane.b32.xlu0 %v14411_v24, %s15282_s1  ;;  %v4603_v24 = vpack.c.bf16 %v4555_v21, %v4555_v21 }
 0x355   :  { %v3375_v43 = vpop.permute.xlu1 %3374  ;;  %v3373_v28 = vpop.permute.xlu0 %3372 }
 0x356   :  { %3482 = vst.msk [vmem:[#allocation3 + $0x94] sm:$0xf] %vm3444_vm11, %v3375_v43  ;;  %3481 = vst.msk [vmem:[#allocation3 + $0x90] sm:$0xf] %vm3444_vm11, %v3373_v28  ;;  %v4607_v28 = vpack.c.bf16 %v4559_v26, %v4559_v26 }
 0x357   :  { %3827 = vrot.lane.b32.xlu1 %v14414_v27, %s15282_s1  ;;  %3825 = vrot.lane.b32.xlu0 %v14413_v37, %s15282_s1 }
 0x359   :  { %v3379_v40 = vpop.permute.xlu1 %3378  ;;  %v3377_v29 = vpop.permute.xlu0 %3376 }
 0x35a   :  { %3484 = vst.msk [vmem:[#allocation3 + $0x9c] sm:$0xf] %vm3444_vm11, %v3379_v40  ;;  %3483 = vst.msk [vmem:[#allocation3 + $0x98] sm:$0xf] %vm3444_vm11, %v3377_v29 }
 0x35d   :  { %v3383_v35 = vpop.permute.xlu1 %3382  ;;  %v3381_v48 = vpop.permute.xlu0 %3380 }
 0x35e   :  { %3486 = vst.msk [vmem:[#allocation3 + $0xa4] sm:$0xf] %vm3444_vm11, %v3383_v35  ;;  %3485 = vst.msk [vmem:[#allocation3 + $0xa0] sm:$0xf] %vm3444_vm11, %v3381_v48  ;;  %v4563_v48 = vld [vmem:[#allocation2 + $0x2a0] sm:$0xff] }
 0x361   :  { %v3387_v54 = vpop.permute.xlu1 %3386  ;;  %v3385_v36 = vpop.permute.xlu0 %3384 }
 0x362   :  { %3488 = vst.msk [vmem:[#allocation3 + $0xac] sm:$0xf] %vm3444_vm11, %v3387_v54  ;;  %3487 = vst.msk [vmem:[#allocation3 + $0xa8] sm:$0xf] %vm3444_vm11, %v3385_v36 }
 0x365   :  { %v3391_v53 = vpop.permute.xlu1 %3390  ;;  %v3389_v38 = vpop.permute.xlu0 %3388 }
 0x366   :  { %3490 = vst.msk [vmem:[#allocation3 + $0xb4] sm:$0xf] %vm3444_vm11, %v3391_v53  ;;  %3489 = vst.msk [vmem:[#allocation3 + $0xb0] sm:$0xf] %vm3444_vm11, %v3389_v38  ;;  %v4611_v38 = vpack.c.bf16 %v4563_v48, %v4563_v48 }
 0x369   :  { %v3395_v39 = vpop.permute.xlu1 %3394  ;;  %v3393_v56 = vpop.permute.xlu0 %3392 }
 0x36a   :  { %3492 = vst.msk [vmem:[#allocation3 + $0xbc] sm:$0xf] %vm3444_vm11, %v3395_v39  ;;  %3491 = vst.msk [vmem:[#allocation3 + $0xb8] sm:$0xf] %vm3444_vm11, %v3393_v56 }
 0x36d   :  { %v3736_v2 = vpop.permute.xlu1 %3735  ;;  %v3734_v41 = vpop.permute.xlu0 %3733 }
 0x36e   :  { %3879 = vst.msk [vmem:[#allocation3 + $0x4] sm:$0xf] %vm3877_vm12, %v3736_v2  ;;  %3878 = vst.msk [vmem:[#allocation3] sm:$0xf] %vm3877_vm12, %v3734_v41  ;;  %v4567_v41 = vld [vmem:[#allocation2 + $0x300] sm:$0xff] }
 0x371   :  { %v3740_v42 = vpop.permute.xlu1 %3739  ;;  %v3738_v45 = vpop.permute.xlu0 %3737 }
 0x372   :  { %3881 = vst.msk [vmem:[#allocation3 + $0xc] sm:$0xf] %vm3877_vm12, %v3740_v42  ;;  %3880 = vst.msk [vmem:[#allocation3 + $0x8] sm:$0xf] %vm3877_vm12, %v3738_v45 }
 0x375   :  { %v3926_v14 = vld [vmem:[#allocation3] sm:$0xff]   ;;  %v3744_v46 = vpop.permute.xlu1 %3743  ;;  %v3742_v10 = vpop.permute.xlu0 %3741 }
 0x376   :  { %4631 = vst.msk [vmem:[#allocation3] sm:$0xf] %vm412_vm3, %v4583_v6  ;;  %14957 = vmatprep.mubr.msk.bf16.mxu0 %vm4137_vm13, %v3926_v14  ;;  %v4615_v6 = vpack.c.bf16 %v4567_v41, %v4567_v41 }
 0x377   :  { %3883 = vst.msk [vmem:[#allocation3 + $0x14] sm:$0xf] %vm3877_vm12, %v3744_v46  ;;  %3882 = vst.msk [vmem:[#allocation3 + $0x10] sm:$0xf] %vm3877_vm12, %v3742_v10 }
 0x379   :  { %v3748_v51 = vpop.permute.xlu1 %3747  ;;  %v3746_v20 = vpop.permute.xlu0 %3745  ;;  %v15036_v34 = vld [vmem:[#allocation3 + $0x8] sm:$0xff]  }
 0x37a   :  { %3885 = vst.msk [vmem:[#allocation3 + $0x1c] sm:$0xf] %vm3877_vm12, %v3748_v51  ;;  %3884 = vst.msk [vmem:[#allocation3 + $0x18] sm:$0xf] %vm3877_vm12, %v3746_v20  ;;  %14958 = vmatmul.mubr.msk.bf16.vlgmr.msra.gmra.mxu0 %vm4137_vm13, %v15036_v34 }
 0x37d   :  { %v3752_v58 = vpop.permute.xlu1 %3751  ;;  %v3750_v59 = vpop.permute.xlu0 %3749 }
 0x37e   :  { %v3930_v31 = vld [vmem:[#allocation3 + $0x10] sm:$0xff]   ;;  %3887 = vst.msk [vmem:[#allocation3 + $0x24] sm:$0xf] %vm3877_vm12, %v3752_v58  ;;  %3886 = vst.msk [vmem:[#allocation3 + $0x20] sm:$0xf] %vm3877_vm12, %v3750_v59 }
 0x37f   :  { %4635 = vst.msk [vmem:[#allocation3 + $0x10] sm:$0xf] %vm412_vm3, %v4587_v52  ;;  %14961 = vmatprep.mubr.msk.bf16.mxu0 %vm4137_vm13, %v3930_v31  ;;  %v4619_v52 = vpack.c.bf16 %v4571_v50, %v4571_v50 }
 0x381   :  { %v3756_v57 = vpop.permute.xlu1 %3755  ;;  %v3754_v60 = vpop.permute.xlu0 %3753  ;;  %v15037_v55 = vld [vmem:[#allocation3 + $0x18] sm:$0xff]  }
 0x382   :  { %3889 = vst.msk [vmem:[#allocation3 + $0x2c] sm:$0xf] %vm3877_vm12, %v3756_v57  ;;  %3888 = vst.msk [vmem:[#allocation3 + $0x28] sm:$0xf] %vm3877_vm12, %v3754_v60  ;;  %14962 = vmatmul.mubr.msk.bf16.gmra.mxu0 %vm4137_vm13, %v15037_v55 }
 0x385   :  { %v3934_v63 = vld [vmem:[#allocation3 + $0x20] sm:$0xff]   ;;  %v3760_v3 = vpop.permute.xlu1 %3759  ;;  %v3758_v19 = vpop.permute.xlu0 %3757 }
 0x386   :  { %4639 = vst.msk [vmem:[#allocation3 + $0x20] sm:$0xf] %vm412_vm3, %v4591_v62  ;;  %14965 = vmatprep.mubr.msk.bf16.mxu0 %vm4137_vm13, %v3934_v63  ;;  %v4623_v62 = vpack.c.bf16 %v4575_v44, %v4575_v44 }
 0x387   :  { %3891 = vst.msk [vmem:[#allocation3 + $0x34] sm:$0xf] %vm3877_vm12, %v3760_v3  ;;  %3890 = vst.msk [vmem:[#allocation3 + $0x30] sm:$0xf] %vm3877_vm12, %v3758_v19 }
 0x389   :  { %v3764_v18 = vpop.permute.xlu1 %3763  ;;  %v3762_v0 = vpop.permute.xlu0 %3761  ;;  %v15038_v11 = vld [vmem:[#allocation3 + $0x28] sm:$0xff]  }
 0x38a   :  { %3893 = vst.msk [vmem:[#allocation3 + $0x3c] sm:$0xf] %vm3877_vm12, %v3764_v18  ;;  %3892 = vst.msk [vmem:[#allocation3 + $0x38] sm:$0xf] %vm3877_vm12, %v3762_v0  ;;  %14966 = vmatmul.mubr.msk.bf16.gmra.mxu0 %vm4137_vm13, %v15038_v11 }
 0x38d   :  { %v3768_v5 = vpop.permute.xlu1 %3767  ;;  %v3766_v8 = vpop.permute.xlu0 %3765 }
 0x38e   :  { %v3938_v49 = vld [vmem:[#allocation3 + $0x30] sm:$0xff]   ;;  %3895 = vst.msk [vmem:[#allocation3 + $0x44] sm:$0xf] %vm3877_vm12, %v3768_v5  ;;  %3894 = vst.msk [vmem:[#allocation3 + $0x40] sm:$0xf] %vm3877_vm12, %v3766_v8 }
 0x38f   :  { %4643 = vst.msk [vmem:[#allocation3 + $0x30] sm:$0xf] %vm412_vm3, %v4595_v30  ;;  %14969 = vmatprep.mubr.msk.bf16.mxu0 %vm4137_vm13, %v3938_v49  ;;  %v4627_v30 = vpack.c.bf16 %v4579_v4, %v4579_v4  ;;  %v4679_v49 = vld [vmem:[#allocation2 + $0x1] sm:$0xff] }
 0x390   :  { %v14415_v5 = vpack.c.bf16 %v4679_v49, %v4679_v49 }
 0x391   :  { %v3772_v47 = vpop.permute.xlu1 %3771  ;;  %v3770_v9 = vpop.permute.xlu0 %3769  ;;  %v15039_v15 = vld [vmem:[#allocation3 + $0x38] sm:$0xff]  }
 0x392   :  { %3897 = vst.msk [vmem:[#allocation3 + $0x4c] sm:$0xf] %vm3877_vm12, %v3772_v47  ;;  %3896 = vst.msk [vmem:[#allocation3 + $0x48] sm:$0xf] %vm3877_vm12, %v3770_v9  ;;  %14970 = vmatmul.mubr.msk.bf16.gmra.mxu0 %vm4137_vm13, %v15039_v15  ;;  %4919 = vrot.lane.b32.xlu0 %v14415_v5, %s15275_s16  ;;  %v16916_v47 = vld [vmem:[%s19485_s2] ss:$0 sm:$0xff] }
 0x395   :  { %v3942_v22 = vld [vmem:[#allocation3 + $0x40] sm:$0xff]   ;;  %v3776_v61 = vpop.permute.xlu1 %3775  ;;  %v3774_v12 = vpop.permute.xlu0 %3773 }
 0x396   :  { %4647 = vst.msk [vmem:[#allocation3 + $0x40] sm:$0xf] %vm412_vm3, %v4599_v16  ;;  %14973 = vmatprep.mubr.msk.bf16.mxu0 %vm4137_vm13, %v3942_v22 }
 0x397   :  { %3899 = vst.msk [vmem:[#allocation3 + $0x54] sm:$0xf] %vm3877_vm12, %v3776_v61  ;;  %3898 = vst.msk [vmem:[#allocation3 + $0x50] sm:$0xf] %vm3877_vm12, %v3774_v12 }
 0x399   :  { %v3780_v17 = vpop.permute.xlu1 %3779  ;;  %v3778_v23 = vpop.permute.xlu0 %3777  ;;  %v15040_v13 = vld [vmem:[#allocation3 + $0x48] sm:$0xff]  }
 0x39a   :  { %3901 = vst.msk [vmem:[#allocation3 + $0x5c] sm:$0xf] %vm3877_vm12, %v3780_v17  ;;  %3900 = vst.msk [vmem:[#allocation3 + $0x58] sm:$0xf] %vm3877_vm12, %v3778_v23  ;;  %14974 = vmatmul.mubr.msk.bf16.gmra.mxu0 %vm4137_vm13, %v15040_v13 }
 0x39d   :  { %v3784_v25 = vpop.permute.xlu1 %3783  ;;  %v3782_v32 = vpop.permute.xlu0 %3781 }
 0x39e   :  { %v3946_v33 = vld [vmem:[#allocation3 + $0x50] sm:$0xff]   ;;  %3903 = vst.msk [vmem:[#allocation3 + $0x64] sm:$0xf] %vm3877_vm12, %v3784_v25  ;;  %3902 = vst.msk [vmem:[#allocation3 + $0x60] sm:$0xf] %vm3877_vm12, %v3782_v32 }
 0x39f   :  { %4651 = vst.msk [vmem:[#allocation3 + $0x50] sm:$0xf] %vm412_vm3, %v4603_v24  ;;  %14977 = vmatprep.mubr.msk.bf16.mxu0 %vm4137_vm13, %v3946_v33 }
 0x3a1   :  { %v3788_v27 = vpop.permute.xlu1 %3787  ;;  %v3786_v37 = vpop.permute.xlu0 %3785  ;;  %v15041_v43 = vld [vmem:[#allocation3 + $0x58] sm:$0xff]  }
 0x3a2   :  { %3905 = vst.msk [vmem:[#allocation3 + $0x6c] sm:$0xf] %vm3877_vm12, %v3788_v27  ;;  %3904 = vst.msk [vmem:[#allocation3 + $0x68] sm:$0xf] %vm3877_vm12, %v3786_v37  ;;  %14978 = vmatmul.mubr.msk.bf16.gmra.mxu0 %vm4137_vm13, %v15041_v43 }
 0x3a5   :  { %v3950_v40 = vld [vmem:[#allocation3 + $0x60] sm:$0xff]   ;;  %v3792_v29 = vpop.permute.xlu1 %3791  ;;  %v3790_v35 = vpop.permute.xlu0 %3789 }
 0x3a6   :  { %4655 = vst.msk [vmem:[#allocation3 + $0x60] sm:$0xf] %vm412_vm3, %v4607_v28  ;;  %14981 = vmatprep.mubr.msk.bf16.mxu1 %vm4137_vm13, %v3950_v40 }
 0x3a7   :  { %3907 = vst.msk [vmem:[#allocation3 + $0x74] sm:$0xf] %vm3877_vm12, %v3792_v29  ;;  %3906 = vst.msk [vmem:[#allocation3 + $0x70] sm:$0xf] %vm3877_vm12, %v3790_v35 }
 0x3a9   :  { %v3796_v54 = vpop.permute.xlu1 %3795  ;;  %v3794_v36 = vpop.permute.xlu0 %3793  ;;  %v15042_v53 = vld [vmem:[#allocation3 + $0x68] sm:$0xff]  }
 0x3aa   :  { %3909 = vst.msk [vmem:[#allocation3 + $0x7c] sm:$0xf] %vm3877_vm12, %v3796_v54  ;;  %3908 = vst.msk [vmem:[#allocation3 + $0x78] sm:$0xf] %vm3877_vm12, %v3794_v36  ;;  %14982 = vmatmul.mubr.msk.bf16.vlgmr.msra.gmra.mxu1 %vm4137_vm13, %v15042_v53 }
 0x3ad   :  { %v3800_v56 = vpop.permute.xlu1 %3799  ;;  %v3798_v2 = vpop.permute.xlu0 %3797 }
 0x3ae   :  { %v3954_v39 = vld [vmem:[#allocation3 + $0x70] sm:$0xff]   ;;  %3911 = vst.msk [vmem:[#allocation3 + $0x84] sm:$0xf] %vm3877_vm12, %v3800_v56  ;;  %3910 = vst.msk [vmem:[#allocation3 + $0x80] sm:$0xf] %vm3877_vm12, %v3798_v2 }
 0x3af   :  { %4659 = vst.msk [vmem:[#allocation3 + $0x70] sm:$0xf] %vm412_vm3, %v4611_v38  ;;  %14985 = vmatprep.mubr.msk.bf16.mxu1 %vm4137_vm13, %v3954_v39 }
 0x3b1   :  { %v3804_v1 = vpop.permute.xlu1 %3803  ;;  %v3802_v42 = vpop.permute.xlu0 %3801  ;;  %v15043_v45 = vld [vmem:[#allocation3 + $0x78] sm:$0xff]  }
 0x3b2   :  { %3913 = vst.msk [vmem:[#allocation3 + $0x8c] sm:$0xf] %vm3877_vm12, %v3804_v1  ;;  %3912 = vst.msk [vmem:[#allocation3 + $0x88] sm:$0xf] %vm3877_vm12, %v3802_v42  ;;  %14986 = vmatmul.mubr.msk.bf16.gmra.mxu1 %vm4137_vm13, %v15043_v45 }
 0x3b5   :  { %v3958_v14 = vld [vmem:[#allocation3 + $0x80] sm:$0xff]   ;;  %v3808_v46 = vpop.permute.xlu1 %3807  ;;  %v3806_v10 = vpop.permute.xlu0 %3805 }
 0x3b6   :  { %4663 = vst.msk [vmem:[#allocation3 + $0x80] sm:$0xf] %vm412_vm3, %v4615_v6  ;;  %14989 = vmatprep.mubr.msk.bf16.mxu1 %vm4137_vm13, %v3958_v14 }
 0x3b7   :  { %3915 = vst.msk [vmem:[#allocation3 + $0x94] sm:$0xf] %vm3877_vm12, %v3808_v46  ;;  %3914 = vst.msk [vmem:[#allocation3 + $0x90] sm:$0xf] %vm3877_vm12, %v3806_v10  ;;  %v4683_v46 = vld [vmem:[#allocation2 + $0x61] sm:$0xff] }
 0x3b9   :  { %v3812_v51 = vpop.permute.xlu1 %3811  ;;  %v3810_v20 = vpop.permute.xlu0 %3809  ;;  %v15044_v34 = vld [vmem:[#allocation3 + $0x88] sm:$0xff]  }
 0x3ba   :  { %3917 = vst.msk [vmem:[#allocation3 + $0x9c] sm:$0xf] %vm3877_vm12, %v3812_v51  ;;  %3916 = vst.msk [vmem:[#allocation3 + $0x98] sm:$0xf] %vm3877_vm12, %v3810_v20  ;;  %14990 = vmatmul.mubr.msk.bf16.gmra.mxu1 %vm4137_vm13, %v15044_v34 }
 0x3bd   :  { %v3816_v58 = vpop.permute.xlu1 %3815  ;;  %v3814_v59 = vpop.permute.xlu0 %3813 }
 0x3be   :  { %v3962_v31 = vld [vmem:[#allocation3 + $0x90] sm:$0xff]   ;;  %3919 = vst.msk [vmem:[#allocation3 + $0xa4] sm:$0xf] %vm3877_vm12, %v3816_v58  ;;  %3918 = vst.msk [vmem:[#allocation3 + $0xa0] sm:$0xf] %vm3877_vm12, %v3814_v59 }
 0x3bf   :  { %4667 = vst.msk [vmem:[#allocation3 + $0x90] sm:$0xf] %vm412_vm3, %v4619_v52  ;;  %14993 = vmatprep.mubr.msk.bf16.mxu1 %vm4137_vm13, %v3962_v31 }
 0x3c1   :  { %v3820_v57 = vpop.permute.xlu1 %3819  ;;  %v3818_v60 = vpop.permute.xlu0 %3817  ;;  %v15045_v55 = vld [vmem:[#allocation3 + $0x98] sm:$0xff]  }
 0x3c2   :  { %3921 = vst.msk [vmem:[#allocation3 + $0xac] sm:$0xf] %vm3877_vm12, %v3820_v57  ;;  %3920 = vst.msk [vmem:[#allocation3 + $0xa8] sm:$0xf] %vm3877_vm12, %v3818_v60  ;;  %14994 = vmatmul.mubr.msk.bf16.gmra.mxu1 %vm4137_vm13, %v15045_v55  ;;  %v14419_v57 = vpack.c.bf16 %v4683_v46, %v4683_v46 }
 0x3c5   :  { %v3966_v63 = vld [vmem:[#allocation3 + $0xa0] sm:$0xff]   ;;  %v3824_v3 = vpop.permute.xlu1 %3823  ;;  %v3822_v19 = vpop.permute.xlu0 %3821 }
 0x3c6   :  { %4671 = vst.msk [vmem:[#allocation3 + $0xa0] sm:$0xf] %vm412_vm3, %v4623_v62  ;;  %14997 = vmatprep.mubr.msk.bf16.mxu1 %vm4137_vm13, %v3966_v63 }
 0x3c7   :  { %3923 = vst.msk [vmem:[#allocation3 + $0xb4] sm:$0xf] %vm3877_vm12, %v3824_v3  ;;  %3922 = vst.msk [vmem:[#allocation3 + $0xb0] sm:$0xf] %vm3877_vm12, %v3822_v19 }
 0x3c9   :  { %v3828_v18 = vpop.permute.xlu1 %3827  ;;  %v3826_v0 = vpop.permute.xlu0 %3825  ;;  %v15046_v11 = vld [vmem:[#allocation3 + $0xa8] sm:$0xff]  }
 0x3ca   :  { %3925 = vst.msk [vmem:[#allocation3 + $0xbc] sm:$0xf] %vm3877_vm12, %v3828_v18  ;;  %3924 = vst.msk [vmem:[#allocation3 + $0xb8] sm:$0xf] %vm3877_vm12, %v3826_v0  ;;  %14998 = vmatmul.mubr.msk.bf16.gmra.mxu1 %vm4137_vm13, %v15046_v11 }
 0x3ce   :  { %v3970_v8 = vld [vmem:[#allocation3 + $0xb0] sm:$0xff]  }
 0x3cf   :  { %4675 = vst.msk [vmem:[#allocation3 + $0xb0] sm:$0xf] %vm412_vm3, %v4627_v30  ;;  %15001 = vmatprep.mubr.msk.bf16.mxu1 %vm4137_vm13, %v3970_v8 }
 0x3d1   :  { %v15047_v7 = vld [vmem:[#allocation3 + $0xb8] sm:$0xff]  }
 0x3d2   :  { %15002 = vmatmul.mubr.msk.bf16.gmra.mxu1 %vm4137_vm13, %v15047_v7  ;;  %v4687_v7 = vld [vmem:[#allocation2 + $0xc1] sm:$0xff] }
 0x404   :  { %v4920_v21 = vpop.permute.xlu0 %4919 }
 0x405   :  { %5063 = vst.msk [vmem:[#allocation3] sm:$0xf] %vm845_vm4, %v4920_v21 }
 0x43a   :  { %v14959_v9 = vpop.f32.mrf.mxu0 }
 0x43b   :  { %v4257_v15 = vadd.f32 %v14959_v9, %v16916_v47 }
 0x43c   :  { %v4248_v16 = vpop.f32.mrf.mxu0 }
 0x43d   :  { %v4441_v22 = vmax.f32 %v4257_v15, 0.0  ;;  %v4249_v61 = vadd.f32 %v16916_v47, %v4248_v16 }
 0x43e   :  { %v14960_v12 = vpop.f32.mrf.mxu0 }
 0x43f   :  { %4489 = vst.msk [vmem:[#allocation2 + $0x31] sm:$0xff] %vm23_vm0, %v4441_v22  ;;  %v4439_v17 = vmax.f32 %v4249_v61, 0.0  ;;  %v4260_v23 = vadd.f32 %v14960_v12, %v16916_v47 }
 0x440   :  { %v4251_v13 = vpop.f32.mrf.mxu0 }
 0x441   :  { %4487 = vst.msk [vmem:[#allocation2 + $0x11] sm:$0xff] %vm23_vm0, %v4439_v17  ;;  %v4442_v24 = vmax.f32 %v4260_v23, 0.0  ;;  %v4252_v33 = vadd.f32 %v16916_v47, %v4251_v13 }
 0x442   :  { %v14963_v25 = vpop.f32.mrf.mxu0 }
 0x443   :  { %4490 = vst.msk [vmem:[#allocation2 + $0x41] sm:$0xff] %vm23_vm0, %v4442_v24  ;;  %v4440_v32 = vmax.f32 %v4252_v33, 0.0  ;;  %v4273_v26 = vadd.f32 %v14963_v25, %v16916_v47  ;;  %v14423_v24 = vpack.c.bf16 %v4687_v7, %v4687_v7 }
 0x444   :  { %v4264_v27 = vpop.f32.mrf.mxu0 }
 0x445   :  { %4488 = vst.msk [vmem:[#allocation2 + $0x21] sm:$0xff] %vm23_vm0, %v4440_v32  ;;  %v4445_v37 = vmax.f32 %v4273_v26, 0.0  ;;  %v4265_v43 = vadd.f32 %v16916_v47, %v4264_v27 }
 0x446   :  { %v14964_v28 = vpop.f32.mrf.mxu0  ;;  %v4538_v40 = vld [vmem:[#allocation2 + $0x30] sm:$0xff] }
 0x447   :  { %4493 = vst.msk [vmem:[#allocation2 + $0x91] sm:$0xff] %vm23_vm0, %v4445_v37  ;;  %v4443_v29 = vmax.f32 %v4265_v43, 0.0  ;;  %v4276_v35 = vadd.f32 %v14964_v28, %v16916_v47  ;;  %v16931_v53 = vpack.c.bf16 %v4538_v40, %v4538_v40  ;;  %v4682_v41 = vld [vmem:[#allocation2 + $0x31] sm:$0xff] }
 0x448   :  { %v4267_v48 = vpop.f32.mrf.mxu0  ;;  %v4680_v54 = vld [vmem:[#allocation2 + $0x11] sm:$0xff]  ;;  %v14418_v34 = vpack.c.bf16 %v4682_v41, %v4682_v41 }
 0x449   :  { %v4536_v36 = vld [vmem:[#allocation2 + $0x10] sm:$0xff]  ;;  %4491 = vst.msk [vmem:[#allocation2 + $0x71] sm:$0xff] %vm23_vm0, %v4443_v29  ;;  %v4446_v38 = vmax.f32 %v4276_v35, 0.0  ;;  %v4268_v39 = vadd.f32 %v16916_v47, %v4267_v48  ;;  %v14416_v56 = vpack.c.bf16 %v4680_v54, %v4680_v54 }
 0x44a   :  { %v14967_v2 = vpop.f32.mrf.mxu0  ;;  %v16935_v1 = vpack.c.bf16 %v4536_v36, %v4536_v36  ;;  %4634 = vst.msk [vmem:[#allocation3 + $0xc] sm:$0xf] %vm412_vm3, %v16931_v53 }
 0x44b   :  { %4494 = vst.msk [vmem:[#allocation2 + $0xa1] sm:$0xff] %vm23_vm0, %v4446_v38  ;;  %v4444_v42 = vmax.f32 %v4268_v39, 0.0  ;;  %v4289_v45 = vadd.f32 %v14967_v2, %v16916_v47  ;;  %4921 = vrot.lane.b32.xlu1 %v14416_v56, %s15275_s16  ;;  %v4691_v38 = vld [vmem:[#allocation2 + $0x121] sm:$0xff] }
 0x44c   :  { %v4280_v6 = vpop.f32.mrf.mxu0  ;;  %v4681_v14 = vld [vmem:[#allocation2 + $0x21] sm:$0xff]  ;;  %4632 = vst.msk [vmem:[#allocation3 + $0x4] sm:$0xf] %vm412_vm3, %v16935_v1 }
 0x44d   :  { %v4537_v10 = vld [vmem:[#allocation2 + $0x20] sm:$0xff]  ;;  %4492 = vst.msk [vmem:[#allocation2 + $0x81] sm:$0xff] %vm23_vm0, %v4444_v42  ;;  %v4449_v50 = vmax.f32 %v4289_v45, 0.0  ;;  %v4281_v51 = vadd.f32 %v16916_v47, %v4280_v6  ;;  %v14417_v20 = vpack.c.bf16 %v4681_v14, %v4681_v14 }
 0x44e   :  { %v14968_v52 = vpop.f32.mrf.mxu0  ;;  %v16946_v31 = vpack.c.bf16 %v4537_v10, %v4537_v10  ;;  %v4542_v58 = vld [vmem:[#allocation2 + $0x90] sm:$0xff] }
 0x44f   :  { %4497 = vst.msk [vmem:[#allocation2 + $0xf1] sm:$0xff] %vm23_vm0, %v4449_v50  ;;  %v4447_v59 = vmax.f32 %v4281_v51, 0.0  ;;  %v4292_v44 = vadd.f32 %v14968_v52, %v16916_v47  ;;  %4923 = vrot.lane.b32.xlu0 %v14417_v20, %s15275_s16  ;;  %4925 = vrot.lane.b32.xlu1 %v14418_v34, %s15275_s16  ;;  %v16954_v63 = vpack.c.bf16 %v4542_v58, %v4542_v58  ;;  %v4686_v0 = vld [vmem:[#allocation2 + $0x91] sm:$0xff] }
 0x450   :  { %v4283_v60 = vpop.f32.mrf.mxu0  ;;  %v4684_v55 = vld [vmem:[#allocation2 + $0x71] sm:$0xff]  ;;  %4633 = vst.msk [vmem:[#allocation3 + $0x8] sm:$0xf] %vm412_vm3, %v16946_v31  ;;  %v14422_v61 = vpack.c.bf16 %v4686_v0, %v4686_v0  ;;  %v14427_v50 = vpack.c.bf16 %v4691_v38, %v4691_v38 }
 0x451   :  { %v4540_v62 = vld [vmem:[#allocation2 + $0x70] sm:$0xff]  ;;  %4495 = vst.msk [vmem:[#allocation2 + $0xd1] sm:$0xff] %vm23_vm0, %v4447_v59  ;;  %v4450_v3 = vmax.f32 %v4292_v44, 0.0  ;;  %v4284_v19 = vadd.f32 %v16916_v47, %v4283_v60  ;;  %v14420_v4 = vpack.c.bf16 %v4684_v55, %v4684_v55 }
 0x452   :  { %v14971_v18 = vpop.f32.mrf.mxu0  ;;  %v16958_v11 = vpack.c.bf16 %v4540_v62, %v4540_v62  ;;  %4638 = vst.msk [vmem:[#allocation3 + $0x1c] sm:$0xf] %vm412_vm3, %v16954_v63 }
 0x453   :  { %4498 = vst.msk [vmem:[#allocation2 + $0x101] sm:$0xff] %vm23_vm0, %v4450_v3  ;;  %v4448_v30 = vmax.f32 %v4284_v19, 0.0  ;;  %v4305_v49 = vadd.f32 %v14971_v18, %v16916_v47  ;;  %4927 = vrot.lane.b32.xlu0 %v14419_v57, %s15275_s16  ;;  %4929 = vrot.lane.b32.xlu1 %v14420_v4, %s15275_s16  ;;  %v4695_v18 = vld [vmem:[#allocation2 + $0x181] sm:$0xff] }
 0x454   :  { %v4296_v5 = vpop.f32.mrf.mxu0  ;;  %v4685_v8 = vld [vmem:[#allocation2 + $0x81] sm:$0xff]  ;;  %4636 = vst.msk [vmem:[#allocation3 + $0x14] sm:$0xf] %vm412_vm3, %v16958_v11 }
 0x455   :  { %v4541_v9 = vld [vmem:[#allocation2 + $0x80] sm:$0xff]  ;;  %4496 = vst.msk [vmem:[#allocation2 + $0xe1] sm:$0xff] %vm23_vm0, %v4448_v30  ;;  %v4453_v15 = vmax.f32 %v4305_v49, 0.0  ;;  %v4297_v16 = vadd.f32 %v16916_v47, %v4296_v5  ;;  %v14421_v22 = vpack.c.bf16 %v4685_v8, %v4685_v8 }
 0x456   :  { %v14972_v12 = vpop.f32.mrf.mxu0  ;;  %v16970_v21 = vpack.c.bf16 %v4541_v9, %v4541_v9  ;;  %v4546_v17 = vld [vmem:[#allocation2 + $0xf0] sm:$0xff] }
 0x457   :  { %4501 = vst.msk [vmem:[#allocation2 + $0x151] sm:$0xff] %vm23_vm0, %v4453_v15  ;;  %v4451_v23 = vmax.f32 %v4297_v16, 0.0  ;;  %v4308_v13 = vadd.f32 %v14972_v12, %v16916_v47  ;;  %4931 = vrot.lane.b32.xlu0 %v14421_v22, %s15275_s16  ;;  %4933 = vrot.lane.b32.xlu1 %v14422_v61, %s15275_s16  ;;  %v16978_v26 = vpack.c.bf16 %v4546_v17, %v4546_v17  ;;  %v4690_v40 = vld [vmem:[#allocation2 + $0xf1] sm:$0xff] }
 0x458   :  { %v4299_v33 = vpop.f32.mrf.mxu0  ;;  %v4688_v25 = vld [vmem:[#allocation2 + $0xd1] sm:$0xff]  ;;  %4637 = vst.msk [vmem:[#allocation3 + $0x18] sm:$0xf] %vm412_vm3, %v16970_v21  ;;  %v14426_v42 = vpack.c.bf16 %v4690_v40, %v4690_v40  ;;  %v14431_v61 = vpack.c.bf16 %v4695_v18, %v4695_v18  ;;  %v4703_v18 = vld [vmem:[#allocation2 + $0x241] sm:$0xff] }
 0x459   :  { %v4544_v32 = vld [vmem:[#allocation2 + $0xd0] sm:$0xff]  ;;  %4499 = vst.msk [vmem:[#allocation2 + $0x131] sm:$0xff] %vm23_vm0, %v4451_v23  ;;  %v4454_v27 = vmax.f32 %v4308_v13, 0.0  ;;  %v4300_v37 = vadd.f32 %v16916_v47, %v4299_v33  ;;  %v14424_v43 = vpack.c.bf16 %v4688_v25, %v4688_v25 }
 0x45a   :  { %v14975_v28 = vpop.f32.mrf.mxu0  ;;  %v16982_v29 = vpack.c.bf16 %v4544_v32, %v4544_v32  ;;  %4642 = vst.msk [vmem:[#allocation3 + $0x2c] sm:$0xf] %vm412_vm3, %v16978_v26 }
 0x45b   :  { %4502 = vst.msk [vmem:[#allocation2 + $0x161] sm:$0xff] %vm23_vm0, %v4454_v27  ;;  %v4452_v35 = vmax.f32 %v4300_v37, 0.0  ;;  %v4321_v48 = vadd.f32 %v14975_v28, %v16916_v47  ;;  %4935 = vrot.lane.b32.xlu0 %v14423_v24, %s15275_s16  ;;  %4937 = vrot.lane.b32.xlu1 %v14424_v43, %s15275_s16 }
 0x45c   :  { %v4312_v54 = vpop.f32.mrf.mxu0  ;;  %v4689_v36 = vld [vmem:[#allocation2 + $0xe1] sm:$0xff]  ;;  %4640 = vst.msk [vmem:[#allocation3 + $0x24] sm:$0xf] %vm412_vm3, %v16982_v29 }
 0x45d   :  { %v4545_v39 = vld [vmem:[#allocation2 + $0xe0] sm:$0xff]  ;;  %4500 = vst.msk [vmem:[#allocation2 + $0x141] sm:$0xff] %vm23_vm0, %v4452_v35  ;;  %v4457_v56 = vmax.f32 %v4321_v48, 0.0  ;;  %v4313_v2 = vadd.f32 %v16916_v47, %v4312_v54  ;;  %v14425_v41 = vpack.c.bf16 %v4689_v36, %v4689_v36 }
 0x45e   :  { %v14976_v45 = vpop.f32.mrf.mxu0  ;;  %v16994_v6 = vpack.c.bf16 %v4545_v39, %v4545_v39  ;;  %v4550_v14 = vld [vmem:[#allocation2 + $0x150] sm:$0xff]  ;;  %v4699_v48 = vld [vmem:[#allocation2 + $0x1e1] sm:$0xff] }
 0x45f   :  { %4505 = vst.msk [vmem:[#allocation2 + $0x1b1] sm:$0xff] %vm23_vm0, %v4457_v56  ;;  %v4455_v46 = vmax.f32 %v4313_v2, 0.0  ;;  %v4324_v10 = vadd.f32 %v14976_v45, %v16916_v47  ;;  %4939 = vrot.lane.b32.xlu0 %v14425_v41, %s15275_s16  ;;  %4941 = vrot.lane.b32.xlu1 %v14426_v42, %s15275_s16  ;;  %v17002_v52 = vpack.c.bf16 %v4550_v14, %v4550_v14  ;;  %v4694_v60 = vld [vmem:[#allocation2 + $0x151] sm:$0xff] }
 0x460   :  { %v4315_v51 = vpop.f32.mrf.mxu0  ;;  %v4692_v20 = vld [vmem:[#allocation2 + $0x131] sm:$0xff]  ;;  %4641 = vst.msk [vmem:[#allocation3 + $0x28] sm:$0xf] %vm412_vm3, %v16994_v6  ;;  %v14430_v8 = vpack.c.bf16 %v4694_v60, %v4694_v60 }
 0x461   :  { %v4548_v34 = vld [vmem:[#allocation2 + $0x130] sm:$0xff]  ;;  %4503 = vst.msk [vmem:[#allocation2 + $0x191] sm:$0xff] %vm23_vm0, %v4455_v46  ;;  %v4458_v58 = vmax.f32 %v4324_v10, 0.0  ;;  %v4316_v59 = vadd.f32 %v16916_v47, %v4315_v51  ;;  %v14428_v44 = vpack.c.bf16 %v4692_v20, %v4692_v20  ;;  %v14435_v46 = vpack.c.bf16 %v4699_v48, %v4699_v48 }
 0x462   :  { %v14979_v57 = vpop.f32.mrf.mxu0  ;;  %v17006_v55 = vpack.c.bf16 %v4548_v34, %v4548_v34  ;;  %4646 = vst.msk [vmem:[#allocation3 + $0x3c] sm:$0xf] %vm412_vm3, %v17002_v52 }
 0x463   :  { %4506 = vst.msk [vmem:[#allocation2 + $0x1c1] sm:$0xff] %vm23_vm0, %v4458_v58  ;;  %v4456_v62 = vmax.f32 %v4316_v59, 0.0  ;;  %v4337_v3 = vadd.f32 %v14979_v57, %v16916_v47  ;;  %4943 = vrot.lane.b32.xlu0 %v14427_v50, %s15275_s16  ;;  %4945 = vrot.lane.b32.xlu1 %v14428_v44, %s15275_s16 }
 0x464   :  { %v4328_v19 = vpop.f32.mrf.mxu0  ;;  %v4693_v4 = vld [vmem:[#allocation2 + $0x141] sm:$0xff]  ;;  %4644 = vst.msk [vmem:[#allocation3 + $0x34] sm:$0xf] %vm412_vm3, %v17006_v55 }
 0x465   :  { %v4549_v0 = vld [vmem:[#allocation2 + $0x140] sm:$0xff]  ;;  %4504 = vst.msk [vmem:[#allocation2 + $0x1a1] sm:$0xff] %vm23_vm0, %v4456_v62  ;;  %v4461_v30 = vmax.f32 %v4337_v3, 0.0  ;;  %v4329_v49 = vadd.f32 %v16916_v47, %v4328_v19  ;;  %v14429_v5 = vpack.c.bf16 %v4693_v4, %v4693_v4 }
 0x466   :  { %v14980_v7 = vpop.f32.mrf.mxu0  ;;  %v17018_v9 = vpack.c.bf16 %v4549_v0, %v4549_v0  ;;  %v4554_v15 = vld [vmem:[#allocation2 + $0x1b0] sm:$0xff] }
 0x467   :  { %4509 = vst.msk [vmem:[#allocation2 + $0x211] sm:$0xff] %vm23_vm0, %v4461_v30  ;;  %v4459_v16 = vmax.f32 %v4329_v49, 0.0  ;;  %v4340_v22 = vadd.f32 %v14980_v7, %v16916_v47  ;;  %4947 = vrot.lane.b32.xlu0 %v14429_v5, %s15275_s16  ;;  %4949 = vrot.lane.b32.xlu1 %v14430_v8, %s15275_s16  ;;  %v17026_v13 = vpack.c.bf16 %v4554_v15, %v4554_v15  ;;  %v4698_v27 = vld [vmem:[#allocation2 + $0x1b1] sm:$0xff] }
 0x468   :  { %v4331_v12 = vpop.f32.mrf.mxu0  ;;  %v4696_v17 = vld [vmem:[#allocation2 + $0x191] sm:$0xff]  ;;  %4645 = vst.msk [vmem:[#allocation3 + $0x38] sm:$0xf] %vm412_vm3, %v17018_v9  ;;  %v14434_v56 = vpack.c.bf16 %v4698_v27, %v4698_v27 }
 0x469   :  { %v4552_v23 = vld [vmem:[#allocation2 + $0x190] sm:$0xff]  ;;  %4507 = vst.msk [vmem:[#allocation2 + $0x1f1] sm:$0xff] %vm23_vm0, %v4459_v16  ;;  %v4462_v24 = vmax.f32 %v4340_v22, 0.0  ;;  %v4332_v33 = vadd.f32 %v16916_v47, %v4331_v12  ;;  %v14432_v25 = vpack.c.bf16 %v4696_v17, %v4696_v17  ;;  %v14439_v12 = vpack.c.bf16 %v4703_v18, %v4703_v18 }
 0x46a   :  { %v14983_v32 = vpop.f32.mrf.mxu1  ;;  %v17030_v37 = vpack.c.bf16 %v4552_v23, %v4552_v23  ;;  %4650 = vst.msk [vmem:[#allocation3 + $0x4c] sm:$0xf] %vm412_vm3, %v17026_v13 }
 0x46b   :  { %4510 = vst.msk [vmem:[#allocation2 + $0x221] sm:$0xff] %vm23_vm0, %v4462_v24  ;;  %v4460_v43 = vmax.f32 %v4332_v33, 0.0  ;;  %v4353_v28 = vadd.f32 %v14983_v32, %v16916_v47  ;;  %4951 = vrot.lane.b32.xlu0 %v14431_v61, %s15275_s16  ;;  %4953 = vrot.lane.b32.xlu1 %v14432_v25, %s15275_s16 }
 0x46c   :  { %v4344_v40 = vpop.f32.mrf.mxu1  ;;  %v4697_v35 = vld [vmem:[#allocation2 + $0x1a1] sm:$0xff]  ;;  %4648 = vst.msk [vmem:[#allocation3 + $0x44] sm:$0xf] %vm412_vm3, %v17030_v37 }
 0x46d   :  { %v4553_v54 = vld [vmem:[#allocation2 + $0x1a0] sm:$0xff]  ;;  %4508 = vst.msk [vmem:[#allocation2 + $0x201] sm:$0xff] %vm23_vm0, %v4460_v43  ;;  %v4465_v36 = vmax.f32 %v4353_v28, 0.0  ;;  %v4345_v38 = vadd.f32 %v16916_v47, %v4344_v40  ;;  %v14433_v39 = vpack.c.bf16 %v4697_v35, %v4697_v35 }
 0x46e   :  { %v14984_v2 = vpop.f32.mrf.mxu1  ;;  %v17042_v41 = vpack.c.bf16 %v4553_v54, %v4553_v54  ;;  %v4558_v42 = vld [vmem:[#allocation2 + $0x210] sm:$0xff] }
 0x46f   :  { %4513 = vst.msk [vmem:[#allocation2 + $0x271] sm:$0xff] %vm23_vm0, %v4465_v36  ;;  %v4463_v45 = vmax.f32 %v4345_v38, 0.0  ;;  %v4356_v14 = vadd.f32 %v14984_v2, %v16916_v47  ;;  %4955 = vrot.lane.b32.xlu0 %v14433_v39, %s15275_s16  ;;  %4957 = vrot.lane.b32.xlu1 %v14434_v56, %s15275_s16  ;;  %v17050_v20 = vpack.c.bf16 %v4558_v42, %v4558_v42  ;;  %v4702_v57 = vld [vmem:[#allocation2 + $0x211] sm:$0xff]  ;;  %v4707_v38 = vld [vmem:[#allocation2 + $0x2a1] sm:$0xff] }
 0x470   :  { %v4347_v10 = vpop.f32.mrf.mxu1  ;;  %v4700_v50 = vld [vmem:[#allocation2 + $0x1f1] sm:$0xff]  ;;  %4649 = vst.msk [vmem:[#allocation3 + $0x48] sm:$0xf] %vm412_vm3, %v17042_v41  ;;  %v14438_v8 = vpack.c.bf16 %v4702_v57, %v4702_v57 }
 0x471   :  { %v4556_v51 = vld [vmem:[#allocation2 + $0x1f0] sm:$0xff]  ;;  %4511 = vst.msk [vmem:[#allocation2 + $0x251] sm:$0xff] %vm23_vm0, %v4463_v45  ;;  %v4466_v34 = vmax.f32 %v4356_v14, 0.0  ;;  %v4348_v58 = vadd.f32 %v16916_v47, %v4347_v10  ;;  %v14436_v59 = vpack.c.bf16 %v4700_v50, %v4700_v50 }
 0x472   :  { %v14987_v44 = vpop.f32.mrf.mxu1  ;;  %v17054_v60 = vpack.c.bf16 %v4556_v51, %v4556_v51  ;;  %4654 = vst.msk [vmem:[#allocation3 + $0x5c] sm:$0xf] %vm412_vm3, %v17050_v20 }
 0x473   :  { %4514 = vst.msk [vmem:[#allocation2 + $0x281] sm:$0xff] %vm23_vm0, %v4466_v34  ;;  %v4464_v62 = vmax.f32 %v4348_v58, 0.0  ;;  %v4369_v3 = vadd.f32 %v14987_v44, %v16916_v47  ;;  %4959 = vrot.lane.b32.xlu0 %v14435_v46, %s15275_s16  ;;  %4961 = vrot.lane.b32.xlu1 %v14436_v59, %s15275_s16  ;;  %v14443_v34 = vpack.c.bf16 %v4707_v38, %v4707_v38 }
 0x474   :  { %v4360_v19 = vpop.f32.mrf.mxu1  ;;  %v4701_v4 = vld [vmem:[#allocation2 + $0x201] sm:$0xff]  ;;  %4652 = vst.msk [vmem:[#allocation3 + $0x54] sm:$0xf] %vm412_vm3, %v17054_v60 }
 0x475   :  { %v4557_v0 = vld [vmem:[#allocation2 + $0x200] sm:$0xff]  ;;  %4512 = vst.msk [vmem:[#allocation2 + $0x261] sm:$0xff] %vm23_vm0, %v4464_v62  ;;  %v4469_v30 = vmax.f32 %v4369_v3, 0.0  ;;  %v4361_v49 = vadd.f32 %v16916_v47, %v4360_v19  ;;  %v14437_v5 = vpack.c.bf16 %v4701_v4, %v4701_v4 }
 0x476   :  { %v14988_v7 = vpop.f32.mrf.mxu1  ;;  %v17066_v15 = vpack.c.bf16 %v4557_v0, %v4557_v0  ;;  %v4562_v16 = vld [vmem:[#allocation2 + $0x270] sm:$0xff] }
 0x477   :  { %4517 = vst.msk [vmem:[#allocation2 + $0x2d1] sm:$0xff] %vm23_vm0, %v4469_v30  ;;  %v4467_v22 = vmax.f32 %v4361_v49, 0.0  ;;  %v4372_v61 = vadd.f32 %v14988_v7, %v16916_v47  ;;  %4963 = vrot.lane.b32.xlu0 %v14437_v5, %s15275_s16  ;;  %4965 = vrot.lane.b32.xlu1 %v14438_v8, %s15275_s16  ;;  %v17074_v33 = vpack.c.bf16 %v4562_v16, %v4562_v16  ;;  %v4706_v28 = vld [vmem:[#allocation2 + $0x271] sm:$0xff]  ;;  %v4711_v7 = vld [vmem:[#allocation2 + $0x301] sm:$0xff] }
 0x478   :  { %v4363_v17 = vpop.f32.mrf.mxu1  ;;  %v4704_v23 = vld [vmem:[#allocation2 + $0x251] sm:$0xff]  ;;  %4653 = vst.msk [vmem:[#allocation3 + $0x58] sm:$0xf] %vm412_vm3, %v17066_v15  ;;  %v14442_v45 = vpack.c.bf16 %v4706_v28, %v4706_v28 }
 0x479   :  { %v4560_v24 = vld [vmem:[#allocation2 + $0x250] sm:$0xff]  ;;  %4515 = vst.msk [vmem:[#allocation2 + $0x2b1] sm:$0xff] %vm23_vm0, %v4467_v22  ;;  %v4470_v25 = vmax.f32 %v4372_v61, 0.0  ;;  %v4364_v32 = vadd.f32 %v16916_v47, %v4363_v17  ;;  %v14440_v27 = vpack.c.bf16 %v4704_v23, %v4704_v23 }
 0x47a   :  { %v14991_v43 = vpop.f32.mrf.mxu1  ;;  %v17078_v40 = vpack.c.bf16 %v4560_v24, %v4560_v24  ;;  %4658 = vst.msk [vmem:[#allocation3 + $0x6c] sm:$0xf] %vm412_vm3, %v17074_v33 }
 0x47b   :  { %4518 = vst.msk [vmem:[#allocation2 + $0x2e1] sm:$0xff] %vm23_vm0, %v4470_v25  ;;  %v4468_v35 = vmax.f32 %v4364_v32, 0.0  ;;  %v4385_v48 = vadd.f32 %v14991_v43, %v16916_v47  ;;  %4967 = vrot.lane.b32.xlu0 %v14439_v12, %s15275_s16  ;;  %4969 = vrot.lane.b32.xlu1 %v14440_v27, %s15275_s16  ;;  %v14447_v43 = vpack.c.bf16 %v4711_v7, %v4711_v7 }
 0x47c   :  { %v4376_v54 = vpop.f32.mrf.mxu1  ;;  %v4705_v36 = vld [vmem:[#allocation2 + $0x261] sm:$0xff]  ;;  %4656 = vst.msk [vmem:[#allocation3 + $0x64] sm:$0xf] %vm412_vm3, %v17078_v40 }
 0x47d   :  { %v4561_v39 = vld [vmem:[#allocation2 + $0x260] sm:$0xff]  ;;  %4516 = vst.msk [vmem:[#allocation2 + $0x2c1] sm:$0xff] %vm23_vm0, %v4468_v35  ;;  %v4473_v56 = vmax.f32 %v4385_v48, 0.0  ;;  %v4377_v2 = vadd.f32 %v16916_v47, %v4376_v54  ;;  %v14441_v42 = vpack.c.bf16 %v4705_v36, %v4705_v36 }
 0x47e   :  { %v14992_v14 = vpop.f32.mrf.mxu1  ;;  %v17090_v46 = vpack.c.bf16 %v4561_v39, %v4561_v39  ;;  %v4566_v10 = vld [vmem:[#allocation2 + $0x2d0] sm:$0xff] }
 0x47f   :  { %4521 = vst.msk [vmem:[#allocation2 + $0x331] sm:$0xff] %vm23_vm0, %v4473_v56  ;;  %v4471_v50 = vmax.f32 %v4377_v2, 0.0  ;;  %v4388_v51 = vadd.f32 %v14992_v14, %v16916_v47  ;;  %4971 = vrot.lane.b32.xlu0 %v14441_v42, %s15275_s16  ;;  %4973 = vrot.lane.b32.xlu1 %v14442_v45, %s15275_s16  ;;  %v17098_v57 = vpack.c.bf16 %v4566_v10, %v4566_v10  ;;  %v4710_v18 = vld [vmem:[#allocation2 + $0x2d1] sm:$0xff] }
 0x480   :  { %v4379_v58 = vpop.f32.mrf.mxu1  ;;  %v4708_v59 = vld [vmem:[#allocation2 + $0x2b1] sm:$0xff]  ;;  %4657 = vst.msk [vmem:[#allocation3 + $0x68] sm:$0xf] %vm412_vm3, %v17090_v46  ;;  %v14446_v17 = vpack.c.bf16 %v4710_v18, %v4710_v18 }
 0x481   :  { %v4564_v44 = vld [vmem:[#allocation2 + $0x2b0] sm:$0xff]  ;;  %4519 = vst.msk [vmem:[#allocation2 + $0x311] sm:$0xff] %vm23_vm0, %v4471_v50  ;;  %v4474_v62 = vmax.f32 %v4388_v51, 0.0  ;;  %v4380_v3 = vadd.f32 %v16916_v47, %v4379_v58  ;;  %v14444_v19 = vpack.c.bf16 %v4708_v59, %v4708_v59  ;;  %v4715_v51 = vld [vmem:[#allocation2 + $0x361] sm:$0xff] }
 0x482   :  { %v14995_v4 = vpop.f32.mrf.mxu1  ;;  %v17102_v0 = vpack.c.bf16 %v4564_v44, %v4564_v44  ;;  %4662 = vst.msk [vmem:[#allocation3 + $0x7c] sm:$0xf] %vm412_vm3, %v17098_v57 }
 0x483   :  { %4522 = vst.msk [vmem:[#allocation2 + $0x341] sm:$0xff] %vm23_vm0, %v4474_v62  ;;  %v4472_v30 = vmax.f32 %v4380_v3, 0.0  ;;  %v4401_v49 = vadd.f32 %v14995_v4, %v16916_v47  ;;  %4975 = vrot.lane.b32.xlu0 %v14443_v34, %s15275_s16  ;;  %4977 = vrot.lane.b32.xlu1 %v14444_v19, %s15275_s16 }
 0x484   :  { %v4392_v5 = vpop.f32.mrf.mxu1  ;;  %v4709_v8 = vld [vmem:[#allocation2 + $0x2c1] sm:$0xff]  ;;  %4660 = vst.msk [vmem:[#allocation3 + $0x74] sm:$0xf] %vm412_vm3, %v17102_v0 }
 0x485   :  { %v4565_v16 = vld [vmem:[#allocation2 + $0x2c0] sm:$0xff]  ;;  %4520 = vst.msk [vmem:[#allocation2 + $0x321] sm:$0xff] %vm23_vm0, %v4472_v30  ;;  %v4477_v22 = vmax.f32 %v4401_v49, 0.0  ;;  %v4393_v61 = vadd.f32 %v16916_v47, %v4392_v5  ;;  %v14445_v12 = vpack.c.bf16 %v4709_v8, %v4709_v8  ;;  %v14451_v49 = vpack.c.bf16 %v4715_v51, %v4715_v51 }
 0x486   :  { %v14996_v23 = vpop.f32.mrf.mxu1  ;;  %v17114_v24 = vpack.c.bf16 %v4565_v16, %v4565_v16  ;;  %v4570_v25 = vld [vmem:[#allocation2 + $0x330] sm:$0xff] }
 0x487   :  { %4525 = vst.msk [vmem:[#allocation2 + $0x391] sm:$0xff] %vm23_vm0, %v4477_v22  ;;  %v4475_v32 = vmax.f32 %v4393_v61, 0.0  ;;  %v4404_v27 = vadd.f32 %v14996_v23, %v16916_v47  ;;  %4979 = vrot.lane.b32.xlu0 %v14445_v12, %s15275_s16  ;;  %4981 = vrot.lane.b32.xlu1 %v14446_v17, %s15275_s16  ;;  %v17122_v54 = vpack.c.bf16 %v4570_v25, %v4570_v25  ;;  %v4714_v2 = vld [vmem:[#allocation2 + $0x331] sm:$0xff] }
 0x488   :  { %v4395_v28 = vpop.f32.mrf.mxu1  ;;  %v4712_v35 = vld [vmem:[#allocation2 + $0x311] sm:$0xff]  ;;  %4661 = vst.msk [vmem:[#allocation3 + $0x78] sm:$0xf] %vm412_vm3, %v17114_v24  ;;  %v14450_v62 = vpack.c.bf16 %v4714_v2, %v4714_v2 }
 0x489   :  { %v4568_v48 = vld [vmem:[#allocation2 + $0x310] sm:$0xff]  ;;  %4523 = vst.msk [vmem:[#allocation2 + $0x371] sm:$0xff] %vm23_vm0, %v4475_v32  ;;  %v4478_v36 = vmax.f32 %v4404_v27, 0.0  ;;  %v4396_v38 = vadd.f32 %v16916_v47, %v4395_v28  ;;  %v14448_v39 = vpack.c.bf16 %v4712_v35, %v4712_v35  ;;  %v4719_v35 = vld [vmem:[#allocation2 + $0x3c1] sm:$0xff] }
 0x48a   :  { %v14999_v56 = vpop.f32.mrf.mxu1  ;;  %v17126_v42 = vpack.c.bf16 %v4568_v48, %v4568_v48  ;;  %4666 = vst.msk [vmem:[#allocation3 + $0x8c] sm:$0xf] %vm412_vm3, %v17122_v54  ;;  %v14455_v51 = vpack.c.bf16 %v4719_v35, %v4719_v35 }
 0x48b   :  { %4526 = vst.msk [vmem:[#allocation2 + $0x3a1] sm:$0xff] %vm23_vm0, %v4478_v36  ;;  %v4476_v45 = vmax.f32 %v4396_v38, 0.0  ;;  %v4417_v14 = vadd.f32 %v14999_v56, %v16916_v47  ;;  %4983 = vrot.lane.b32.xlu0 %v14447_v43, %s15275_s16  ;;  %4985 = vrot.lane.b32.xlu1 %v14448_v39, %s15275_s16 }
 0x48c   :  { %v4408_v10 = vpop.f32.mrf.mxu1  ;;  %v4713_v50 = vld [vmem:[#allocation2 + $0x321] sm:$0xff]  ;;  %4664 = vst.msk [vmem:[#allocation3 + $0x84] sm:$0xf] %vm412_vm3, %v17126_v42 }
 0x48d   :  { %v4569_v34 = vld [vmem:[#allocation2 + $0x320] sm:$0xff]  ;;  %4524 = vst.msk [vmem:[#allocation2 + $0x381] sm:$0xff] %vm23_vm0, %v4476_v45  ;;  %v4481_v58 = vmax.f32 %v4417_v14, 0.0  ;;  %v4409_v59 = vadd.f32 %v16916_v47, %v4408_v10  ;;  %v14449_v44 = vpack.c.bf16 %v4713_v50, %v4713_v50 }
 0x48e   :  { %v15000_v3 = vpop.f32.mrf.mxu1  ;;  %v17138_v19 = vpack.c.bf16 %v4569_v34, %v4569_v34  ;;  %v4574_v4 = vld [vmem:[#allocation2 + $0x390] sm:$0xff] }
 0x48f   :  { %4529 = vst.msk [vmem:[#allocation2 + $0x3f1] sm:$0xff] %vm23_vm0, %v4481_v58  ;;  %v4479_v18 = vmax.f32 %v4409_v59, 0.0  ;;  %v4420_v30 = vadd.f32 %v15000_v3, %v16916_v47  ;;  %4987 = vrot.lane.b32.xlu0 %v14449_v44, %s15275_s16  ;;  %4989 = vrot.lane.b32.xlu1 %v14450_v62, %s15275_s16  ;;  %v17146_v16 = vpack.c.bf16 %v4574_v4, %v4574_v4  ;;  %v4718_v23 = vld [vmem:[#allocation2 + $0x391] sm:$0xff] }
 0x490   :  { %v4411_v5 = vpop.f32.mrf.mxu1  ;;  %v4716_v8 = vld [vmem:[#allocation2 + $0x371] sm:$0xff]  ;;  %4665 = vst.msk [vmem:[#allocation3 + $0x88] sm:$0xf] %vm412_vm3, %v17138_v19  ;;  %v14454_v56 = vpack.c.bf16 %v4718_v23, %v4718_v23 }
 0x491   :  { %v4572_v7 = vld [vmem:[#allocation2 + $0x370] sm:$0xff]  ;;  %4527 = vst.msk [vmem:[#allocation2 + $0x3d1] sm:$0xff] %vm23_vm0, %v4479_v18  ;;  %v4482_v22 = vmax.f32 %v4420_v30, 0.0  ;;  %v4412_v61 = vadd.f32 %v16916_v47, %v4411_v5  ;;  %v14452_v12 = vpack.c.bf16 %v4716_v8, %v4716_v8  ;;  %v4723_v8 = vld [vmem:[#allocation2 + $0x421] sm:$0xff] }
 0x492   :  { %v15003_v17 = vpop.f32.mrf.mxu1  ;;  %v17150_v25 = vpack.c.bf16 %v4572_v7, %v4572_v7  ;;  %4670 = vst.msk [vmem:[#allocation3 + $0x9c] sm:$0xf] %vm412_vm3, %v17146_v16 }
 0x493   :  { %4530 = vst.msk [vmem:[#allocation2 + $0x401] sm:$0xff] %vm23_vm0, %v4482_v22  ;;  %v4480_v32 = vmax.f32 %v4412_v61, 0.0  ;;  %v4433_v27 = vadd.f32 %v15003_v17, %v16916_v47  ;;  %4991 = vrot.lane.b32.xlu0 %v14451_v49, %s15275_s16  ;;  %4993 = vrot.lane.b32.xlu1 %v14452_v12, %s15275_s16  ;;  %v14459_v17 = vpack.c.bf16 %v4723_v8, %v4723_v8  ;;  %v5119_v8 = vld [vmem:[#allocation2 + $0xc2] sm:$0xff] }
 0x494   :  { %v4424_v43 = vpop.f32.mrf.mxu1  ;;  %v4717_v28 = vld [vmem:[#allocation2 + $0x381] sm:$0xff]  ;;  %4668 = vst.msk [vmem:[#allocation3 + $0x94] sm:$0xf] %vm412_vm3, %v17150_v25 }
 0x495   :  { %v4573_v48 = vld [vmem:[#allocation2 + $0x380] sm:$0xff]  ;;  %4528 = vst.msk [vmem:[#allocation2 + $0x3e1] sm:$0xff] %vm23_vm0, %v4480_v32  ;;  %v4485_v36 = vmax.f32 %v4433_v27, 0.0  ;;  %v4425_v38 = vadd.f32 %v16916_v47, %v4424_v43  ;;  %v14453_v39 = vpack.c.bf16 %v4717_v28, %v4717_v28 }
 0x496   :  { %v15004_v2 = vpop.f32.mrf.mxu1  ;;  %v17162_v45 = vpack.c.bf16 %v4573_v48, %v4573_v48  ;;  %v4578_v14 = vld [vmem:[#allocation2 + $0x3f0] sm:$0xff] }
 0x497   :  { %4533 = vst.msk [vmem:[#allocation2 + $0x451] sm:$0xff] %vm23_vm0, %v4485_v36  ;;  %v4483_v10 = vmax.f32 %v4425_v38, 0.0  ;;  %v4436_v50 = vadd.f32 %v15004_v2, %v16916_v47  ;;  %4995 = vrot.lane.b32.xlu0 %v14453_v39, %s15275_s16  ;;  %4997 = vrot.lane.b32.xlu1 %v14454_v56, %s15275_s16  ;;  %v17170_v44 = vpack.c.bf16 %v4578_v14, %v4578_v14  ;;  %v4722_v18 = vld [vmem:[#allocation2 + $0x3f1] sm:$0xff]  ;;  %v5111_v36 = vld [vmem:[#allocation2 + $0x2] sm:$0xff] }
 0x498   :  { %v4427_v34 = vpop.f32.mrf.mxu1  ;;  %v4720_v58 = vld [vmem:[#allocation2 + $0x3d1] sm:$0xff]  ;;  %4669 = vst.msk [vmem:[#allocation3 + $0x98] sm:$0xf] %vm412_vm3, %v17162_v45  ;;  %v14458_v22 = vpack.c.bf16 %v4722_v18, %v4722_v18 }
 0x499   :  { %v4576_v59 = vld [vmem:[#allocation2 + $0x3d0] sm:$0xff]  ;;  %4531 = vst.msk [vmem:[#allocation2 + $0x431] sm:$0xff] %vm23_vm0, %v4483_v10  ;;  %v4486_v62 = vmax.f32 %v4436_v50, 0.0  ;;  %v4428_v3 = vadd.f32 %v16916_v47, %v4427_v34  ;;  %v14456_v4 = vpack.c.bf16 %v4720_v58, %v4720_v58  ;;  %v14463_v10 = vpack.c.bf16 %v5111_v36, %v5111_v36  ;;  %v5115_v58 = vld [vmem:[#allocation2 + $0x62] sm:$0xff] }
 0x49a   :  { %v17174_v30 = vpack.c.bf16 %v4576_v59, %v4576_v59  ;;  %4674 = vst.msk [vmem:[#allocation3 + $0xac] sm:$0xf] %vm412_vm3, %v17170_v44  ;;  %v5112_v14 = vld [vmem:[#allocation2 + $0x12] sm:$0xff] }
 0x49b   :  { %4534 = vst.msk [vmem:[#allocation2 + $0x461] sm:$0xff] %vm23_vm0, %v4486_v62  ;;  %v4484_v49 = vmax.f32 %v4428_v3, 0.0  ;;  %4999 = vrot.lane.b32.xlu0 %v14455_v51, %s15275_s16  ;;  %5001 = vrot.lane.b32.xlu1 %v14456_v4, %s15275_s16  ;;  %v14464_v50 = vpack.c.bf16 %v5112_v14, %v5112_v14  ;;  %v5113_v51 = vld [vmem:[#allocation2 + $0x22] sm:$0xff]  ;;  %v5114_v34 = vld [vmem:[#allocation2 + $0x32] sm:$0xff]  ;;  %v14467_v4 = vpack.c.bf16 %v5115_v58, %v5115_v58 }
 0x49c   :  { %v4721_v5 = vld [vmem:[#allocation2 + $0x3e1] sm:$0xff]  ;;  %4672 = vst.msk [vmem:[#allocation3 + $0xa4] sm:$0xf] %vm412_vm3, %v17174_v30  ;;  %v14465_v59 = vpack.c.bf16 %v5113_v51, %v5113_v51  ;;  %v14466_v62 = vpack.c.bf16 %v5114_v34, %v5114_v34  ;;  %v5116_v3 = vld [vmem:[#allocation2 + $0x72] sm:$0xff] }
 0x49d   :  { %v4577_v47 = vld [vmem:[#allocation2 + $0x3e0] sm:$0xff]  ;;  %4532 = vst.msk [vmem:[#allocation2 + $0x441] sm:$0xff] %vm23_vm0, %v4484_v49  ;;  %v14457_v7 = vpack.c.bf16 %v4721_v5, %v4721_v5  ;;  %v14468_v18 = vpack.c.bf16 %v5116_v3, %v5116_v3  ;;  %v5118_v5 = vld [vmem:[#allocation2 + $0x92] sm:$0xff]  ;;  %vm12873_vm0 = vcmask 261312  }
 0x49e   :  { %v17184_v61 = vpack.c.bf16 %v4577_v47, %v4577_v47  ;;  %v4582_v12 = vld [vmem:[#allocation2 + $0x450] sm:$0xff]  ;;  %v5117_v49 = vld [vmem:[#allocation2 + $0x82] sm:$0xff] }
 0x49f   :  { %5003 = vrot.lane.b32.xlu0 %v14457_v7, %s15275_s16  ;;  %5005 = vrot.lane.b32.xlu1 %v14458_v22, %s15275_s16  ;;  %v17190_v23 = vpack.c.bf16 %v4582_v12, %v4582_v12  ;;  %v4726_v35 = vld [vmem:[#allocation2 + $0x451] sm:$0xff]  ;;  %v14469_v47 = vpack.c.bf16 %v5117_v49, %v5117_v49  ;;  %v14470_v7 = vpack.c.bf16 %v5118_v5, %v5118_v5  ;;  %v5127_v34 = vld [vmem:[#allocation2 + $0x182] sm:$0xff] }
 0x4a0   :  { %4673 = vst.msk [vmem:[#allocation3 + $0xa8] sm:$0xf] %vm412_vm3, %v17184_v61  ;;  %v4724_v32 = vld [vmem:[#allocation2 + $0x431] sm:$0xff]  ;;  %v14462_v56 = vpack.c.bf16 %v4726_v35, %v4726_v35  ;;  %v14471_v12 = vpack.c.bf16 %v5119_v8, %v5119_v8 }
 0x4a1   :  { %v4580_v27 = vld [vmem:[#allocation2 + $0x430] sm:$0xff]  ;;  %v14460_v43 = vpack.c.bf16 %v4724_v32, %v4724_v32  ;;  %4678 = vst.msk [vmem:[#allocation3 + $0xbc] sm:$0xf] %vm412_vm3, %v17190_v23  ;;  %v5121_v32 = vld [vmem:[#allocation2 + $0xe2] sm:$0xff] }
 0x4a2   :  { %v17192_v28 = vpack.c.bf16 %v4580_v27, %v4580_v27  ;;  %v5120_v22 = vld [vmem:[#allocation2 + $0xd2] sm:$0xff] }
 0x4a3   :  { %5007 = vrot.lane.b32.xlu0 %v14459_v17, %s15275_s16  ;;  %5009 = vrot.lane.b32.xlu1 %v14460_v43, %s15275_s16  ;;  %v14472_v17 = vpack.c.bf16 %v5120_v22, %v5120_v22  ;;  %v5122_v27 = vld [vmem:[#allocation2 + $0xf2] sm:$0xff]  ;;  %v5123_v43 = vld [vmem:[#allocation2 + $0x122] sm:$0xff] }
 0x4a4   :  { %4676 = vst.msk [vmem:[#allocation3 + $0xb4] sm:$0xf] %vm412_vm3, %v17192_v28  ;;  %v4725_v48 = vld [vmem:[#allocation2 + $0x441] sm:$0xff]  ;;  %v14474_v36 = vpack.c.bf16 %v5122_v27, %v5122_v27  ;;  %v5126_v51 = vld [vmem:[#allocation2 + $0x152] sm:$0xff] }
 0x4a5   :  { %v4581_v38 = vld [vmem:[#allocation2 + $0x440] sm:$0xff]  ;;  %v14461_v39 = vpack.c.bf16 %v4725_v48, %v4725_v48  ;;  %v14473_v48 = vpack.c.bf16 %v5121_v32, %v5121_v32  ;;  %v14478_v3 = vpack.c.bf16 %v5126_v51, %v5126_v51 }
 0x4a6   :  { %v17200_v2 = vpack.c.bf16 %v4581_v38, %v4581_v38  ;;  %v5124_v38 = vld [vmem:[#allocation2 + $0x132] sm:$0xff]  ;;  %v5131_v22 = vld [vmem:[#allocation2 + $0x1e2] sm:$0xff] }
 0x4a7   :  { %5011 = vrot.lane.b32.xlu0 %v14461_v39, %s15275_s16  ;;  %5013 = vrot.lane.b32.xlu1 %v14462_v56, %s15275_s16  ;;  %v14475_v39 = vpack.c.bf16 %v5123_v43, %v5123_v43  ;;  %v5132_v43 = vld [vmem:[#allocation2 + $0x1f2] sm:$0xff] }
 0x4a8   :  { %4677 = vst.msk [vmem:[#allocation3 + $0xb8] sm:$0xf] %vm412_vm3, %v17200_v2  ;;  %vm12894_vm3 = vcmask 458112  }
 0x4ab   :  { %5351 = vrot.lane.b32.xlu0 %v14463_v10, %s15276_s27  ;;  %5353 = vrot.lane.b32.xlu1 %v14464_v50, %s15276_s27  ;;  %v14476_v10 = vpack.c.bf16 %v5124_v38, %v5124_v38  ;;  %v5125_v50 = vld [vmem:[#allocation2 + $0x142] sm:$0xff]  ;;  %v14484_v38 = vpack.c.bf16 %v5132_v43, %v5132_v43 }
 0x4af   :  { %5355 = vrot.lane.b32.xlu0 %v14465_v59, %s15276_s27  ;;  %5357 = vrot.lane.b32.xlu1 %v14466_v62, %s15276_s27  ;;  %v14477_v62 = vpack.c.bf16 %v5125_v50, %v5125_v50 }
 0x4b3   :  { %5359 = vrot.lane.b32.xlu0 %v14467_v4, %s15276_s27  ;;  %5361 = vrot.lane.b32.xlu1 %v14468_v18, %s15276_s27  ;;  %v5128_v4 = vld [vmem:[#allocation2 + $0x192] sm:$0xff]  ;;  %v14479_v18 = vpack.c.bf16 %v5127_v34, %v5127_v34 }
 0x4b4   :  { %v14480_v8 = vpack.c.bf16 %v5128_v4, %v5128_v4 }
 0x4b7   :  { %5363 = vrot.lane.b32.xlu0 %v14469_v47, %s15276_s27  ;;  %5365 = vrot.lane.b32.xlu1 %v14470_v7, %s15276_s27  ;;  %v5129_v47 = vld [vmem:[#allocation2 + $0x1a2] sm:$0xff]  ;;  %v5130_v7 = vld [vmem:[#allocation2 + $0x1b2] sm:$0xff] }
 0x4b8   :  { %v14481_v32 = vpack.c.bf16 %v5129_v47, %v5129_v47  ;;  %v14482_v27 = vpack.c.bf16 %v5130_v7, %v5130_v7 }
 0x4bb   :  { %5367 = vrot.lane.b32.xlu0 %v14471_v12, %s15276_s27  ;;  %5369 = vrot.lane.b32.xlu1 %v14472_v17, %s15276_s27 }
 0x4bd   :  { %v4922_v35 = vpop.permute.xlu1 %4921 }
 0x4be   :  { %5064 = vst.msk [vmem:[#allocation3 + $0x4] sm:$0xf] %vm845_vm4, %v4922_v35  ;;  %v14483_v35 = vpack.c.bf16 %v5131_v22, %v5131_v22 }
 0x4bf   :  { %5371 = vrot.lane.b32.xlu0 %v14473_v48, %s15276_s27  ;;  %5373 = vrot.lane.b32.xlu1 %v14474_v36, %s15276_s27 }
 0x4c1   :  { %v4924_v56 = vpop.permute.xlu0 %4923  ;;  %v4926_v14 = vpop.permute.xlu1 %4925 }
 0x4c2   :  { %5065 = vst.msk [vmem:[#allocation3 + $0x8] sm:$0xf] %vm845_vm4, %v4924_v56  ;;  %5066 = vst.msk [vmem:[#allocation3 + $0xc] sm:$0xf] %vm845_vm4, %v4926_v14  ;;  %v5134_v56 = vld [vmem:[#allocation2 + $0x212] sm:$0xff]  ;;  %v5135_v14 = vld [vmem:[#allocation2 + $0x242] sm:$0xff] }
 0x4c3   :  { %5375 = vrot.lane.b32.xlu0 %v14475_v39, %s15276_s27  ;;  %5377 = vrot.lane.b32.xlu1 %v14476_v10, %s15276_s27  ;;  %v5133_v39 = vld [vmem:[#allocation2 + $0x202] sm:$0xff]  ;;  %v14486_v34 = vpack.c.bf16 %v5134_v56, %v5134_v56 }
 0x4c4   :  { %v14485_v51 = vpack.c.bf16 %v5133_v39, %v5133_v39 }
 0x4c5   :  { %v4928_v58 = vpop.permute.xlu0 %4927  ;;  %v4930_v59 = vpop.permute.xlu1 %4929 }
 0x4c6   :  { %5067 = vst.msk [vmem:[#allocation3 + $0x10] sm:$0xf] %vm845_vm4, %v4928_v58  ;;  %5068 = vst.msk [vmem:[#allocation3 + $0x14] sm:$0xf] %vm845_vm4, %v4930_v59  ;;  %v5136_v58 = vld [vmem:[#allocation2 + $0x252] sm:$0xff]  ;;  %v14487_v59 = vpack.c.bf16 %v5135_v14, %v5135_v14 }
 0x4c7   :  { %5379 = vrot.lane.b32.xlu0 %v14477_v62, %s15276_s27  ;;  %5381 = vrot.lane.b32.xlu1 %v14478_v3, %s15276_s27  ;;  %v14488_v4 = vpack.c.bf16 %v5136_v58, %v5136_v58 }
 0x4c9   :  { %v4932_v49 = vpop.permute.xlu0 %4931  ;;  %v4934_v5 = vpop.permute.xlu1 %4933 }
 0x4ca   :  { %5069 = vst.msk [vmem:[#allocation3 + $0x18] sm:$0xf] %vm845_vm4, %v4932_v49  ;;  %5070 = vst.msk [vmem:[#allocation3 + $0x1c] sm:$0xf] %vm845_vm4, %v4934_v5  ;;  %v5138_v49 = vld [vmem:[#allocation2 + $0x272] sm:$0xff]  ;;  %v5139_v5 = vld [vmem:[#allocation2 + $0x2a2] sm:$0xff] }
 0x4cb   :  { %5383 = vrot.lane.b32.xlu0 %v14479_v18, %s15276_s27  ;;  %5385 = vrot.lane.b32.xlu1 %v14480_v8, %s15276_s27  ;;  %v5137_v18 = vld [vmem:[#allocation2 + $0x262] sm:$0xff]  ;;  %v14490_v22 = vpack.c.bf16 %v5138_v49, %v5138_v49 }
 0x4cc   :  { %v14489_v7 = vpack.c.bf16 %v5137_v18, %v5137_v18 }
 0x4cd   :  { %v4936_v12 = vpop.permute.xlu0 %4935  ;;  %v4938_v17 = vpop.permute.xlu1 %4937 }
 0x4ce   :  { %5071 = vst.msk [vmem:[#allocation3 + $0x20] sm:$0xf] %vm845_vm4, %v4936_v12  ;;  %5072 = vst.msk [vmem:[#allocation3 + $0x24] sm:$0xf] %vm845_vm4, %v4938_v17  ;;  %v5140_v12 = vld [vmem:[#allocation2 + $0x2b2] sm:$0xff]  ;;  %v14491_v17 = vpack.c.bf16 %v5139_v5, %v5139_v5 }
 0x4cf   :  { %5387 = vrot.lane.b32.xlu0 %v14481_v32, %s15276_s27  ;;  %5389 = vrot.lane.b32.xlu1 %v14482_v27, %s15276_s27  ;;  %v14492_v43 = vpack.c.bf16 %v5140_v12, %v5140_v12 }
 0x4d1   :  { %v4940_v48 = vpop.permute.xlu0 %4939  ;;  %v4942_v36 = vpop.permute.xlu1 %4941 }
 0x4d2   :  { %5073 = vst.msk [vmem:[#allocation3 + $0x28] sm:$0xf] %vm845_vm4, %v4940_v48  ;;  %5074 = vst.msk [vmem:[#allocation3 + $0x2c] sm:$0xf] %vm845_vm4, %v4942_v36  ;;  %v5142_v48 = vld [vmem:[#allocation2 + $0x2d2] sm:$0xff]  ;;  %v5143_v36 = vld [vmem:[#allocation2 + $0x302] sm:$0xff] }
 0x4d3   :  { %5391 = vrot.lane.b32.xlu0 %v14483_v35, %s15276_s27  ;;  %5393 = vrot.lane.b32.xlu1 %v14484_v38, %s15276_s27  ;;  %v5141_v35 = vld [vmem:[#allocation2 + $0x2c2] sm:$0xff]  ;;  %v14494_v14 = vpack.c.bf16 %v5142_v48, %v5142_v48 }
 0x4d4   :  { %v14493_v56 = vpack.c.bf16 %v5141_v35, %v5141_v35 }
 0x4d5   :  { %v4944_v10 = vpop.permute.xlu0 %4943  ;;  %v4946_v50 = vpop.permute.xlu1 %4945 }
 0x4d6   :  { %5075 = vst.msk [vmem:[#allocation3 + $0x30] sm:$0xf] %vm845_vm4, %v4944_v10  ;;  %5076 = vst.msk [vmem:[#allocation3 + $0x34] sm:$0xf] %vm845_vm4, %v4946_v50  ;;  %v5144_v10 = vld [vmem:[#allocation2 + $0x312] sm:$0xff]  ;;  %v14495_v50 = vpack.c.bf16 %v5143_v36, %v5143_v36 }
 0x4d7   :  { %5395 = vrot.lane.b32.xlu0 %v14485_v51, %s15276_s27  ;;  %5397 = vrot.lane.b32.xlu1 %v14486_v34, %s15276_s27  ;;  %v14496_v58 = vpack.c.bf16 %v5144_v10, %v5144_v10 }
 0x4d9   :  { %v4948_v62 = vpop.permute.xlu0 %4947  ;;  %v4950_v3 = vpop.permute.xlu1 %4949 }
 0x4da   :  { %5077 = vst.msk [vmem:[#allocation3 + $0x38] sm:$0xf] %vm845_vm4, %v4948_v62  ;;  %5078 = vst.msk [vmem:[#allocation3 + $0x3c] sm:$0xf] %vm845_vm4, %v4950_v3  ;;  %v5146_v62 = vld [vmem:[#allocation2 + $0x332] sm:$0xff]  ;;  %v5147_v3 = vld [vmem:[#allocation2 + $0x362] sm:$0xff] }
 0x4db   :  { %5399 = vrot.lane.b32.xlu0 %v14487_v59, %s15276_s27  ;;  %5401 = vrot.lane.b32.xlu1 %v14488_v4, %s15276_s27  ;;  %v5145_v59 = vld [vmem:[#allocation2 + $0x322] sm:$0xff]  ;;  %v14498_v5 = vpack.c.bf16 %v5146_v62, %v5146_v62 }
 0x4dc   :  { %v14497_v49 = vpack.c.bf16 %v5145_v59, %v5145_v59 }
 0x4dd   :  { %v4952_v8 = vpop.permute.xlu0 %4951  ;;  %v4954_v47 = vpop.permute.xlu1 %4953 }
 0x4de   :  { %5079 = vst.msk [vmem:[#allocation3 + $0x40] sm:$0xf] %vm845_vm4, %v4952_v8  ;;  %5080 = vst.msk [vmem:[#allocation3 + $0x44] sm:$0xf] %vm845_vm4, %v4954_v47  ;;  %v5148_v8 = vld [vmem:[#allocation2 + $0x372] sm:$0xff]  ;;  %v14499_v47 = vpack.c.bf16 %v5147_v3, %v5147_v3 }
 0x4df   :  { %5403 = vrot.lane.b32.xlu0 %v14489_v7, %s15276_s27  ;;  %5405 = vrot.lane.b32.xlu1 %v14490_v22, %s15276_s27  ;;  %v14500_v12 = vpack.c.bf16 %v5148_v8, %v5148_v8 }
 0x4e1   :  { %v4956_v32 = vpop.permute.xlu0 %4955  ;;  %v4958_v27 = vpop.permute.xlu1 %4957 }
 0x4e2   :  { %5081 = vst.msk [vmem:[#allocation3 + $0x48] sm:$0xf] %vm845_vm4, %v4956_v32  ;;  %5082 = vst.msk [vmem:[#allocation3 + $0x4c] sm:$0xf] %vm845_vm4, %v4958_v27  ;;  %v5150_v32 = vld [vmem:[#allocation2 + $0x392] sm:$0xff]  ;;  %v5151_v27 = vld [vmem:[#allocation2 + $0x3c2] sm:$0xff] }
 0x4e3   :  { %5407 = vrot.lane.b32.xlu0 %v14491_v17, %s15276_s27  ;;  %5409 = vrot.lane.b32.xlu1 %v14492_v43, %s15276_s27  ;;  %v5149_v17 = vld [vmem:[#allocation2 + $0x382] sm:$0xff]  ;;  %v14502_v36 = vpack.c.bf16 %v5150_v32, %v5150_v32 }
 0x4e4   :  { %v14501_v48 = vpack.c.bf16 %v5149_v17, %v5149_v17 }
 0x4e5   :  { %v4960_v38 = vpop.permute.xlu0 %4959  ;;  %v4962_v39 = vpop.permute.xlu1 %4961 }
 0x4e6   :  { %5083 = vst.msk [vmem:[#allocation3 + $0x50] sm:$0xf] %vm845_vm4, %v4960_v38  ;;  %5084 = vst.msk [vmem:[#allocation3 + $0x54] sm:$0xf] %vm845_vm4, %v4962_v39  ;;  %v5152_v38 = vld [vmem:[#allocation2 + $0x3d2] sm:$0xff]  ;;  %v14503_v39 = vpack.c.bf16 %v5151_v27, %v5151_v27 }
 0x4e7   :  { %5411 = vrot.lane.b32.xlu0 %v14493_v56, %s15276_s27  ;;  %5413 = vrot.lane.b32.xlu1 %v14494_v14, %s15276_s27  ;;  %v14504_v10 = vpack.c.bf16 %v5152_v38, %v5152_v38 }
 0x4e9   :  { %v4964_v51 = vpop.permute.xlu0 %4963  ;;  %v4966_v34 = vpop.permute.xlu1 %4965 }
 0x4ea   :  { %5085 = vst.msk [vmem:[#allocation3 + $0x58] sm:$0xf] %vm845_vm4, %v4964_v51  ;;  %5086 = vst.msk [vmem:[#allocation3 + $0x5c] sm:$0xf] %vm845_vm4, %v4966_v34  ;;  %v5154_v51 = vld [vmem:[#allocation2 + $0x3f2] sm:$0xff]  ;;  %v5155_v34 = vld [vmem:[#allocation2 + $0x422] sm:$0xff] }
 0x4eb   :  { %5415 = vrot.lane.b32.xlu0 %v14495_v50, %s15276_s27  ;;  %5417 = vrot.lane.b32.xlu1 %v14496_v58, %s15276_s27  ;;  %v5153_v50 = vld [vmem:[#allocation2 + $0x3e2] sm:$0xff]  ;;  %v14506_v3 = vpack.c.bf16 %v5154_v51, %v5154_v51 }
 0x4ec   :  { %v14505_v62 = vpack.c.bf16 %v5153_v50, %v5153_v50 }
 0x4ed   :  { %v4968_v4 = vpop.permute.xlu0 %4967  ;;  %v4970_v18 = vpop.permute.xlu1 %4969 }
 0x4ee   :  { %5087 = vst.msk [vmem:[#allocation3 + $0x60] sm:$0xf] %vm845_vm4, %v4968_v4  ;;  %5088 = vst.msk [vmem:[#allocation3 + $0x64] sm:$0xf] %vm845_vm4, %v4970_v18  ;;  %v5156_v4 = vld [vmem:[#allocation2 + $0x432] sm:$0xff]  ;;  %v14507_v18 = vpack.c.bf16 %v5155_v34, %v5155_v34 }
 0x4ef   :  { %5419 = vrot.lane.b32.xlu0 %v14497_v49, %s15276_s27  ;;  %5421 = vrot.lane.b32.xlu1 %v14498_v5, %s15276_s27  ;;  %v14508_v8 = vpack.c.bf16 %v5156_v4, %v5156_v4 }
 0x4f1   :  { %v4972_v7 = vpop.permute.xlu0 %4971  ;;  %v4974_v22 = vpop.permute.xlu1 %4973 }
 0x4f2   :  { %5089 = vst.msk [vmem:[#allocation3 + $0x68] sm:$0xf] %vm845_vm4, %v4972_v7  ;;  %5090 = vst.msk [vmem:[#allocation3 + $0x6c] sm:$0xf] %vm845_vm4, %v4974_v22  ;;  %v5158_v7 = vld [vmem:[#allocation2 + $0x452] sm:$0xff] }
 0x4f3   :  { %5423 = vrot.lane.b32.xlu0 %v14499_v47, %s15276_s27  ;;  %5425 = vrot.lane.b32.xlu1 %v14500_v12, %s15276_s27  ;;  %v5157_v47 = vld [vmem:[#allocation2 + $0x442] sm:$0xff]  ;;  %v14510_v32 = vpack.c.bf16 %v5158_v7, %v5158_v7 }
 0x4f4   :  { %v14509_v17 = vpack.c.bf16 %v5157_v47, %v5157_v47 }
 0x4f5   :  { %v4976_v43 = vpop.permute.xlu0 %4975  ;;  %v4978_v35 = vpop.permute.xlu1 %4977 }
 0x4f6   :  { %5091 = vst.msk [vmem:[#allocation3 + $0x70] sm:$0xf] %vm845_vm4, %v4976_v43  ;;  %5092 = vst.msk [vmem:[#allocation3 + $0x74] sm:$0xf] %vm845_vm4, %v4978_v35  ;;  %v5546_v35 = vld [vmem:[#allocation2 + $0x40] sm:$0xff] }
 0x4f7   :  { %5427 = vrot.lane.b32.xlu0 %v14501_v48, %s15276_s27  ;;  %5429 = vrot.lane.b32.xlu1 %v14502_v36, %s15276_s27  ;;  %v14514_v38 = vpack.c.bf16 %v5546_v35, %v5546_v35 }
 0x4f9   :  { %v4980_v56 = vpop.permute.xlu0 %4979  ;;  %v4982_v14 = vpop.permute.xlu1 %4981 }
 0x4fa   :  { %5093 = vst.msk [vmem:[#allocation3 + $0x78] sm:$0xf] %vm845_vm4, %v4980_v56  ;;  %5094 = vst.msk [vmem:[#allocation3 + $0x7c] sm:$0xf] %vm845_vm4, %v4982_v14 }
 0x4fb   :  { %5431 = vrot.lane.b32.xlu0 %v14503_v39, %s15276_s27  ;;  %5433 = vrot.lane.b32.xlu1 %v14504_v10, %s15276_s27 }
 0x4fd   :  { %v4984_v58 = vpop.permute.xlu0 %4983  ;;  %v4986_v59 = vpop.permute.xlu1 %4985 }
 0x4fe   :  { %5095 = vst.msk [vmem:[#allocation3 + $0x80] sm:$0xf] %vm845_vm4, %v4984_v58  ;;  %5096 = vst.msk [vmem:[#allocation3 + $0x84] sm:$0xf] %vm845_vm4, %v4986_v59 }
 0x4ff   :  { %5435 = vrot.lane.b32.xlu0 %v14505_v62, %s15276_s27  ;;  %5437 = vrot.lane.b32.xlu1 %v14506_v3, %s15276_s27 }
 0x501   :  { %v4988_v49 = vpop.permute.xlu0 %4987  ;;  %v4990_v5 = vpop.permute.xlu1 %4989 }
 0x502   :  { %5097 = vst.msk [vmem:[#allocation3 + $0x88] sm:$0xf] %vm845_vm4, %v4988_v49  ;;  %5098 = vst.msk [vmem:[#allocation3 + $0x8c] sm:$0xf] %vm845_vm4, %v4990_v5 }
 0x503   :  { %5439 = vrot.lane.b32.xlu0 %v14507_v18, %s15276_s27  ;;  %5441 = vrot.lane.b32.xlu1 %v14508_v8, %s15276_s27 }
 0x505   :  { %v4992_v22 = vpop.permute.xlu0 %4991  ;;  %v4994_v12 = vpop.permute.xlu1 %4993 }
 0x506   :  { %5099 = vst.msk [vmem:[#allocation3 + $0x90] sm:$0xf] %vm845_vm4, %v4992_v22  ;;  %5100 = vst.msk [vmem:[#allocation3 + $0x94] sm:$0xf] %vm845_vm4, %v4994_v12 }
 0x507   :  { %5443 = vrot.lane.b32.xlu0 %v14509_v17, %s15276_s27  ;;  %5445 = vrot.lane.b32.xlu1 %v14510_v32, %s15276_s27 }
 0x509   :  { %v4996_v27 = vpop.permute.xlu0 %4995  ;;  %v4998_v43 = vpop.permute.xlu1 %4997 }
 0x50a   :  { %5101 = vst.msk [vmem:[#allocation3 + $0x98] sm:$0xf] %vm845_vm4, %v4996_v27  ;;  %5102 = vst.msk [vmem:[#allocation3 + $0x9c] sm:$0xf] %vm845_vm4, %v4998_v43 }
 0x50b   :  { %5783 = vrot.lane.b32.xlu0 %v16935_v1, %s15277_s0  ;;  %5785 = vrot.lane.b32.xlu1 %v16946_v31, %s15277_s0  ;;  %v5550_v1 = vld [vmem:[#allocation2 + $0xa0] sm:$0xff] }
 0x50c   :  { %v14518_v10 = vpack.c.bf16 %v5550_v1, %v5550_v1 }
 0x50d   :  { %v5000_v48 = vpop.permute.xlu0 %4999  ;;  %v5002_v36 = vpop.permute.xlu1 %5001 }
 0x50e   :  { %5103 = vst.msk [vmem:[#allocation3 + $0xa0] sm:$0xf] %vm845_vm4, %v5000_v48  ;;  %5104 = vst.msk [vmem:[#allocation3 + $0xa4] sm:$0xf] %vm845_vm4, %v5002_v36 }
 0x50f   :  { %5787 = vrot.lane.b32.xlu0 %v16931_v53, %s15277_s0  ;;  %5789 = vrot.lane.b32.xlu1 %v14514_v38, %s15277_s0 }
 0x511   :  { %v5004_v39 = vpop.permute.xlu0 %5003  ;;  %v5006_v56 = vpop.permute.xlu1 %5005 }
 0x512   :  { %5105 = vst.msk [vmem:[#allocation3 + $0xa8] sm:$0xf] %vm845_vm4, %v5004_v39  ;;  %5106 = vst.msk [vmem:[#allocation3 + $0xac] sm:$0xf] %vm845_vm4, %v5006_v56 }
 0x513   :  { %5791 = vrot.lane.b32.xlu0 %v16958_v11, %s15277_s0  ;;  %5793 = vrot.lane.b32.xlu1 %v16970_v21, %s15277_s0  ;;  %v5554_v11 = vld [vmem:[#allocation2 + $0x100] sm:$0xff] }
 0x514   :  { %v14522_v34 = vpack.c.bf16 %v5554_v11, %v5554_v11 }
 0x515   :  { %v5008_v31 = vpop.permute.xlu0 %5007  ;;  %v5010_v14 = vpop.permute.xlu1 %5009 }
 0x516   :  { %5107 = vst.msk [vmem:[#allocation3 + $0xb0] sm:$0xf] %vm845_vm4, %v5008_v31  ;;  %5108 = vst.msk [vmem:[#allocation3 + $0xb4] sm:$0xf] %vm845_vm4, %v5010_v14 }
 0x517   :  { %5795 = vrot.lane.b32.xlu0 %v16954_v63, %s15277_s0  ;;  %5797 = vrot.lane.b32.xlu1 %v14518_v10, %s15277_s0 }
 0x519   :  { %v5012_v53 = vpop.permute.xlu0 %5011  ;;  %v5014_v50 = vpop.permute.xlu1 %5013 }
 0x51a   :  { %5109 = vst.msk [vmem:[#allocation3 + $0xb8] sm:$0xf] %vm845_vm4, %v5012_v53  ;;  %5110 = vst.msk [vmem:[#allocation3 + $0xbc] sm:$0xf] %vm845_vm4, %v5014_v50  ;;  %v5976_v53 = vld [vmem:[#allocation2 + $0x21] sm:$0xff]  ;;  %vm12901_vm4 = vcmask 523712  }
 0x51b   :  { %5799 = vrot.lane.b32.xlu0 %v16982_v29, %s15277_s0  ;;  %5801 = vrot.lane.b32.xlu1 %v16994_v6, %s15277_s0  ;;  %v5558_v29 = vld [vmem:[#allocation2 + $0x160] sm:$0xff] }
 0x51c   :  { %v14526_v62 = vpack.c.bf16 %v5558_v29, %v5558_v29  ;;  %v5979_v29 = vld [vmem:[#allocation2 + $0x71] sm:$0xff] }
 0x51d   :  { %v5352_v21 = vpop.permute.xlu0 %5351  ;;  %v5354_v51 = vpop.permute.xlu1 %5353 }
 0x51e   :  { %5495 = vst.msk [vmem:[#allocation3] sm:$0xf] %vm1278_vm5, %v5352_v21  ;;  %5496 = vst.msk [vmem:[#allocation3 + $0x4] sm:$0xf] %vm1278_vm5, %v5354_v51  ;;  %v14560_v21 = vpack.c.bf16 %v5976_v53, %v5976_v53  ;;  %v5978_v51 = vld [vmem:[#allocation2 + $0x41] sm:$0xff] }
 0x51f   :  { %5803 = vrot.lane.b32.xlu0 %v16978_v26, %s15277_s0  ;;  %5805 = vrot.lane.b32.xlu1 %v14522_v34, %s15277_s0 }
 0x521   :  { %v5356_v63 = vpop.permute.xlu0 %5355  ;;  %v5358_v58 = vpop.permute.xlu1 %5357 }
 0x522   :  { %5497 = vst.msk [vmem:[#allocation3 + $0x8] sm:$0xf] %vm1278_vm5, %v5356_v63  ;;  %5498 = vst.msk [vmem:[#allocation3 + $0xc] sm:$0xf] %vm1278_vm5, %v5358_v58 }
 0x523   :  { %5807 = vrot.lane.b32.xlu0 %v17006_v55, %s15277_s0  ;;  %5809 = vrot.lane.b32.xlu1 %v17018_v9, %s15277_s0  ;;  %v5562_v55 = vld [vmem:[#allocation2 + $0x1c0] sm:$0xff] }
 0x524   :  { %v14530_v18 = vpack.c.bf16 %v5562_v55, %v5562_v55  ;;  %v5981_v55 = vld [vmem:[#allocation2 + $0x91] sm:$0xff] }
 0x525   :  { %v5360_v6 = vpop.permute.xlu0 %5359  ;;  %v5362_v59 = vpop.permute.xlu1 %5361 }
 0x526   :  { %5499 = vst.msk [vmem:[#allocation3 + $0x10] sm:$0xf] %vm1278_vm5, %v5360_v6  ;;  %5500 = vst.msk [vmem:[#allocation3 + $0x14] sm:$0xf] %vm1278_vm5, %v5362_v59  ;;  %v5980_v6 = vld [vmem:[#allocation2 + $0x81] sm:$0xff] }
 0x527   :  { %5811 = vrot.lane.b32.xlu0 %v17002_v52, %s15277_s0  ;;  %5813 = vrot.lane.b32.xlu1 %v14526_v62, %s15277_s0 }
 0x529   :  { %v5364_v26 = vpop.permute.xlu0 %5363  ;;  %v5366_v3 = vpop.permute.xlu1 %5365 }
 0x52a   :  { %5501 = vst.msk [vmem:[#allocation3 + $0x18] sm:$0xf] %vm1278_vm5, %v5364_v26  ;;  %5502 = vst.msk [vmem:[#allocation3 + $0x1c] sm:$0xf] %vm1278_vm5, %v5366_v3  ;;  %v14563_v26 = vpack.c.bf16 %v5979_v29, %v5979_v29  ;;  %v14564_v3 = vpack.c.bf16 %v5980_v6, %v5980_v6 }
 0x52b   :  { %5815 = vrot.lane.b32.xlu0 %v17030_v37, %s15277_s0  ;;  %5817 = vrot.lane.b32.xlu1 %v17042_v41, %s15277_s0  ;;  %v5566_v37 = vld [vmem:[#allocation2 + $0x220] sm:$0xff] }
 0x52c   :  { %v14534_v8 = vpack.c.bf16 %v5566_v37, %v5566_v37  ;;  %v5983_v37 = vld [vmem:[#allocation2 + $0xd1] sm:$0xff] }
 0x52d   :  { %v5368_v9 = vpop.permute.xlu0 %5367  ;;  %v5370_v4 = vpop.permute.xlu1 %5369 }
 0x52e   :  { %5503 = vst.msk [vmem:[#allocation3 + $0x20] sm:$0xf] %vm1278_vm5, %v5368_v9  ;;  %5504 = vst.msk [vmem:[#allocation3 + $0x24] sm:$0xf] %vm1278_vm5, %v5370_v4  ;;  %v5982_v9 = vld [vmem:[#allocation2 + $0xa1] sm:$0xff] }
 0x52f   :  { %5819 = vrot.lane.b32.xlu0 %v17026_v13, %s15277_s0  ;;  %5821 = vrot.lane.b32.xlu1 %v14530_v18, %s15277_s0 }
 0x531   :  { %v5372_v52 = vpop.permute.xlu0 %5371  ;;  %v5374_v49 = vpop.permute.xlu1 %5373 }
 0x532   :  { %5505 = vst.msk [vmem:[#allocation3 + $0x28] sm:$0xf] %vm1278_vm5, %v5372_v52  ;;  %5506 = vst.msk [vmem:[#allocation3 + $0x2c] sm:$0xf] %vm1278_vm5, %v5374_v49  ;;  %v14565_v52 = vpack.c.bf16 %v5981_v55, %v5981_v55  ;;  %v14566_v49 = vpack.c.bf16 %v5982_v9, %v5982_v9 }
 0x533   :  { %5823 = vrot.lane.b32.xlu0 %v17054_v60, %s15277_s0  ;;  %5825 = vrot.lane.b32.xlu1 %v17066_v15, %s15277_s0  ;;  %v5570_v60 = vld [vmem:[#allocation2 + $0x280] sm:$0xff] }
 0x534   :  { %v14538_v22 = vpack.c.bf16 %v5570_v60, %v5570_v60  ;;  %v5985_v60 = vld [vmem:[#allocation2 + $0xf1] sm:$0xff] }
 0x535   :  { %v5376_v41 = vpop.permute.xlu0 %5375  ;;  %v5378_v5 = vpop.permute.xlu1 %5377 }
 0x536   :  { %5507 = vst.msk [vmem:[#allocation3 + $0x30] sm:$0xf] %vm1278_vm5, %v5376_v41  ;;  %5508 = vst.msk [vmem:[#allocation3 + $0x34] sm:$0xf] %vm1278_vm5, %v5378_v5  ;;  %v5984_v41 = vld [vmem:[#allocation2 + $0xe1] sm:$0xff] }
 0x537   :  { %5827 = vrot.lane.b32.xlu0 %v17050_v20, %s15277_s0  ;;  %5829 = vrot.lane.b32.xlu1 %v14534_v8, %s15277_s0 }
 0x539   :  { %v5380_v13 = vpop.permute.xlu0 %5379  ;;  %v5382_v47 = vpop.permute.xlu1 %5381 }
 0x53a   :  { %5509 = vst.msk [vmem:[#allocation3 + $0x38] sm:$0xf] %vm1278_vm5, %v5380_v13  ;;  %5510 = vst.msk [vmem:[#allocation3 + $0x3c] sm:$0xf] %vm1278_vm5, %v5382_v47  ;;  %v14567_v13 = vpack.c.bf16 %v5983_v37, %v5983_v37  ;;  %v14568_v47 = vpack.c.bf16 %v5984_v41, %v5984_v41 }
 0x53b   :  { %5831 = vrot.lane.b32.xlu0 %v17078_v40, %s15277_s0  ;;  %5833 = vrot.lane.b32.xlu1 %v17090_v46, %s15277_s0  ;;  %v5574_v40 = vld [vmem:[#allocation2 + $0x2e0] sm:$0xff] }
 0x53c   :  { %v14542_v32 = vpack.c.bf16 %v5574_v40, %v5574_v40  ;;  %v5987_v40 = vld [vmem:[#allocation2 + $0x131] sm:$0xff] }
 0x53d   :  { %v5384_v15 = vpop.permute.xlu0 %5383  ;;  %v5386_v7 = vpop.permute.xlu1 %5385 }
 0x53e   :  { %5511 = vst.msk [vmem:[#allocation3 + $0x40] sm:$0xf] %vm1278_vm5, %v5384_v15  ;;  %5512 = vst.msk [vmem:[#allocation3 + $0x44] sm:$0xf] %vm1278_vm5, %v5386_v7  ;;  %v5986_v15 = vld [vmem:[#allocation2 + $0x101] sm:$0xff] }
 0x53f   :  { %5835 = vrot.lane.b32.xlu0 %v17074_v33, %s15277_s0  ;;  %5837 = vrot.lane.b32.xlu1 %v14538_v22, %s15277_s0 }
 0x541   :  { %v5388_v20 = vpop.permute.xlu0 %5387  ;;  %v5390_v12 = vpop.permute.xlu1 %5389 }
 0x542   :  { %5513 = vst.msk [vmem:[#allocation3 + $0x48] sm:$0xf] %vm1278_vm5, %v5388_v20  ;;  %5514 = vst.msk [vmem:[#allocation3 + $0x4c] sm:$0xf] %vm1278_vm5, %v5390_v12  ;;  %v14569_v20 = vpack.c.bf16 %v5985_v60, %v5985_v60  ;;  %v14570_v12 = vpack.c.bf16 %v5986_v15, %v5986_v15 }
 0x543   :  { %5839 = vrot.lane.b32.xlu0 %v17102_v0, %s15277_s0  ;;  %5841 = vrot.lane.b32.xlu1 %v17114_v24, %s15277_s0  ;;  %v5578_v0 = vld [vmem:[#allocation2 + $0x340] sm:$0xff] }
 0x544   :  { %v14546_v35 = vpack.c.bf16 %v5578_v0, %v5578_v0  ;;  %v5989_v0 = vld [vmem:[#allocation2 + $0x151] sm:$0xff] }
 0x545   :  { %v5392_v46 = vpop.permute.xlu0 %5391  ;;  %v5394_v17 = vpop.permute.xlu1 %5393 }
 0x546   :  { %5515 = vst.msk [vmem:[#allocation3 + $0x50] sm:$0xf] %vm1278_vm5, %v5392_v46  ;;  %5516 = vst.msk [vmem:[#allocation3 + $0x54] sm:$0xf] %vm1278_vm5, %v5394_v17  ;;  %v5988_v46 = vld [vmem:[#allocation2 + $0x141] sm:$0xff] }
 0x547   :  { %5843 = vrot.lane.b32.xlu0 %v17098_v57, %s15277_s0  ;;  %5845 = vrot.lane.b32.xlu1 %v14542_v32, %s15277_s0 }
 0x549   :  { %v5396_v33 = vpop.permute.xlu0 %5395  ;;  %v5398_v27 = vpop.permute.xlu1 %5397 }
 0x54a   :  { %5517 = vst.msk [vmem:[#allocation3 + $0x58] sm:$0xf] %vm1278_vm5, %v5396_v33  ;;  %5518 = vst.msk [vmem:[#allocation3 + $0x5c] sm:$0xf] %vm1278_vm5, %v5398_v27  ;;  %v14571_v33 = vpack.c.bf16 %v5987_v40, %v5987_v40  ;;  %v14572_v27 = vpack.c.bf16 %v5988_v46, %v5988_v46 }
 0x54b   :  { %5847 = vrot.lane.b32.xlu0 %v17126_v42, %s15277_s0  ;;  %5849 = vrot.lane.b32.xlu1 %v17138_v19, %s15277_s0  ;;  %v5582_v42 = vld [vmem:[#allocation2 + $0x3a0] sm:$0xff] }
 0x54c   :  { %v14550_v38 = vpack.c.bf16 %v5582_v42, %v5582_v42  ;;  %v5991_v42 = vld [vmem:[#allocation2 + $0x191] sm:$0xff] }
 0x54d   :  { %v5400_v24 = vpop.permute.xlu0 %5399  ;;  %v5402_v43 = vpop.permute.xlu1 %5401 }
 0x54e   :  { %5519 = vst.msk [vmem:[#allocation3 + $0x60] sm:$0xf] %vm1278_vm5, %v5400_v24  ;;  %5520 = vst.msk [vmem:[#allocation3 + $0x64] sm:$0xf] %vm1278_vm5, %v5402_v43  ;;  %v5990_v24 = vld [vmem:[#allocation2 + $0x161] sm:$0xff] }
 0x54f   :  { %5851 = vrot.lane.b32.xlu0 %v17122_v54, %s15277_s0  ;;  %5853 = vrot.lane.b32.xlu1 %v14546_v35, %s15277_s0 }
 0x551   :  { %v5404_v57 = vpop.permute.xlu0 %5403  ;;  %v5406_v48 = vpop.permute.xlu1 %5405 }
 0x552   :  { %5521 = vst.msk [vmem:[#allocation3 + $0x68] sm:$0xf] %vm1278_vm5, %v5404_v57  ;;  %5522 = vst.msk [vmem:[#allocation3 + $0x6c] sm:$0xf] %vm1278_vm5, %v5406_v48  ;;  %v14573_v57 = vpack.c.bf16 %v5989_v0, %v5989_v0  ;;  %v14574_v48 = vpack.c.bf16 %v5990_v24, %v5990_v24 }
 0x553   :  { %5855 = vrot.lane.b32.xlu0 %v17150_v25, %s15277_s0  ;;  %5857 = vrot.lane.b32.xlu1 %v17162_v45, %s15277_s0  ;;  %v5586_v25 = vld [vmem:[#allocation2 + $0x400] sm:$0xff] }
 0x554   :  { %v14554_v1 = vpack.c.bf16 %v5586_v25, %v5586_v25  ;;  %v5993_v25 = vld [vmem:[#allocation2 + $0x1b1] sm:$0xff] }
 0x555   :  { %v5408_v19 = vpop.permute.xlu0 %5407  ;;  %v5410_v36 = vpop.permute.xlu1 %5409 }
 0x556   :  { %5523 = vst.msk [vmem:[#allocation3 + $0x70] sm:$0xf] %vm1278_vm5, %v5408_v19  ;;  %5524 = vst.msk [vmem:[#allocation3 + $0x74] sm:$0xf] %vm1278_vm5, %v5410_v36  ;;  %v5992_v19 = vld [vmem:[#allocation2 + $0x1a1] sm:$0xff] }
 0x557   :  { %5859 = vrot.lane.b32.xlu0 %v17146_v16, %s15277_s0  ;;  %5861 = vrot.lane.b32.xlu1 %v14550_v38, %s15277_s0 }
 0x559   :  { %v5412_v54 = vpop.permute.xlu0 %5411  ;;  %v5414_v39 = vpop.permute.xlu1 %5413 }
 0x55a   :  { %5525 = vst.msk [vmem:[#allocation3 + $0x78] sm:$0xf] %vm1278_vm5, %v5412_v54  ;;  %5526 = vst.msk [vmem:[#allocation3 + $0x7c] sm:$0xf] %vm1278_vm5, %v5414_v39  ;;  %v14575_v54 = vpack.c.bf16 %v5991_v42, %v5991_v42  ;;  %v14576_v39 = vpack.c.bf16 %v5992_v19, %v5992_v19 }
 0x55b   :  { %5863 = vrot.lane.b32.xlu0 %v17174_v30, %s15277_s0  ;;  %5865 = vrot.lane.b32.xlu1 %v17184_v61, %s15277_s0  ;;  %v5590_v30 = vld [vmem:[#allocation2 + $0x460] sm:$0xff] }
 0x55c   :  { %v14558_v10 = vpack.c.bf16 %v5590_v30, %v5590_v30  ;;  %v5995_v30 = vld [vmem:[#allocation2 + $0x1f1] sm:$0xff] }
 0x55d   :  { %v5416_v45 = vpop.permute.xlu0 %5415  ;;  %v5418_v56 = vpop.permute.xlu1 %5417 }
 0x55e   :  { %5527 = vst.msk [vmem:[#allocation3 + $0x80] sm:$0xf] %vm1278_vm5, %v5416_v45  ;;  %5528 = vst.msk [vmem:[#allocation3 + $0x84] sm:$0xf] %vm1278_vm5, %v5418_v56  ;;  %v5994_v45 = vld [vmem:[#allocation2 + $0x1c1] sm:$0xff] }
 0x55f   :  { %5867 = vrot.lane.b32.xlu0 %v17170_v44, %s15277_s0  ;;  %5869 = vrot.lane.b32.xlu1 %v14554_v1, %s15277_s0  ;;  %v5975_v44 = vld [vmem:[#allocation2 + $0x11] sm:$0xff] }
 0x561   :  { %v5420_v16 = vpop.permute.xlu0 %5419  ;;  %v5422_v31 = vpop.permute.xlu1 %5421 }
 0x562   :  { %5529 = vst.msk [vmem:[#allocation3 + $0x88] sm:$0xf] %vm1278_vm5, %v5420_v16  ;;  %5530 = vst.msk [vmem:[#allocation3 + $0x8c] sm:$0xf] %vm1278_vm5, %v5422_v31  ;;  %v14577_v16 = vpack.c.bf16 %v5993_v25, %v5993_v25  ;;  %v14578_v31 = vpack.c.bf16 %v5994_v45, %v5994_v45 }
 0x563   :  { %5871 = vrot.lane.b32.xlu0 %v17192_v28, %s15277_s0  ;;  %5873 = vrot.lane.b32.xlu1 %v17200_v2, %s15277_s0  ;;  %v14559_v28 = vpack.c.bf16 %v5975_v44, %v5975_v44  ;;  %v5977_v2 = vld [vmem:[#allocation2 + $0x31] sm:$0xff]  ;;  %v14579_v44 = vpack.c.bf16 %v5995_v30, %v5995_v30 }
 0x564   :  { %v14561_v58 = vpack.c.bf16 %v5977_v2, %v5977_v2 }
 0x565   :  { %v5424_v61 = vpop.permute.xlu0 %5423  ;;  %v5426_v14 = vpop.permute.xlu1 %5425 }
 0x566   :  { %5531 = vst.msk [vmem:[#allocation3 + $0x90] sm:$0xf] %vm1278_vm5, %v5424_v61  ;;  %5532 = vst.msk [vmem:[#allocation3 + $0x94] sm:$0xf] %vm1278_vm5, %v5426_v14  ;;  %v5996_v61 = vld [vmem:[#allocation2 + $0x201] sm:$0xff] }
 0x567   :  { %5875 = vrot.lane.b32.xlu0 %v17190_v23, %s15277_s0  ;;  %5877 = vrot.lane.b32.xlu1 %v14558_v10, %s15277_s0  ;;  %v14562_v23 = vpack.c.bf16 %v5978_v51, %v5978_v51  ;;  %v14580_v53 = vpack.c.bf16 %v5996_v61, %v5996_v61 }
 0x569   :  { %v5428_v50 = vpop.permute.xlu0 %5427  ;;  %v5430_v11 = vpop.permute.xlu1 %5429 }
 0x56a   :  { %5533 = vst.msk [vmem:[#allocation3 + $0x98] sm:$0xf] %vm1278_vm5, %v5428_v50  ;;  %5534 = vst.msk [vmem:[#allocation3 + $0x9c] sm:$0xf] %vm1278_vm5, %v5430_v11  ;;  %v5997_v50 = vld [vmem:[#allocation2 + $0x211] sm:$0xff]  ;;  %v5998_v11 = vld [vmem:[#allocation2 + $0x221] sm:$0xff] }
 0x56b   :  { %6215 = vrot.lane.b32.xlu0 %v14559_v28, %s15278_s18  ;;  %6217 = vrot.lane.b32.xlu1 %v14560_v21, %s15278_s18  ;;  %v14581_v2 = vpack.c.bf16 %v5997_v50, %v5997_v50  ;;  %v14582_v51 = vpack.c.bf16 %v5998_v11, %v5998_v11 }
 0x56d   :  { %v5432_v34 = vpop.permute.xlu0 %5431  ;;  %v5434_v63 = vpop.permute.xlu1 %5433 }
 0x56e   :  { %5535 = vst.msk [vmem:[#allocation3 + $0xa0] sm:$0xf] %vm1278_vm5, %v5432_v34  ;;  %5536 = vst.msk [vmem:[#allocation3 + $0xa4] sm:$0xf] %vm1278_vm5, %v5434_v63  ;;  %v5999_v34 = vld [vmem:[#allocation2 + $0x251] sm:$0xff]  ;;  %v6000_v63 = vld [vmem:[#allocation2 + $0x261] sm:$0xff] }
 0x56f   :  { %6219 = vrot.lane.b32.xlu0 %v14561_v58, %s15278_s18  ;;  %6221 = vrot.lane.b32.xlu1 %v14562_v23, %s15278_s18  ;;  %v14583_v29 = vpack.c.bf16 %v5999_v34, %v5999_v34  ;;  %v14584_v6 = vpack.c.bf16 %v6000_v63, %v6000_v63 }
 0x571   :  { %v5436_v59 = vpop.permute.xlu0 %5435  ;;  %v5438_v62 = vpop.permute.xlu1 %5437 }
 0x572   :  { %5537 = vst.msk [vmem:[#allocation3 + $0xa8] sm:$0xf] %vm1278_vm5, %v5436_v59  ;;  %5538 = vst.msk [vmem:[#allocation3 + $0xac] sm:$0xf] %vm1278_vm5, %v5438_v62  ;;  %v6001_v59 = vld [vmem:[#allocation2 + $0x271] sm:$0xff]  ;;  %v6002_v62 = vld [vmem:[#allocation2 + $0x281] sm:$0xff] }
 0x573   :  { %6223 = vrot.lane.b32.xlu0 %v14563_v26, %s15278_s18  ;;  %6225 = vrot.lane.b32.xlu1 %v14564_v3, %s15278_s18  ;;  %v14585_v55 = vpack.c.bf16 %v6001_v59, %v6001_v59  ;;  %v14586_v9 = vpack.c.bf16 %v6002_v62, %v6002_v62 }
 0x575   :  { %v5440_v4 = vpop.permute.xlu0 %5439  ;;  %v5442_v18 = vpop.permute.xlu1 %5441 }
 0x576   :  { %5539 = vst.msk [vmem:[#allocation3 + $0xb0] sm:$0xf] %vm1278_vm5, %v5440_v4  ;;  %5540 = vst.msk [vmem:[#allocation3 + $0xb4] sm:$0xf] %vm1278_vm5, %v5442_v18  ;;  %v6003_v4 = vld [vmem:[#allocation2 + $0x2b1] sm:$0xff]  ;;  %v6004_v18 = vld [vmem:[#allocation2 + $0x2c1] sm:$0xff] }
 0x577   :  { %6227 = vrot.lane.b32.xlu0 %v14565_v52, %s15278_s18  ;;  %6229 = vrot.lane.b32.xlu1 %v14566_v49, %s15278_s18  ;;  %v14587_v37 = vpack.c.bf16 %v6003_v4, %v6003_v4  ;;  %v14588_v41 = vpack.c.bf16 %v6004_v18, %v6004_v18 }
 0x579   :  { %v5444_v5 = vpop.permute.xlu0 %5443  ;;  %v5446_v8 = vpop.permute.xlu1 %5445 }
 0x57a   :  { %5541 = vst.msk [vmem:[#allocation3 + $0xb8] sm:$0xf] %vm1278_vm5, %v5444_v5  ;;  %5542 = vst.msk [vmem:[#allocation3 + $0xbc] sm:$0xf] %vm1278_vm5, %v5446_v8  ;;  %v6005_v5 = vld [vmem:[#allocation2 + $0x2d1] sm:$0xff]  ;;  %v6006_v8 = vld [vmem:[#allocation2 + $0x2e1] sm:$0xff] }
 0x57b   :  { %6231 = vrot.lane.b32.xlu0 %v14567_v13, %s15278_s18  ;;  %6233 = vrot.lane.b32.xlu1 %v14568_v47, %s15278_s18  ;;  %v14589_v60 = vpack.c.bf16 %v6005_v5, %v6005_v5  ;;  %v14590_v15 = vpack.c.bf16 %v6006_v8, %v6006_v8  ;;  %vm12908_vm5 = vcmask 589312  }
 0x57d   :  { %v5784_v7 = vpop.permute.xlu0 %5783  ;;  %v5786_v22 = vpop.permute.xlu1 %5785 }
 0x57e   :  { %5927 = vst.msk [vmem:[#allocation3] sm:$0xf] %vm1711_vm6, %v5784_v7  ;;  %5928 = vst.msk [vmem:[#allocation3 + $0x4] sm:$0xf] %vm1711_vm6, %v5786_v22  ;;  %v6007_v7 = vld [vmem:[#allocation2 + $0x311] sm:$0xff]  ;;  %v6008_v22 = vld [vmem:[#allocation2 + $0x321] sm:$0xff] }
 0x57f   :  { %6235 = vrot.lane.b32.xlu0 %v14569_v20, %s15278_s18  ;;  %6237 = vrot.lane.b32.xlu1 %v14570_v12, %s15278_s18  ;;  %v14591_v40 = vpack.c.bf16 %v6007_v7, %v6007_v7  ;;  %v14592_v46 = vpack.c.bf16 %v6008_v22, %v6008_v22 }
 0x581   :  { %v5788_v17 = vpop.permute.xlu0 %5787  ;;  %v5790_v32 = vpop.permute.xlu1 %5789 }
 0x582   :  { %5929 = vst.msk [vmem:[#allocation3 + $0x8] sm:$0xf] %vm1711_vm6, %v5788_v17  ;;  %5930 = vst.msk [vmem:[#allocation3 + $0xc] sm:$0xf] %vm1711_vm6, %v5790_v32  ;;  %v6009_v17 = vld [vmem:[#allocation2 + $0x331] sm:$0xff]  ;;  %v6010_v32 = vld [vmem:[#allocation2 + $0x341] sm:$0xff] }
 0x583   :  { %6239 = vrot.lane.b32.xlu0 %v14571_v33, %s15278_s18  ;;  %6241 = vrot.lane.b32.xlu1 %v14572_v27, %s15278_s18  ;;  %v14593_v0 = vpack.c.bf16 %v6009_v17, %v6009_v17  ;;  %v14594_v24 = vpack.c.bf16 %v6010_v32, %v6010_v32 }
 0x585   :  { %v5792_v43 = vpop.permute.xlu0 %5791  ;;  %v5794_v35 = vpop.permute.xlu1 %5793 }
 0x586   :  { %5931 = vst.msk [vmem:[#allocation3 + $0x10] sm:$0xf] %vm1711_vm6, %v5792_v43  ;;  %5932 = vst.msk [vmem:[#allocation3 + $0x14] sm:$0xf] %vm1711_vm6, %v5794_v35  ;;  %v6011_v43 = vld [vmem:[#allocation2 + $0x371] sm:$0xff]  ;;  %v6012_v35 = vld [vmem:[#allocation2 + $0x381] sm:$0xff] }
 0x587   :  { %6243 = vrot.lane.b32.xlu0 %v14573_v57, %s15278_s18  ;;  %6245 = vrot.lane.b32.xlu1 %v14574_v48, %s15278_s18  ;;  %v14595_v42 = vpack.c.bf16 %v6011_v43, %v6011_v43  ;;  %v14596_v19 = vpack.c.bf16 %v6012_v35, %v6012_v35 }
 0x589   :  { %v5796_v36 = vpop.permute.xlu0 %5795  ;;  %v5798_v38 = vpop.permute.xlu1 %5797 }
 0x58a   :  { %5933 = vst.msk [vmem:[#allocation3 + $0x18] sm:$0xf] %vm1711_vm6, %v5796_v36  ;;  %5934 = vst.msk [vmem:[#allocation3 + $0x1c] sm:$0xf] %vm1711_vm6, %v5798_v38  ;;  %v6013_v36 = vld [vmem:[#allocation2 + $0x391] sm:$0xff]  ;;  %v6014_v38 = vld [vmem:[#allocation2 + $0x3a1] sm:$0xff] }
 0x58b   :  { %6247 = vrot.lane.b32.xlu0 %v14575_v54, %s15278_s18  ;;  %6249 = vrot.lane.b32.xlu1 %v14576_v39, %s15278_s18  ;;  %v14597_v25 = vpack.c.bf16 %v6013_v36, %v6013_v36  ;;  %v14598_v45 = vpack.c.bf16 %v6014_v38, %v6014_v38 }
 0x58d   :  { %v5800_v56 = vpop.permute.xlu0 %5799  ;;  %v5802_v1 = vpop.permute.xlu1 %5801 }
 0x58e   :  { %5935 = vst.msk [vmem:[#allocation3 + $0x20] sm:$0xf] %vm1711_vm6, %v5800_v56  ;;  %5936 = vst.msk [vmem:[#allocation3 + $0x24] sm:$0xf] %vm1711_vm6, %v5802_v1  ;;  %v6015_v56 = vld [vmem:[#allocation2 + $0x3d1] sm:$0xff]  ;;  %v6016_v1 = vld [vmem:[#allocation2 + $0x3e1] sm:$0xff] }
 0x58f   :  { %6251 = vrot.lane.b32.xlu0 %v14577_v16, %s15278_s18  ;;  %6253 = vrot.lane.b32.xlu1 %v14578_v31, %s15278_s18  ;;  %v14599_v30 = vpack.c.bf16 %v6015_v56, %v6015_v56  ;;  %v14600_v61 = vpack.c.bf16 %v6016_v1, %v6016_v1 }
 0x591   :  { %v5804_v14 = vpop.permute.xlu0 %5803  ;;  %v5806_v10 = vpop.permute.xlu1 %5805 }
 0x592   :  { %5937 = vst.msk [vmem:[#allocation3 + $0x28] sm:$0xf] %vm1711_vm6, %v5804_v14  ;;  %5938 = vst.msk [vmem:[#allocation3 + $0x2c] sm:$0xf] %vm1711_vm6, %v5806_v10  ;;  %v6017_v14 = vld [vmem:[#allocation2 + $0x3f1] sm:$0xff]  ;;  %v6018_v10 = vld [vmem:[#allocation2 + $0x401] sm:$0xff] }
 0x593   :  { %6255 = vrot.lane.b32.xlu0 %v14579_v44, %s15278_s18  ;;  %6257 = vrot.lane.b32.xlu1 %v14580_v53, %s15278_s18  ;;  %v14601_v50 = vpack.c.bf16 %v6017_v14, %v6017_v14  ;;  %v14602_v11 = vpack.c.bf16 %v6018_v10, %v6018_v10 }
 0x595   :  { %v5808_v28 = vpop.permute.xlu0 %5807  ;;  %v5810_v21 = vpop.permute.xlu1 %5809 }
 0x596   :  { %5939 = vst.msk [vmem:[#allocation3 + $0x30] sm:$0xf] %vm1711_vm6, %v5808_v28  ;;  %5940 = vst.msk [vmem:[#allocation3 + $0x34] sm:$0xf] %vm1711_vm6, %v5810_v21  ;;  %v6019_v28 = vld [vmem:[#allocation2 + $0x431] sm:$0xff]  ;;  %v6020_v21 = vld [vmem:[#allocation2 + $0x441] sm:$0xff] }
 0x597   :  { %6259 = vrot.lane.b32.xlu0 %v14581_v2, %s15278_s18  ;;  %6261 = vrot.lane.b32.xlu1 %v14582_v51, %s15278_s18  ;;  %v14603_v34 = vpack.c.bf16 %v6019_v28, %v6019_v28  ;;  %v14604_v63 = vpack.c.bf16 %v6020_v21, %v6020_v21 }
 0x599   :  { %v5812_v58 = vpop.permute.xlu0 %5811  ;;  %v5814_v23 = vpop.permute.xlu1 %5813 }
 0x59a   :  { %5941 = vst.msk [vmem:[#allocation3 + $0x38] sm:$0xf] %vm1711_vm6, %v5812_v58  ;;  %5942 = vst.msk [vmem:[#allocation3 + $0x3c] sm:$0xf] %vm1711_vm6, %v5814_v23  ;;  %v6021_v58 = vld [vmem:[#allocation2 + $0x451] sm:$0xff]  ;;  %v6022_v23 = vld [vmem:[#allocation2 + $0x461] sm:$0xff] }
 0x59b   :  { %6263 = vrot.lane.b32.xlu0 %v14583_v29, %s15278_s18  ;;  %6265 = vrot.lane.b32.xlu1 %v14584_v6, %s15278_s18  ;;  %v14605_v59 = vpack.c.bf16 %v6021_v58, %v6021_v58  ;;  %v14606_v62 = vpack.c.bf16 %v6022_v23, %v6022_v23 }
 0x59d   :  { %v5816_v26 = vpop.permute.xlu0 %5815  ;;  %v5818_v3 = vpop.permute.xlu1 %5817 }
 0x59e   :  { %5943 = vst.msk [vmem:[#allocation3 + $0x40] sm:$0xf] %vm1711_vm6, %v5816_v26  ;;  %5944 = vst.msk [vmem:[#allocation3 + $0x44] sm:$0xf] %vm1711_vm6, %v5818_v3  ;;  %v6407_v26 = vld [vmem:[#allocation2 + $0x12] sm:$0xff]  ;;  %v6408_v3 = vld [vmem:[#allocation2 + $0x22] sm:$0xff] }
 0x59f   :  { %6267 = vrot.lane.b32.xlu0 %v14585_v55, %s15278_s18  ;;  %6269 = vrot.lane.b32.xlu1 %v14586_v9, %s15278_s18  ;;  %v14607_v4 = vpack.c.bf16 %v6407_v26, %v6407_v26  ;;  %v14608_v18 = vpack.c.bf16 %v6408_v3, %v6408_v3 }
 0x5a1   :  { %v5820_v52 = vpop.permute.xlu0 %5819  ;;  %v5822_v49 = vpop.permute.xlu1 %5821 }
 0x5a2   :  { %5945 = vst.msk [vmem:[#allocation3 + $0x48] sm:$0xf] %vm1711_vm6, %v5820_v52  ;;  %5946 = vst.msk [vmem:[#allocation3 + $0x4c] sm:$0xf] %vm1711_vm6, %v5822_v49  ;;  %v6409_v52 = vld [vmem:[#allocation2 + $0x32] sm:$0xff]  ;;  %v6410_v49 = vld [vmem:[#allocation2 + $0x42] sm:$0xff] }
 0x5a3   :  { %6271 = vrot.lane.b32.xlu0 %v14587_v37, %s15278_s18  ;;  %6273 = vrot.lane.b32.xlu1 %v14588_v41, %s15278_s18  ;;  %v14609_v5 = vpack.c.bf16 %v6409_v52, %v6409_v52  ;;  %v14610_v8 = vpack.c.bf16 %v6410_v49, %v6410_v49 }
 0x5a5   :  { %v5824_v13 = vpop.permute.xlu0 %5823  ;;  %v5826_v47 = vpop.permute.xlu1 %5825 }
 0x5a6   :  { %5947 = vst.msk [vmem:[#allocation3 + $0x50] sm:$0xf] %vm1711_vm6, %v5824_v13  ;;  %5948 = vst.msk [vmem:[#allocation3 + $0x54] sm:$0xf] %vm1711_vm6, %v5826_v47  ;;  %v6411_v13 = vld [vmem:[#allocation2 + $0x72] sm:$0xff]  ;;  %v6412_v47 = vld [vmem:[#allocation2 + $0x82] sm:$0xff] }
 0x5a7   :  { %6275 = vrot.lane.b32.xlu0 %v14589_v60, %s15278_s18  ;;  %6277 = vrot.lane.b32.xlu1 %v14590_v15, %s15278_s18  ;;  %v14611_v7 = vpack.c.bf16 %v6411_v13, %v6411_v13  ;;  %v14612_v22 = vpack.c.bf16 %v6412_v47, %v6412_v47 }
 0x5a9   :  { %v5828_v20 = vpop.permute.xlu0 %5827  ;;  %v5830_v12 = vpop.permute.xlu1 %5829 }
 0x5aa   :  { %5949 = vst.msk [vmem:[#allocation3 + $0x58] sm:$0xf] %vm1711_vm6, %v5828_v20  ;;  %5950 = vst.msk [vmem:[#allocation3 + $0x5c] sm:$0xf] %vm1711_vm6, %v5830_v12  ;;  %v6413_v20 = vld [vmem:[#allocation2 + $0x92] sm:$0xff]  ;;  %v6414_v12 = vld [vmem:[#allocation2 + $0xa2] sm:$0xff] }
 0x5ab   :  { %6279 = vrot.lane.b32.xlu0 %v14591_v40, %s15278_s18  ;;  %6281 = vrot.lane.b32.xlu1 %v14592_v46, %s15278_s18  ;;  %v14613_v17 = vpack.c.bf16 %v6413_v20, %v6413_v20  ;;  %v14614_v32 = vpack.c.bf16 %v6414_v12, %v6414_v12 }
 0x5ad   :  { %v5832_v33 = vpop.permute.xlu0 %5831  ;;  %v5834_v27 = vpop.permute.xlu1 %5833 }
 0x5ae   :  { %5951 = vst.msk [vmem:[#allocation3 + $0x60] sm:$0xf] %vm1711_vm6, %v5832_v33  ;;  %5952 = vst.msk [vmem:[#allocation3 + $0x64] sm:$0xf] %vm1711_vm6, %v5834_v27  ;;  %v6415_v33 = vld [vmem:[#allocation2 + $0xd2] sm:$0xff]  ;;  %v6416_v27 = vld [vmem:[#allocation2 + $0xe2] sm:$0xff] }
 0x5af   :  { %6283 = vrot.lane.b32.xlu0 %v14593_v0, %s15278_s18  ;;  %6285 = vrot.lane.b32.xlu1 %v14594_v24, %s15278_s18  ;;  %v14615_v43 = vpack.c.bf16 %v6415_v33, %v6415_v33  ;;  %v14616_v35 = vpack.c.bf16 %v6416_v27, %v6416_v27 }
 0x5b1   :  { %v5836_v57 = vpop.permute.xlu0 %5835  ;;  %v5838_v48 = vpop.permute.xlu1 %5837 }
 0x5b2   :  { %5953 = vst.msk [vmem:[#allocation3 + $0x68] sm:$0xf] %vm1711_vm6, %v5836_v57  ;;  %5954 = vst.msk [vmem:[#allocation3 + $0x6c] sm:$0xf] %vm1711_vm6, %v5838_v48  ;;  %v6417_v57 = vld [vmem:[#allocation2 + $0xf2] sm:$0xff]  ;;  %v6418_v48 = vld [vmem:[#allocation2 + $0x102] sm:$0xff] }
 0x5b3   :  { %6287 = vrot.lane.b32.xlu0 %v14595_v42, %s15278_s18  ;;  %6289 = vrot.lane.b32.xlu1 %v14596_v19, %s15278_s18  ;;  %v14617_v36 = vpack.c.bf16 %v6417_v57, %v6417_v57  ;;  %v14618_v38 = vpack.c.bf16 %v6418_v48, %v6418_v48 }
 0x5b5   :  { %v5840_v54 = vpop.permute.xlu0 %5839  ;;  %v5842_v39 = vpop.permute.xlu1 %5841 }
 0x5b6   :  { %5955 = vst.msk [vmem:[#allocation3 + $0x70] sm:$0xf] %vm1711_vm6, %v5840_v54  ;;  %5956 = vst.msk [vmem:[#allocation3 + $0x74] sm:$0xf] %vm1711_vm6, %v5842_v39  ;;  %v6419_v54 = vld [vmem:[#allocation2 + $0x132] sm:$0xff]  ;;  %v6420_v39 = vld [vmem:[#allocation2 + $0x142] sm:$0xff] }
 0x5b7   :  { %6291 = vrot.lane.b32.xlu0 %v14597_v25, %s15278_s18  ;;  %6293 = vrot.lane.b32.xlu1 %v14598_v45, %s15278_s18  ;;  %v14619_v56 = vpack.c.bf16 %v6419_v54, %v6419_v54  ;;  %v14620_v1 = vpack.c.bf16 %v6420_v39, %v6420_v39 }
 0x5b9   :  { %v5844_v16 = vpop.permute.xlu0 %5843  ;;  %v5846_v31 = vpop.permute.xlu1 %5845 }
 0x5ba   :  { %5957 = vst.msk [vmem:[#allocation3 + $0x78] sm:$0xf] %vm1711_vm6, %v5844_v16  ;;  %5958 = vst.msk [vmem:[#allocation3 + $0x7c] sm:$0xf] %vm1711_vm6, %v5846_v31  ;;  %v6421_v16 = vld [vmem:[#allocation2 + $0x152] sm:$0xff]  ;;  %v6422_v31 = vld [vmem:[#allocation2 + $0x162] sm:$0xff] }
 0x5bb   :  { %6295 = vrot.lane.b32.xlu0 %v14599_v30, %s15278_s18  ;;  %6297 = vrot.lane.b32.xlu1 %v14600_v61, %s15278_s18  ;;  %v14621_v14 = vpack.c.bf16 %v6421_v16, %v6421_v16  ;;  %v14622_v10 = vpack.c.bf16 %v6422_v31, %v6422_v31 }
 0x5bd   :  { %v5848_v44 = vpop.permute.xlu0 %5847  ;;  %v5850_v53 = vpop.permute.xlu1 %5849 }
 0x5be   :  { %5959 = vst.msk [vmem:[#allocation3 + $0x80] sm:$0xf] %vm1711_vm6, %v5848_v44  ;;  %5960 = vst.msk [vmem:[#allocation3 + $0x84] sm:$0xf] %vm1711_vm6, %v5850_v53  ;;  %v6423_v44 = vld [vmem:[#allocation2 + $0x192] sm:$0xff]  ;;  %v6424_v53 = vld [vmem:[#allocation2 + $0x1a2] sm:$0xff] }
 0x5bf   :  { %6299 = vrot.lane.b32.xlu0 %v14601_v50, %s15278_s18  ;;  %6301 = vrot.lane.b32.xlu1 %v14602_v11, %s15278_s18  ;;  %v14623_v28 = vpack.c.bf16 %v6423_v44, %v6423_v44  ;;  %v14624_v21 = vpack.c.bf16 %v6424_v53, %v6424_v53 }
 0x5c1   :  { %v5852_v2 = vpop.permute.xlu0 %5851  ;;  %v5854_v51 = vpop.permute.xlu1 %5853 }
 0x5c2   :  { %5961 = vst.msk [vmem:[#allocation3 + $0x88] sm:$0xf] %vm1711_vm6, %v5852_v2  ;;  %5962 = vst.msk [vmem:[#allocation3 + $0x8c] sm:$0xf] %vm1711_vm6, %v5854_v51  ;;  %v6425_v2 = vld [vmem:[#allocation2 + $0x1b2] sm:$0xff]  ;;  %v6426_v51 = vld [vmem:[#allocation2 + $0x1c2] sm:$0xff] }
 0x5c3   :  { %6303 = vrot.lane.b32.xlu0 %v14603_v34, %s15278_s18  ;;  %6305 = vrot.lane.b32.xlu1 %v14604_v63, %s15278_s18  ;;  %v14625_v58 = vpack.c.bf16 %v6425_v2, %v6425_v2  ;;  %v14626_v23 = vpack.c.bf16 %v6426_v51, %v6426_v51 }
 0x5c5   :  { %v5856_v29 = vpop.permute.xlu0 %5855  ;;  %v5858_v6 = vpop.permute.xlu1 %5857 }
 0x5c6   :  { %5963 = vst.msk [vmem:[#allocation3 + $0x90] sm:$0xf] %vm1711_vm6, %v5856_v29  ;;  %5964 = vst.msk [vmem:[#allocation3 + $0x94] sm:$0xf] %vm1711_vm6, %v5858_v6  ;;  %v6427_v29 = vld [vmem:[#allocation2 + $0x1f2] sm:$0xff]  ;;  %v6428_v6 = vld [vmem:[#allocation2 + $0x202] sm:$0xff] }
 0x5c7   :  { %6307 = vrot.lane.b32.xlu0 %v14605_v59, %s15278_s18  ;;  %6309 = vrot.lane.b32.xlu1 %v14606_v62, %s15278_s18  ;;  %v14627_v26 = vpack.c.bf16 %v6427_v29, %v6427_v29  ;;  %v14628_v3 = vpack.c.bf16 %v6428_v6, %v6428_v6 }
 0x5c9   :  { %v5860_v55 = vpop.permute.xlu0 %5859  ;;  %v5862_v9 = vpop.permute.xlu1 %5861 }
 0x5ca   :  { %5965 = vst.msk [vmem:[#allocation3 + $0x98] sm:$0xf] %vm1711_vm6, %v5860_v55  ;;  %5966 = vst.msk [vmem:[#allocation3 + $0x9c] sm:$0xf] %vm1711_vm6, %v5862_v9  ;;  %v6429_v55 = vld [vmem:[#allocation2 + $0x212] sm:$0xff]  ;;  %v6430_v9 = vld [vmem:[#allocation2 + $0x222] sm:$0xff] }
 0x5cb   :  { %6647 = vrot.lane.b32.xlu0 %v14607_v4, %s15279_s19  ;;  %6649 = vrot.lane.b32.xlu1 %v14608_v18, %s15279_s19  ;;  %v14629_v52 = vpack.c.bf16 %v6429_v55, %v6429_v55  ;;  %v14630_v49 = vpack.c.bf16 %v6430_v9, %v6430_v9 }
 0x5cd   :  { %v5864_v37 = vpop.permute.xlu0 %5863  ;;  %v5866_v41 = vpop.permute.xlu1 %5865 }
 0x5ce   :  { %5967 = vst.msk [vmem:[#allocation3 + $0xa0] sm:$0xf] %vm1711_vm6, %v5864_v37  ;;  %5968 = vst.msk [vmem:[#allocation3 + $0xa4] sm:$0xf] %vm1711_vm6, %v5866_v41  ;;  %v6431_v37 = vld [vmem:[#allocation2 + $0x252] sm:$0xff]  ;;  %v6432_v41 = vld [vmem:[#allocation2 + $0x262] sm:$0xff] }
 0x5cf   :  { %6651 = vrot.lane.b32.xlu0 %v14609_v5, %s15279_s19  ;;  %6653 = vrot.lane.b32.xlu1 %v14610_v8, %s15279_s19  ;;  %v14631_v13 = vpack.c.bf16 %v6431_v37, %v6431_v37  ;;  %v14632_v47 = vpack.c.bf16 %v6432_v41, %v6432_v41 }
 0x5d1   :  { %v5868_v60 = vpop.permute.xlu0 %5867  ;;  %v5870_v15 = vpop.permute.xlu1 %5869 }
 0x5d2   :  { %5969 = vst.msk [vmem:[#allocation3 + $0xa8] sm:$0xf] %vm1711_vm6, %v5868_v60  ;;  %5970 = vst.msk [vmem:[#allocation3 + $0xac] sm:$0xf] %vm1711_vm6, %v5870_v15  ;;  %v6433_v60 = vld [vmem:[#allocation2 + $0x272] sm:$0xff]  ;;  %v6434_v15 = vld [vmem:[#allocation2 + $0x282] sm:$0xff] }
 0x5d3   :  { %6655 = vrot.lane.b32.xlu0 %v14611_v7, %s15279_s19  ;;  %6657 = vrot.lane.b32.xlu1 %v14612_v22, %s15279_s19  ;;  %v14633_v20 = vpack.c.bf16 %v6433_v60, %v6433_v60  ;;  %v14634_v12 = vpack.c.bf16 %v6434_v15, %v6434_v15 }
 0x5d5   :  { %v5872_v40 = vpop.permute.xlu0 %5871  ;;  %v5874_v46 = vpop.permute.xlu1 %5873 }
 0x5d6   :  { %5971 = vst.msk [vmem:[#allocation3 + $0xb0] sm:$0xf] %vm1711_vm6, %v5872_v40  ;;  %5972 = vst.msk [vmem:[#allocation3 + $0xb4] sm:$0xf] %vm1711_vm6, %v5874_v46  ;;  %v6435_v40 = vld [vmem:[#allocation2 + $0x2b2] sm:$0xff]  ;;  %v6436_v46 = vld [vmem:[#allocation2 + $0x2c2] sm:$0xff] }
 0x5d7   :  { %6659 = vrot.lane.b32.xlu0 %v14613_v17, %s15279_s19  ;;  %6661 = vrot.lane.b32.xlu1 %v14614_v32, %s15279_s19  ;;  %v14635_v33 = vpack.c.bf16 %v6435_v40, %v6435_v40  ;;  %v14636_v27 = vpack.c.bf16 %v6436_v46, %v6436_v46 }
 0x5d9   :  { %v5876_v0 = vpop.permute.xlu0 %5875  ;;  %v5878_v24 = vpop.permute.xlu1 %5877 }
 0x5da   :  { %5973 = vst.msk [vmem:[#allocation3 + $0xb8] sm:$0xf] %vm1711_vm6, %v5876_v0  ;;  %5974 = vst.msk [vmem:[#allocation3 + $0xbc] sm:$0xf] %vm1711_vm6, %v5878_v24  ;;  %v6437_v0 = vld [vmem:[#allocation2 + $0x2d2] sm:$0xff]  ;;  %v6438_v24 = vld [vmem:[#allocation2 + $0x2e2] sm:$0xff] }
 0x5db   :  { %6663 = vrot.lane.b32.xlu0 %v14615_v43, %s15279_s19  ;;  %6665 = vrot.lane.b32.xlu1 %v14616_v35, %s15279_s19  ;;  %v14637_v57 = vpack.c.bf16 %v6437_v0, %v6437_v0  ;;  %v14638_v48 = vpack.c.bf16 %v6438_v24, %v6438_v24  ;;  %vm12915_vm6 = vcmask 654912  }
 0x5dd   :  { %v6216_v42 = vpop.permute.xlu0 %6215  ;;  %v6218_v19 = vpop.permute.xlu1 %6217 }
 0x5de   :  { %6359 = vst.msk [vmem:[#allocation3] sm:$0xf] %vm2144_vm7, %v6216_v42  ;;  %6360 = vst.msk [vmem:[#allocation3 + $0x4] sm:$0xf] %vm2144_vm7, %v6218_v19  ;;  %v6439_v42 = vld [vmem:[#allocation2 + $0x312] sm:$0xff]  ;;  %v6440_v19 = vld [vmem:[#allocation2 + $0x322] sm:$0xff] }
 0x5df   :  { %6667 = vrot.lane.b32.xlu0 %v14617_v36, %s15279_s19  ;;  %6669 = vrot.lane.b32.xlu1 %v14618_v38, %s15279_s19  ;;  %v14639_v54 = vpack.c.bf16 %v6439_v42, %v6439_v42  ;;  %v14640_v39 = vpack.c.bf16 %v6440_v19, %v6440_v19 }
 0x5e1   :  { %v6220_v25 = vpop.permute.xlu0 %6219  ;;  %v6222_v45 = vpop.permute.xlu1 %6221 }
 0x5e2   :  { %6361 = vst.msk [vmem:[#allocation3 + $0x8] sm:$0xf] %vm2144_vm7, %v6220_v25  ;;  %6362 = vst.msk [vmem:[#allocation3 + $0xc] sm:$0xf] %vm2144_vm7, %v6222_v45  ;;  %v6441_v25 = vld [vmem:[#allocation2 + $0x332] sm:$0xff]  ;;  %v6442_v45 = vld [vmem:[#allocation2 + $0x342] sm:$0xff] }
 0x5e3   :  { %6671 = vrot.lane.b32.xlu0 %v14619_v56, %s15279_s19  ;;  %6673 = vrot.lane.b32.xlu1 %v14620_v1, %s15279_s19  ;;  %v14641_v16 = vpack.c.bf16 %v6441_v25, %v6441_v25  ;;  %v14642_v31 = vpack.c.bf16 %v6442_v45, %v6442_v45 }
 0x5e5   :  { %v6224_v30 = vpop.permute.xlu0 %6223  ;;  %v6226_v61 = vpop.permute.xlu1 %6225 }
 0x5e6   :  { %6363 = vst.msk [vmem:[#allocation3 + $0x10] sm:$0xf] %vm2144_vm7, %v6224_v30  ;;  %6364 = vst.msk [vmem:[#allocation3 + $0x14] sm:$0xf] %vm2144_vm7, %v6226_v61  ;;  %v6443_v30 = vld [vmem:[#allocation2 + $0x372] sm:$0xff]  ;;  %v6444_v61 = vld [vmem:[#allocation2 + $0x382] sm:$0xff] }
 0x5e7   :  { %6675 = vrot.lane.b32.xlu0 %v14621_v14, %s15279_s19  ;;  %6677 = vrot.lane.b32.xlu1 %v14622_v10, %s15279_s19  ;;  %v14643_v44 = vpack.c.bf16 %v6443_v30, %v6443_v30  ;;  %v14644_v53 = vpack.c.bf16 %v6444_v61, %v6444_v61 }
 0x5e9   :  { %v6228_v50 = vpop.permute.xlu0 %6227  ;;  %v6230_v11 = vpop.permute.xlu1 %6229 }
 0x5ea   :  { %6365 = vst.msk [vmem:[#allocation3 + $0x18] sm:$0xf] %vm2144_vm7, %v6228_v50  ;;  %6366 = vst.msk [vmem:[#allocation3 + $0x1c] sm:$0xf] %vm2144_vm7, %v6230_v11  ;;  %v6445_v50 = vld [vmem:[#allocation2 + $0x392] sm:$0xff]  ;;  %v6446_v11 = vld [vmem:[#allocation2 + $0x3a2] sm:$0xff] }
 0x5eb   :  { %6679 = vrot.lane.b32.xlu0 %v14623_v28, %s15279_s19  ;;  %6681 = vrot.lane.b32.xlu1 %v14624_v21, %s15279_s19  ;;  %v14645_v2 = vpack.c.bf16 %v6445_v50, %v6445_v50  ;;  %v14646_v51 = vpack.c.bf16 %v6446_v11, %v6446_v11 }
 0x5ed   :  { %v6232_v34 = vpop.permute.xlu0 %6231  ;;  %v6234_v63 = vpop.permute.xlu1 %6233 }
 0x5ee   :  { %6367 = vst.msk [vmem:[#allocation3 + $0x20] sm:$0xf] %vm2144_vm7, %v6232_v34  ;;  %6368 = vst.msk [vmem:[#allocation3 + $0x24] sm:$0xf] %vm2144_vm7, %v6234_v63  ;;  %v6447_v34 = vld [vmem:[#allocation2 + $0x3d2] sm:$0xff]  ;;  %v6448_v63 = vld [vmem:[#allocation2 + $0x3e2] sm:$0xff] }
 0x5ef   :  { %6683 = vrot.lane.b32.xlu0 %v14625_v58, %s15279_s19  ;;  %6685 = vrot.lane.b32.xlu1 %v14626_v23, %s15279_s19  ;;  %v14647_v29 = vpack.c.bf16 %v6447_v34, %v6447_v34  ;;  %v14648_v6 = vpack.c.bf16 %v6448_v63, %v6448_v63 }
 0x5f1   :  { %v6236_v59 = vpop.permute.xlu0 %6235  ;;  %v6238_v62 = vpop.permute.xlu1 %6237 }
 0x5f2   :  { %6369 = vst.msk [vmem:[#allocation3 + $0x28] sm:$0xf] %vm2144_vm7, %v6236_v59  ;;  %6370 = vst.msk [vmem:[#allocation3 + $0x2c] sm:$0xf] %vm2144_vm7, %v6238_v62  ;;  %v6449_v59 = vld [vmem:[#allocation2 + $0x3f2] sm:$0xff]  ;;  %v6450_v62 = vld [vmem:[#allocation2 + $0x402] sm:$0xff] }
 0x5f3   :  { %6687 = vrot.lane.b32.xlu0 %v14627_v26, %s15279_s19  ;;  %6689 = vrot.lane.b32.xlu1 %v14628_v3, %s15279_s19  ;;  %v14649_v55 = vpack.c.bf16 %v6449_v59, %v6449_v59  ;;  %v14650_v9 = vpack.c.bf16 %v6450_v62, %v6450_v62 }
 0x5f5   :  { %v6240_v4 = vpop.permute.xlu0 %6239  ;;  %v6242_v18 = vpop.permute.xlu1 %6241 }
 0x5f6   :  { %6371 = vst.msk [vmem:[#allocation3 + $0x30] sm:$0xf] %vm2144_vm7, %v6240_v4  ;;  %6372 = vst.msk [vmem:[#allocation3 + $0x34] sm:$0xf] %vm2144_vm7, %v6242_v18  ;;  %v6451_v4 = vld [vmem:[#allocation2 + $0x432] sm:$0xff]  ;;  %v6452_v18 = vld [vmem:[#allocation2 + $0x442] sm:$0xff] }
 0x5f7   :  { %6691 = vrot.lane.b32.xlu0 %v14629_v52, %s15279_s19  ;;  %6693 = vrot.lane.b32.xlu1 %v14630_v49, %s15279_s19  ;;  %v14651_v37 = vpack.c.bf16 %v6451_v4, %v6451_v4  ;;  %v14652_v41 = vpack.c.bf16 %v6452_v18, %v6452_v18 }
 0x5f9   :  { %v6244_v5 = vpop.permute.xlu0 %6243  ;;  %v6246_v8 = vpop.permute.xlu1 %6245 }
 0x5fa   :  { %6373 = vst.msk [vmem:[#allocation3 + $0x38] sm:$0xf] %vm2144_vm7, %v6244_v5  ;;  %6374 = vst.msk [vmem:[#allocation3 + $0x3c] sm:$0xf] %vm2144_vm7, %v6246_v8  ;;  %v6453_v5 = vld [vmem:[#allocation2 + $0x452] sm:$0xff]  ;;  %v6454_v8 = vld [vmem:[#allocation2 + $0x462] sm:$0xff] }
 0x5fb   :  { %6695 = vrot.lane.b32.xlu0 %v14631_v13, %s15279_s19  ;;  %6697 = vrot.lane.b32.xlu1 %v14632_v47, %s15279_s19  ;;  %v14653_v60 = vpack.c.bf16 %v6453_v5, %v6453_v5  ;;  %v14654_v15 = vpack.c.bf16 %v6454_v8, %v6454_v8 }
 0x5fd   :  { %v6248_v7 = vpop.permute.xlu0 %6247  ;;  %v6250_v22 = vpop.permute.xlu1 %6249 }
 0x5fe   :  { %6375 = vst.msk [vmem:[#allocation3 + $0x40] sm:$0xf] %vm2144_vm7, %v6248_v7  ;;  %6376 = vst.msk [vmem:[#allocation3 + $0x44] sm:$0xf] %vm2144_vm7, %v6250_v22  ;;  %v6839_v7 = vld [vmem:[#allocation2 + $0x20] sm:$0xff]  ;;  %v6840_v22 = vld [vmem:[#allocation2 + $0x30] sm:$0xff] }
 0x5ff   :  { %6699 = vrot.lane.b32.xlu0 %v14633_v20, %s15279_s19  ;;  %6701 = vrot.lane.b32.xlu1 %v14634_v12, %s15279_s19  ;;  %v6842_v20 = vld [vmem:[#allocation2 + $0x50] sm:$0xff]  ;;  %v14655_v46 = vpack.c.bf16 %v6839_v7, %v6839_v7 }
 0x601   :  { %v6252_v17 = vpop.permute.xlu0 %6251  ;;  %v6254_v32 = vpop.permute.xlu1 %6253 }
 0x602   :  { %6377 = vst.msk [vmem:[#allocation3 + $0x48] sm:$0xf] %vm2144_vm7, %v6252_v17  ;;  %6378 = vst.msk [vmem:[#allocation3 + $0x4c] sm:$0xf] %vm2144_vm7, %v6254_v32  ;;  %v14656_v17 = vpack.c.bf16 %v6840_v22, %v6840_v22  ;;  %v6841_v32 = vld [vmem:[#allocation2 + $0x40] sm:$0xff] }
 0x603   :  { %6703 = vrot.lane.b32.xlu0 %v14635_v33, %s15279_s19  ;;  %6705 = vrot.lane.b32.xlu1 %v14636_v27, %s15279_s19  ;;  %v14658_v33 = vpack.c.bf16 %v6842_v20, %v6842_v20  ;;  %v14657_v24 = vpack.c.bf16 %v6841_v32, %v6841_v32 }
 0x605   :  { %v6256_v43 = vpop.permute.xlu0 %6255  ;;  %v6258_v35 = vpop.permute.xlu1 %6257 }
 0x606   :  { %6379 = vst.msk [vmem:[#allocation3 + $0x50] sm:$0xf] %vm2144_vm7, %v6256_v43  ;;  %6380 = vst.msk [vmem:[#allocation3 + $0x54] sm:$0xf] %vm2144_vm7, %v6258_v35  ;;  %v6843_v43 = vld [vmem:[#allocation2 + $0x80] sm:$0xff]  ;;  %v6844_v35 = vld [vmem:[#allocation2 + $0x90] sm:$0xff] }
 0x607   :  { %6707 = vrot.lane.b32.xlu0 %v14637_v57, %s15279_s19  ;;  %6709 = vrot.lane.b32.xlu1 %v14638_v48, %s15279_s19  ;;  %v6846_v57 = vld [vmem:[#allocation2 + $0xb0] sm:$0xff]  ;;  %v14659_v19 = vpack.c.bf16 %v6843_v43, %v6843_v43 }
 0x609   :  { %v6260_v36 = vpop.permute.xlu0 %6259  ;;  %v6262_v38 = vpop.permute.xlu1 %6261 }
 0x60a   :  { %6381 = vst.msk [vmem:[#allocation3 + $0x58] sm:$0xf] %vm2144_vm7, %v6260_v36  ;;  %6382 = vst.msk [vmem:[#allocation3 + $0x5c] sm:$0xf] %vm2144_vm7, %v6262_v38  ;;  %v14660_v36 = vpack.c.bf16 %v6844_v35, %v6844_v35  ;;  %v6845_v38 = vld [vmem:[#allocation2 + $0xa0] sm:$0xff] }
 0x60b   :  { %6711 = vrot.lane.b32.xlu0 %v14639_v54, %s15279_s19  ;;  %6713 = vrot.lane.b32.xlu1 %v14640_v39, %s15279_s19  ;;  %v14662_v54 = vpack.c.bf16 %v6846_v57, %v6846_v57  ;;  %v14661_v45 = vpack.c.bf16 %v6845_v38, %v6845_v38 }
 0x60d   :  { %v6264_v56 = vpop.permute.xlu0 %6263  ;;  %v6266_v1 = vpop.permute.xlu1 %6265 }
 0x60e   :  { %6383 = vst.msk [vmem:[#allocation3 + $0x60] sm:$0xf] %vm2144_vm7, %v6264_v56  ;;  %6384 = vst.msk [vmem:[#allocation3 + $0x64] sm:$0xf] %vm2144_vm7, %v6266_v1  ;;  %v6847_v56 = vld [vmem:[#allocation2 + $0xe0] sm:$0xff]  ;;  %v6848_v1 = vld [vmem:[#allocation2 + $0xf0] sm:$0xff] }
 0x60f   :  { %6715 = vrot.lane.b32.xlu0 %v14641_v16, %s15279_s19  ;;  %6717 = vrot.lane.b32.xlu1 %v14642_v31, %s15279_s19  ;;  %v6850_v16 = vld [vmem:[#allocation2 + $0x110] sm:$0xff]  ;;  %v14663_v61 = vpack.c.bf16 %v6847_v56, %v6847_v56 }
 0x611   :  { %v6268_v14 = vpop.permute.xlu0 %6267  ;;  %v6270_v10 = vpop.permute.xlu1 %6269 }
 0x612   :  { %6385 = vst.msk [vmem:[#allocation3 + $0x68] sm:$0xf] %vm2144_vm7, %v6268_v14  ;;  %6386 = vst.msk [vmem:[#allocation3 + $0x6c] sm:$0xf] %vm2144_vm7, %v6270_v10  ;;  %v14664_v14 = vpack.c.bf16 %v6848_v1, %v6848_v1  ;;  %v6849_v10 = vld [vmem:[#allocation2 + $0x100] sm:$0xff] }
 0x613   :  { %6719 = vrot.lane.b32.xlu0 %v14643_v44, %s15279_s19  ;;  %6721 = vrot.lane.b32.xlu1 %v14644_v53, %s15279_s19  ;;  %v14666_v44 = vpack.c.bf16 %v6850_v16, %v6850_v16  ;;  %v14665_v11 = vpack.c.bf16 %v6849_v10, %v6849_v10 }
 0x615   :  { %v6272_v28 = vpop.permute.xlu0 %6271  ;;  %v6274_v21 = vpop.permute.xlu1 %6273 }
 0x616   :  { %6387 = vst.msk [vmem:[#allocation3 + $0x70] sm:$0xf] %vm2144_vm7, %v6272_v28  ;;  %6388 = vst.msk [vmem:[#allocation3 + $0x74] sm:$0xf] %vm2144_vm7, %v6274_v21  ;;  %v6851_v28 = vld [vmem:[#allocation2 + $0x140] sm:$0xff]  ;;  %v6852_v21 = vld [vmem:[#allocation2 + $0x150] sm:$0xff] }
 0x617   :  { %6723 = vrot.lane.b32.xlu0 %v14645_v2, %s15279_s19  ;;  %6725 = vrot.lane.b32.xlu1 %v14646_v51, %s15279_s19  ;;  %v6854_v2 = vld [vmem:[#allocation2 + $0x170] sm:$0xff]  ;;  %v14667_v63 = vpack.c.bf16 %v6851_v28, %v6851_v28 }
 0x619   :  { %v6276_v58 = vpop.permute.xlu0 %6275  ;;  %v6278_v23 = vpop.permute.xlu1 %6277 }
 0x61a   :  { %6389 = vst.msk [vmem:[#allocation3 + $0x78] sm:$0xf] %vm2144_vm7, %v6276_v58  ;;  %6390 = vst.msk [vmem:[#allocation3 + $0x7c] sm:$0xf] %vm2144_vm7, %v6278_v23  ;;  %v14668_v58 = vpack.c.bf16 %v6852_v21, %v6852_v21  ;;  %v6853_v23 = vld [vmem:[#allocation2 + $0x160] sm:$0xff] }
 0x61b   :  { %6727 = vrot.lane.b32.xlu0 %v14647_v29, %s15279_s19  ;;  %6729 = vrot.lane.b32.xlu1 %v14648_v6, %s15279_s19  ;;  %v14670_v29 = vpack.c.bf16 %v6854_v2, %v6854_v2  ;;  %v14669_v62 = vpack.c.bf16 %v6853_v23, %v6853_v23 }
 0x61d   :  { %v6280_v26 = vpop.permute.xlu0 %6279  ;;  %v6282_v3 = vpop.permute.xlu1 %6281 }
 0x61e   :  { %6391 = vst.msk [vmem:[#allocation3 + $0x80] sm:$0xf] %vm2144_vm7, %v6280_v26  ;;  %6392 = vst.msk [vmem:[#allocation3 + $0x84] sm:$0xf] %vm2144_vm7, %v6282_v3  ;;  %v6855_v26 = vld [vmem:[#allocation2 + $0x1a0] sm:$0xff]  ;;  %v6856_v3 = vld [vmem:[#allocation2 + $0x1b0] sm:$0xff] }
 0x61f   :  { %6731 = vrot.lane.b32.xlu0 %v14649_v55, %s15279_s19  ;;  %6733 = vrot.lane.b32.xlu1 %v14650_v9, %s15279_s19  ;;  %v6858_v55 = vld [vmem:[#allocation2 + $0x1d0] sm:$0xff]  ;;  %v14671_v18 = vpack.c.bf16 %v6855_v26, %v6855_v26 }
 0x621   :  { %v6284_v52 = vpop.permute.xlu0 %6283  ;;  %v6286_v49 = vpop.permute.xlu1 %6285 }
 0x622   :  { %6393 = vst.msk [vmem:[#allocation3 + $0x88] sm:$0xf] %vm2144_vm7, %v6284_v52  ;;  %6394 = vst.msk [vmem:[#allocation3 + $0x8c] sm:$0xf] %vm2144_vm7, %v6286_v49  ;;  %v14672_v52 = vpack.c.bf16 %v6856_v3, %v6856_v3  ;;  %v6857_v49 = vld [vmem:[#allocation2 + $0x1c0] sm:$0xff] }
 0x623   :  { %6735 = vrot.lane.b32.xlu0 %v14651_v37, %s15279_s19  ;;  %6737 = vrot.lane.b32.xlu1 %v14652_v41, %s15279_s19  ;;  %v14674_v37 = vpack.c.bf16 %v6858_v55, %v6858_v55  ;;  %v14673_v8 = vpack.c.bf16 %v6857_v49, %v6857_v49 }
 0x625   :  { %v6288_v13 = vpop.permute.xlu0 %6287  ;;  %v6290_v47 = vpop.permute.xlu1 %6289 }
 0x626   :  { %6395 = vst.msk [vmem:[#allocation3 + $0x90] sm:$0xf] %vm2144_vm7, %v6288_v13  ;;  %6396 = vst.msk [vmem:[#allocation3 + $0x94] sm:$0xf] %vm2144_vm7, %v6290_v47  ;;  %v6859_v13 = vld [vmem:[#allocation2 + $0x200] sm:$0xff]  ;;  %v6860_v47 = vld [vmem:[#allocation2 + $0x210] sm:$0xff] }
 0x627   :  { %6739 = vrot.lane.b32.xlu0 %v14653_v60, %s15279_s19  ;;  %6741 = vrot.lane.b32.xlu1 %v14654_v15, %s15279_s19  ;;  %v6862_v60 = vld [vmem:[#allocation2 + $0x230] sm:$0xff]  ;;  %v14675_v22 = vpack.c.bf16 %v6859_v13, %v6859_v13  ;;  %v14676_v20 = vpack.c.bf16 %v6860_v47, %v6860_v47 }
 0x629   :  { %v6292_v12 = vpop.permute.xlu0 %6291  ;;  %v6294_v40 = vpop.permute.xlu1 %6293 }
 0x62a   :  { %6397 = vst.msk [vmem:[#allocation3 + $0x98] sm:$0xf] %vm2144_vm7, %v6292_v12  ;;  %6398 = vst.msk [vmem:[#allocation3 + $0x9c] sm:$0xf] %vm2144_vm7, %v6294_v40  ;;  %v6861_v12 = vld [vmem:[#allocation2 + $0x220] sm:$0xff]  ;;  %v14678_v40 = vpack.c.bf16 %v6862_v60, %v6862_v60 }
 0x62b   :  { %7079 = vrot.lane.b32.xlu0 %v14655_v46, %s15280_s20  ;;  %7081 = vrot.lane.b32.xlu1 %v14656_v17, %s15280_s20  ;;  %v14677_v32 = vpack.c.bf16 %v6861_v12, %v6861_v12 }
 0x62d   :  { %v6296_v27 = vpop.permute.xlu0 %6295  ;;  %v6298_v0 = vpop.permute.xlu1 %6297 }
 0x62e   :  { %6399 = vst.msk [vmem:[#allocation3 + $0xa0] sm:$0xf] %vm2144_vm7, %v6296_v27  ;;  %6400 = vst.msk [vmem:[#allocation3 + $0xa4] sm:$0xf] %vm2144_vm7, %v6298_v0  ;;  %v6864_v27 = vld [vmem:[#allocation2 + $0x270] sm:$0xff] }
 0x62f   :  { %7083 = vrot.lane.b32.xlu0 %v14657_v24, %s15280_s20  ;;  %7085 = vrot.lane.b32.xlu1 %v14658_v33, %s15280_s20  ;;  %v6863_v33 = vld [vmem:[#allocation2 + $0x260] sm:$0xff]  ;;  %v6866_v0 = vld [vmem:[#allocation2 + $0x290] sm:$0xff]  ;;  %v14680_v57 = vpack.c.bf16 %v6864_v27, %v6864_v27 }
 0x630   :  { %v14679_v35 = vpack.c.bf16 %v6863_v33, %v6863_v33 }
 0x631   :  { %v6300_v48 = vpop.permute.xlu0 %6299  ;;  %v6302_v42 = vpop.permute.xlu1 %6301 }
 0x632   :  { %6401 = vst.msk [vmem:[#allocation3 + $0xa8] sm:$0xf] %vm2144_vm7, %v6300_v48  ;;  %6402 = vst.msk [vmem:[#allocation3 + $0xac] sm:$0xf] %vm2144_vm7, %v6302_v42  ;;  %v6865_v48 = vld [vmem:[#allocation2 + $0x280] sm:$0xff]  ;;  %v14682_v42 = vpack.c.bf16 %v6866_v0, %v6866_v0 }
 0x633   :  { %7087 = vrot.lane.b32.xlu0 %v14659_v19, %s15280_s20  ;;  %7089 = vrot.lane.b32.xlu1 %v14660_v36, %s15280_s20  ;;  %v14681_v38 = vpack.c.bf16 %v6865_v48, %v6865_v48 }
 0x635   :  { %v6304_v39 = vpop.permute.xlu0 %6303  ;;  %v6306_v25 = vpop.permute.xlu1 %6305 }
 0x636   :  { %6403 = vst.msk [vmem:[#allocation3 + $0xb0] sm:$0xf] %vm2144_vm7, %v6304_v39  ;;  %6404 = vst.msk [vmem:[#allocation3 + $0xb4] sm:$0xf] %vm2144_vm7, %v6306_v25  ;;  %v6868_v39 = vld [vmem:[#allocation2 + $0x2d0] sm:$0xff] }
 0x637   :  { %7091 = vrot.lane.b32.xlu0 %v14661_v45, %s15280_s20  ;;  %7093 = vrot.lane.b32.xlu1 %v14662_v54, %s15280_s20  ;;  %v6867_v54 = vld [vmem:[#allocation2 + $0x2c0] sm:$0xff]  ;;  %v6870_v25 = vld [vmem:[#allocation2 + $0x2f0] sm:$0xff]  ;;  %v14684_v16 = vpack.c.bf16 %v6868_v39, %v6868_v39 }
 0x638   :  { %v14683_v1 = vpack.c.bf16 %v6867_v54, %v6867_v54 }
 0x639   :  { %v6308_v31 = vpop.permute.xlu0 %6307  ;;  %v6310_v30 = vpop.permute.xlu1 %6309 }
 0x63a   :  { %6405 = vst.msk [vmem:[#allocation3 + $0xb8] sm:$0xf] %vm2144_vm7, %v6308_v31  ;;  %6406 = vst.msk [vmem:[#allocation3 + $0xbc] sm:$0xf] %vm2144_vm7, %v6310_v30  ;;  %v6869_v31 = vld [vmem:[#allocation2 + $0x2e0] sm:$0xff]  ;;  %v14686_v30 = vpack.c.bf16 %v6870_v25, %v6870_v25  ;;  %vm12922_vm7 = vcmask 720512  }
 0x63b   :  { %7095 = vrot.lane.b32.xlu0 %v14663_v61, %s15280_s20  ;;  %7097 = vrot.lane.b32.xlu1 %v14664_v14, %s15280_s20  ;;  %v14685_v10 = vpack.c.bf16 %v6869_v31, %v6869_v31 }
 0x63d   :  { %v6648_v53 = vpop.permute.xlu0 %6647  ;;  %v6650_v50 = vpop.permute.xlu1 %6649 }
 0x63e   :  { %6791 = vst.msk [vmem:[#allocation3] sm:$0xf] %vm2577_vm8, %v6648_v53  ;;  %6792 = vst.msk [vmem:[#allocation3 + $0x4] sm:$0xf] %vm2577_vm8, %v6650_v50  ;;  %v6872_v53 = vld [vmem:[#allocation2 + $0x330] sm:$0xff] }
 0x63f   :  { %7099 = vrot.lane.b32.xlu0 %v14665_v11, %s15280_s20  ;;  %7101 = vrot.lane.b32.xlu1 %v14666_v44, %s15280_s20  ;;  %v6871_v44 = vld [vmem:[#allocation2 + $0x320] sm:$0xff]  ;;  %v6874_v50 = vld [vmem:[#allocation2 + $0x350] sm:$0xff]  ;;  %v14688_v2 = vpack.c.bf16 %v6872_v53, %v6872_v53 }
 0x640   :  { %v14687_v21 = vpack.c.bf16 %v6871_v44, %v6871_v44 }
 0x641   :  { %v6652_v51 = vpop.permute.xlu0 %6651  ;;  %v6654_v34 = vpop.permute.xlu1 %6653 }
 0x642   :  { %6793 = vst.msk [vmem:[#allocation3 + $0x8] sm:$0xf] %vm2577_vm8, %v6652_v51  ;;  %6794 = vst.msk [vmem:[#allocation3 + $0xc] sm:$0xf] %vm2577_vm8, %v6654_v34  ;;  %v6873_v51 = vld [vmem:[#allocation2 + $0x340] sm:$0xff]  ;;  %v14690_v34 = vpack.c.bf16 %v6874_v50, %v6874_v50 }
 0x643   :  { %7103 = vrot.lane.b32.xlu0 %v14667_v63, %s15280_s20  ;;  %7105 = vrot.lane.b32.xlu1 %v14668_v58, %s15280_s20  ;;  %v14689_v23 = vpack.c.bf16 %v6873_v51, %v6873_v51 }
 0x645   :  { %v6656_v6 = vpop.permute.xlu0 %6655  ;;  %v6658_v59 = vpop.permute.xlu1 %6657 }
 0x646   :  { %6795 = vst.msk [vmem:[#allocation3 + $0x10] sm:$0xf] %vm2577_vm8, %v6656_v6  ;;  %6796 = vst.msk [vmem:[#allocation3 + $0x14] sm:$0xf] %vm2577_vm8, %v6658_v59  ;;  %v6876_v6 = vld [vmem:[#allocation2 + $0x390] sm:$0xff] }
 0x647   :  { %7107 = vrot.lane.b32.xlu0 %v14669_v62, %s15280_s20  ;;  %7109 = vrot.lane.b32.xlu1 %v14670_v29, %s15280_s20  ;;  %v6875_v29 = vld [vmem:[#allocation2 + $0x380] sm:$0xff]  ;;  %v6878_v59 = vld [vmem:[#allocation2 + $0x3b0] sm:$0xff]  ;;  %v14692_v55 = vpack.c.bf16 %v6876_v6, %v6876_v6 }
 0x648   :  { %v14691_v3 = vpack.c.bf16 %v6875_v29, %v6875_v29 }
 0x649   :  { %v6660_v9 = vpop.permute.xlu0 %6659  ;;  %v6662_v4 = vpop.permute.xlu1 %6661 }
 0x64a   :  { %6797 = vst.msk [vmem:[#allocation3 + $0x18] sm:$0xf] %vm2577_vm8, %v6660_v9  ;;  %6798 = vst.msk [vmem:[#allocation3 + $0x1c] sm:$0xf] %vm2577_vm8, %v6662_v4  ;;  %v6877_v9 = vld [vmem:[#allocation2 + $0x3a0] sm:$0xff]  ;;  %v14694_v4 = vpack.c.bf16 %v6878_v59, %v6878_v59 }
 0x64b   :  { %7111 = vrot.lane.b32.xlu0 %v14671_v18, %s15280_s20  ;;  %7113 = vrot.lane.b32.xlu1 %v14672_v52, %s15280_s20  ;;  %v14693_v49 = vpack.c.bf16 %v6877_v9, %v6877_v9 }
 0x64d   :  { %v6664_v41 = vpop.permute.xlu0 %6663  ;;  %v6666_v5 = vpop.permute.xlu1 %6665 }
 0x64e   :  { %6799 = vst.msk [vmem:[#allocation3 + $0x20] sm:$0xf] %vm2577_vm8, %v6664_v41  ;;  %6800 = vst.msk [vmem:[#allocation3 + $0x24] sm:$0xf] %vm2577_vm8, %v6666_v5  ;;  %v6880_v41 = vld [vmem:[#allocation2 + $0x3f0] sm:$0xff] }
 0x64f   :  { %7115 = vrot.lane.b32.xlu0 %v14673_v8, %s15280_s20  ;;  %7117 = vrot.lane.b32.xlu1 %v14674_v37, %s15280_s20  ;;  %v6879_v37 = vld [vmem:[#allocation2 + $0x3e0] sm:$0xff]  ;;  %v6882_v5 = vld [vmem:[#allocation2 + $0x410] sm:$0xff]  ;;  %v14696_v60 = vpack.c.bf16 %v6880_v41, %v6880_v41 }
 0x650   :  { %v14695_v47 = vpack.c.bf16 %v6879_v37, %v6879_v37 }
 0x651   :  { %v6668_v15 = vpop.permute.xlu0 %6667  ;;  %v6670_v7 = vpop.permute.xlu1 %6669 }
 0x652   :  { %6801 = vst.msk [vmem:[#allocation3 + $0x28] sm:$0xf] %vm2577_vm8, %v6668_v15  ;;  %6802 = vst.msk [vmem:[#allocation3 + $0x2c] sm:$0xf] %vm2577_vm8, %v6670_v7  ;;  %v6881_v15 = vld [vmem:[#allocation2 + $0x400] sm:$0xff]  ;;  %v14698_v7 = vpack.c.bf16 %v6882_v5, %v6882_v5 }
 0x653   :  { %7119 = vrot.lane.b32.xlu0 %v14675_v22, %s15280_s20  ;;  %7121 = vrot.lane.b32.xlu1 %v14676_v20, %s15280_s20  ;;  %v14697_v12 = vpack.c.bf16 %v6881_v15, %v6881_v15 }
 0x655   :  { %v6672_v46 = vpop.permute.xlu0 %6671  ;;  %v6674_v17 = vpop.permute.xlu1 %6673 }
 0x656   :  { %6803 = vst.msk [vmem:[#allocation3 + $0x30] sm:$0xf] %vm2577_vm8, %v6672_v46  ;;  %6804 = vst.msk [vmem:[#allocation3 + $0x34] sm:$0xf] %vm2577_vm8, %v6674_v17  ;;  %v6884_v46 = vld [vmem:[#allocation2 + $0x450] sm:$0xff] }
 0x657   :  { %7123 = vrot.lane.b32.xlu0 %v14677_v32, %s15280_s20  ;;  %7125 = vrot.lane.b32.xlu1 %v14678_v40, %s15280_s20  ;;  %v6883_v40 = vld [vmem:[#allocation2 + $0x440] sm:$0xff]  ;;  %v6886_v17 = vld [vmem:[#allocation2 + $0x470] sm:$0xff]  ;;  %v14700_v0 = vpack.c.bf16 %v6884_v46, %v6884_v46 }
 0x658   :  { %v14699_v27 = vpack.c.bf16 %v6883_v40, %v6883_v40 }
 0x659   :  { %v6676_v24 = vpop.permute.xlu0 %6675  ;;  %v6678_v43 = vpop.permute.xlu1 %6677 }
 0x65a   :  { %6805 = vst.msk [vmem:[#allocation3 + $0x38] sm:$0xf] %vm2577_vm8, %v6676_v24  ;;  %6806 = vst.msk [vmem:[#allocation3 + $0x3c] sm:$0xf] %vm2577_vm8, %v6678_v43  ;;  %v6885_v24 = vld [vmem:[#allocation2 + $0x460] sm:$0xff]  ;;  %v14702_v43 = vpack.c.bf16 %v6886_v17, %v6886_v17 }
 0x65b   :  { %7127 = vrot.lane.b32.xlu0 %v14679_v35, %s15280_s20  ;;  %7129 = vrot.lane.b32.xlu1 %v14680_v57, %s15280_s20  ;;  %v14701_v48 = vpack.c.bf16 %v6885_v24, %v6885_v24 }
 0x65d   :  { %v6680_v19 = vpop.permute.xlu0 %6679  ;;  %v6682_v36 = vpop.permute.xlu1 %6681 }
 0x65e   :  { %6807 = vst.msk [vmem:[#allocation3 + $0x40] sm:$0xf] %vm2577_vm8, %v6680_v19  ;;  %6808 = vst.msk [vmem:[#allocation3 + $0x44] sm:$0xf] %vm2577_vm8, %v6682_v36  ;;  %v7272_v19 = vld [vmem:[#allocation2 + $0x31] sm:$0xff] }
 0x65f   :  { %7131 = vrot.lane.b32.xlu0 %v14681_v38, %s15280_s20  ;;  %7133 = vrot.lane.b32.xlu1 %v14682_v42, %s15280_s20  ;;  %v7271_v42 = vld [vmem:[#allocation2 + $0x21] sm:$0xff]  ;;  %v7274_v36 = vld [vmem:[#allocation2 + $0x51] sm:$0xff]  ;;  %v14704_v25 = vpack.c.bf16 %v7272_v19, %v7272_v19 }
 0x660   :  { %v14703_v39 = vpack.c.bf16 %v7271_v42, %v7271_v42 }
 0x661   :  { %v6684_v45 = vpop.permute.xlu0 %6683  ;;  %v6686_v56 = vpop.permute.xlu1 %6685 }
 0x662   :  { %6809 = vst.msk [vmem:[#allocation3 + $0x48] sm:$0xf] %vm2577_vm8, %v6684_v45  ;;  %6810 = vst.msk [vmem:[#allocation3 + $0x4c] sm:$0xf] %vm2577_vm8, %v6686_v56  ;;  %v7273_v45 = vld [vmem:[#allocation2 + $0x41] sm:$0xff]  ;;  %v14706_v56 = vpack.c.bf16 %v7274_v36, %v7274_v36 }
 0x663   :  { %7135 = vrot.lane.b32.xlu0 %v14683_v1, %s15280_s20  ;;  %7137 = vrot.lane.b32.xlu1 %v14684_v16, %s15280_s20  ;;  %v14705_v31 = vpack.c.bf16 %v7273_v45, %v7273_v45 }
 0x665   :  { %v6688_v61 = vpop.permute.xlu0 %6687  ;;  %v6690_v14 = vpop.permute.xlu1 %6689 }
 0x666   :  { %6811 = vst.msk [vmem:[#allocation3 + $0x50] sm:$0xf] %vm2577_vm8, %v6688_v61  ;;  %6812 = vst.msk [vmem:[#allocation3 + $0x54] sm:$0xf] %vm2577_vm8, %v6690_v14  ;;  %v7276_v61 = vld [vmem:[#allocation2 + $0x91] sm:$0xff] }
 0x667   :  { %7139 = vrot.lane.b32.xlu0 %v14685_v10, %s15280_s20  ;;  %7141 = vrot.lane.b32.xlu1 %v14686_v30, %s15280_s20  ;;  %v7275_v30 = vld [vmem:[#allocation2 + $0x81] sm:$0xff]  ;;  %v7278_v14 = vld [vmem:[#allocation2 + $0xb1] sm:$0xff]  ;;  %v14708_v50 = vpack.c.bf16 %v7276_v61, %v7276_v61 }
 0x668   :  { %v14707_v53 = vpack.c.bf16 %v7275_v30, %v7275_v30 }
 0x669   :  { %v6692_v11 = vpop.permute.xlu0 %6691  ;;  %v6694_v28 = vpop.permute.xlu1 %6693 }
 0x66a   :  { %6813 = vst.msk [vmem:[#allocation3 + $0x58] sm:$0xf] %vm2577_vm8, %v6692_v11  ;;  %6814 = vst.msk [vmem:[#allocation3 + $0x5c] sm:$0xf] %vm2577_vm8, %v6694_v28  ;;  %v7277_v11 = vld [vmem:[#allocation2 + $0xa1] sm:$0xff]  ;;  %v14710_v28 = vpack.c.bf16 %v7278_v14, %v7278_v14 }
 0x66b   :  { %7143 = vrot.lane.b32.xlu0 %v14687_v21, %s15280_s20  ;;  %7145 = vrot.lane.b32.xlu1 %v14688_v2, %s15280_s20  ;;  %v14709_v51 = vpack.c.bf16 %v7277_v11, %v7277_v11 }
 0x66d   :  { %v6696_v63 = vpop.permute.xlu0 %6695  ;;  %v6698_v58 = vpop.permute.xlu1 %6697 }
 0x66e   :  { %6815 = vst.msk [vmem:[#allocation3 + $0x60] sm:$0xf] %vm2577_vm8, %v6696_v63  ;;  %6816 = vst.msk [vmem:[#allocation3 + $0x64] sm:$0xf] %vm2577_vm8, %v6698_v58  ;;  %v7280_v63 = vld [vmem:[#allocation2 + $0xf1] sm:$0xff] }
 0x66f   :  { %7147 = vrot.lane.b32.xlu0 %v14689_v23, %s15280_s20  ;;  %7149 = vrot.lane.b32.xlu1 %v14690_v34, %s15280_s20  ;;  %v7279_v34 = vld [vmem:[#allocation2 + $0xe1] sm:$0xff]  ;;  %v7282_v58 = vld [vmem:[#allocation2 + $0x111] sm:$0xff]  ;;  %v14712_v59 = vpack.c.bf16 %v7280_v63, %v7280_v63 }
 0x670   :  { %v14711_v6 = vpack.c.bf16 %v7279_v34, %v7279_v34 }
 0x671   :  { %v6700_v62 = vpop.permute.xlu0 %6699  ;;  %v6702_v26 = vpop.permute.xlu1 %6701 }
 0x672   :  { %6817 = vst.msk [vmem:[#allocation3 + $0x68] sm:$0xf] %vm2577_vm8, %v6700_v62  ;;  %6818 = vst.msk [vmem:[#allocation3 + $0x6c] sm:$0xf] %vm2577_vm8, %v6702_v26  ;;  %v7281_v62 = vld [vmem:[#allocation2 + $0x101] sm:$0xff]  ;;  %v14714_v26 = vpack.c.bf16 %v7282_v58, %v7282_v58 }
 0x673   :  { %7151 = vrot.lane.b32.xlu0 %v14691_v3, %s15280_s20  ;;  %7153 = vrot.lane.b32.xlu1 %v14692_v55, %s15280_s20  ;;  %v14713_v9 = vpack.c.bf16 %v7281_v62, %v7281_v62 }
 0x675   :  { %v6704_v18 = vpop.permute.xlu0 %6703  ;;  %v6706_v52 = vpop.permute.xlu1 %6705 }
 0x676   :  { %6819 = vst.msk [vmem:[#allocation3 + $0x70] sm:$0xf] %vm2577_vm8, %v6704_v18  ;;  %6820 = vst.msk [vmem:[#allocation3 + $0x74] sm:$0xf] %vm2577_vm8, %v6706_v52  ;;  %v7284_v18 = vld [vmem:[#allocation2 + $0x151] sm:$0xff] }
 0x677   :  { %7155 = vrot.lane.b32.xlu0 %v14693_v49, %s15280_s20  ;;  %7157 = vrot.lane.b32.xlu1 %v14694_v4, %s15280_s20  ;;  %v7283_v4 = vld [vmem:[#allocation2 + $0x141] sm:$0xff]  ;;  %v7286_v52 = vld [vmem:[#allocation2 + $0x171] sm:$0xff]  ;;  %v14716_v5 = vpack.c.bf16 %v7284_v18, %v7284_v18 }
 0x678   :  { %v14715_v41 = vpack.c.bf16 %v7283_v4, %v7283_v4 }
 0x679   :  { %v6708_v8 = vpop.permute.xlu0 %6707  ;;  %v6710_v13 = vpop.permute.xlu1 %6709 }
 0x67a   :  { %6821 = vst.msk [vmem:[#allocation3 + $0x78] sm:$0xf] %vm2577_vm8, %v6708_v8  ;;  %6822 = vst.msk [vmem:[#allocation3 + $0x7c] sm:$0xf] %vm2577_vm8, %v6710_v13  ;;  %v7285_v8 = vld [vmem:[#allocation2 + $0x161] sm:$0xff]  ;;  %v14718_v13 = vpack.c.bf16 %v7286_v52, %v7286_v52 }
 0x67b   :  { %7159 = vrot.lane.b32.xlu0 %v14695_v47, %s15280_s20  ;;  %7161 = vrot.lane.b32.xlu1 %v14696_v60, %s15280_s20  ;;  %v14717_v15 = vpack.c.bf16 %v7285_v8, %v7285_v8 }
 0x67d   :  { %v6712_v22 = vpop.permute.xlu0 %6711  ;;  %v6714_v20 = vpop.permute.xlu1 %6713 }
 0x67e   :  { %6823 = vst.msk [vmem:[#allocation3 + $0x80] sm:$0xf] %vm2577_vm8, %v6712_v22  ;;  %6824 = vst.msk [vmem:[#allocation3 + $0x84] sm:$0xf] %vm2577_vm8, %v6714_v20  ;;  %v7288_v22 = vld [vmem:[#allocation2 + $0x1b1] sm:$0xff] }
 0x67f   :  { %7163 = vrot.lane.b32.xlu0 %v14697_v12, %s15280_s20  ;;  %7165 = vrot.lane.b32.xlu1 %v14698_v7, %s15280_s20  ;;  %v7287_v7 = vld [vmem:[#allocation2 + $0x1a1] sm:$0xff]  ;;  %v7290_v20 = vld [vmem:[#allocation2 + $0x1d1] sm:$0xff]  ;;  %v14720_v17 = vpack.c.bf16 %v7288_v22, %v7288_v22 }
 0x680   :  { %v14719_v46 = vpack.c.bf16 %v7287_v7, %v7287_v7 }
 0x681   :  { %v6716_v32 = vpop.permute.xlu0 %6715  ;;  %v6718_v33 = vpop.permute.xlu1 %6717 }
 0x682   :  { %6825 = vst.msk [vmem:[#allocation3 + $0x88] sm:$0xf] %vm2577_vm8, %v6716_v32  ;;  %6826 = vst.msk [vmem:[#allocation3 + $0x8c] sm:$0xf] %vm2577_vm8, %v6718_v33  ;;  %v7289_v32 = vld [vmem:[#allocation2 + $0x1c1] sm:$0xff]  ;;  %v14722_v33 = vpack.c.bf16 %v7290_v20, %v7290_v20 }
 0x683   :  { %7167 = vrot.lane.b32.xlu0 %v14699_v27, %s15280_s20  ;;  %7169 = vrot.lane.b32.xlu1 %v14700_v0, %s15280_s20  ;;  %v14721_v24 = vpack.c.bf16 %v7289_v32, %v7289_v32 }
 0x685   :  { %v6720_v35 = vpop.permute.xlu0 %6719  ;;  %v6722_v57 = vpop.permute.xlu1 %6721 }
 0x686   :  { %6827 = vst.msk [vmem:[#allocation3 + $0x90] sm:$0xf] %vm2577_vm8, %v6720_v35  ;;  %6828 = vst.msk [vmem:[#allocation3 + $0x94] sm:$0xf] %vm2577_vm8, %v6722_v57  ;;  %v7292_v35 = vld [vmem:[#allocation2 + $0x211] sm:$0xff] }
 0x687   :  { %7171 = vrot.lane.b32.xlu0 %v14701_v48, %s15280_s20  ;;  %7173 = vrot.lane.b32.xlu1 %v14702_v43, %s15280_s20  ;;  %v7291_v43 = vld [vmem:[#allocation2 + $0x201] sm:$0xff]  ;;  %v7294_v57 = vld [vmem:[#allocation2 + $0x231] sm:$0xff]  ;;  %v14724_v36 = vpack.c.bf16 %v7292_v35, %v7292_v35 }
 0x688   :  { %v14723_v19 = vpack.c.bf16 %v7291_v43, %v7291_v43 }
 0x689   :  { %v6724_v38 = vpop.permute.xlu0 %6723  ;;  %v6726_v54 = vpop.permute.xlu1 %6725 }
 0x68a   :  { %6829 = vst.msk [vmem:[#allocation3 + $0x98] sm:$0xf] %vm2577_vm8, %v6724_v38  ;;  %6830 = vst.msk [vmem:[#allocation3 + $0x9c] sm:$0xf] %vm2577_vm8, %v6726_v54  ;;  %v7293_v38 = vld [vmem:[#allocation2 + $0x221] sm:$0xff]  ;;  %v14726_v54 = vpack.c.bf16 %v7294_v57, %v7294_v57 }
 0x68b   :  { %7511 = vrot.lane.b32.xlu0 %v14703_v39, %s15281_s21  ;;  %7513 = vrot.lane.b32.xlu1 %v14704_v25, %s15281_s21  ;;  %v14725_v45 = vpack.c.bf16 %v7293_v38, %v7293_v38 }
 0x68d   :  { %v6728_v1 = vpop.permute.xlu0 %6727  ;;  %v6730_v16 = vpop.permute.xlu1 %6729 }
 0x68e   :  { %6831 = vst.msk [vmem:[#allocation3 + $0xa0] sm:$0xf] %vm2577_vm8, %v6728_v1  ;;  %6832 = vst.msk [vmem:[#allocation3 + $0xa4] sm:$0xf] %vm2577_vm8, %v6730_v16  ;;  %v7296_v1 = vld [vmem:[#allocation2 + $0x271] sm:$0xff] }
 0x68f   :  { %7515 = vrot.lane.b32.xlu0 %v14705_v31, %s15281_s21  ;;  %7517 = vrot.lane.b32.xlu1 %v14706_v56, %s15281_s21  ;;  %v7295_v56 = vld [vmem:[#allocation2 + $0x261] sm:$0xff]  ;;  %v7298_v16 = vld [vmem:[#allocation2 + $0x291] sm:$0xff]  ;;  %v14728_v14 = vpack.c.bf16 %v7296_v1, %v7296_v1 }
 0x690   :  { %v14727_v61 = vpack.c.bf16 %v7295_v56, %v7295_v56 }
 0x691   :  { %v6732_v10 = vpop.permute.xlu0 %6731  ;;  %v6734_v44 = vpop.permute.xlu1 %6733 }
 0x692   :  { %6833 = vst.msk [vmem:[#allocation3 + $0xa8] sm:$0xf] %vm2577_vm8, %v6732_v10  ;;  %6834 = vst.msk [vmem:[#allocation3 + $0xac] sm:$0xf] %vm2577_vm8, %v6734_v44  ;;  %v7297_v10 = vld [vmem:[#allocation2 + $0x281] sm:$0xff]  ;;  %v14730_v44 = vpack.c.bf16 %v7298_v16, %v7298_v16 }
 0x693   :  { %7519 = vrot.lane.b32.xlu0 %v14707_v53, %s15281_s21  ;;  %7521 = vrot.lane.b32.xlu1 %v14708_v50, %s15281_s21  ;;  %v14729_v11 = vpack.c.bf16 %v7297_v10, %v7297_v10 }
 0x695   :  { %v6736_v21 = vpop.permute.xlu0 %6735  ;;  %v6738_v2 = vpop.permute.xlu1 %6737 }
 0x696   :  { %6835 = vst.msk [vmem:[#allocation3 + $0xb0] sm:$0xf] %vm2577_vm8, %v6736_v21  ;;  %6836 = vst.msk [vmem:[#allocation3 + $0xb4] sm:$0xf] %vm2577_vm8, %v6738_v2  ;;  %v7300_v21 = vld [vmem:[#allocation2 + $0x2d1] sm:$0xff] }
 0x697   :  { %7523 = vrot.lane.b32.xlu0 %v14709_v51, %s15281_s21  ;;  %7525 = vrot.lane.b32.xlu1 %v14710_v28, %s15281_s21  ;;  %v7299_v28 = vld [vmem:[#allocation2 + $0x2c1] sm:$0xff]  ;;  %v7302_v2 = vld [vmem:[#allocation2 + $0x2f1] sm:$0xff]  ;;  %v14732_v58 = vpack.c.bf16 %v7300_v21, %v7300_v21 }
 0x698   :  { %v14731_v63 = vpack.c.bf16 %v7299_v28, %v7299_v28 }
 0x699   :  { %v6740_v23 = vpop.permute.xlu0 %6739  ;;  %v6742_v29 = vpop.permute.xlu1 %6741 }
 0x69a   :  { %6837 = vst.msk [vmem:[#allocation3 + $0xb8] sm:$0xf] %vm2577_vm8, %v6740_v23  ;;  %6838 = vst.msk [vmem:[#allocation3 + $0xbc] sm:$0xf] %vm2577_vm8, %v6742_v29  ;;  %v7301_v23 = vld [vmem:[#allocation2 + $0x2e1] sm:$0xff]  ;;  %v14734_v29 = vpack.c.bf16 %v7302_v2, %v7302_v2  ;;  %vm12929_vm8 = vcmask 786112  }
 0x69b   :  { %7527 = vrot.lane.b32.xlu0 %v14711_v6, %s15281_s21  ;;  %7529 = vrot.lane.b32.xlu1 %v14712_v59, %s15281_s21  ;;  %v14733_v62 = vpack.c.bf16 %v7301_v23, %v7301_v23 }
 0x69d   :  { %v7080_v3 = vpop.permute.xlu0 %7079  ;;  %v7082_v55 = vpop.permute.xlu1 %7081 }
 0x69e   :  { %7223 = vst.msk [vmem:[#allocation3] sm:$0xf] %vm3011_vm9, %v7080_v3  ;;  %7224 = vst.msk [vmem:[#allocation3 + $0x4] sm:$0xf] %vm3011_vm9, %v7082_v55  ;;  %v7304_v3 = vld [vmem:[#allocation2 + $0x331] sm:$0xff] }
 0x69f   :  { %7531 = vrot.lane.b32.xlu0 %v14713_v9, %s15281_s21  ;;  %7533 = vrot.lane.b32.xlu1 %v14714_v26, %s15281_s21  ;;  %v7303_v26 = vld [vmem:[#allocation2 + $0x321] sm:$0xff]  ;;  %v7306_v55 = vld [vmem:[#allocation2 + $0x351] sm:$0xff]  ;;  %v14736_v52 = vpack.c.bf16 %v7304_v3, %v7304_v3 }
 0x6a0   :  { %v14735_v18 = vpack.c.bf16 %v7303_v26, %v7303_v26 }
 0x6a1   :  { %v7084_v49 = vpop.permute.xlu0 %7083  ;;  %v7086_v37 = vpop.permute.xlu1 %7085 }
 0x6a2   :  { %7225 = vst.msk [vmem:[#allocation3 + $0x8] sm:$0xf] %vm3011_vm9, %v7084_v49  ;;  %7226 = vst.msk [vmem:[#allocation3 + $0xc] sm:$0xf] %vm3011_vm9, %v7086_v37  ;;  %v7305_v49 = vld [vmem:[#allocation2 + $0x341] sm:$0xff]  ;;  %v14738_v37 = vpack.c.bf16 %v7306_v55, %v7306_v55 }
 0x6a3   :  { %7535 = vrot.lane.b32.xlu0 %v14715_v41, %s15281_s21  ;;  %7537 = vrot.lane.b32.xlu1 %v14716_v5, %s15281_s21  ;;  %v14737_v8 = vpack.c.bf16 %v7305_v49, %v7305_v49 }
 0x6a5   :  { %v7088_v47 = vpop.permute.xlu0 %7087  ;;  %v7090_v60 = vpop.permute.xlu1 %7089 }
 0x6a6   :  { %7227 = vst.msk [vmem:[#allocation3 + $0x10] sm:$0xf] %vm3011_vm9, %v7088_v47  ;;  %7228 = vst.msk [vmem:[#allocation3 + $0x14] sm:$0xf] %vm3011_vm9, %v7090_v60  ;;  %v7308_v47 = vld [vmem:[#allocation2 + $0x391] sm:$0xff] }
 0x6a7   :  { %7539 = vrot.lane.b32.xlu0 %v14717_v15, %s15281_s21  ;;  %7541 = vrot.lane.b32.xlu1 %v14718_v13, %s15281_s21  ;;  %v7307_v13 = vld [vmem:[#allocation2 + $0x381] sm:$0xff]  ;;  %v7310_v60 = vld [vmem:[#allocation2 + $0x3b1] sm:$0xff]  ;;  %v14740_v20 = vpack.c.bf16 %v7308_v47, %v7308_v47 }
 0x6a8   :  { %v14739_v22 = vpack.c.bf16 %v7307_v13, %v7307_v13 }
 0x6a9   :  { %v7092_v12 = vpop.permute.xlu0 %7091  ;;  %v7094_v40 = vpop.permute.xlu1 %7093 }
 0x6aa   :  { %7229 = vst.msk [vmem:[#allocation3 + $0x18] sm:$0xf] %vm3011_vm9, %v7092_v12  ;;  %7230 = vst.msk [vmem:[#allocation3 + $0x1c] sm:$0xf] %vm3011_vm9, %v7094_v40  ;;  %v7309_v12 = vld [vmem:[#allocation2 + $0x3a1] sm:$0xff]  ;;  %v14742_v40 = vpack.c.bf16 %v7310_v60, %v7310_v60 }
 0x6ab   :  { %7543 = vrot.lane.b32.xlu0 %v14719_v46, %s15281_s21  ;;  %7545 = vrot.lane.b32.xlu1 %v14720_v17, %s15281_s21  ;;  %v14741_v32 = vpack.c.bf16 %v7309_v12, %v7309_v12 }
 0x6ad   :  { %v7096_v27 = vpop.permute.xlu0 %7095  ;;  %v7098_v0 = vpop.permute.xlu1 %7097 }
 0x6ae   :  { %7231 = vst.msk [vmem:[#allocation3 + $0x20] sm:$0xf] %vm3011_vm9, %v7096_v27  ;;  %7232 = vst.msk [vmem:[#allocation3 + $0x24] sm:$0xf] %vm3011_vm9, %v7098_v0  ;;  %v7312_v27 = vld [vmem:[#allocation2 + $0x3f1] sm:$0xff] }
 0x6af   :  { %7547 = vrot.lane.b32.xlu0 %v14721_v24, %s15281_s21  ;;  %7549 = vrot.lane.b32.xlu1 %v14722_v33, %s15281_s21  ;;  %v7311_v33 = vld [vmem:[#allocation2 + $0x3e1] sm:$0xff]  ;;  %v7314_v0 = vld [vmem:[#allocation2 + $0x411] sm:$0xff]  ;;  %v14744_v57 = vpack.c.bf16 %v7312_v27, %v7312_v27 }
 0x6b0   :  { %v14743_v35 = vpack.c.bf16 %v7311_v33, %v7311_v33 }
 0x6b1   :  { %v7100_v48 = vpop.permute.xlu0 %7099  ;;  %v7102_v42 = vpop.permute.xlu1 %7101 }
 0x6b2   :  { %7233 = vst.msk [vmem:[#allocation3 + $0x28] sm:$0xf] %vm3011_vm9, %v7100_v48  ;;  %7234 = vst.msk [vmem:[#allocation3 + $0x2c] sm:$0xf] %vm3011_vm9, %v7102_v42  ;;  %v7313_v48 = vld [vmem:[#allocation2 + $0x401] sm:$0xff]  ;;  %v14746_v42 = vpack.c.bf16 %v7314_v0, %v7314_v0 }
 0x6b3   :  { %7551 = vrot.lane.b32.xlu0 %v14723_v19, %s15281_s21  ;;  %7553 = vrot.lane.b32.xlu1 %v14724_v36, %s15281_s21  ;;  %v14745_v38 = vpack.c.bf16 %v7313_v48, %v7313_v48 }
 0x6b5   :  { %v7104_v39 = vpop.permute.xlu0 %7103  ;;  %v7106_v25 = vpop.permute.xlu1 %7105 }
 0x6b6   :  { %7235 = vst.msk [vmem:[#allocation3 + $0x30] sm:$0xf] %vm3011_vm9, %v7104_v39  ;;  %7236 = vst.msk [vmem:[#allocation3 + $0x34] sm:$0xf] %vm3011_vm9, %v7106_v25  ;;  %v7316_v39 = vld [vmem:[#allocation2 + $0x451] sm:$0xff] }
 0x6b7   :  { %7555 = vrot.lane.b32.xlu0 %v14725_v45, %s15281_s21  ;;  %7557 = vrot.lane.b32.xlu1 %v14726_v54, %s15281_s21  ;;  %v7315_v54 = vld [vmem:[#allocation2 + $0x441] sm:$0xff]  ;;  %v7318_v25 = vld [vmem:[#allocation2 + $0x471] sm:$0xff]  ;;  %v14748_v16 = vpack.c.bf16 %v7316_v39, %v7316_v39 }
 0x6b8   :  { %v14747_v1 = vpack.c.bf16 %v7315_v54, %v7315_v54 }
 0x6b9   :  { %v7108_v31 = vpop.permute.xlu0 %7107  ;;  %v7110_v30 = vpop.permute.xlu1 %7109 }
 0x6ba   :  { %7237 = vst.msk [vmem:[#allocation3 + $0x38] sm:$0xf] %vm3011_vm9, %v7108_v31  ;;  %7238 = vst.msk [vmem:[#allocation3 + $0x3c] sm:$0xf] %vm3011_vm9, %v7110_v30  ;;  %v7317_v31 = vld [vmem:[#allocation2 + $0x461] sm:$0xff]  ;;  %v14750_v30 = vpack.c.bf16 %v7318_v25, %v7318_v25 }
 0x6bb   :  { %7559 = vrot.lane.b32.xlu0 %v14727_v61, %s15281_s21  ;;  %7561 = vrot.lane.b32.xlu1 %v14728_v14, %s15281_s21  ;;  %v14749_v10 = vpack.c.bf16 %v7317_v31, %v7317_v31 }
 0x6bd   :  { %v7112_v53 = vpop.permute.xlu0 %7111  ;;  %v7114_v50 = vpop.permute.xlu1 %7113 }
 0x6be   :  { %7239 = vst.msk [vmem:[#allocation3 + $0x40] sm:$0xf] %vm3011_vm9, %v7112_v53  ;;  %7240 = vst.msk [vmem:[#allocation3 + $0x44] sm:$0xf] %vm3011_vm9, %v7114_v50  ;;  %v7704_v53 = vld [vmem:[#allocation2 + $0x32] sm:$0xff] }
 0x6bf   :  { %7563 = vrot.lane.b32.xlu0 %v14729_v11, %s15281_s21  ;;  %7565 = vrot.lane.b32.xlu1 %v14730_v44, %s15281_s21  ;;  %v7703_v44 = vld [vmem:[#allocation2 + $0x22] sm:$0xff]  ;;  %v7706_v50 = vld [vmem:[#allocation2 + $0x52] sm:$0xff]  ;;  %v14752_v2 = vpack.c.bf16 %v7704_v53, %v7704_v53 }
 0x6c0   :  { %v14751_v21 = vpack.c.bf16 %v7703_v44, %v7703_v44 }
 0x6c1   :  { %v7116_v51 = vpop.permute.xlu0 %7115  ;;  %v7118_v34 = vpop.permute.xlu1 %7117 }
 0x6c2   :  { %7241 = vst.msk [vmem:[#allocation3 + $0x48] sm:$0xf] %vm3011_vm9, %v7116_v51  ;;  %7242 = vst.msk [vmem:[#allocation3 + $0x4c] sm:$0xf] %vm3011_vm9, %v7118_v34  ;;  %v7705_v51 = vld [vmem:[#allocation2 + $0x42] sm:$0xff]  ;;  %v14754_v34 = vpack.c.bf16 %v7706_v50, %v7706_v50 }
 0x6c3   :  { %7567 = vrot.lane.b32.xlu0 %v14731_v63, %s15281_s21  ;;  %7569 = vrot.lane.b32.xlu1 %v14732_v58, %s15281_s21  ;;  %v14753_v23 = vpack.c.bf16 %v7705_v51, %v7705_v51 }
 0x6c5   :  { %v7120_v6 = vpop.permute.xlu0 %7119  ;;  %v7122_v59 = vpop.permute.xlu1 %7121 }
 0x6c6   :  { %7243 = vst.msk [vmem:[#allocation3 + $0x50] sm:$0xf] %vm3011_vm9, %v7120_v6  ;;  %7244 = vst.msk [vmem:[#allocation3 + $0x54] sm:$0xf] %vm3011_vm9, %v7122_v59  ;;  %v7708_v6 = vld [vmem:[#allocation2 + $0x92] sm:$0xff] }
 0x6c7   :  { %7571 = vrot.lane.b32.xlu0 %v14733_v62, %s15281_s21  ;;  %7573 = vrot.lane.b32.xlu1 %v14734_v29, %s15281_s21  ;;  %v7707_v29 = vld [vmem:[#allocation2 + $0x82] sm:$0xff]  ;;  %v7710_v59 = vld [vmem:[#allocation2 + $0xb2] sm:$0xff]  ;;  %v14756_v55 = vpack.c.bf16 %v7708_v6, %v7708_v6 }
 0x6c8   :  { %v14755_v3 = vpack.c.bf16 %v7707_v29, %v7707_v29 }
 0x6c9   :  { %v7124_v9 = vpop.permute.xlu0 %7123  ;;  %v7126_v4 = vpop.permute.xlu1 %7125 }
 0x6ca   :  { %7245 = vst.msk [vmem:[#allocation3 + $0x58] sm:$0xf] %vm3011_vm9, %v7124_v9  ;;  %7246 = vst.msk [vmem:[#allocation3 + $0x5c] sm:$0xf] %vm3011_vm9, %v7126_v4  ;;  %v7709_v9 = vld [vmem:[#allocation2 + $0xa2] sm:$0xff]  ;;  %v14758_v4 = vpack.c.bf16 %v7710_v59, %v7710_v59 }
 0x6cb   :  { %7575 = vrot.lane.b32.xlu0 %v14735_v18, %s15281_s21  ;;  %7577 = vrot.lane.b32.xlu1 %v14736_v52, %s15281_s21  ;;  %v14757_v49 = vpack.c.bf16 %v7709_v9, %v7709_v9 }
 0x6cd   :  { %v7128_v41 = vpop.permute.xlu0 %7127  ;;  %v7130_v5 = vpop.permute.xlu1 %7129 }
 0x6ce   :  { %7247 = vst.msk [vmem:[#allocation3 + $0x60] sm:$0xf] %vm3011_vm9, %v7128_v41  ;;  %7248 = vst.msk [vmem:[#allocation3 + $0x64] sm:$0xf] %vm3011_vm9, %v7130_v5  ;;  %v7712_v41 = vld [vmem:[#allocation2 + $0xf2] sm:$0xff] }
 0x6cf   :  { %7579 = vrot.lane.b32.xlu0 %v14737_v8, %s15281_s21  ;;  %7581 = vrot.lane.b32.xlu1 %v14738_v37, %s15281_s21  ;;  %v7711_v37 = vld [vmem:[#allocation2 + $0xe2] sm:$0xff]  ;;  %v7714_v5 = vld [vmem:[#allocation2 + $0x112] sm:$0xff]  ;;  %v14760_v60 = vpack.c.bf16 %v7712_v41, %v7712_v41 }
 0x6d0   :  { %v14759_v47 = vpack.c.bf16 %v7711_v37, %v7711_v37 }
 0x6d1   :  { %v7132_v15 = vpop.permute.xlu0 %7131  ;;  %v7134_v7 = vpop.permute.xlu1 %7133 }
 0x6d2   :  { %7249 = vst.msk [vmem:[#allocation3 + $0x68] sm:$0xf] %vm3011_vm9, %v7132_v15  ;;  %7250 = vst.msk [vmem:[#allocation3 + $0x6c] sm:$0xf] %vm3011_vm9, %v7134_v7  ;;  %v7713_v15 = vld [vmem:[#allocation2 + $0x102] sm:$0xff]  ;;  %v14762_v7 = vpack.c.bf16 %v7714_v5, %v7714_v5 }
 0x6d3   :  { %7583 = vrot.lane.b32.xlu0 %v14739_v22, %s15281_s21  ;;  %7585 = vrot.lane.b32.xlu1 %v14740_v20, %s15281_s21  ;;  %v14761_v12 = vpack.c.bf16 %v7713_v15, %v7713_v15 }
 0x6d5   :  { %v7136_v46 = vpop.permute.xlu0 %7135  ;;  %v7138_v17 = vpop.permute.xlu1 %7137 }
 0x6d6   :  { %7251 = vst.msk [vmem:[#allocation3 + $0x70] sm:$0xf] %vm3011_vm9, %v7136_v46  ;;  %7252 = vst.msk [vmem:[#allocation3 + $0x74] sm:$0xf] %vm3011_vm9, %v7138_v17  ;;  %v7716_v46 = vld [vmem:[#allocation2 + $0x152] sm:$0xff] }
 0x6d7   :  { %7587 = vrot.lane.b32.xlu0 %v14741_v32, %s15281_s21  ;;  %7589 = vrot.lane.b32.xlu1 %v14742_v40, %s15281_s21  ;;  %v7715_v40 = vld [vmem:[#allocation2 + $0x142] sm:$0xff]  ;;  %v7718_v17 = vld [vmem:[#allocation2 + $0x172] sm:$0xff]  ;;  %v14764_v0 = vpack.c.bf16 %v7716_v46, %v7716_v46 }
 0x6d8   :  { %v14763_v27 = vpack.c.bf16 %v7715_v40, %v7715_v40 }
 0x6d9   :  { %v7140_v24 = vpop.permute.xlu0 %7139  ;;  %v7142_v43 = vpop.permute.xlu1 %7141 }
 0x6da   :  { %7253 = vst.msk [vmem:[#allocation3 + $0x78] sm:$0xf] %vm3011_vm9, %v7140_v24  ;;  %7254 = vst.msk [vmem:[#allocation3 + $0x7c] sm:$0xf] %vm3011_vm9, %v7142_v43  ;;  %v7717_v24 = vld [vmem:[#allocation2 + $0x162] sm:$0xff]  ;;  %v14766_v43 = vpack.c.bf16 %v7718_v17, %v7718_v17 }
 0x6db   :  { %7591 = vrot.lane.b32.xlu0 %v14743_v35, %s15281_s21  ;;  %7593 = vrot.lane.b32.xlu1 %v14744_v57, %s15281_s21  ;;  %v14765_v48 = vpack.c.bf16 %v7717_v24, %v7717_v24 }
 0x6dd   :  { %v7144_v19 = vpop.permute.xlu0 %7143  ;;  %v7146_v36 = vpop.permute.xlu1 %7145 }
 0x6de   :  { %7255 = vst.msk [vmem:[#allocation3 + $0x80] sm:$0xf] %vm3011_vm9, %v7144_v19  ;;  %7256 = vst.msk [vmem:[#allocation3 + $0x84] sm:$0xf] %vm3011_vm9, %v7146_v36  ;;  %v7720_v19 = vld [vmem:[#allocation2 + $0x1b2] sm:$0xff] }
 0x6df   :  { %7595 = vrot.lane.b32.xlu0 %v14745_v38, %s15281_s21  ;;  %7597 = vrot.lane.b32.xlu1 %v14746_v42, %s15281_s21  ;;  %v7719_v42 = vld [vmem:[#allocation2 + $0x1a2] sm:$0xff]  ;;  %v7722_v36 = vld [vmem:[#allocation2 + $0x1d2] sm:$0xff]  ;;  %v14768_v25 = vpack.c.bf16 %v7720_v19, %v7720_v19 }
 0x6e0   :  { %v14767_v39 = vpack.c.bf16 %v7719_v42, %v7719_v42 }
 0x6e1   :  { %v7148_v45 = vpop.permute.xlu0 %7147  ;;  %v7150_v56 = vpop.permute.xlu1 %7149 }
 0x6e2   :  { %7257 = vst.msk [vmem:[#allocation3 + $0x88] sm:$0xf] %vm3011_vm9, %v7148_v45  ;;  %7258 = vst.msk [vmem:[#allocation3 + $0x8c] sm:$0xf] %vm3011_vm9, %v7150_v56  ;;  %v7721_v45 = vld [vmem:[#allocation2 + $0x1c2] sm:$0xff]  ;;  %v14770_v56 = vpack.c.bf16 %v7722_v36, %v7722_v36 }
 0x6e3   :  { %7599 = vrot.lane.b32.xlu0 %v14747_v1, %s15281_s21  ;;  %7601 = vrot.lane.b32.xlu1 %v14748_v16, %s15281_s21  ;;  %v14769_v31 = vpack.c.bf16 %v7721_v45, %v7721_v45 }
 0x6e5   :  { %v7152_v61 = vpop.permute.xlu0 %7151  ;;  %v7154_v14 = vpop.permute.xlu1 %7153 }
 0x6e6   :  { %7259 = vst.msk [vmem:[#allocation3 + $0x90] sm:$0xf] %vm3011_vm9, %v7152_v61  ;;  %7260 = vst.msk [vmem:[#allocation3 + $0x94] sm:$0xf] %vm3011_vm9, %v7154_v14  ;;  %v7724_v61 = vld [vmem:[#allocation2 + $0x212] sm:$0xff] }
 0x6e7   :  { %7603 = vrot.lane.b32.xlu0 %v14749_v10, %s15281_s21  ;;  %7605 = vrot.lane.b32.xlu1 %v14750_v30, %s15281_s21  ;;  %v7723_v30 = vld [vmem:[#allocation2 + $0x202] sm:$0xff]  ;;  %v7726_v14 = vld [vmem:[#allocation2 + $0x232] sm:$0xff]  ;;  %v14772_v50 = vpack.c.bf16 %v7724_v61, %v7724_v61 }
 0x6e8   :  { %v14771_v53 = vpack.c.bf16 %v7723_v30, %v7723_v30 }
 0x6e9   :  { %v7156_v11 = vpop.permute.xlu0 %7155  ;;  %v7158_v28 = vpop.permute.xlu1 %7157 }
 0x6ea   :  { %7261 = vst.msk [vmem:[#allocation3 + $0x98] sm:$0xf] %vm3011_vm9, %v7156_v11  ;;  %7262 = vst.msk [vmem:[#allocation3 + $0x9c] sm:$0xf] %vm3011_vm9, %v7158_v28  ;;  %v7725_v11 = vld [vmem:[#allocation2 + $0x222] sm:$0xff]  ;;  %v14774_v28 = vpack.c.bf16 %v7726_v14, %v7726_v14 }
 0x6eb   :  { %7943 = vrot.lane.b32.xlu0 %v14751_v21, %s15282_s1  ;;  %7945 = vrot.lane.b32.xlu1 %v14752_v2, %s15282_s1  ;;  %v14773_v51 = vpack.c.bf16 %v7725_v11, %v7725_v11 }
 0x6ed   :  { %v7160_v63 = vpop.permute.xlu0 %7159  ;;  %v7162_v58 = vpop.permute.xlu1 %7161 }
 0x6ee   :  { %7263 = vst.msk [vmem:[#allocation3 + $0xa0] sm:$0xf] %vm3011_vm9, %v7160_v63  ;;  %7264 = vst.msk [vmem:[#allocation3 + $0xa4] sm:$0xf] %vm3011_vm9, %v7162_v58  ;;  %v7728_v63 = vld [vmem:[#allocation2 + $0x272] sm:$0xff] }
 0x6ef   :  { %7947 = vrot.lane.b32.xlu0 %v14753_v23, %s15282_s1  ;;  %7949 = vrot.lane.b32.xlu1 %v14754_v34, %s15282_s1  ;;  %v7727_v34 = vld [vmem:[#allocation2 + $0x262] sm:$0xff]  ;;  %v7730_v58 = vld [vmem:[#allocation2 + $0x292] sm:$0xff]  ;;  %v14776_v59 = vpack.c.bf16 %v7728_v63, %v7728_v63 }
 0x6f0   :  { %v14775_v6 = vpack.c.bf16 %v7727_v34, %v7727_v34 }
 0x6f1   :  { %v7164_v62 = vpop.permute.xlu0 %7163  ;;  %v7166_v26 = vpop.permute.xlu1 %7165 }
 0x6f2   :  { %7265 = vst.msk [vmem:[#allocation3 + $0xa8] sm:$0xf] %vm3011_vm9, %v7164_v62  ;;  %7266 = vst.msk [vmem:[#allocation3 + $0xac] sm:$0xf] %vm3011_vm9, %v7166_v26  ;;  %v7729_v62 = vld [vmem:[#allocation2 + $0x282] sm:$0xff]  ;;  %v14778_v26 = vpack.c.bf16 %v7730_v58, %v7730_v58 }
 0x6f3   :  { %7951 = vrot.lane.b32.xlu0 %v14755_v3, %s15282_s1  ;;  %7953 = vrot.lane.b32.xlu1 %v14756_v55, %s15282_s1  ;;  %v14777_v9 = vpack.c.bf16 %v7729_v62, %v7729_v62 }
 0x6f5   :  { %v7168_v18 = vpop.permute.xlu0 %7167  ;;  %v7170_v52 = vpop.permute.xlu1 %7169 }
 0x6f6   :  { %7267 = vst.msk [vmem:[#allocation3 + $0xb0] sm:$0xf] %vm3011_vm9, %v7168_v18  ;;  %7268 = vst.msk [vmem:[#allocation3 + $0xb4] sm:$0xf] %vm3011_vm9, %v7170_v52  ;;  %v7732_v18 = vld [vmem:[#allocation2 + $0x2d2] sm:$0xff] }
 0x6f7   :  { %7955 = vrot.lane.b32.xlu0 %v14757_v49, %s15282_s1  ;;  %7957 = vrot.lane.b32.xlu1 %v14758_v4, %s15282_s1  ;;  %v7731_v4 = vld [vmem:[#allocation2 + $0x2c2] sm:$0xff]  ;;  %v7734_v52 = vld [vmem:[#allocation2 + $0x2f2] sm:$0xff]  ;;  %v14780_v5 = vpack.c.bf16 %v7732_v18, %v7732_v18 }
 0x6f8   :  { %v14779_v41 = vpack.c.bf16 %v7731_v4, %v7731_v4 }
 0x6f9   :  { %v7172_v8 = vpop.permute.xlu0 %7171  ;;  %v7174_v13 = vpop.permute.xlu1 %7173 }
 0x6fa   :  { %7269 = vst.msk [vmem:[#allocation3 + $0xb8] sm:$0xf] %vm3011_vm9, %v7172_v8  ;;  %7270 = vst.msk [vmem:[#allocation3 + $0xbc] sm:$0xf] %vm3011_vm9, %v7174_v13  ;;  %v7733_v8 = vld [vmem:[#allocation2 + $0x2e2] sm:$0xff]  ;;  %v14782_v13 = vpack.c.bf16 %v7734_v52, %v7734_v52  ;;  %vm12936_vm9 = vcmask 851712  }
 0x6fb   :  { %7959 = vrot.lane.b32.xlu0 %v14759_v47, %s15282_s1  ;;  %7961 = vrot.lane.b32.xlu1 %v14760_v60, %s15282_s1  ;;  %v14781_v15 = vpack.c.bf16 %v7733_v8, %v7733_v8 }
 0x6fd   :  { %v7512_v22 = vpop.permute.xlu0 %7511  ;;  %v7514_v20 = vpop.permute.xlu1 %7513 }
 0x6fe   :  { %7655 = vst.msk [vmem:[#allocation3] sm:$0xf] %vm3444_vm11, %v7512_v22  ;;  %7656 = vst.msk [vmem:[#allocation3 + $0x4] sm:$0xf] %vm3444_vm11, %v7514_v20  ;;  %v7736_v22 = vld [vmem:[#allocation2 + $0x332] sm:$0xff] }
 0x6ff   :  { %7963 = vrot.lane.b32.xlu0 %v14761_v12, %s15282_s1  ;;  %7965 = vrot.lane.b32.xlu1 %v14762_v7, %s15282_s1  ;;  %v7735_v7 = vld [vmem:[#allocation2 + $0x322] sm:$0xff]  ;;  %v7738_v20 = vld [vmem:[#allocation2 + $0x352] sm:$0xff]  ;;  %v14784_v17 = vpack.c.bf16 %v7736_v22, %v7736_v22  ;;  %v17920_v22 = vld [vmem:[%s19486_s3] ss:$0 sm:$0xff] }
 0x700   :  { %v14783_v46 = vpack.c.bf16 %v7735_v7, %v7735_v7 }
 0x701   :  { %v7516_v32 = vpop.permute.xlu0 %7515  ;;  %v7518_v33 = vpop.permute.xlu1 %7517 }
 0x702   :  { %7657 = vst.msk [vmem:[#allocation3 + $0x8] sm:$0xf] %vm3444_vm11, %v7516_v32  ;;  %7658 = vst.msk [vmem:[#allocation3 + $0xc] sm:$0xf] %vm3444_vm11, %v7518_v33  ;;  %v7737_v32 = vld [vmem:[#allocation2 + $0x342] sm:$0xff]  ;;  %v14786_v33 = vpack.c.bf16 %v7738_v20, %v7738_v20 }
 0x703   :  { %7967 = vrot.lane.b32.xlu0 %v14763_v27, %s15282_s1  ;;  %7969 = vrot.lane.b32.xlu1 %v14764_v0, %s15282_s1  ;;  %v14785_v24 = vpack.c.bf16 %v7737_v32, %v7737_v32 }
 0x705   :  { %v7520_v35 = vpop.permute.xlu0 %7519  ;;  %v7522_v57 = vpop.permute.xlu1 %7521 }
 0x706   :  { %7659 = vst.msk [vmem:[#allocation3 + $0x10] sm:$0xf] %vm3444_vm11, %v7520_v35  ;;  %7660 = vst.msk [vmem:[#allocation3 + $0x14] sm:$0xf] %vm3444_vm11, %v7522_v57  ;;  %v7740_v35 = vld [vmem:[#allocation2 + $0x392] sm:$0xff] }
 0x707   :  { %7971 = vrot.lane.b32.xlu0 %v14765_v48, %s15282_s1  ;;  %7973 = vrot.lane.b32.xlu1 %v14766_v43, %s15282_s1  ;;  %v7739_v43 = vld [vmem:[#allocation2 + $0x382] sm:$0xff]  ;;  %v7742_v57 = vld [vmem:[#allocation2 + $0x3b2] sm:$0xff]  ;;  %v14788_v36 = vpack.c.bf16 %v7740_v35, %v7740_v35 }
 0x708   :  { %v14787_v19 = vpack.c.bf16 %v7739_v43, %v7739_v43 }
 0x709   :  { %v7524_v38 = vpop.permute.xlu0 %7523  ;;  %v7526_v54 = vpop.permute.xlu1 %7525 }
 0x70a   :  { %7661 = vst.msk [vmem:[#allocation3 + $0x18] sm:$0xf] %vm3444_vm11, %v7524_v38  ;;  %7662 = vst.msk [vmem:[#allocation3 + $0x1c] sm:$0xf] %vm3444_vm11, %v7526_v54  ;;  %v7741_v38 = vld [vmem:[#allocation2 + $0x3a2] sm:$0xff]  ;;  %v14790_v54 = vpack.c.bf16 %v7742_v57, %v7742_v57 }
 0x70b   :  { %7975 = vrot.lane.b32.xlu0 %v14767_v39, %s15282_s1  ;;  %7977 = vrot.lane.b32.xlu1 %v14768_v25, %s15282_s1  ;;  %v14789_v45 = vpack.c.bf16 %v7741_v38, %v7741_v38 }
 0x70d   :  { %v7528_v1 = vpop.permute.xlu0 %7527  ;;  %v7530_v16 = vpop.permute.xlu1 %7529 }
 0x70e   :  { %7663 = vst.msk [vmem:[#allocation3 + $0x20] sm:$0xf] %vm3444_vm11, %v7528_v1  ;;  %7664 = vst.msk [vmem:[#allocation3 + $0x24] sm:$0xf] %vm3444_vm11, %v7530_v16  ;;  %v7744_v1 = vld [vmem:[#allocation2 + $0x3f2] sm:$0xff] }
 0x70f   :  { %7979 = vrot.lane.b32.xlu0 %v14769_v31, %s15282_s1  ;;  %7981 = vrot.lane.b32.xlu1 %v14770_v56, %s15282_s1  ;;  %v7743_v56 = vld [vmem:[#allocation2 + $0x3e2] sm:$0xff]  ;;  %v7746_v16 = vld [vmem:[#allocation2 + $0x412] sm:$0xff]  ;;  %v14792_v14 = vpack.c.bf16 %v7744_v1, %v7744_v1 }
 0x710   :  { %v14791_v61 = vpack.c.bf16 %v7743_v56, %v7743_v56 }
 0x711   :  { %v7532_v10 = vpop.permute.xlu0 %7531  ;;  %v7534_v44 = vpop.permute.xlu1 %7533 }
 0x712   :  { %7665 = vst.msk [vmem:[#allocation3 + $0x28] sm:$0xf] %vm3444_vm11, %v7532_v10  ;;  %7666 = vst.msk [vmem:[#allocation3 + $0x2c] sm:$0xf] %vm3444_vm11, %v7534_v44  ;;  %v7745_v10 = vld [vmem:[#allocation2 + $0x402] sm:$0xff]  ;;  %v14794_v44 = vpack.c.bf16 %v7746_v16, %v7746_v16 }
 0x713   :  { %7983 = vrot.lane.b32.xlu0 %v14771_v53, %s15282_s1  ;;  %7985 = vrot.lane.b32.xlu1 %v14772_v50, %s15282_s1  ;;  %v14793_v11 = vpack.c.bf16 %v7745_v10, %v7745_v10 }
 0x715   :  { %v7536_v21 = vpop.permute.xlu0 %7535  ;;  %v7538_v2 = vpop.permute.xlu1 %7537 }
 0x716   :  { %7667 = vst.msk [vmem:[#allocation3 + $0x30] sm:$0xf] %vm3444_vm11, %v7536_v21  ;;  %7668 = vst.msk [vmem:[#allocation3 + $0x34] sm:$0xf] %vm3444_vm11, %v7538_v2  ;;  %v7748_v21 = vld [vmem:[#allocation2 + $0x452] sm:$0xff] }
 0x717   :  { %7987 = vrot.lane.b32.xlu0 %v14773_v51, %s15282_s1  ;;  %7989 = vrot.lane.b32.xlu1 %v14774_v28, %s15282_s1  ;;  %v7747_v28 = vld [vmem:[#allocation2 + $0x442] sm:$0xff]  ;;  %v7750_v2 = vld [vmem:[#allocation2 + $0x472] sm:$0xff]  ;;  %v14796_v58 = vpack.c.bf16 %v7748_v21, %v7748_v21 }
 0x718   :  { %v14795_v63 = vpack.c.bf16 %v7747_v28, %v7747_v28 }
 0x719   :  { %v7540_v23 = vpop.permute.xlu0 %7539  ;;  %v7542_v29 = vpop.permute.xlu1 %7541 }
 0x71a   :  { %7669 = vst.msk [vmem:[#allocation3 + $0x38] sm:$0xf] %vm3444_vm11, %v7540_v23  ;;  %7670 = vst.msk [vmem:[#allocation3 + $0x3c] sm:$0xf] %vm3444_vm11, %v7542_v29  ;;  %v7749_v23 = vld [vmem:[#allocation2 + $0x462] sm:$0xff]  ;;  %v14798_v29 = vpack.c.bf16 %v7750_v2, %v7750_v2 }
 0x71b   :  { %7991 = vrot.lane.b32.xlu0 %v14775_v6, %s15282_s1  ;;  %7993 = vrot.lane.b32.xlu1 %v14776_v59, %s15282_s1  ;;  %v14797_v62 = vpack.c.bf16 %v7749_v23, %v7749_v23 }
 0x71d   :  { %v7544_v3 = vpop.permute.xlu0 %7543  ;;  %v7546_v55 = vpop.permute.xlu1 %7545 }
 0x71e   :  { %7671 = vst.msk [vmem:[#allocation3 + $0x40] sm:$0xf] %vm3444_vm11, %v7544_v3  ;;  %7672 = vst.msk [vmem:[#allocation3 + $0x44] sm:$0xf] %vm3444_vm11, %v7546_v55 }
 0x71f   :  { %7995 = vrot.lane.b32.xlu0 %v14777_v9, %s15282_s1  ;;  %7997 = vrot.lane.b32.xlu1 %v14778_v26, %s15282_s1 }
 0x721   :  { %v7548_v49 = vpop.permute.xlu0 %7547  ;;  %v7550_v37 = vpop.permute.xlu1 %7549 }
 0x722   :  { %7673 = vst.msk [vmem:[#allocation3 + $0x48] sm:$0xf] %vm3444_vm11, %v7548_v49  ;;  %7674 = vst.msk [vmem:[#allocation3 + $0x4c] sm:$0xf] %vm3444_vm11, %v7550_v37 }
 0x723   :  { %7999 = vrot.lane.b32.xlu0 %v14779_v41, %s15282_s1  ;;  %8001 = vrot.lane.b32.xlu1 %v14780_v5, %s15282_s1 }
 0x725   :  { %v7552_v47 = vpop.permute.xlu0 %7551  ;;  %v7554_v60 = vpop.permute.xlu1 %7553 }
 0x726   :  { %7675 = vst.msk [vmem:[#allocation3 + $0x50] sm:$0xf] %vm3444_vm11, %v7552_v47  ;;  %7676 = vst.msk [vmem:[#allocation3 + $0x54] sm:$0xf] %vm3444_vm11, %v7554_v60 }
 0x727   :  { %8003 = vrot.lane.b32.xlu0 %v14781_v15, %s15282_s1  ;;  %8005 = vrot.lane.b32.xlu1 %v14782_v13, %s15282_s1 }
 0x729   :  { %v7556_v12 = vpop.permute.xlu0 %7555  ;;  %v7558_v40 = vpop.permute.xlu1 %7557 }
 0x72a   :  { %7677 = vst.msk [vmem:[#allocation3 + $0x58] sm:$0xf] %vm3444_vm11, %v7556_v12  ;;  %7678 = vst.msk [vmem:[#allocation3 + $0x5c] sm:$0xf] %vm3444_vm11, %v7558_v40 }
 0x72b   :  { %8007 = vrot.lane.b32.xlu0 %v14783_v46, %s15282_s1  ;;  %8009 = vrot.lane.b32.xlu1 %v14784_v17, %s15282_s1 }
 0x72d   :  { %v7560_v27 = vpop.permute.xlu0 %7559  ;;  %v7562_v0 = vpop.permute.xlu1 %7561 }
 0x72e   :  { %7679 = vst.msk [vmem:[#allocation3 + $0x60] sm:$0xf] %vm3444_vm11, %v7560_v27  ;;  %7680 = vst.msk [vmem:[#allocation3 + $0x64] sm:$0xf] %vm3444_vm11, %v7562_v0 }
 0x72f   :  { %8011 = vrot.lane.b32.xlu0 %v14785_v24, %s15282_s1  ;;  %8013 = vrot.lane.b32.xlu1 %v14786_v33, %s15282_s1 }
 0x731   :  { %v7564_v48 = vpop.permute.xlu0 %7563  ;;  %v7566_v42 = vpop.permute.xlu1 %7565 }
 0x732   :  { %7681 = vst.msk [vmem:[#allocation3 + $0x68] sm:$0xf] %vm3444_vm11, %v7564_v48  ;;  %7682 = vst.msk [vmem:[#allocation3 + $0x6c] sm:$0xf] %vm3444_vm11, %v7566_v42 }
 0x733   :  { %8015 = vrot.lane.b32.xlu0 %v14787_v19, %s15282_s1  ;;  %8017 = vrot.lane.b32.xlu1 %v14788_v36, %s15282_s1 }
 0x735   :  { %v7568_v39 = vpop.permute.xlu0 %7567  ;;  %v7570_v25 = vpop.permute.xlu1 %7569 }
 0x736   :  { %7683 = vst.msk [vmem:[#allocation3 + $0x70] sm:$0xf] %vm3444_vm11, %v7568_v39  ;;  %7684 = vst.msk [vmem:[#allocation3 + $0x74] sm:$0xf] %vm3444_vm11, %v7570_v25 }
 0x737   :  { %8019 = vrot.lane.b32.xlu0 %v14789_v45, %s15282_s1  ;;  %8021 = vrot.lane.b32.xlu1 %v14790_v54, %s15282_s1 }
 0x739   :  { %v7572_v31 = vpop.permute.xlu0 %7571  ;;  %v7574_v30 = vpop.permute.xlu1 %7573 }
 0x73a   :  { %7685 = vst.msk [vmem:[#allocation3 + $0x78] sm:$0xf] %vm3444_vm11, %v7572_v31  ;;  %7686 = vst.msk [vmem:[#allocation3 + $0x7c] sm:$0xf] %vm3444_vm11, %v7574_v30 }
 0x73b   :  { %8023 = vrot.lane.b32.xlu0 %v14791_v61, %s15282_s1  ;;  %8025 = vrot.lane.b32.xlu1 %v14792_v14, %s15282_s1 }
 0x73d   :  { %v7576_v53 = vpop.permute.xlu0 %7575  ;;  %v7578_v50 = vpop.permute.xlu1 %7577 }
 0x73e   :  { %7687 = vst.msk [vmem:[#allocation3 + $0x80] sm:$0xf] %vm3444_vm11, %v7576_v53  ;;  %7688 = vst.msk [vmem:[#allocation3 + $0x84] sm:$0xf] %vm3444_vm11, %v7578_v50 }
 0x73f   :  { %8027 = vrot.lane.b32.xlu0 %v14793_v11, %s15282_s1  ;;  %8029 = vrot.lane.b32.xlu1 %v14794_v44, %s15282_s1 }
 0x741   :  { %v7580_v51 = vpop.permute.xlu0 %7579  ;;  %v7582_v34 = vpop.permute.xlu1 %7581 }
 0x742   :  { %7689 = vst.msk [vmem:[#allocation3 + $0x88] sm:$0xf] %vm3444_vm11, %v7580_v51  ;;  %7690 = vst.msk [vmem:[#allocation3 + $0x8c] sm:$0xf] %vm3444_vm11, %v7582_v34 }
 0x743   :  { %8031 = vrot.lane.b32.xlu0 %v14795_v63, %s15282_s1  ;;  %8033 = vrot.lane.b32.xlu1 %v14796_v58, %s15282_s1 }
 0x745   :  { %v7584_v6 = vpop.permute.xlu0 %7583  ;;  %v7586_v59 = vpop.permute.xlu1 %7585 }
 0x746   :  { %7691 = vst.msk [vmem:[#allocation3 + $0x90] sm:$0xf] %vm3444_vm11, %v7584_v6  ;;  %7692 = vst.msk [vmem:[#allocation3 + $0x94] sm:$0xf] %vm3444_vm11, %v7586_v59 }
 0x747   :  { %8035 = vrot.lane.b32.xlu0 %v14797_v62, %s15282_s1  ;;  %8037 = vrot.lane.b32.xlu1 %v14798_v29, %s15282_s1 }
 0x749   :  { %v7588_v26 = vpop.permute.xlu0 %7587  ;;  %v7590_v3 = vpop.permute.xlu1 %7589 }
 0x74a   :  { %7693 = vst.msk [vmem:[#allocation3 + $0x98] sm:$0xf] %vm3444_vm11, %v7588_v26  ;;  %7694 = vst.msk [vmem:[#allocation3 + $0x9c] sm:$0xf] %vm3444_vm11, %v7590_v3 }
 0x74d   :  { %v7592_v55 = vpop.permute.xlu0 %7591  ;;  %v7594_v9 = vpop.permute.xlu1 %7593 }
 0x74e   :  { %7695 = vst.msk [vmem:[#allocation3 + $0xa0] sm:$0xf] %vm3444_vm11, %v7592_v55  ;;  %7696 = vst.msk [vmem:[#allocation3 + $0xa4] sm:$0xf] %vm3444_vm11, %v7594_v9 }
 0x751   :  { %v7596_v4 = vpop.permute.xlu0 %7595  ;;  %v7598_v18 = vpop.permute.xlu1 %7597 }
 0x752   :  { %7697 = vst.msk [vmem:[#allocation3 + $0xa8] sm:$0xf] %vm3444_vm11, %v7596_v4  ;;  %7698 = vst.msk [vmem:[#allocation3 + $0xac] sm:$0xf] %vm3444_vm11, %v7598_v18 }
 0x755   :  { %v7600_v52 = vpop.permute.xlu0 %7599  ;;  %v7602_v49 = vpop.permute.xlu1 %7601 }
 0x756   :  { %7699 = vst.msk [vmem:[#allocation3 + $0xb0] sm:$0xf] %vm3444_vm11, %v7600_v52  ;;  %7700 = vst.msk [vmem:[#allocation3 + $0xb4] sm:$0xf] %vm3444_vm11, %v7602_v49 }
 0x759   :  { %v7604_v37 = vpop.permute.xlu0 %7603  ;;  %v7606_v41 = vpop.permute.xlu1 %7605 }
 0x75a   :  { %7701 = vst.msk [vmem:[#allocation3 + $0xb8] sm:$0xf] %vm3444_vm11, %v7604_v37  ;;  %7702 = vst.msk [vmem:[#allocation3 + $0xbc] sm:$0xf] %vm3444_vm11, %v7606_v41  ;;  %vm12950_vm11 = vcmask 982912  }
 0x75d   :  { %v7944_v5 = vpop.permute.xlu0 %7943  ;;  %v7946_v8 = vpop.permute.xlu1 %7945 }
 0x75e   :  { %8087 = vst.msk [vmem:[#allocation3] sm:$0xf] %vm3877_vm12, %v7944_v5  ;;  %8088 = vst.msk [vmem:[#allocation3 + $0x4] sm:$0xf] %vm3877_vm12, %v7946_v8 }
 0x761   :  { %v7948_v13 = vpop.permute.xlu0 %7947  ;;  %v7950_v47 = vpop.permute.xlu1 %7949 }
 0x762   :  { %8089 = vst.msk [vmem:[#allocation3 + $0x8] sm:$0xf] %vm3877_vm12, %v7948_v13  ;;  %8090 = vst.msk [vmem:[#allocation3 + $0xc] sm:$0xf] %vm3877_vm12, %v7950_v47 }
 0x765   :  { %v7952_v60 = vpop.permute.xlu0 %7951  ;;  %v7954_v15 = vpop.permute.xlu1 %7953  ;;  %v14800_v7 = vld [vmem:[#allocation3] sm:$0xff]  }
 0x766   :  { %8091 = vst.msk [vmem:[#allocation3 + $0x10] sm:$0xf] %vm3877_vm12, %v7952_v60  ;;  %8092 = vst.msk [vmem:[#allocation3 + $0x14] sm:$0xf] %vm3877_vm12, %v7954_v15  ;;  %v14802_v20 = vunpack.c.h.bf16 %v14800_v7  ;;  %v14801_v12 = vunpack.c.l.bf16 %v14800_v7 }
 0x768   :  { %v8239_v40 = vmul.f32 %v14802_v20, %v17920_v22  ;;  %v8238_v46 = vmul.f32 %v14801_v12, %v17920_v22 }
 0x769   :  { %v7956_v17 = vpop.permute.xlu0 %7955  ;;  %v7958_v32 = vpop.permute.xlu1 %7957  ;;  %v14895_v33 = vld [vmem:[#allocation3 + $0x8] sm:$0xff]  }
 0x76a   :  { %8093 = vst.msk [vmem:[#allocation3 + $0x18] sm:$0xf] %vm3877_vm12, %v7956_v17  ;;  %8094 = vst.msk [vmem:[#allocation3 + $0x1c] sm:$0xf] %vm3877_vm12, %v7958_v32  ;;  %v8289_v27 = vsel %vm4137_vm13, %v8239_v40, 0.0  ;;  %v8286_v0 = vsel %vm4137_vm13, %v8238_v46, 0.0  ;;  %v14805_v24 = vunpack.c.l.bf16 %v14895_v33  ;;  %v14806_v43 = vunpack.c.h.bf16 %v14895_v33 }
 0x76b   :  { %8290 = vadd.xlane.f32.xlu1 %v8289_v27  ;;  %8287 = vadd.xlane.f32.xlu0 %v8286_v0 }
 0x76c   :  { %v8240_v35 = vmul.f32 %v14805_v24, %v17920_v22  ;;  %v8241_v19 = vmul.f32 %v14806_v43, %v17920_v22 }
 0x76d   :  { %v7960_v57 = vpop.permute.xlu0 %7959  ;;  %v7962_v48 = vpop.permute.xlu1 %7961  ;;  %v14896_v42 = vld [vmem:[#allocation3 + $0x10] sm:$0xff]  }
 0x76e   :  { %8095 = vst.msk [vmem:[#allocation3 + $0x20] sm:$0xf] %vm3877_vm12, %v7960_v57  ;;  %8096 = vst.msk [vmem:[#allocation3 + $0x24] sm:$0xf] %vm3877_vm12, %v7962_v48  ;;  %v8292_v36 = vsel %vm4137_vm13, %v8240_v35, 0.0  ;;  %v14809_v38 = vunpack.c.l.bf16 %v14896_v42  ;;  %v14810_v54 = vunpack.c.h.bf16 %v14896_v42  ;;  %v8295_v56 = vsel %vm4137_vm13, %v8241_v19, 0.0 }
 0x76f   :  { %8293 = vadd.xlane.f32.xlu0 %v8292_v36 }
 0x770   :  { %v8242_v39 = vmul.f32 %v14809_v38, %v17920_v22  ;;  %v8243_v30 = vmul.f32 %v14810_v54, %v17920_v22 }
 0x771   :  { %v7964_v25 = vpop.permute.xlu0 %7963  ;;  %v7966_v45 = vpop.permute.xlu1 %7965  ;;  %v14897_v1 = vld [vmem:[#allocation3 + $0x18] sm:$0xff]  }
 0x772   :  { %8097 = vst.msk [vmem:[#allocation3 + $0x28] sm:$0xf] %vm3877_vm12, %v7964_v25  ;;  %8098 = vst.msk [vmem:[#allocation3 + $0x2c] sm:$0xf] %vm3877_vm12, %v7966_v45  ;;  %v8298_v16 = vsel %vm4137_vm13, %v8242_v39, 0.0  ;;  %v14813_v31 = vunpack.c.l.bf16 %v14897_v1  ;;  %v14814_v61 = vunpack.c.h.bf16 %v14897_v1  ;;  %v8301_v28 = vsel %vm4137_vm13, %v8243_v30, 0.0 }
 0x773   :  { %8299 = vadd.xlane.f32.xlu1 %v8298_v16  ;;  %8296 = vadd.xlane.f32.xlu0 %v8295_v56 }
 0x774   :  { %v8244_v14 = vmul.f32 %v14813_v31, %v17920_v22  ;;  %v8245_v50 = vmul.f32 %v14814_v61, %v17920_v22 }
 0x775   :  { %v7968_v10 = vpop.permute.xlu0 %7967  ;;  %v7970_v44 = vpop.permute.xlu1 %7969  ;;  %v14898_v53 = vld [vmem:[#allocation3 + $0x20] sm:$0xff]  }
 0x776   :  { %8099 = vst.msk [vmem:[#allocation3 + $0x30] sm:$0xf] %vm3877_vm12, %v7968_v10  ;;  %8100 = vst.msk [vmem:[#allocation3 + $0x34] sm:$0xf] %vm3877_vm12, %v7970_v44  ;;  %v8304_v11 = vsel %vm4137_vm13, %v8244_v14, 0.0  ;;  %v14817_v21 = vunpack.c.l.bf16 %v14898_v53  ;;  %v14818_v2 = vunpack.c.h.bf16 %v14898_v53  ;;  %v8307_v58 = vsel %vm4137_vm13, %v8245_v50, 0.0 }
 0x777   :  { %8305 = vadd.xlane.f32.xlu1 %v8304_v11  ;;  %8302 = vadd.xlane.f32.xlu0 %v8301_v28 }
 0x778   :  { %v8246_v51 = vmul.f32 %v14817_v21, %v17920_v22  ;;  %v8247_v59 = vmul.f32 %v14818_v2, %v17920_v22 }
 0x779   :  { %v7972_v34 = vpop.permute.xlu0 %7971  ;;  %v7974_v63 = vpop.permute.xlu1 %7973  ;;  %v14899_v23 = vld [vmem:[#allocation3 + $0x28] sm:$0xff]  }
 0x77a   :  { %8101 = vst.msk [vmem:[#allocation3 + $0x38] sm:$0xf] %vm3877_vm12, %v7972_v34  ;;  %8102 = vst.msk [vmem:[#allocation3 + $0x3c] sm:$0xf] %vm3877_vm12, %v7974_v63  ;;  %v8310_v29 = vsel %vm4137_vm13, %v8246_v51, 0.0  ;;  %v14821_v6 = vunpack.c.l.bf16 %v14899_v23  ;;  %v14822_v62 = vunpack.c.h.bf16 %v14899_v23  ;;  %v8313_v52 = vsel %vm4137_vm13, %v8247_v59, 0.0 }
 0x77b   :  { %8311 = vadd.xlane.f32.xlu1 %v8310_v29  ;;  %8308 = vadd.xlane.f32.xlu0 %v8307_v58 }
 0x77c   :  { %v8248_v26 = vmul.f32 %v14821_v6, %v17920_v22  ;;  %v8249_v4 = vmul.f32 %v14822_v62, %v17920_v22 }
 0x77d   :  { %v7976_v3 = vpop.permute.xlu0 %7975  ;;  %v7978_v55 = vpop.permute.xlu1 %7977  ;;  %v14900_v9 = vld [vmem:[#allocation3 + $0x30] sm:$0xff]  }
 0x77e   :  { %8103 = vst.msk [vmem:[#allocation3 + $0x40] sm:$0xf] %vm3877_vm12, %v7976_v3  ;;  %8104 = vst.msk [vmem:[#allocation3 + $0x44] sm:$0xf] %vm3877_vm12, %v7978_v55  ;;  %v8316_v18 = vsel %vm4137_vm13, %v8248_v26, 0.0  ;;  %v14825_v49 = vunpack.c.l.bf16 %v14900_v9  ;;  %v14826_v37 = vunpack.c.h.bf16 %v14900_v9  ;;  %v8319_v13 = vsel %vm4137_vm13, %v8249_v4, 0.0 }
 0x77f   :  { %8317 = vadd.xlane.f32.xlu1 %v8316_v18  ;;  %8314 = vadd.xlane.f32.xlu0 %v8313_v52 }
 0x780   :  { %v8250_v41 = vmul.f32 %v14825_v49, %v17920_v22  ;;  %v8251_v7 = vmul.f32 %v14826_v37, %v17920_v22 }
 0x781   :  { %v7980_v5 = vpop.permute.xlu0 %7979  ;;  %v7982_v8 = vpop.permute.xlu1 %7981  ;;  %v14901_v47 = vld [vmem:[#allocation3 + $0x38] sm:$0xff]  }
 0x782   :  { %8105 = vst.msk [vmem:[#allocation3 + $0x48] sm:$0xf] %vm3877_vm12, %v7980_v5  ;;  %8106 = vst.msk [vmem:[#allocation3 + $0x4c] sm:$0xf] %vm3877_vm12, %v7982_v8  ;;  %v8322_v60 = vsel %vm4137_vm13, %v8250_v41, 0.0  ;;  %v14829_v15 = vunpack.c.l.bf16 %v14901_v47  ;;  %v14830_v20 = vunpack.c.h.bf16 %v14901_v47  ;;  %v8325_v27 = vsel %vm4137_vm13, %v8251_v7, 0.0 }
 0x783   :  { %8323 = vadd.xlane.f32.xlu1 %v8322_v60  ;;  %8320 = vadd.xlane.f32.xlu0 %v8319_v13 }
 0x784   :  { %v8252_v12 = vmul.f32 %v14829_v15, %v17920_v22  ;;  %v8253_v32 = vmul.f32 %v14830_v20, %v17920_v22 }
 0x785   :  { %v7984_v40 = vpop.permute.xlu0 %7983  ;;  %v7986_v46 = vpop.permute.xlu1 %7985  ;;  %v14902_v17 = vld [vmem:[#allocation3 + $0x40] sm:$0xff]  }
 0x786   :  { %8107 = vst.msk [vmem:[#allocation3 + $0x50] sm:$0xf] %vm3877_vm12, %v7984_v40  ;;  %8108 = vst.msk [vmem:[#allocation3 + $0x54] sm:$0xf] %vm3877_vm12, %v7986_v46  ;;  %v8328_v33 = vsel %vm4137_vm13, %v8252_v12, 0.0  ;;  %v14833_v0 = vunpack.c.l.bf16 %v14902_v17  ;;  %v14834_v24 = vunpack.c.h.bf16 %v14902_v17  ;;  %v8331_v48 = vsel %vm4137_vm13, %v8253_v32, 0.0 }
 0x787   :  { %8329 = vadd.xlane.f32.xlu1 %v8328_v33  ;;  %8326 = vadd.xlane.f32.xlu0 %v8325_v27 }
 0x788   :  { %v8254_v43 = vmul.f32 %v14833_v0, %v17920_v22  ;;  %v8255_v38 = vmul.f32 %v14834_v24, %v17920_v22 }
 0x789   :  { %v7988_v35 = vpop.permute.xlu0 %7987  ;;  %v7990_v57 = vpop.permute.xlu1 %7989  ;;  %v14903_v42 = vld [vmem:[#allocation3 + $0x48] sm:$0xff]  }
 0x78a   :  { %8109 = vst.msk [vmem:[#allocation3 + $0x58] sm:$0xf] %vm3877_vm12, %v7988_v35  ;;  %8110 = vst.msk [vmem:[#allocation3 + $0x5c] sm:$0xf] %vm3877_vm12, %v7990_v57  ;;  %v8334_v19 = vsel %vm4137_vm13, %v8254_v43, 0.0  ;;  %v14837_v36 = vunpack.c.l.bf16 %v14903_v42  ;;  %v14838_v54 = vunpack.c.h.bf16 %v14903_v42  ;;  %v8337_v31 = vsel %vm4137_vm13, %v8255_v38, 0.0 }
 0x78b   :  { %8335 = vadd.xlane.f32.xlu1 %v8334_v19  ;;  %8332 = vadd.xlane.f32.xlu0 %v8331_v48 }
 0x78c   :  { %v8256_v39 = vmul.f32 %v14837_v36, %v17920_v22  ;;  %v8257_v1 = vmul.f32 %v14838_v54, %v17920_v22 }
 0x78d   :  { %v7992_v25 = vpop.permute.xlu0 %7991  ;;  %v7994_v45 = vpop.permute.xlu1 %7993  ;;  %v14904_v56 = vld [vmem:[#allocation3 + $0x50] sm:$0xff]  }
 0x78e   :  { %8111 = vst.msk [vmem:[#allocation3 + $0x60] sm:$0xf] %vm3877_vm12, %v7992_v25  ;;  %8112 = vst.msk [vmem:[#allocation3 + $0x64] sm:$0xf] %vm3877_vm12, %v7994_v45  ;;  %v8340_v16 = vsel %vm4137_vm13, %v8256_v39, 0.0  ;;  %v14841_v30 = vunpack.c.l.bf16 %v14904_v56  ;;  %v14842_v61 = vunpack.c.h.bf16 %v14904_v56  ;;  %v8343_v53 = vsel %vm4137_vm13, %v8257_v1, 0.0 }
 0x78f   :  { %8341 = vadd.xlane.f32.xlu1 %v8340_v16  ;;  %8338 = vadd.xlane.f32.xlu0 %v8337_v31 }
 0x790   :  { %v8258_v14 = vmul.f32 %v14841_v30, %v17920_v22  ;;  %v8259_v21 = vmul.f32 %v14842_v61, %v17920_v22 }
 0x791   :  { %v7996_v10 = vpop.permute.xlu0 %7995  ;;  %v7998_v44 = vpop.permute.xlu1 %7997  ;;  %v14905_v50 = vld [vmem:[#allocation3 + $0x58] sm:$0xff]  }
 0x792   :  { %8113 = vst.msk [vmem:[#allocation3 + $0x68] sm:$0xf] %vm3877_vm12, %v7996_v10  ;;  %8114 = vst.msk [vmem:[#allocation3 + $0x6c] sm:$0xf] %vm3877_vm12, %v7998_v44  ;;  %v8346_v11 = vsel %vm4137_vm13, %v8258_v14, 0.0  ;;  %v14845_v28 = vunpack.c.l.bf16 %v14905_v50  ;;  %v14846_v2 = vunpack.c.h.bf16 %v14905_v50  ;;  %v8349_v6 = vsel %vm4137_vm13, %v8259_v21, 0.0 }
 0x793   :  { %8347 = vadd.xlane.f32.xlu1 %v8346_v11  ;;  %8344 = vadd.xlane.f32.xlu0 %v8343_v53 }
 0x794   :  { %v8260_v51 = vmul.f32 %v14845_v28, %v17920_v22  ;;  %v8261_v23 = vmul.f32 %v14846_v2, %v17920_v22 }
 0x795   :  { %v8000_v34 = vpop.permute.xlu0 %7999  ;;  %v8002_v63 = vpop.permute.xlu1 %8001  ;;  %v14906_v58 = vld [vmem:[#allocation3 + $0x60] sm:$0xff]  }
 0x796   :  { %8115 = vst.msk [vmem:[#allocation3 + $0x70] sm:$0xf] %vm3877_vm12, %v8000_v34  ;;  %8116 = vst.msk [vmem:[#allocation3 + $0x74] sm:$0xf] %vm3877_vm12, %v8002_v63  ;;  %v8352_v29 = vsel %vm4137_vm13, %v8260_v51, 0.0  ;;  %v14849_v59 = vunpack.c.l.bf16 %v14906_v58  ;;  %v14850_v62 = vunpack.c.h.bf16 %v14906_v58  ;;  %v8355_v9 = vsel %vm4137_vm13, %v8261_v23, 0.0 }
 0x797   :  { %8353 = vadd.xlane.f32.xlu1 %v8352_v29  ;;  %8350 = vadd.xlane.f32.xlu0 %v8349_v6 }
 0x798   :  { %v8262_v26 = vmul.f32 %v14849_v59, %v17920_v22  ;;  %v8263_v49 = vmul.f32 %v14850_v62, %v17920_v22 }
 0x799   :  { %v8004_v3 = vpop.permute.xlu0 %8003  ;;  %v8006_v55 = vpop.permute.xlu1 %8005  ;;  %v14907_v4 = vld [vmem:[#allocation3 + $0x68] sm:$0xff]  }
 0x79a   :  { %8117 = vst.msk [vmem:[#allocation3 + $0x78] sm:$0xf] %vm3877_vm12, %v8004_v3  ;;  %8118 = vst.msk [vmem:[#allocation3 + $0x7c] sm:$0xf] %vm3877_vm12, %v8006_v55  ;;  %v8358_v18 = vsel %vm4137_vm13, %v8262_v26, 0.0  ;;  %v14853_v52 = vunpack.c.l.bf16 %v14907_v4  ;;  %v14854_v37 = vunpack.c.h.bf16 %v14907_v4  ;;  %v8361_v15 = vsel %vm4137_vm13, %v8263_v49, 0.0 }
 0x79b   :  { %8359 = vadd.xlane.f32.xlu1 %v8358_v18  ;;  %8356 = vadd.xlane.f32.xlu0 %v8355_v9 }
 0x79c   :  { %v8264_v41 = vmul.f32 %v14853_v52, %v17920_v22  ;;  %v8265_v47 = vmul.f32 %v14854_v37, %v17920_v22 }
 0x79d   :  { %v8008_v5 = vpop.permute.xlu0 %8007  ;;  %v8010_v8 = vpop.permute.xlu1 %8009  ;;  %v14908_v13 = vld [vmem:[#allocation3 + $0x70] sm:$0xff]  }
 0x79e   :  { %8119 = vst.msk [vmem:[#allocation3 + $0x80] sm:$0xf] %vm3877_vm12, %v8008_v5  ;;  %8120 = vst.msk [vmem:[#allocation3 + $0x84] sm:$0xf] %vm3877_vm12, %v8010_v8  ;;  %v8364_v60 = vsel %vm4137_vm13, %v8264_v41, 0.0  ;;  %v14857_v7 = vunpack.c.l.bf16 %v14908_v13  ;;  %v14858_v20 = vunpack.c.h.bf16 %v14908_v13  ;;  %v8367_v17 = vsel %vm4137_vm13, %v8265_v47, 0.0 }
 0x79f   :  { %8365 = vadd.xlane.f32.xlu1 %v8364_v60  ;;  %8362 = vadd.xlane.f32.xlu0 %v8361_v15  ;;  %v15283_v5 = vmov 0  }
 0x7a0   :  { %v8266_v12 = vmul.f32 %v14857_v7, %v17920_v22  ;;  %v8267_v0 = vmul.f32 %v14858_v20, %v17920_v22  ;;  %15030 = vset.pattern.permute.xlu0 %v15283_v5  ;;  %15029 = vset.pattern.permute.xlu1 %v15283_v5 }
 0x7a1   :  { %v8012_v40 = vpop.permute.xlu0 %8011  ;;  %v8014_v46 = vpop.permute.xlu1 %8013  ;;  %v14909_v32 = vld [vmem:[#allocation3 + $0x78] sm:$0xff]  }
 0x7a2   :  { %8121 = vst.msk [vmem:[#allocation3 + $0x88] sm:$0xf] %vm3877_vm12, %v8012_v40  ;;  %8122 = vst.msk [vmem:[#allocation3 + $0x8c] sm:$0xf] %vm3877_vm12, %v8014_v46  ;;  %v8370_v33 = vsel %vm4137_vm13, %v8266_v12, 0.0  ;;  %v14861_v27 = vunpack.c.l.bf16 %v14909_v32  ;;  %v14862_v24 = vunpack.c.h.bf16 %v14909_v32  ;;  %v8373_v36 = vsel %vm4137_vm13, %v8267_v0, 0.0 }
 0x7a3   :  { %8371 = vadd.xlane.f32.xlu1 %v8370_v33  ;;  %8368 = vadd.xlane.f32.xlu0 %v8367_v17 }
 0x7a4   :  { %v8268_v43 = vmul.f32 %v14861_v27, %v17920_v22  ;;  %v8269_v42 = vmul.f32 %v14862_v24, %v17920_v22 }
 0x7a5   :  { %v8016_v35 = vpop.permute.xlu0 %8015  ;;  %v8018_v57 = vpop.permute.xlu1 %8017  ;;  %v14910_v48 = vld [vmem:[#allocation3 + $0x80] sm:$0xff]  }
 0x7a6   :  { %8123 = vst.msk [vmem:[#allocation3 + $0x90] sm:$0xf] %vm3877_vm12, %v8016_v35  ;;  %8124 = vst.msk [vmem:[#allocation3 + $0x94] sm:$0xf] %vm3877_vm12, %v8018_v57  ;;  %v8376_v19 = vsel %vm4137_vm13, %v8268_v43, 0.0  ;;  %v14865_v38 = vunpack.c.l.bf16 %v14910_v48  ;;  %v14866_v54 = vunpack.c.h.bf16 %v14910_v48  ;;  %v8379_v56 = vsel %vm4137_vm13, %v8269_v42, 0.0 }
 0x7a7   :  { %8377 = vadd.xlane.f32.xlu1 %v8376_v19  ;;  %8374 = vadd.xlane.f32.xlu0 %v8373_v36 }
 0x7a8   :  { %v8270_v39 = vmul.f32 %v14865_v38, %v17920_v22  ;;  %v8271_v30 = vmul.f32 %v14866_v54, %v17920_v22 }
 0x7a9   :  { %v8020_v25 = vpop.permute.xlu0 %8019  ;;  %v8022_v45 = vpop.permute.xlu1 %8021  ;;  %v14911_v1 = vld [vmem:[#allocation3 + $0x88] sm:$0xff]  }
 0x7aa   :  { %8125 = vst.msk [vmem:[#allocation3 + $0x98] sm:$0xf] %vm3877_vm12, %v8020_v25  ;;  %8126 = vst.msk [vmem:[#allocation3 + $0x9c] sm:$0xf] %vm3877_vm12, %v8022_v45  ;;  %v8382_v16 = vsel %vm4137_vm13, %v8270_v39, 0.0  ;;  %v14869_v31 = vunpack.c.l.bf16 %v14911_v1  ;;  %v14870_v61 = vunpack.c.h.bf16 %v14911_v1  ;;  %v8385_v28 = vsel %vm4137_vm13, %v8271_v30, 0.0 }
 0x7ab   :  { %8383 = vadd.xlane.f32.xlu1 %v8382_v16  ;;  %8380 = vadd.xlane.f32.xlu0 %v8379_v56  ;;  %v18065_v45 = vstv %s19487_s4  ;;  %s15285_s4 = smov [#allocation5]  }
 0x7ac   :  { %v8272_v14 = vmul.f32 %v14869_v31, %v17920_v22  ;;  %v8273_v50 = vmul.f32 %v14870_v61, %v17920_v22  ;;  %s13152_s10 = sshll.u32 %s15285_s4, 4  ;;  %s13153_s10 = int_to_ptr.vmem [resolvable:$true] %s13152_s10 }
 0x7ad   :  { %v8024_v10 = vpop.permute.xlu0 %8023  ;;  %v8026_v44 = vpop.permute.xlu1 %8025  ;;  %v14912_v53 = vld [vmem:[#allocation3 + $0x90] sm:$0xff]   ;;  %s15252_s11 = scalar_lea.vmem %s13153_s10, 48  ;;  %s15256_s12 = scalar_lea.vmem %s13153_s10, 64 }
 0x7ae   :  { %8127 = vst.msk [vmem:[#allocation3 + $0xa0] sm:$0xf] %vm3877_vm12, %v8024_v10  ;;  %8128 = vst.msk [vmem:[#allocation3 + $0xa4] sm:$0xf] %vm3877_vm12, %v8026_v44  ;;  %v8388_v11 = vsel %vm4137_vm13, %v8272_v14, 0.0  ;;  %v14873_v21 = vunpack.c.l.bf16 %v14912_v53  ;;  %v14874_v2 = vunpack.c.h.bf16 %v14912_v53  ;;  %v8391_v58 = vsel %vm4137_vm13, %v8273_v50, 0.0  ;;  %p15253_p0 = scmp.ne.s32.totalorder %s13153_s10, %s15252_s11  ;;  %p15257_p1 = scmp.lt.s32.totalorder %s13153_s10, %s13153_s10 }
 0x7af   :  { %8389 = vadd.xlane.f32.xlu1 %v8388_v11  ;;  %8386 = vadd.xlane.f32.xlu0 %v8385_v28  ;;  %p15258_p2 = scmp.lt.s32.totalorder %s15256_s12, %s15252_s11 }
 0x7b0   :  { %v8274_v51 = vmul.f32 %v14873_v21, %v17920_v22  ;;  %v8275_v59 = vmul.f32 %v14874_v2, %v17920_v22 }
 0x7b1   :  { %v8028_v34 = vpop.permute.xlu0 %8027  ;;  %v8030_v63 = vpop.permute.xlu1 %8029  ;;  %v14913_v23 = vld [vmem:[#allocation3 + $0x98] sm:$0xff]   ;;  %p15259_p3 = por %p15258_p2, %p15257_p1 }
 0x7b2   :  { %8129 = vst.msk [vmem:[#allocation3 + $0xa8] sm:$0xf] %vm3877_vm12, %v8028_v34  ;;  %8130 = vst.msk [vmem:[#allocation3 + $0xac] sm:$0xf] %vm3877_vm12, %v8030_v63  ;;  %v8394_v29 = vsel %vm4137_vm13, %v8274_v51, 0.0  ;;  %v14877_v6 = vunpack.c.l.bf16 %v14913_v23  ;;  %v14878_v62 = vunpack.c.h.bf16 %v14913_v23  ;;  %v8397_v52 = vsel %vm4137_vm13, %v8275_v59, 0.0 }
 0x7b3   :  { %8395 = vadd.xlane.f32.xlu1 %v8394_v29  ;;  %8392 = vadd.xlane.f32.xlu0 %v8391_v58  ;;  %p15260_p4 = pnand %p15259_p3, %p15253_p0 }
 0x7b4   :  { %v8276_v26 = vmul.f32 %v14877_v6, %v17920_v22  ;;  %v8277_v4 = vmul.f32 %v14878_v62, %v17920_v22 }
 0x7b5   :  { %v8032_v3 = vpop.permute.xlu0 %8031  ;;  %v8034_v55 = vpop.permute.xlu1 %8033  ;;  %v14914_v9 = vld [vmem:[#allocation3 + $0xa0] sm:$0xff]  }
 0x7b6   :  { %8131 = vst.msk [vmem:[#allocation3 + $0xb0] sm:$0xf] %vm3877_vm12, %v8032_v3  ;;  %8132 = vst.msk [vmem:[#allocation3 + $0xb4] sm:$0xf] %vm3877_vm12, %v8034_v55  ;;  %v8400_v18 = vsel %vm4137_vm13, %v8276_v26, 0.0  ;;  %v14881_v49 = vunpack.c.l.bf16 %v14914_v9  ;;  %v14882_v37 = vunpack.c.h.bf16 %v14914_v9  ;;  %v8403_v47 = vsel %vm4137_vm13, %v8277_v4, 0.0 }
 0x7b7   :  { %8401 = vadd.xlane.f32.xlu1 %v8400_v18  ;;  %8398 = vadd.xlane.f32.xlu0 %v8397_v52 }
 0x7b8   :  { %v8278_v41 = vmul.f32 %v14881_v49, %v17920_v22  ;;  %v8279_v20 = vmul.f32 %v14882_v37, %v17920_v22  ;;  %v8816_v49 = vlaneseq }
 0x7b9   :  { %v8036_v8 = vpop.permute.xlu0 %8035  ;;  %v8038_v13 = vpop.permute.xlu1 %8037  ;;  %v14915_v60 = vld [vmem:[#allocation3 + $0xa8] sm:$0xff]  }
 0x7ba   :  { %8133 = vst.msk [vmem:[#allocation3 + $0xb8] sm:$0xf] %vm3877_vm12, %v8036_v8  ;;  %8134 = vst.msk [vmem:[#allocation3 + $0xbc] sm:$0xf] %vm3877_vm12, %v8038_v13  ;;  %v8406_v15 = vsel %vm4137_vm13, %v8278_v41, 0.0  ;;  %v14885_v7 = vunpack.c.l.bf16 %v14915_v60  ;;  %v14886_v12 = vunpack.c.h.bf16 %v14915_v60  ;;  %v8409_v33 = vsel %vm4137_vm13, %v8279_v20, 0.0 }
 0x7bb   :  { %8407 = vadd.xlane.f32.xlu1 %v8406_v15  ;;  %8404 = vadd.xlane.f32.xlu0 %v8403_v47  ;;  %vm12957_vm12 = vcmask 1048512  }
 0x7bc   :  { %v8280_v40 = vmul.f32 %v14885_v7, %v17920_v22  ;;  %v8281_v17 = vmul.f32 %v14886_v12, %v17920_v22 }
 0x7bd   :  { %v14916_v46 = vld [vmem:[#allocation3 + $0xb0] sm:$0xff]  }
 0x7be   :  { %v8412_v32 = vsel %vm4137_vm13, %v8280_v40, 0.0  ;;  %v14889_v27 = vunpack.c.l.bf16 %v14916_v46  ;;  %v14890_v0 = vunpack.c.h.bf16 %v14916_v46  ;;  %v8415_v43 = vsel %vm4137_vm13, %v8281_v17, 0.0 }
 0x7bf   :  { %8413 = vadd.xlane.f32.xlu1 %v8412_v32  ;;  %8410 = vadd.xlane.f32.xlu0 %v8409_v33  ;;  %v18081_v40 = vshrl.u32 %v8816_v49, 7  ;;  %v15284_v17 = vmov 1966171168  }
 0x7c0   :  { %v8282_v24 = vmul.f32 %v14889_v27, %v17920_v22  ;;  %v8283_v42 = vmul.f32 %v14890_v0, %v17920_v22  ;;  %v10357_v32 = vunpack.c.l.s4 %v15284_v17 }
 0x7c1   :  { %v14917_v35 = vld [vmem:[#allocation3 + $0xb8] sm:$0xff]  }
 0x7c2   :  { %v8418_v57 = vsel %vm4137_vm13, %v8282_v24, 0.0  ;;  %v14893_v48 = vunpack.c.l.bf16 %v14917_v35  ;;  %v14894_v19 = vunpack.c.h.bf16 %v14917_v35  ;;  %v8421_v54 = vsel %vm4137_vm13, %v8283_v42, 0.0 }
 0x7c3   :  { %8419 = vadd.xlane.f32.xlu1 %v8418_v57  ;;  %8416 = vadd.xlane.f32.xlu0 %v8415_v43 }
 0x7c4   :  { %v8284_v36 = vmul.f32 %v14893_v48, %v17920_v22  ;;  %v8285_v39 = vmul.f32 %v14894_v19, %v17920_v22  ;;  %v18086_v19 = vsub.s32 0, %v18081_v40 }
 0x7c6   :  { %v8424_v38 = vsel %vm4137_vm13, %v8284_v36, 0.0  ;;  %v8427_v25 = vsel %vm4137_vm13, %v8285_v39, 0.0  ;;  %v10358_v39 = vunpack.c.0.s8 %v10357_v32  ;;  %vm13143_vm13 = vcmp.lt.s32.totalorder %v8816_v49, 384 }
 0x7c7   :  { %8425 = vadd.xlane.f32.xlu1 %v8424_v38  ;;  %8422 = vadd.xlane.f32.xlu0 %v8421_v54  ;;  %v18089_v38 = vsub.s32 1, %v18081_v40  ;;  %v18092_v54 = vsub.s32 2, %v18081_v40 }
 0x7cb   :  { %8428 = vadd.xlane.f32.xlu0 %v8427_v25 }
 0x7f4   :  { %v8291_v56 = vpop.xlane.xlu1 %8290  ;;  %v8288_v1 = vpop.xlane.xlu0 %8287 }
 0x7f5   :  { %v8433_v16 = vadd.f32 %v18065_v45, %v8291_v56  ;;  %v8432_v31 = vadd.f32 %v18065_v45, %v8288_v1 }
 0x7f7   :  { %v13984_v30 = vmul.f32 -1.442695, %v8433_v16  ;;  %v13983_v61 = vmul.f32 -1.442695, %v8432_v31  ;;  %v18095_v16 = vsub.s32 3, %v18081_v40 }
 0x7f8   :  { %v8294_v14 = vpop.xlane.xlu0 %8293 }
 0x7f9   :  { %15060 = vpow2.f32 %v13984_v30  ;;  %v8434_v22 = vadd.f32 %v18065_v45, %v8294_v14 }
 0x7fa   :  { %15062 = vpow2.f32 %v13983_v61 }
 0x7fb   :  { %v13985_v10 = vmul.f32 -1.442695, %v8434_v22  ;;  %v18098_v22 = vsub.s32 4, %v18081_v40 }
 0x7fc   :  { %v8300_v44 = vpop.xlane.xlu1 %8299  ;;  %v8297_v53 = vpop.xlane.xlu0 %8296 }
 0x7fd   :  { %15064 = vpow2.f32 %v13985_v10  ;;  %v8436_v50 = vadd.f32 %v18065_v45, %v8300_v44  ;;  %v8435_v11 = vadd.f32 %v18065_v45, %v8297_v53  ;;  %v18103_v53 = vsub.s32 5, %v18081_v40 }
 0x7ff   :  { %v13987_v28 = vmul.f32 -1.442695, %v8436_v50  ;;  %v13986_v21 = vmul.f32 -1.442695, %v8435_v11  ;;  %v18106_v11 = vsub.s32 6, %v18081_v40 }
 0x800   :  { %v8306_v2 = vpop.xlane.xlu1 %8305  ;;  %v8303_v51 = vpop.xlane.xlu0 %8302 }
 0x801   :  { %15066 = vpow2.f32 %v13987_v28  ;;  %v8438_v34 = vadd.f32 %v18065_v45, %v8306_v2  ;;  %v8437_v63 = vadd.f32 %v18065_v45, %v8303_v51  ;;  %v18109_v28 = vsub.s32 7, %v18081_v40 }
 0x802   :  { %15068 = vpow2.f32 %v13986_v21  ;;  %v18112_v21 = vsub.s32 %v10358_v39, %v18081_v40 }
 0x803   :  { %v13989_v58 = vmul.f32 -1.442695, %v8438_v34  ;;  %v13988_v23 = vmul.f32 -1.442695, %v8437_v63 }
 0x804   :  { %v8312_v29 = vpop.xlane.xlu1 %8311  ;;  %v8309_v6 = vpop.xlane.xlu0 %8308 }
 0x805   :  { %15070 = vpow2.f32 %v13989_v58  ;;  %v8440_v59 = vadd.f32 %v18065_v45, %v8312_v29  ;;  %v8439_v62 = vadd.f32 %v18065_v45, %v8309_v6 }
 0x806   :  { %v15061_v26 = vpop.eup %15060  ;;  %15072 = vpow2.f32 %v13988_v23 }
 0x807   :  { %v15063_v3 = vpop.eup %15062  ;;  %v8625_v55 = vadd.f32 1.0, %v15061_v26  ;;  %v13991_v9 = vmul.f32 -1.442695, %v8440_v59  ;;  %v13990_v4 = vmul.f32 -1.442695, %v8439_v62 }
 0x808   :  { %v8318_v18 = vpop.xlane.xlu1 %8317  ;;  %v8315_v52 = vpop.xlane.xlu0 %8314  ;;  %v8624_v37 = vadd.f32 1.0, %v15063_v3 }
 0x809   :  { %15074 = vrcp.f32 %v8625_v55  ;;  %v8442_v41 = vadd.f32 %v18065_v45, %v8318_v18  ;;  %v8441_v5 = vadd.f32 %v18065_v45, %v8315_v52 }
 0x80a   :  { %v15065_v8 = vpop.eup %15064  ;;  %15076 = vpow2.f32 %v13991_v9 }
 0x80b   :  { %v13993_v13 = vmul.f32 -1.442695, %v8442_v41  ;;  %v13992_v47 = vmul.f32 -1.442695, %v8441_v5  ;;  %v8626_v60 = vadd.f32 1.0, %v15065_v8  ;;  %15078 = vpow2.f32 %v13990_v4 }
 0x80c   :  { %v8324_v15 = vpop.xlane.xlu1 %8323  ;;  %v8321_v7 = vpop.xlane.xlu0 %8320  ;;  %15080 = vrcp.f32 %v8624_v37 }
 0x80d   :  { %v8444_v20 = vadd.f32 %v18065_v45, %v8324_v15  ;;  %v8443_v12 = vadd.f32 %v18065_v45, %v8321_v7  ;;  %15082 = vpow2.f32 %v13993_v13 }
 0x80e   :  { %v15067_v46 = vpop.eup %15066  ;;  %15084 = vpow2.f32 %v13992_v47 }
 0x80f   :  { %v15069_v33 = vpop.eup %15068  ;;  %v8628_v27 = vadd.f32 1.0, %v15067_v46  ;;  %v13995_v0 = vmul.f32 -1.442695, %v8444_v20  ;;  %15086 = vrcp.f32 %v8626_v60  ;;  %v13994_v43 = vmul.f32 -1.442695, %v8443_v12 }
 0x810   :  { %v8627_v24 = vadd.f32 1.0, %v15069_v33  ;;  %v8330_v35 = vpop.xlane.xlu1 %8329  ;;  %v8327_v57 = vpop.xlane.xlu0 %8326 }
 0x811   :  { %15088 = vrcp.f32 %v8628_v27  ;;  %v8446_v48 = vadd.f32 %v18065_v45, %v8330_v35  ;;  %v8445_v42 = vadd.f32 %v18065_v45, %v8327_v57 }
 0x812   :  { %v15071_v36 = vpop.eup %15070  ;;  %15090 = vrcp.f32 %v8627_v24 }
 0x813   :  { %v15073_v25 = vpop.eup %15072  ;;  %v8630_v56 = vadd.f32 1.0, %v15071_v36  ;;  %15092 = vpow2.f32 %v13995_v0  ;;  %v13997_v1 = vmul.f32 -1.442695, %v8446_v48  ;;  %v13996_v30 = vmul.f32 -1.442695, %v8445_v42 }
 0x814   :  { %v8629_v31 = vadd.f32 1.0, %v15073_v25  ;;  %15094 = vpow2.f32 %v13994_v43  ;;  %v8336_v61 = vpop.xlane.xlu1 %8335  ;;  %v8333_v14 = vpop.xlane.xlu0 %8332 }
 0x815   :  { %15096 = vrcp.f32 %v8630_v56  ;;  %v8448_v10 = vadd.f32 %v18065_v45, %v8336_v61  ;;  %v8447_v44 = vadd.f32 %v18065_v45, %v8333_v14 }
 0x816   :  { %v15075_v50 = vpop.eup %15074  ;;  %15098 = vrcp.f32 %v8629_v31 }
 0x817   :  { %15100 = vpow2.f32 %v13997_v1  ;;  %v13999_v2 = vmul.f32 -1.442695, %v8448_v10  ;;  %v13998_v51 = vmul.f32 -1.442695, %v8447_v44  ;;  %v8851_v34 = vrot.slane %v15075_v50, %v18086_v19  ;;  %v15077_v63 = vpop.eup %15076 }
 0x818   :  { %15102 = vpow2.f32 %v13996_v30  ;;  %v8342_v58 = vpop.xlane.xlu1 %8341  ;;  %v8339_v23 = vpop.xlane.xlu0 %8338  ;;  %v8855_v29 = vrot.slane %v15075_v50, %v18089_v38  ;;  %v8859_v6 = vrot.slane %v15075_v50, %v18092_v54  ;;  %v8863_v59 = vrot.slane %v15075_v50, %v18095_v16 }
 0x819   :  { %v15079_v62 = vpop.eup %15078  ;;  %v8632_v26 = vadd.f32 1.0, %v15077_v63  ;;  %15104 = vpow2.f32 %v13999_v2  ;;  %v8450_v3 = vadd.f32 %v18065_v45, %v8342_v58  ;;  %v8449_v55 = vadd.f32 %v18065_v45, %v8339_v23 }
 0x81a   :  { %v18120_v9 = vpop.eup %15080  ;;  %v8631_v4 = vadd.f32 1.0, %v15079_v62  ;;  %15106 = vpow2.f32 %v13998_v51  ;;  %v8867_v18 = vrot.slane %v15075_v50, %v18098_v22  ;;  %v8871_v52 = vrot.slane %v15075_v50, %v18103_v53 }
 0x81b   :  { %v15083_v37 = vpop.eup %15082  ;;  %15108 = vrcp.f32 %v8632_v26  ;;  %v14001_v41 = vmul.f32 -1.442695, %v8450_v3  ;;  %v14000_v5 = vmul.f32 -1.442695, %v8449_v55  ;;  %v8875_v8 = vrot.slane %v15075_v50, %v18106_v11 }
 0x81c   :  { %v15085_v13 = vpop.eup %15084  ;;  %15110 = vrcp.f32 %v8631_v4  ;;  %v8634_v47 = vadd.f32 1.0, %v15083_v37  ;;  %v8348_v60 = vpop.xlane.xlu1 %8347  ;;  %v8879_v7 = vrot.slane %v15075_v50, %v18109_v28  ;;  %v10401_v20 = vcombine.low %v8851_v34, %v8855_v29 }
 0x81d   :  { %v8345_v15 = vpop.xlane.xlu0 %8344  ;;  %v18126_v12 = vpop.eup %15086  ;;  %v8633_v46 = vadd.f32 1.0, %v15085_v13  ;;  %15112 = vpow2.f32 %v14001_v41  ;;  %v8452_v17 = vadd.f32 %v18065_v45, %v8348_v60  ;;  %v10402_v27 = vcombine.low %v8859_v6, %v8863_v59 }
 0x81e   :  { %v8451_v32 = vadd.f32 %v18065_v45, %v8345_v15  ;;  %v18130_v33 = vpop.eup %15088  ;;  %15114 = vrcp.f32 %v8634_v47  ;;  %v10403_v0 = vcombine.low %v8867_v18, %v8871_v52  ;;  %v10404_v24 = vcombine.low %v8875_v8, %v8879_v7 }
 0x81f   :  { %v18132_v43 = vpop.eup %15090  ;;  %15116 = vrcp.f32 %v8633_v46  ;;  %v14003_v35 = vmul.f32 -1.442695, %v8452_v17  ;;  %v10411_v48 = vrot.slane %v10401_v20, %v18112_v21  ;;  %v10418_v25 = vrot.slane %v10402_v27, %v18112_v21 }
 0x820   :  { %v14002_v57 = vmul.f32 -1.442695, %v8451_v32  ;;  %v15093_v42 = vpop.eup %15092  ;;  %15118 = vpow2.f32 %v14000_v5  ;;  %v8354_v36 = vpop.xlane.xlu1 %8353  ;;  %v10425_v56 = vrot.slane %v10403_v0, %v18112_v21  ;;  %v10432_v1 = vrot.slane %v10404_v24, %v18112_v21 }
 0x821   :  { %v8351_v39 = vpop.xlane.xlu0 %8350  ;;  %v15095_v31 = vpop.eup %15094  ;;  %v8636_v30 = vadd.f32 1.0, %v15093_v42  ;;  %15120 = vpow2.f32 %v14003_v35  ;;  %v8454_v61 = vadd.f32 %v18065_v45, %v8354_v36  ;;  %v10433_v50 = vcombine.low %v10411_v48, %v10418_v25 }
 0x822   :  { %v8453_v14 = vadd.f32 %v18065_v45, %v8351_v39  ;;  %v18140_v10 = vpop.eup %15096  ;;  %v8635_v44 = vadd.f32 1.0, %v15095_v31  ;;  %15122 = vpow2.f32 %v14002_v57  ;;  %v10434_v2 = vcombine.low %v10425_v56, %v10432_v1 }
 0x823   :  { %v18142_v51 = vpop.eup %15098  ;;  %15124 = vrcp.f32 %v8636_v30  ;;  %v14005_v34 = vmul.f32 -1.442695, %v8454_v61  ;;  %v8819_v58 = vrot.slane %v18120_v9, %v18086_v19  ;;  %v10441_v29 = vrot.slane %v10433_v50, %v18112_v21 }
 0x824   :  { %v14004_v63 = vmul.f32 -1.442695, %v8453_v14  ;;  %v15101_v23 = vpop.eup %15100  ;;  %15126 = vrcp.f32 %v8635_v44  ;;  %v10448_v6 = vrot.slane %v10434_v2, %v18112_v21  ;;  %v8823_v59 = vrot.slane %v18120_v9, %v18089_v38  ;;  %v8360_v41 = vpop.xlane.xlu1 %8359 }
 0x825   :  { %v15103_v62 = vpop.eup %15102  ;;  %v8638_v26 = vadd.f32 1.0, %v15101_v23  ;;  %15128 = vpow2.f32 %v14005_v34  ;;  %v8827_v3 = vrot.slane %v18120_v9, %v18092_v54  ;;  %v8831_v55 = vrot.slane %v18120_v9, %v18095_v16  ;;  %v8357_v60 = vpop.xlane.xlu0 %8356 }
 0x826   :  { %v15105_v4 = vpop.eup %15104  ;;  %v8637_v18 = vadd.f32 1.0, %v15103_v62  ;;  %15130 = vpow2.f32 %v14004_v63  ;;  %v10449_v52 = vcombine.low %v10441_v29, %v10448_v6  ;;  %v8835_v37 = vrot.slane %v18120_v9, %v18098_v22 }
 0x827   :  { %v15107_v5 = vpop.eup %15106  ;;  %15132 = vrcp.f32 %v8638_v26  ;;  %v8640_v8 = vadd.f32 1.0, %v15105_v4  ;;  %v8839_v13 = vrot.slane %v18120_v9, %v18103_v53  ;;  %v8843_v47 = vrot.slane %v18120_v9, %v18106_v11 }
 0x828   :  { %v18160_v15 = vpop.eup %15108  ;;  %15134 = vrcp.f32 %v8637_v18  ;;  %v8639_v7 = vadd.f32 1.0, %v15107_v5  ;;  %12708 = vperm.xlu0 %15030, %v10449_v52   ;;  %v8847_v20 = vrot.slane %v18120_v9, %v18109_v28  ;;  %v10352_v46 = vcombine.low %v8819_v58, %v8823_v59  ;;  %v8366_v26 = vpop.xlane.xlu1 %8365 }
 0x829   :  { %v18164_v17 = vpop.eup %15110  ;;  %15136 = vrcp.f32 %v8640_v8  ;;  %v10353_v32 = vcombine.low %v8827_v3, %v8831_v55  ;;  %v10354_v27 = vcombine.low %v8835_v37, %v8839_v13  ;;  %v8456_v0 = vadd.f32 %v18065_v45, %v8360_v41  ;;  %v8363_v8 = vpop.xlane.xlu0 %8362 }
 0x82a   :  { %v15113_v24 = vpop.eup %15112  ;;  %15138 = vrcp.f32 %v8639_v7  ;;  %v10355_v35 = vcombine.low %v8843_v47, %v8847_v20  ;;  %v10362_v57 = vrot.slane %v10352_v46, %v18112_v21  ;;  %v8455_v48 = vadd.f32 %v18065_v45, %v8357_v60 }
 0x82b   :  { %v18169_v42 = vpop.eup %15114  ;;  %v8642_v36 = vadd.f32 1.0, %v15113_v24  ;;  %v10369_v9 = vrot.slane %v10353_v32, %v18112_v21  ;;  %v10376_v39 = vrot.slane %v10354_v27, %v18112_v21  ;;  %v14007_v25 = vmul.f32 -1.442695, %v8456_v0 }
 0x82c   :  { %v18173_v56 = vpop.eup %15116  ;;  %v10383_v1 = vrot.slane %v10355_v35, %v18112_v21  ;;  %v14006_v31 = vmul.f32 -1.442695, %v8455_v48  ;;  %v8883_v30 = vrot.slane %v18126_v12, %v18086_v19  ;;  %v8887_v61 = vrot.slane %v18126_v12, %v18089_v38 }
 0x82d   :  { %v15119_v14 = vpop.eup %15118  ;;  %15140 = vrcp.f32 %v8642_v36  ;;  %v10384_v44 = vcombine.low %v10362_v57, %v10369_v9  ;;  %v8891_v50 = vrot.slane %v18126_v12, %v18092_v54  ;;  %v8895_v2 = vrot.slane %v18126_v12, %v18095_v16 }
 0x82e   :  { %v15121_v34 = vpop.eup %15120  ;;  %v8641_v63 = vadd.f32 1.0, %v15119_v14  ;;  %v10385_v58 = vcombine.low %v10376_v39, %v10383_v1  ;;  %15142 = vpow2.f32 %v14007_v25  ;;  %v8899_v23 = vrot.slane %v18126_v12, %v18098_v22 }
 0x82f   :  { %v15123_v29 = vpop.eup %15122  ;;  %v8644_v6 = vadd.f32 1.0, %v15121_v34  ;;  %v10392_v59 = vrot.slane %v10384_v44, %v18112_v21  ;;  %15144 = vpow2.f32 %v14006_v31  ;;  %v8903_v62 = vrot.slane %v18126_v12, %v18103_v53  ;;  %v8372_v34 = vpop.xlane.xlu1 %8371 }
 0x830   :  { %v18189_v3 = vpop.eup %15124  ;;  %15146 = vrcp.f32 %v8641_v63  ;;  %v8643_v55 = vadd.f32 1.0, %v15123_v29  ;;  %v10399_v4 = vrot.slane %v10385_v58, %v18112_v21  ;;  %v8907_v18 = vrot.slane %v18126_v12, %v18106_v11  ;;  %v8369_v63 = vpop.xlane.xlu0 %8368 }
 0x831   :  { %v18194_v52 = vpop.eup %15126  ;;  %15148 = vrcp.f32 %v8644_v6  ;;  %v8911_v37 = vrot.slane %v18126_v12, %v18109_v28  ;;  %v10450_v41 = vcombine.low %v8883_v30, %v8887_v61  ;;  %v10451_v5 = vcombine.low %v8891_v50, %v8895_v2 }
 0x832   :  { %v15129_v13 = vpop.eup %15128  ;;  %15150 = vrcp.f32 %v8643_v55  ;;  %v10400_v47 = vcombine.low %v10392_v59, %v10399_v4  ;;  %v10452_v60 = vcombine.low %v8899_v23, %v8903_v62  ;;  %v8458_v7 = vadd.f32 %v18065_v45, %v8366_v26 }
 0x833   :  { %v15131_v20 = vpop.eup %15130  ;;  %v8646_v46 = vadd.f32 1.0, %v15129_v13  ;;  %v10453_v32 = vcombine.low %v8907_v18, %v8911_v37  ;;  %v10460_v27 = vrot.slane %v10450_v41, %v18112_v21  ;;  %v10467_v0 = vrot.slane %v10451_v5, %v18112_v21 }
 0x834   :  { %v18201_v24 = vpop.eup %15132  ;;  %v8645_v35 = vadd.f32 1.0, %v15131_v20  ;;  %12705 = vperm.xlu1 %15029, %v10400_v47   ;;  %v10474_v12 = vrot.slane %v10452_v60, %v18112_v21  ;;  %v14009_v57 = vmul.f32 -1.442695, %v8458_v7  ;;  %v8457_v48 = vadd.f32 %v18065_v45, %v8363_v8 }
 0x835   :  { %v18205_v36 = vpop.eup %15134  ;;  %15152 = vrcp.f32 %v8646_v46  ;;  %v10481_v9 = vrot.slane %v10453_v32, %v18112_v21  ;;  %v10482_v39 = vcombine.low %v10460_v27, %v10467_v0  ;;  %v8915_v25 = vrot.slane %v18132_v43, %v18086_v19 }
 0x836   :  { %v18210_v1 = vpop.eup %15136  ;;  %15154 = vrcp.f32 %v8645_v35  ;;  %v14008_v31 = vmul.f32 -1.442695, %v8457_v48  ;;  %v8919_v30 = vrot.slane %v18132_v43, %v18089_v38  ;;  %v8923_v61 = vrot.slane %v18132_v43, %v18092_v54 }
 0x837   :  { %v18216_v14 = vpop.eup %15138  ;;  %v10483_v44 = vcombine.low %v10474_v12, %v10481_v9  ;;  %v10490_v50 = vrot.slane %v10482_v39, %v18112_v21  ;;  %15156 = vpow2.f32 %v14009_v57  ;;  %v8927_v2 = vrot.slane %v18132_v43, %v18095_v16 }
 0x838   :  { %15158 = vpow2.f32 %v14008_v31  ;;  %v8931_v58 = vrot.slane %v18132_v43, %v18098_v22  ;;  %v8935_v23 = vrot.slane %v18132_v43, %v18103_v53  ;;  %v8939_v29 = vrot.slane %v18132_v43, %v18106_v11 }
 0x839   :  { %v10497_v6 = vrot.slane %v10483_v44, %v18112_v21  ;;  %v8943_v59 = vrot.slane %v18132_v43, %v18109_v28  ;;  %v10499_v62 = vcombine.low %v8915_v25, %v8919_v30  ;;  %v10500_v26 = vcombine.low %v8923_v61, %v8927_v2  ;;  %v8375_v2 = vpop.xlane.xlu0 %8374 }
 0x83a   :  { %v18230_v55 = vpop.eup %15140  ;;  %v10501_v4 = vcombine.low %v8931_v58, %v8935_v23  ;;  %v8460_v18 = vadd.f32 %v18065_v45, %v8372_v34  ;;  %v8459_v37 = vadd.f32 %v18065_v45, %v8369_v63  ;;  %v8947_v41 = vrot.slane %v18130_v33, %v18086_v19 }
 0x83b   :  { %v15143_v5 = vpop.eup %15142  ;;  %v10498_v8 = vcombine.low %v10490_v50, %v10497_v6  ;;  %v10502_v13 = vcombine.low %v8939_v29, %v8943_v59  ;;  %v10509_v47 = vrot.slane %v10499_v62, %v18112_v21  ;;  %v10516_v60 = vrot.slane %v10500_v26, %v18112_v21  ;;  %v8378_v50 = vpop.xlane.xlu1 %8377 }
 0x83c   :  { %v15145_v43 = vpop.eup %15144  ;;  %v8648_v7 = vadd.f32 1.0, %v15143_v5  ;;  %v10523_v20 = vrot.slane %v10501_v4, %v18112_v21  ;;  %v14011_v46 = vmul.f32 -1.442695, %v8460_v18  ;;  %v14010_v32 = vmul.f32 -1.442695, %v8459_v37 }
 0x83d   :  { %v18239_v27 = vpop.eup %15146  ;;  %v8647_v0 = vadd.f32 1.0, %v15145_v43  ;;  %12711 = vperm.xlu1 %15029, %v10498_v8   ;;  %v10530_v35 = vrot.slane %v10502_v13, %v18112_v21  ;;  %v10531_v12 = vcombine.low %v10509_v47, %v10516_v60  ;;  %v8951_v57 = vrot.slane %v18130_v33, %v18089_v38 }
 0x83e   :  { %v18244_v48 = vpop.eup %15148  ;;  %15160 = vrcp.f32 %v8648_v7  ;;  %v8955_v9 = vrot.slane %v18130_v33, %v18092_v54  ;;  %v8959_v39 = vrot.slane %v18130_v33, %v18095_v16  ;;  %v8963_v25 = vrot.slane %v18130_v33, %v18098_v22 }
 0x83f   :  { %v18252_v31 = vpop.eup %15150  ;;  %15162 = vrcp.f32 %v8647_v0  ;;  %v10532_v30 = vcombine.low %v10523_v20, %v10530_v35  ;;  %v10539_v61 = vrot.slane %v10531_v12, %v18112_v21  ;;  %v8967_v44 = vrot.slane %v18130_v33, %v18103_v53 }
 0x840   :  { %15164 = vpow2.f32 %v14011_v46  ;;  %v8971_v34 = vrot.slane %v18130_v33, %v18106_v11  ;;  %v8975_v63 = vrot.slane %v18130_v33, %v18109_v28  ;;  %v10548_v58 = vcombine.low %v8947_v41, %v8951_v57 }
 0x841   :  { %v10546_v23 = vrot.slane %v10532_v30, %v18112_v21  ;;  %15166 = vpow2.f32 %v14010_v32  ;;  %v10549_v29 = vcombine.low %v8955_v9, %v8959_v39  ;;  %v10550_v6 = vcombine.low %v8963_v25, %v8967_v44  ;;  %v8384_v39 = vpop.xlane.xlu1 %8383  ;;  %v8381_v44 = vpop.xlane.xlu0 %8380 }
 0x842   :  { %v18262_v59 = vpop.eup %15152  ;;  %v10551_v62 = vcombine.low %v8971_v34, %v8975_v63  ;;  %v10558_v26 = vrot.slane %v10548_v58, %v18112_v21  ;;  %v8462_v4 = vadd.f32 %v18065_v45, %v8378_v50  ;;  %v8461_v18 = vadd.f32 %v18065_v45, %v8375_v2 }
 0x843   :  { %v18267_v37 = vpop.eup %15154  ;;  %v10547_v5 = vcombine.low %v10539_v61, %v10546_v23  ;;  %v10565_v33 = vrot.slane %v10549_v29, %v18112_v21  ;;  %v10572_v41 = vrot.slane %v10550_v6, %v18112_v21  ;;  %v8979_v8 = vrot.slane %v18142_v51, %v18086_v19 }
 0x844   :  { %v15157_v13 = vpop.eup %15156  ;;  %v10579_v47 = vrot.slane %v10551_v62, %v18112_v21  ;;  %v14013_v60 = vmul.f32 -1.442695, %v8462_v4  ;;  %v14012_v43 = vmul.f32 -1.442695, %v8461_v18  ;;  %v8983_v7 = vrot.slane %v18142_v51, %v18089_v38 }
 0x845   :  { %v15159_v20 = vpop.eup %15158  ;;  %v8650_v46 = vadd.f32 1.0, %v15157_v13  ;;  %12714 = vperm.xlu1 %15029, %v10547_v5   ;;  %v10580_v32 = vcombine.low %v10558_v26, %v10565_v33  ;;  %v8987_v0 = vrot.slane %v18142_v51, %v18092_v54  ;;  %v8991_v35 = vrot.slane %v18142_v51, %v18095_v16 }
 0x846   :  { %v8649_v12 = vadd.f32 1.0, %v15159_v20  ;;  %v10581_v57 = vcombine.low %v10572_v41, %v10579_v47  ;;  %15168 = vpow2.f32 %v14013_v60  ;;  %v8995_v9 = vrot.slane %v18142_v51, %v18098_v22 }
 0x847   :  { %15170 = vrcp.f32 %v8650_v46  ;;  %v10588_v25 = vrot.slane %v10580_v32, %v18112_v21  ;;  %v8999_v30 = vrot.slane %v18142_v51, %v18103_v53  ;;  %v9003_v61 = vrot.slane %v18142_v51, %v18106_v11 }
 0x848   :  { %15172 = vrcp.f32 %v8649_v12  ;;  %v10595_v50 = vrot.slane %v10581_v57, %v18112_v21  ;;  %v9007_v2 = vrot.slane %v18142_v51, %v18109_v28  ;;  %v10597_v34 = vcombine.low %v8979_v8, %v8983_v7 }
 0x849   :  { %15174 = vpow2.f32 %v14012_v43  ;;  %v10598_v63 = vcombine.low %v8987_v0, %v8991_v35  ;;  %v10599_v58 = vcombine.low %v8995_v9, %v8999_v30  ;;  %v8464_v23 = vadd.f32 %v18065_v45, %v8384_v39 }
 0x84a   :  { %v10596_v29 = vcombine.low %v10588_v25, %v10595_v50  ;;  %v10600_v6 = vcombine.low %v9003_v61, %v9007_v2  ;;  %v10607_v62 = vrot.slane %v10597_v34, %v18112_v21  ;;  %v8463_v26 = vadd.f32 %v18065_v45, %v8381_v44 }
 0x84b   :  { %v18293_v4 = vpop.eup %15160  ;;  %v10614_v18 = vrot.slane %v10598_v63, %v18112_v21  ;;  %v10621_v5 = vrot.slane %v10599_v58, %v18112_v21  ;;  %v14015_v33 = vmul.f32 -1.442695, %v8464_v23  ;;  %v9139_v51 = vrot.slane %v18169_v42, %v18086_v19 }
 0x84c   :  { %v18299_v41 = vpop.eup %15162  ;;  %12717 = vperm.xlu1 %15029, %v10596_v29   ;;  %v10628_v8 = vrot.slane %v10600_v6, %v18112_v21  ;;  %v14014_v13 = vmul.f32 -1.442695, %v8463_v26  ;;  %v9143_v47 = vrot.slane %v18169_v42, %v18089_v38  ;;  %v9147_v60 = vrot.slane %v18169_v42, %v18092_v54 }
 0x84d   :  { %v15165_v43 = vpop.eup %15164  ;;  %v10629_v7 = vcombine.low %v10607_v62, %v10614_v18  ;;  %15176 = vpow2.f32 %v14015_v33  ;;  %v9151_v20 = vrot.slane %v18169_v42, %v18095_v16  ;;  %v9155_v46 = vrot.slane %v18169_v42, %v18098_v22 }
 0x84e   :  { %v15167_v32 = vpop.eup %15166  ;;  %v8652_v0 = vadd.f32 1.0, %v15165_v43  ;;  %v10630_v35 = vcombine.low %v10621_v5, %v10628_v8  ;;  %15178 = vpow2.f32 %v14014_v13  ;;  %v9159_v12 = vrot.slane %v18169_v42, %v18103_v53 }
 0x84f   :  { %v8651_v57 = vadd.f32 1.0, %v15167_v32  ;;  %v10637_v9 = vrot.slane %v10629_v7, %v18112_v21  ;;  %v9163_v39 = vrot.slane %v18169_v42, %v18106_v11  ;;  %v9167_v25 = vrot.slane %v18169_v42, %v18109_v28  ;;  %v8387_v32 = vpop.xlane.xlu0 %8386 }
 0x850   :  { %15180 = vrcp.f32 %v8652_v0  ;;  %v10644_v30 = vrot.slane %v10630_v35, %v18112_v21  ;;  %v10842_v61 = vcombine.low %v9139_v51, %v9143_v47  ;;  %v10843_v44 = vcombine.low %v9147_v60, %v9151_v20 }
 0x851   :  { %15182 = vrcp.f32 %v8651_v57  ;;  %v10844_v50 = vcombine.low %v9155_v46, %v9159_v12  ;;  %v10845_v2 = vcombine.low %v9163_v39, %v9167_v25  ;;  %v9011_v34 = vrot.slane %v18140_v10, %v18086_v19  ;;  %v8390_v46 = vpop.xlane.xlu1 %8389 }
 0x852   :  { %v10645_v63 = vcombine.low %v10637_v9, %v10644_v30  ;;  %v10852_v58 = vrot.slane %v10842_v61, %v18112_v21  ;;  %v10859_v23 = vrot.slane %v10843_v44, %v18112_v21  ;;  %v9015_v29 = vrot.slane %v18140_v10, %v18089_v38 }
 0x853   :  { %v15169_v42 = vpop.eup %15168  ;;  %v10866_v6 = vrot.slane %v10844_v50, %v18112_v21  ;;  %v10873_v62 = vrot.slane %v10845_v2, %v18112_v21  ;;  %v9019_v26 = vrot.slane %v18140_v10, %v18092_v54  ;;  %v9023_v18 = vrot.slane %v18140_v10, %v18095_v16 }
 0x854   :  { %v18330_v5 = vpop.eup %15170  ;;  %v8654_v33 = vadd.f32 1.0, %v15169_v42  ;;  %12720 = vperm.xlu1 %15029, %v10645_v63   ;;  %v10874_v51 = vcombine.low %v10852_v58, %v10859_v23  ;;  %v9027_v8 = vrot.slane %v18140_v10, %v18098_v22  ;;  %v9031_v13 = vrot.slane %v18140_v10, %v18103_v53 }
 0x855   :  { %v18336_v47 = vpop.eup %15172  ;;  %v10875_v60 = vcombine.low %v10866_v6, %v10873_v62  ;;  %v9035_v43 = vrot.slane %v18140_v10, %v18106_v11  ;;  %v9039_v7 = vrot.slane %v18140_v10, %v18109_v28  ;;  %v10646_v20 = vcombine.low %v9011_v34, %v9015_v29 }
 0x856   :  { %v15175_v0 = vpop.eup %15174  ;;  %15184 = vrcp.f32 %v8654_v33  ;;  %v10882_v35 = vrot.slane %v10874_v51, %v18112_v21  ;;  %v10647_v12 = vcombine.low %v9019_v26, %v9023_v18  ;;  %v10648_v57 = vcombine.low %v9027_v8, %v9031_v13 }
 0x857   :  { %v8653_v9 = vadd.f32 1.0, %v15175_v0  ;;  %v10889_v39 = vrot.slane %v10875_v60, %v18112_v21  ;;  %v10649_v25 = vcombine.low %v9035_v43, %v9039_v7  ;;  %v10656_v30 = vrot.slane %v10646_v20, %v18112_v21 }
 0x858   :  { %v10663_v61 = vrot.slane %v10647_v12, %v18112_v21  ;;  %v10670_v44 = vrot.slane %v10648_v57, %v18112_v21  ;;  %v8466_v10 = vadd.f32 %v18065_v45, %v8390_v46  ;;  %v8465_v50 = vadd.f32 %v18065_v45, %v8387_v32 }
 0x859   :  { %15186 = vrcp.f32 %v8653_v9  ;;  %v10890_v2 = vcombine.low %v10882_v35, %v10889_v39  ;;  %v10677_v34 = vrot.slane %v10649_v25, %v18112_v21  ;;  %v9203_v63 = vrot.slane %v18189_v3, %v18086_v19 }
 0x85a   :  { %v15177_v58 = vpop.eup %15176  ;;  %v10678_v23 = vcombine.low %v10656_v30, %v10663_v61  ;;  %v14017_v29 = vmul.f32 -1.442695, %v8466_v10  ;;  %v14016_v42 = vmul.f32 -1.442695, %v8465_v50  ;;  %v9207_v6 = vrot.slane %v18189_v3, %v18089_v38  ;;  %v8396_v10 = vpop.xlane.xlu1 %8395 }
 0x85b   :  { %v15179_v62 = vpop.eup %15178  ;;  %v8656_v26 = vadd.f32 1.0, %v15177_v58  ;;  %12735 = vperm.xlu0 %15030, %v10890_v2   ;;  %v10679_v18 = vcombine.low %v10670_v44, %v10677_v34  ;;  %v9211_v33 = vrot.slane %v18189_v3, %v18092_v54  ;;  %v9215_v51 = vrot.slane %v18189_v3, %v18095_v16 }
 0x85c   :  { %v8655_v8 = vadd.f32 1.0, %v15179_v62  ;;  %v10686_v13 = vrot.slane %v10678_v23, %v18112_v21  ;;  %15188 = vpow2.f32 %v14017_v29  ;;  %v9219_v60 = vrot.slane %v18189_v3, %v18098_v22 }
 0x85d   :  { %v18361_v43 = vpop.eup %15180  ;;  %15190 = vrcp.f32 %v8656_v26  ;;  %v10693_v7 = vrot.slane %v10679_v18, %v18112_v21  ;;  %v9223_v20 = vrot.slane %v18189_v3, %v18103_v53  ;;  %v9227_v46 = vrot.slane %v18189_v3, %v18106_v11 }
 0x85e   :  { %v18368_v32 = vpop.eup %15182  ;;  %15192 = vrcp.f32 %v8655_v8  ;;  %v9231_v0 = vrot.slane %v18189_v3, %v18109_v28  ;;  %v10940_v35 = vcombine.low %v9203_v63, %v9207_v6  ;;  %v10941_v12 = vcombine.low %v9211_v33, %v9215_v51  ;;  %v8393_v63 = vpop.xlane.xlu0 %8392 }
 0x85f   :  { %v10694_v57 = vcombine.low %v10686_v13, %v10693_v7  ;;  %15194 = vpow2.f32 %v14016_v42  ;;  %v10942_v9 = vcombine.low %v9219_v60, %v9223_v20  ;;  %v9043_v39 = vrot.slane %v18164_v17, %v18086_v19 }
 0x860   :  { %v10943_v25 = vcombine.low %v9227_v46, %v9231_v0  ;;  %v10950_v30 = vrot.slane %v10940_v35, %v18112_v21  ;;  %v10957_v61 = vrot.slane %v10941_v12, %v18112_v21  ;;  %v9047_v44 = vrot.slane %v18164_v17, %v18089_v38 }
 0x861   :  { %12723 = vperm.xlu1 %15029, %v10694_v57   ;;  %v10964_v3 = vrot.slane %v10942_v9, %v18112_v21  ;;  %v9051_v50 = vrot.slane %v18164_v17, %v18092_v54  ;;  %v9055_v2 = vrot.slane %v18164_v17, %v18095_v16  ;;  %v9059_v34 = vrot.slane %v18164_v17, %v18098_v22 }
 0x862   :  { %v10971_v58 = vrot.slane %v10943_v25, %v18112_v21  ;;  %v10972_v23 = vcombine.low %v10950_v30, %v10957_v61  ;;  %v9063_v29 = vrot.slane %v18164_v17, %v18103_v53  ;;  %v9067_v42 = vrot.slane %v18164_v17, %v18106_v11 }
 0x863   :  { %v18390_v6 = vpop.eup %15184  ;;  %v9071_v62 = vrot.slane %v18164_v17, %v18109_v28  ;;  %v10695_v26 = vcombine.low %v9043_v39, %v9047_v44  ;;  %v10696_v18 = vcombine.low %v9051_v50, %v9055_v2  ;;  %v8468_v33 = vadd.f32 %v18065_v45, %v8396_v10 }
 0x864   :  { %v10973_v51 = vcombine.low %v10964_v3, %v10971_v58  ;;  %v10980_v8 = vrot.slane %v10972_v23, %v18112_v21  ;;  %v10697_v13 = vcombine.low %v9059_v34, %v9063_v29  ;;  %v8467_v60 = vadd.f32 %v18065_v45, %v8393_v63 }
 0x865   :  { %v10698_v7 = vcombine.low %v9067_v42, %v9071_v62  ;;  %v10705_v20 = vrot.slane %v10695_v26, %v18112_v21  ;;  %v10712_v46 = vrot.slane %v10696_v18, %v18112_v21  ;;  %v14019_v0 = vmul.f32 -1.442695, %v8468_v33 }
 0x866   :  { %v18399_v35 = vpop.eup %15186  ;;  %v10987_v17 = vrot.slane %v10973_v51, %v18112_v21  ;;  %v10719_v12 = vrot.slane %v10697_v13, %v18112_v21  ;;  %v14018_v57 = vmul.f32 -1.442695, %v8467_v60  ;;  %v9267_v9 = vrot.slane %v18201_v24, %v18086_v19 }
 0x867   :  { %v10726_v39 = vrot.slane %v10698_v7, %v18112_v21  ;;  %v10727_v25 = vcombine.low %v10705_v20, %v10712_v46  ;;  %15196 = vpow2.f32 %v14019_v0  ;;  %v9271_v30 = vrot.slane %v18201_v24, %v18089_v38 }
 0x868   :  { %v10988_v61 = vcombine.low %v10980_v8, %v10987_v17  ;;  %15198 = vpow2.f32 %v14018_v57  ;;  %v9275_v44 = vrot.slane %v18201_v24, %v18092_v54  ;;  %v9279_v10 = vrot.slane %v18201_v24, %v18095_v16 }
 0x869   :  { %v15189_v3 = vpop.eup %15188  ;;  %v10728_v50 = vcombine.low %v10719_v12, %v10726_v39  ;;  %v10735_v2 = vrot.slane %v10727_v25, %v18112_v21  ;;  %v9283_v34 = vrot.slane %v18201_v24, %v18098_v22  ;;  %v9287_v63 = vrot.slane %v18201_v24, %v18103_v53  ;;  %v8402_v25 = vpop.xlane.xlu1 %8401 }
 0x86a   :  { %v18417_v58 = vpop.eup %15190  ;;  %v8658_v23 = vadd.f32 1.0, %v15189_v3  ;;  %12741 = vperm.xlu0 %15030, %v10988_v61   ;;  %v9291_v29 = vrot.slane %v18201_v24, %v18106_v11  ;;  %v9295_v42 = vrot.slane %v18201_v24, %v18109_v28  ;;  %v11038_v62 = vcombine.low %v9267_v9, %v9271_v30  ;;  %v8399_v30 = vpop.xlane.xlu0 %8398 }
 0x86b   :  { %v18423_v26 = vpop.eup %15192  ;;  %v10742_v18 = vrot.slane %v10728_v50, %v18112_v21  ;;  %v11039_v33 = vcombine.low %v9275_v44, %v9279_v10  ;;  %v11040_v51 = vcombine.low %v9283_v34, %v9287_v63  ;;  %v9075_v8 = vrot.slane %v18160_v15, %v18086_v19 }
 0x86c   :  { %v15195_v13 = vpop.eup %15194  ;;  %15200 = vrcp.f32 %v8658_v23  ;;  %v11041_v60 = vcombine.low %v9291_v29, %v9295_v42  ;;  %v11048_v7 = vrot.slane %v11038_v62, %v18112_v21  ;;  %v9079_v20 = vrot.slane %v18160_v15, %v18089_v38 }
 0x86d   :  { %v8657_v46 = vadd.f32 1.0, %v15195_v13  ;;  %v10743_v24 = vcombine.low %v10735_v2, %v10742_v18  ;;  %v11055_v0 = vrot.slane %v11039_v33, %v18112_v21  ;;  %v11062_v17 = vrot.slane %v11040_v51, %v18112_v21 }
 0x86e   :  { %v11069_v12 = vrot.slane %v11041_v60, %v18112_v21  ;;  %v9083_v57 = vrot.slane %v18160_v15, %v18092_v54  ;;  %v9087_v9 = vrot.slane %v18160_v15, %v18095_v16  ;;  %v9091_v39 = vrot.slane %v18160_v15, %v18098_v22 }
 0x86f   :  { %15202 = vrcp.f32 %v8657_v46  ;;  %12726 = vperm.xlu1 %15029, %v10743_v24   ;;  %v11070_v61 = vcombine.low %v11048_v7, %v11055_v0  ;;  %v9095_v44 = vrot.slane %v18160_v15, %v18103_v53  ;;  %v9099_v10 = vrot.slane %v18160_v15, %v18106_v11 }
 0x870   :  { %v11071_v3 = vcombine.low %v11062_v17, %v11069_v12  ;;  %v9103_v50 = vrot.slane %v18160_v15, %v18109_v28  ;;  %v10744_v2 = vcombine.low %v9075_v8, %v9079_v20  ;;  %v10745_v34 = vcombine.low %v9083_v57, %v9087_v9 }
 0x871   :  { %v11078_v63 = vrot.slane %v11070_v61, %v18112_v21  ;;  %v10746_v23 = vcombine.low %v9091_v39, %v9095_v44  ;;  %v8470_v29 = vadd.f32 %v18065_v45, %v8402_v25  ;;  %v8469_v42 = vadd.f32 %v18065_v45, %v8399_v30 }
 0x872   :  { %v11085_v62 = vrot.slane %v11071_v3, %v18112_v21  ;;  %v10747_v18 = vcombine.low %v9099_v10, %v9103_v50  ;;  %v10754_v33 = vrot.slane %v10744_v2, %v18112_v21  ;;  %v10761_v51 = vrot.slane %v10745_v34, %v18112_v21 }
 0x873   :  { %v10768_v13 = vrot.slane %v10746_v23, %v18112_v21  ;;  %v14021_v60 = vmul.f32 -1.442695, %v8470_v29  ;;  %v14020_v15 = vmul.f32 -1.442695, %v8469_v42  ;;  %v9331_v8 = vrot.slane %v18210_v1, %v18086_v19 }
 0x874   :  { %v15197_v7 = vpop.eup %15196  ;;  %v11086_v20 = vcombine.low %v11078_v63, %v11085_v62  ;;  %v10775_v46 = vrot.slane %v10747_v18, %v18112_v21  ;;  %v10776_v24 = vcombine.low %v10754_v33, %v10761_v51  ;;  %v9335_v0 = vrot.slane %v18210_v1, %v18089_v38 }
 0x875   :  { %v15199_v17 = vpop.eup %15198  ;;  %v8660_v12 = vadd.f32 1.0, %v15197_v7  ;;  %15204 = vpow2.f32 %v14021_v60  ;;  %v9339_v57 = vrot.slane %v18210_v1, %v18092_v54  ;;  %v9343_v9 = vrot.slane %v18210_v1, %v18095_v16  ;;  %v8405_v7 = vpop.xlane.xlu0 %8404 }
 0x876   :  { %v8659_v39 = vadd.f32 1.0, %v15199_v17  ;;  %12747 = vperm.xlu0 %15030, %v11086_v20   ;;  %v10777_v25 = vcombine.low %v10768_v13, %v10775_v46  ;;  %v10784_v30 = vrot.slane %v10776_v24, %v18112_v21  ;;  %15206 = vpow2.f32 %v14020_v15  ;;  %v8408_v13 = vpop.xlane.xlu1 %8407 }
 0x877   :  { %15208 = vrcp.f32 %v8660_v12  ;;  %v9347_v61 = vrot.slane %v18210_v1, %v18098_v22  ;;  %v9351_v44 = vrot.slane %v18210_v1, %v18103_v53  ;;  %v9355_v10 = vrot.slane %v18210_v1, %v18106_v11 }
 0x878   :  { %15210 = vrcp.f32 %v8659_v39  ;;  %v10791_v3 = vrot.slane %v10777_v25, %v18112_v21  ;;  %v9359_v50 = vrot.slane %v18210_v1, %v18109_v28  ;;  %v11136_v2 = vcombine.low %v9331_v8, %v9335_v0 }
 0x879   :  { %v18472_v34 = vpop.eup %15200  ;;  %v11137_v63 = vcombine.low %v9339_v57, %v9343_v9  ;;  %v11138_v23 = vcombine.low %v9347_v61, %v9351_v44  ;;  %v9107_v29 = vrot.slane %v18173_v56, %v18086_v19  ;;  %v9111_v42 = vrot.slane %v18173_v56, %v18089_v38 }
 0x87a   :  { %v10792_v62 = vcombine.low %v10784_v30, %v10791_v3  ;;  %v11139_v18 = vcombine.low %v9355_v10, %v9359_v50  ;;  %v11146_v33 = vrot.slane %v11136_v2, %v18112_v21  ;;  %v9115_v51 = vrot.slane %v18173_v56, %v18092_v54 }
 0x87b   :  { %v11153_v1 = vrot.slane %v11137_v63, %v18112_v21  ;;  %v11160_v60 = vrot.slane %v11138_v23, %v18112_v21  ;;  %v9119_v15 = vrot.slane %v18173_v56, %v18095_v16  ;;  %v9123_v8 = vrot.slane %v18173_v56, %v18098_v22 }
 0x87c   :  { %v18487_v20 = vpop.eup %15202  ;;  %12729 = vperm.xlu1 %15029, %v10792_v62   ;;  %v11167_v46 = vrot.slane %v11139_v18, %v18112_v21  ;;  %v9127_v24 = vrot.slane %v18173_v56, %v18103_v53  ;;  %v9131_v0 = vrot.slane %v18173_v56, %v18106_v11  ;;  %v9135_v17 = vrot.slane %v18173_v56, %v18109_v28 }
 0x87d   :  { %v11168_v12 = vcombine.low %v11146_v33, %v11153_v1  ;;  %v10793_v57 = vcombine.low %v9107_v29, %v9111_v42  ;;  %v10794_v9 = vcombine.low %v9115_v51, %v9119_v15  ;;  %v8472_v39 = vadd.f32 %v18065_v45, %v8408_v13 }
 0x87e   :  { %v11169_v25 = vcombine.low %v11160_v60, %v11167_v46  ;;  %v10795_v30 = vcombine.low %v9123_v8, %v9127_v24  ;;  %v10796_v61 = vcombine.low %v9131_v0, %v9135_v17  ;;  %v8471_v44 = vadd.f32 %v18065_v45, %v8405_v7 }
 0x87f   :  { %v11176_v10 = vrot.slane %v11168_v12, %v18112_v21  ;;  %v10803_v3 = vrot.slane %v10793_v57, %v18112_v21  ;;  %v10810_v50 = vrot.slane %v10794_v9, %v18112_v21  ;;  %v14023_v2 = vmul.f32 -1.442695, %v8472_v39 }
 0x880   :  { %v11183_v63 = vrot.slane %v11169_v25, %v18112_v21  ;;  %v10817_v56 = vrot.slane %v10795_v30, %v18112_v21  ;;  %v10824_v23 = vrot.slane %v10796_v61, %v18112_v21  ;;  %v14022_v29 = vmul.f32 -1.442695, %v8471_v44 }
 0x881   :  { %v10825_v42 = vcombine.low %v10803_v3, %v10810_v50  ;;  %15212 = vpow2.f32 %v14023_v2  ;;  %v9395_v62 = vrot.slane %v18230_v55, %v18086_v19  ;;  %v9399_v18 = vrot.slane %v18230_v55, %v18089_v38 }
 0x882   :  { %v15205_v33 = vpop.eup %15204  ;;  %v11184_v51 = vcombine.low %v11176_v10, %v11183_v63  ;;  %v10826_v13 = vcombine.low %v10817_v56, %v10824_v23  ;;  %15214 = vpow2.f32 %v14022_v29  ;;  %v9403_v1 = vrot.slane %v18230_v55, %v18092_v54  ;;  %v8414_v56 = vpop.xlane.xlu1 %8413 }
 0x883   :  { %v15207_v60 = vpop.eup %15206  ;;  %v8662_v15 = vadd.f32 1.0, %v15205_v33  ;;  %v10833_v8 = vrot.slane %v10825_v42, %v18112_v21  ;;  %v9407_v7 = vrot.slane %v18230_v55, %v18095_v16  ;;  %v9411_v46 = vrot.slane %v18230_v55, %v18098_v22 }
 0x884   :  { %v18515_v24 = vpop.eup %15208  ;;  %v8661_v0 = vadd.f32 1.0, %v15207_v60  ;;  %12753 = vperm.xlu0 %15030, %v11184_v51   ;;  %v10840_v17 = vrot.slane %v10826_v13, %v18112_v21  ;;  %v9415_v12 = vrot.slane %v18230_v55, %v18103_v53  ;;  %v9419_v57 = vrot.slane %v18230_v55, %v18106_v11 }
 0x885   :  { %v18522_v9 = vpop.eup %15210  ;;  %15216 = vrcp.f32 %v8662_v15  ;;  %v9423_v39 = vrot.slane %v18230_v55, %v18109_v28  ;;  %v11234_v25 = vcombine.low %v9395_v62, %v9399_v18  ;;  %v11235_v30 = vcombine.low %v9403_v1, %v9407_v7  ;;  %v8411_v62 = vpop.xlane.xlu0 %8410 }
 0x886   :  { %15218 = vrcp.f32 %v8661_v0  ;;  %v10841_v61 = vcombine.low %v10833_v8, %v10840_v17  ;;  %v11236_v44 = vcombine.low %v9411_v46, %v9415_v12  ;;  %v9171_v10 = vrot.slane %v18194_v52, %v18086_v19 }
 0x887   :  { %v11237_v3 = vcombine.low %v9419_v57, %v9423_v39  ;;  %v11244_v50 = vrot.slane %v11234_v25, %v18112_v21  ;;  %v11251_v2 = vrot.slane %v11235_v30, %v18112_v21  ;;  %v9175_v63 = vrot.slane %v18194_v52, %v18089_v38 }
 0x888   :  { %12732 = vperm.xlu1 %15029, %v10841_v61   ;;  %v11258_v55 = vrot.slane %v11236_v44, %v18112_v21  ;;  %v9179_v23 = vrot.slane %v18194_v52, %v18092_v54  ;;  %v9183_v29 = vrot.slane %v18194_v52, %v18095_v16  ;;  %v9187_v42 = vrot.slane %v18194_v52, %v18098_v22 }
 0x889   :  { %v11265_v18 = vrot.slane %v11237_v3, %v18112_v21  ;;  %v11266_v33 = vcombine.low %v11244_v50, %v11251_v2  ;;  %v9191_v51 = vrot.slane %v18194_v52, %v18103_v53  ;;  %v9195_v13 = vrot.slane %v18194_v52, %v18106_v11 }
 0x88a   :  { %v9199_v1 = vrot.slane %v18194_v52, %v18109_v28  ;;  %v10891_v60 = vcombine.low %v9171_v10, %v9175_v63  ;;  %v10892_v15 = vcombine.low %v9179_v23, %v9183_v29  ;;  %v8474_v8 = vadd.f32 %v18065_v45, %v8414_v56 }
 0x88b   :  { %v11267_v7 = vcombine.low %v11258_v55, %v11265_v18  ;;  %v11274_v46 = vrot.slane %v11266_v33, %v18112_v21  ;;  %v10893_v0 = vcombine.low %v9187_v42, %v9191_v51  ;;  %v8473_v17 = vadd.f32 %v18065_v45, %v8411_v62 }
 0x88c   :  { %v10894_v12 = vcombine.low %v9195_v13, %v9199_v1  ;;  %v10901_v57 = vrot.slane %v10891_v60, %v18112_v21  ;;  %v10908_v39 = vrot.slane %v10892_v15, %v18112_v21  ;;  %v14025_v25 = vmul.f32 -1.442695, %v8474_v8 }
 0x88d   :  { %v11281_v30 = vrot.slane %v11267_v7, %v18112_v21  ;;  %v10915_v52 = vrot.slane %v10893_v0, %v18112_v21  ;;  %v14024_v61 = vmul.f32 -1.442695, %v8473_v17  ;;  %v9459_v44 = vrot.slane %v18244_v48, %v18086_v19 }
 0x88e   :  { %v15213_v10 = vpop.eup %15212  ;;  %v10922_v3 = vrot.slane %v10894_v12, %v18112_v21  ;;  %v10923_v50 = vcombine.low %v10901_v57, %v10908_v39  ;;  %15220 = vpow2.f32 %v14025_v25  ;;  %v9463_v2 = vrot.slane %v18244_v48, %v18089_v38 }
 0x88f   :  { %v15215_v63 = vpop.eup %15214  ;;  %v8664_v56 = vadd.f32 1.0, %v15213_v10  ;;  %v11282_v55 = vcombine.low %v11274_v46, %v11281_v30  ;;  %15222 = vpow2.f32 %v14024_v61  ;;  %v9467_v23 = vrot.slane %v18244_v48, %v18092_v54 }
 0x890   :  { %v8663_v29 = vadd.f32 1.0, %v15215_v63  ;;  %v10924_v42 = vcombine.low %v10915_v52, %v10922_v3  ;;  %v10931_v62 = vrot.slane %v10923_v50, %v18112_v21  ;;  %v9471_v18 = vrot.slane %v18244_v48, %v18095_v16  ;;  %v8420_v52 = vpop.xlane.xlu1 %8419  ;;  %v8417_v3 = vpop.xlane.xlu0 %8416 }
 0x891   :  { %15224 = vrcp.f32 %v8664_v56  ;;  %12759 = vperm.xlu0 %15030, %v11282_v55   ;;  %v9475_v33 = vrot.slane %v18244_v48, %v18098_v22  ;;  %v9479_v51 = vrot.slane %v18244_v48, %v18103_v53  ;;  %v9483_v13 = vrot.slane %v18244_v48, %v18106_v11 }
 0x892   :  { %v18569_v1 = vpop.eup %15216  ;;  %15226 = vrcp.f32 %v8663_v29  ;;  %v10938_v60 = vrot.slane %v10924_v42, %v18112_v21  ;;  %v9487_v15 = vrot.slane %v18244_v48, %v18109_v28  ;;  %v11332_v8 = vcombine.low %v9459_v44, %v9463_v2 }
 0x893   :  { %v18574_v7 = vpop.eup %15218  ;;  %v11333_v46 = vcombine.low %v9467_v23, %v9471_v18  ;;  %v11334_v0 = vcombine.low %v9475_v33, %v9479_v51  ;;  %v9235_v17 = vrot.slane %v18205_v36, %v18086_v19  ;;  %v9239_v12 = vrot.slane %v18205_v36, %v18089_v38 }
 0x894   :  { %v10939_v57 = vcombine.low %v10931_v62, %v10938_v60  ;;  %v11335_v39 = vcombine.low %v9483_v13, %v9487_v15  ;;  %v11342_v25 = vrot.slane %v11332_v8, %v18112_v21  ;;  %v9243_v30 = vrot.slane %v18205_v36, %v18092_v54 }
 0x895   :  { %v11349_v48 = vrot.slane %v11333_v46, %v18112_v21  ;;  %v11356_v61 = vrot.slane %v11334_v0, %v18112_v21  ;;  %v9247_v44 = vrot.slane %v18205_v36, %v18095_v16  ;;  %v9251_v10 = vrot.slane %v18205_v36, %v18098_v22 }
 0x896   :  { %12738 = vperm.xlu1 %15029, %v10939_v57   ;;  %v11363_v50 = vrot.slane %v11335_v39, %v18112_v21  ;;  %v9255_v2 = vrot.slane %v18205_v36, %v18103_v53  ;;  %v9259_v63 = vrot.slane %v18205_v36, %v18106_v11  ;;  %v9263_v56 = vrot.slane %v18205_v36, %v18109_v28 }
 0x897   :  { %v11364_v55 = vcombine.low %v11342_v25, %v11349_v48  ;;  %v10989_v23 = vcombine.low %v9235_v17, %v9239_v12  ;;  %v10990_v29 = vcombine.low %v9243_v30, %v9247_v44  ;;  %v8476_v42 = vadd.f32 %v18065_v45, %v8420_v52 }
 0x898   :  { %v11365_v62 = vcombine.low %v11356_v61, %v11363_v50  ;;  %v10991_v18 = vcombine.low %v9251_v10, %v9255_v2  ;;  %v10992_v33 = vcombine.low %v9259_v63, %v9263_v56  ;;  %v8475_v51 = vadd.f32 %v18065_v45, %v8417_v3 }
 0x899   :  { %v11372_v13 = vrot.slane %v11364_v55, %v18112_v21  ;;  %v10999_v60 = vrot.slane %v10989_v23, %v18112_v21  ;;  %v11006_v15 = vrot.slane %v10990_v29, %v18112_v21  ;;  %v14027_v8 = vmul.f32 -1.442695, %v8476_v42 }
 0x89a   :  { %v11379_v46 = vrot.slane %v11365_v62, %v18112_v21  ;;  %v11013_v36 = vrot.slane %v10991_v18, %v18112_v21  ;;  %v11020_v0 = vrot.slane %v10992_v33, %v18112_v21  ;;  %v14026_v17 = vmul.f32 -1.442695, %v8475_v51 }
 0x89b   :  { %v15221_v12 = vpop.eup %15220  ;;  %v11021_v57 = vcombine.low %v10999_v60, %v11006_v15  ;;  %15228 = vpow2.f32 %v14027_v8  ;;  %v9523_v39 = vrot.slane %v18262_v59, %v18086_v19  ;;  %v9527_v25 = vrot.slane %v18262_v59, %v18089_v38 }
 0x89c   :  { %v15223_v30 = vpop.eup %15222  ;;  %v8666_v52 = vadd.f32 1.0, %v15221_v12  ;;  %v11380_v48 = vcombine.low %v11372_v13, %v11379_v46  ;;  %v11022_v61 = vcombine.low %v11013_v36, %v11020_v0  ;;  %15230 = vpow2.f32 %v14026_v17  ;;  %v8426_v36 = vpop.xlane.xlu1 %8425 }
 0x89d   :  { %v8665_v44 = vadd.f32 1.0, %v15223_v30  ;;  %v11029_v10 = vrot.slane %v11021_v57, %v18112_v21  ;;  %v9531_v3 = vrot.slane %v18262_v59, %v18092_v54  ;;  %v9535_v50 = vrot.slane %v18262_v59, %v18095_v16  ;;  %v8423_v57 = vpop.xlane.xlu0 %8422 }
 0x89e   :  { %v18613_v2 = vpop.eup %15224  ;;  %15232 = vrcp.f32 %v8666_v52  ;;  %12765 = vperm.xlu0 %15030, %v11380_v48   ;;  %v11036_v63 = vrot.slane %v11022_v61, %v18112_v21  ;;  %v9539_v56 = vrot.slane %v18262_v59, %v18098_v22  ;;  %v9543_v55 = vrot.slane %v18262_v59, %v18103_v53 }
 0x89f   :  { %v18620_v23 = vpop.eup %15226  ;;  %15234 = vrcp.f32 %v8665_v44  ;;  %v9547_v29 = vrot.slane %v18262_v59, %v18106_v11  ;;  %v9551_v42 = vrot.slane %v18262_v59, %v18109_v28  ;;  %v11430_v62 = vcombine.low %v9523_v39, %v9527_v25 }
 0x8a0   :  { %v11037_v18 = vcombine.low %v11029_v10, %v11036_v63  ;;  %v11431_v33 = vcombine.low %v9531_v3, %v9535_v50  ;;  %v11432_v51 = vcombine.low %v9539_v56, %v9543_v55  ;;  %v9299_v13 = vrot.slane %v18216_v14, %v18086_v19 }
 0x8a1   :  { %v11433_v60 = vcombine.low %v9547_v29, %v9551_v42  ;;  %v11440_v15 = vrot.slane %v11430_v62, %v18112_v21  ;;  %v9303_v8 = vrot.slane %v18216_v14, %v18089_v38  ;;  %v9307_v46 = vrot.slane %v18216_v14, %v18092_v54 }
 0x8a2   :  { %12744 = vperm.xlu1 %15029, %v11037_v18   ;;  %v11447_v59 = vrot.slane %v11431_v33, %v18112_v21  ;;  %v11454_v0 = vrot.slane %v11432_v51, %v18112_v21  ;;  %v9311_v17 = vrot.slane %v18216_v14, %v18095_v16  ;;  %v9315_v12 = vrot.slane %v18216_v14, %v18098_v22 }
 0x8a3   :  { %v11461_v39 = vrot.slane %v11433_v60, %v18112_v21  ;;  %v9319_v25 = vrot.slane %v18216_v14, %v18103_v53  ;;  %v9323_v30 = vrot.slane %v18216_v14, %v18106_v11  ;;  %v9327_v52 = vrot.slane %v18216_v14, %v18109_v28 }
 0x8a4   :  { %v11462_v48 = vcombine.low %v11440_v15, %v11447_v59  ;;  %v11087_v61 = vcombine.low %v9299_v13, %v9303_v8  ;;  %v11088_v44 = vcombine.low %v9307_v46, %v9311_v17  ;;  %v8478_v10 = vadd.f32 %v18065_v45, %v8426_v36 }
 0x8a5   :  { %v11463_v3 = vcombine.low %v11454_v0, %v11461_v39  ;;  %v11089_v50 = vcombine.low %v9315_v12, %v9319_v25  ;;  %v11090_v63 = vcombine.low %v9323_v30, %v9327_v52  ;;  %v8477_v56 = vadd.f32 %v18065_v45, %v8423_v57 }
 0x8a6   :  { %v11470_v55 = vrot.slane %v11462_v48, %v18112_v21  ;;  %v11097_v29 = vrot.slane %v11087_v61, %v18112_v21  ;;  %v11104_v42 = vrot.slane %v11088_v44, %v18112_v21  ;;  %v14029_v62 = vmul.f32 -1.442695, %v8478_v10 }
 0x8a7   :  { %v11477_v18 = vrot.slane %v11463_v3, %v18112_v21  ;;  %v11111_v14 = vrot.slane %v11089_v50, %v18112_v21  ;;  %v11118_v33 = vrot.slane %v11090_v63, %v18112_v21  ;;  %v14028_v51 = vmul.f32 -1.442695, %v8477_v56 }
 0x8a8   :  { %v15229_v13 = vpop.eup %15228  ;;  %v11119_v60 = vcombine.low %v11097_v29, %v11104_v42  ;;  %15236 = vpow2.f32 %v14029_v62  ;;  %v9587_v15 = vrot.slane %v18293_v4, %v18086_v19  ;;  %v9591_v8 = vrot.slane %v18293_v4, %v18089_v38 }
 0x8a9   :  { %v15231_v46 = vpop.eup %15230  ;;  %v8668_v36 = vadd.f32 1.0, %v15229_v13  ;;  %v11478_v59 = vcombine.low %v11470_v55, %v11477_v18  ;;  %v11120_v0 = vcombine.low %v11111_v14, %v11118_v33  ;;  %15238 = vpow2.f32 %v14028_v51  ;;  %v8429_v14 = vpop.xlane.xlu0 %8428 }
 0x8aa   :  { %v8667_v17 = vadd.f32 1.0, %v15231_v46  ;;  %v11127_v12 = vrot.slane %v11119_v60, %v18112_v21  ;;  %v9595_v57 = vrot.slane %v18293_v4, %v18092_v54  ;;  %v9599_v39 = vrot.slane %v18293_v4, %v18095_v16 }
 0x8ab   :  { %v18663_v25 = vpop.eup %15232  ;;  %15240 = vrcp.f32 %v8668_v36  ;;  %12771 = vperm.xlu0 %15030, %v11478_v59   ;;  %v11134_v30 = vrot.slane %v11120_v0, %v18112_v21  ;;  %v9603_v52 = vrot.slane %v18293_v4, %v18098_v22  ;;  %v9607_v48 = vrot.slane %v18293_v4, %v18103_v53 }
 0x8ac   :  { %v18670_v61 = vpop.eup %15234  ;;  %15242 = vrcp.f32 %v8667_v17  ;;  %v9611_v44 = vrot.slane %v18293_v4, %v18106_v11  ;;  %v9615_v10 = vrot.slane %v18293_v4, %v18109_v28  ;;  %v11528_v3 = vcombine.low %v9587_v15, %v9591_v8 }
 0x8ad   :  { %v11135_v50 = vcombine.low %v11127_v12, %v11134_v30  ;;  %v11529_v63 = vcombine.low %v9595_v57, %v9599_v39  ;;  %v11530_v56 = vcombine.low %v9603_v52, %v9607_v48  ;;  %v9363_v55 = vrot.slane %v18239_v27, %v18086_v19 }
 0x8ae   :  { %v11531_v29 = vcombine.low %v9611_v44, %v9615_v10  ;;  %v11538_v42 = vrot.slane %v11528_v3, %v18112_v21  ;;  %v9367_v62 = vrot.slane %v18239_v27, %v18089_v38  ;;  %v9371_v18 = vrot.slane %v18239_v27, %v18092_v54 }
 0x8af   :  { %12750 = vperm.xlu1 %15029, %v11135_v50   ;;  %v11545_v4 = vrot.slane %v11529_v63, %v18112_v21  ;;  %v11552_v33 = vrot.slane %v11530_v56, %v18112_v21  ;;  %v9375_v51 = vrot.slane %v18239_v27, %v18095_v16  ;;  %v9379_v13 = vrot.slane %v18239_v27, %v18098_v22 }
 0x8b0   :  { %v11559_v60 = vrot.slane %v11531_v29, %v18112_v21  ;;  %v9383_v15 = vrot.slane %v18239_v27, %v18103_v53  ;;  %v9387_v8 = vrot.slane %v18239_v27, %v18106_v11  ;;  %v9391_v46 = vrot.slane %v18239_v27, %v18109_v28 }
 0x8b1   :  { %v11560_v36 = vcombine.low %v11538_v42, %v11545_v4  ;;  %v11185_v59 = vcombine.low %v9363_v55, %v9367_v62  ;;  %v11186_v0 = vcombine.low %v9371_v18, %v9375_v51  ;;  %v8479_v17 = vadd.f32 %v18065_v45, %v8429_v14 }
 0x8b2   :  { %v11561_v12 = vcombine.low %v11552_v33, %v11559_v60  ;;  %v11187_v57 = vcombine.low %v9379_v13, %v9383_v15  ;;  %v11188_v39 = vcombine.low %v9387_v8, %v9391_v46  ;;  %v9651_v30 = vrot.slane %v18330_v5, %v18086_v19 }
 0x8b3   :  { %v11568_v52 = vrot.slane %v11560_v36, %v18112_v21  ;;  %v11195_v48 = vrot.slane %v11185_v59, %v18112_v21  ;;  %v11202_v44 = vrot.slane %v11186_v0, %v18112_v21  ;;  %v14030_v10 = vmul.f32 -1.442695, %v8479_v17 }
 0x8b4   :  { %v11575_v27 = vrot.slane %v11561_v12, %v18112_v21  ;;  %v11209_v3 = vrot.slane %v11187_v57, %v18112_v21  ;;  %v11216_v50 = vrot.slane %v11188_v39, %v18112_v21  ;;  %v9655_v45 = vrot.slane %v18330_v5, %v18089_v38 }
 0x8b5   :  { %v15237_v63 = vpop.eup %15236  ;;  %v11217_v56 = vcombine.low %v11195_v48, %v11202_v44  ;;  %15244 = vpow2.f32 %v14030_v10  ;;  %v9659_v55 = vrot.slane %v18330_v5, %v18092_v54  ;;  %v9663_v29 = vrot.slane %v18330_v5, %v18095_v16 }
 0x8b6   :  { %v15239_v42 = vpop.eup %15238  ;;  %v8670_v62 = vadd.f32 1.0, %v15237_v63  ;;  %v11576_v18 = vcombine.low %v11568_v52, %v11575_v27  ;;  %v11218_v14 = vcombine.low %v11209_v3, %v11216_v50  ;;  %v9667_v4 = vrot.slane %v18330_v5, %v18098_v22 }
 0x8b7   :  { %v8669_v33 = vadd.f32 1.0, %v15239_v42  ;;  %v11225_v51 = vrot.slane %v11217_v56, %v18112_v21  ;;  %v9671_v13 = vrot.slane %v18330_v5, %v18103_v53  ;;  %v9675_v60 = vrot.slane %v18330_v5, %v18106_v11 }
 0x8b8   :  { %v18718_v15 = vpop.eup %15240  ;;  %15246 = vrcp.f32 %v8670_v62  ;;  %12777 = vperm.xlu0 %15030, %v11576_v18   ;;  %v11232_v8 = vrot.slane %v11218_v14, %v18112_v21  ;;  %v9679_v46 = vrot.slane %v18330_v5, %v18109_v28  ;;  %v11626_v36 = vcombine.low %v9651_v30, %v9655_v45 }
 0x8b9   :  { %v18723_v59 = vpop.eup %15242  ;;  %15248 = vrcp.f32 %v8669_v33  ;;  %v11627_v0 = vcombine.low %v9659_v55, %v9663_v29  ;;  %v11628_v17 = vcombine.low %v9667_v4, %v9671_v13  ;;  %v9427_v12 = vrot.slane %v18252_v31, %v18086_v19 }
 0x8ba   :  { %v11233_v57 = vcombine.low %v11225_v51, %v11232_v8  ;;  %v11629_v39 = vcombine.low %v9675_v60, %v9679_v46  ;;  %v11636_v52 = vrot.slane %v11626_v36, %v18112_v21  ;;  %v9431_v48 = vrot.slane %v18252_v31, %v18089_v38 }
 0x8bb   :  { %v11643_v44 = vrot.slane %v11627_v0, %v18112_v21  ;;  %v11650_v5 = vrot.slane %v11628_v17, %v18112_v21  ;;  %v9435_v30 = vrot.slane %v18252_v31, %v18092_v54  ;;  %v9439_v10 = vrot.slane %v18252_v31, %v18095_v16 }
 0x8bc   :  { %12756 = vperm.xlu1 %15029, %v11233_v57   ;;  %v11657_v27 = vrot.slane %v11629_v39, %v18112_v21  ;;  %v9443_v3 = vrot.slane %v18252_v31, %v18098_v22  ;;  %v9447_v50 = vrot.slane %v18252_v31, %v18103_v53  ;;  %v9451_v45 = vrot.slane %v18252_v31, %v18106_v11 }
 0x8bd   :  { %v11658_v63 = vcombine.low %v11636_v52, %v11643_v44  ;;  %v9455_v56 = vrot.slane %v18252_v31, %v18109_v28  ;;  %v11283_v55 = vcombine.low %v9427_v12, %v9431_v48  ;;  %v11284_v29 = vcombine.low %v9435_v30, %v9439_v10 }
 0x8be   :  { %v11659_v42 = vcombine.low %v11650_v5, %v11657_v27  ;;  %v11285_v62 = vcombine.low %v9443_v3, %v9447_v50  ;;  %v9491_v18 = vrot.slane %v18267_v37, %v18086_v19  ;;  %v9495_v14 = vrot.slane %v18267_v37, %v18089_v38 }
 0x8bf   :  { %v11666_v4 = vrot.slane %v11658_v63, %v18112_v21  ;;  %v11286_v33 = vcombine.low %v9451_v45, %v9455_v56  ;;  %v11293_v51 = vrot.slane %v11283_v55, %v18112_v21  ;;  %v11300_v13 = vrot.slane %v11284_v29, %v18112_v21 }
 0x8c0   :  { %v11673_v60 = vrot.slane %v11659_v42, %v18112_v21  ;;  %v11307_v31 = vrot.slane %v11285_v62, %v18112_v21  ;;  %v9499_v8 = vrot.slane %v18267_v37, %v18092_v54  ;;  %v9503_v46 = vrot.slane %v18267_v37, %v18095_v16 }
 0x8c1   :  { %v11314_v36 = vrot.slane %v11286_v33, %v18112_v21  ;;  %v11315_v0 = vcombine.low %v11293_v51, %v11300_v13  ;;  %v9507_v17 = vrot.slane %v18267_v37, %v18098_v22  ;;  %v9511_v12 = vrot.slane %v18267_v37, %v18103_v53 }
 0x8c2   :  { %v15245_v57 = vpop.eup %15244  ;;  %v11674_v39 = vcombine.low %v11666_v4, %v11673_v60  ;;  %v9515_v52 = vrot.slane %v18267_v37, %v18106_v11  ;;  %v9519_v48 = vrot.slane %v18267_v37, %v18109_v28  ;;  %v11381_v44 = vcombine.low %v9491_v18, %v9495_v14 }
 0x8c3   :  { %v8671_v5 = vadd.f32 1.0, %v15245_v57  ;;  %v11316_v30 = vcombine.low %v11307_v31, %v11314_v36  ;;  %v11323_v10 = vrot.slane %v11315_v0, %v18112_v21  ;;  %v11382_v27 = vcombine.low %v9499_v8, %v9503_v46 }
 0x8c4   :  { %12783 = vperm.xlu0 %15030, %v11674_v39   ;;  %v11383_v3 = vcombine.low %v9507_v17, %v9511_v12  ;;  %v11384_v50 = vcombine.low %v9515_v52, %v9519_v48  ;;  %v11391_v45 = vrot.slane %v11381_v44, %v18112_v21  ;;  %v9555_v63 = vrot.slane %v18299_v41, %v18086_v19 }
 0x8c5   :  { %v18771_v56 = vpop.eup %15246  ;;  %15250 = vrcp.f32 %v8671_v5  ;;  %v11330_v55 = vrot.slane %v11316_v30, %v18112_v21  ;;  %v11398_v37 = vrot.slane %v11382_v27, %v18112_v21  ;;  %v9559_v29 = vrot.slane %v18299_v41, %v18089_v38 }
 0x8c6   :  { %v18777_v42 = vpop.eup %15248  ;;  %v11405_v62 = vrot.slane %v11383_v3, %v18112_v21  ;;  %v11412_v18 = vrot.slane %v11384_v50, %v18112_v21  ;;  %v9563_v14 = vrot.slane %v18299_v41, %v18092_v54  ;;  %v9567_v4 = vrot.slane %v18299_v41, %v18095_v16 }
 0x8c7   :  { %v11331_v33 = vcombine.low %v11323_v10, %v11330_v55  ;;  %v11413_v51 = vcombine.low %v11391_v45, %v11398_v37  ;;  %v9571_v13 = vrot.slane %v18299_v41, %v18098_v22  ;;  %v9575_v60 = vrot.slane %v18299_v41, %v18103_v53 }
 0x8c8   :  { %v11414_v31 = vcombine.low %v11405_v62, %v11412_v18  ;;  %v9579_v8 = vrot.slane %v18299_v41, %v18106_v11  ;;  %v9583_v46 = vrot.slane %v18299_v41, %v18109_v28  ;;  %v11479_v36 = vcombine.low %v9555_v63, %v9559_v29 }
 0x8c9   :  { %12762 = vperm.xlu1 %15029, %v11331_v33   ;;  %v11421_v0 = vrot.slane %v11413_v51, %v18112_v21  ;;  %v11480_v17 = vcombine.low %v9563_v14, %v9567_v4  ;;  %v11481_v12 = vcombine.low %v9571_v13, %v9575_v60  ;;  %v9619_v57 = vrot.slane %v18336_v47, %v18086_v19 }
 0x8ca   :  { %v11428_v39 = vrot.slane %v11414_v31, %v18112_v21  ;;  %v11482_v52 = vcombine.low %v9579_v8, %v9583_v46  ;;  %v11489_v48 = vrot.slane %v11479_v36, %v18112_v21  ;;  %v9623_v44 = vrot.slane %v18336_v47, %v18089_v38 }
 0x8cb   :  { %v11496_v5 = vrot.slane %v11480_v17, %v18112_v21  ;;  %v11503_v41 = vrot.slane %v11481_v12, %v18112_v21  ;;  %v9627_v30 = vrot.slane %v18336_v47, %v18092_v54  ;;  %v9631_v10 = vrot.slane %v18336_v47, %v18095_v16 }
 0x8cc   :  { %v11429_v27 = vcombine.low %v11421_v0, %v11428_v39  ;;  %v11510_v3 = vrot.slane %v11482_v52, %v18112_v21  ;;  %v9635_v50 = vrot.slane %v18336_v47, %v18098_v22  ;;  %v9639_v45 = vrot.slane %v18336_v47, %v18103_v53 }
 0x8cd   :  { %v11511_v63 = vcombine.low %v11489_v48, %v11496_v5  ;;  %v9643_v55 = vrot.slane %v18336_v47, %v18106_v11  ;;  %v9647_v37 = vrot.slane %v18336_v47, %v18109_v28  ;;  %v11577_v29 = vcombine.low %v9619_v57, %v9623_v44 }
 0x8ce   :  { %12768 = vperm.xlu1 %15029, %v11429_v27   ;;  %v11512_v62 = vcombine.low %v11503_v41, %v11510_v3  ;;  %v11578_v18 = vcombine.low %v9627_v30, %v9631_v10  ;;  %v11579_v14 = vcombine.low %v9635_v50, %v9639_v45  ;;  %v9843_v4 = vrot.slane %v18417_v58, %v18086_v19 }
 0x8cf   :  { %v11519_v33 = vrot.slane %v11511_v63, %v18112_v21  ;;  %v11580_v51 = vcombine.low %v9643_v55, %v9647_v37  ;;  %v11587_v13 = vrot.slane %v11577_v29, %v18112_v21  ;;  %v9847_v60 = vrot.slane %v18417_v58, %v18089_v38 }
 0x8d0   :  { %v11526_v31 = vrot.slane %v11512_v62, %v18112_v21  ;;  %v11594_v47 = vrot.slane %v11578_v18, %v18112_v21  ;;  %v11601_v8 = vrot.slane %v11579_v14, %v18112_v21  ;;  %v9851_v46 = vrot.slane %v18417_v58, %v18092_v54 }
 0x8d1   :  { %v11608_v36 = vrot.slane %v11580_v51, %v18112_v21  ;;  %v9855_v0 = vrot.slane %v18417_v58, %v18095_v16  ;;  %v9859_v17 = vrot.slane %v18417_v58, %v18098_v22  ;;  %v9863_v12 = vrot.slane %v18417_v58, %v18103_v53 }
 0x8d2   :  { %v18833_v57 = vpop.eup %15250  ;;  %v11527_v39 = vcombine.low %v11519_v33, %v11526_v31  ;;  %v11609_v52 = vcombine.low %v11587_v13, %v11594_v47  ;;  %v9867_v48 = vrot.slane %v18417_v58, %v18106_v11  ;;  %v9871_v44 = vrot.slane %v18417_v58, %v18109_v28 }
 0x8d3   :  { %v11610_v5 = vcombine.low %v11601_v8, %v11608_v36  ;;  %v11920_v41 = vcombine.low %v9843_v4, %v9847_v60  ;;  %v11921_v30 = vcombine.low %v9851_v46, %v9855_v0  ;;  %v11922_v10 = vcombine.low %v9859_v17, %v9863_v12 }
 0x8d4   :  { %12774 = vperm.xlu1 %15029, %v11527_v39   ;;  %v11617_v27 = vrot.slane %v11609_v52, %v18112_v21  ;;  %v11923_v3 = vcombine.low %v9867_v48, %v9871_v44  ;;  %v9875_v50 = vrot.slane %v18487_v20, %v18086_v19  ;;  %v9879_v45 = vrot.slane %v18487_v20, %v18089_v38 }
 0x8d5   :  { %v11624_v63 = vrot.slane %v11610_v5, %v18112_v21  ;;  %v11930_v55 = vrot.slane %v11920_v41, %v18112_v21  ;;  %v11937_v58 = vrot.slane %v11921_v30, %v18112_v21  ;;  %v11944_v37 = vrot.slane %v11922_v10, %v18112_v21 }
 0x8d6   :  { %v11951_v29 = vrot.slane %v11923_v3, %v18112_v21  ;;  %v9883_v62 = vrot.slane %v18487_v20, %v18092_v54  ;;  %v9887_v18 = vrot.slane %v18487_v20, %v18095_v16  ;;  %v9891_v14 = vrot.slane %v18487_v20, %v18098_v22 }
 0x8d7   :  { %v11625_v4 = vcombine.low %v11617_v27, %v11624_v63  ;;  %v11952_v33 = vcombine.low %v11930_v55, %v11937_v58  ;;  %v9895_v51 = vrot.slane %v18487_v20, %v18103_v53  ;;  %v9899_v13 = vrot.slane %v18487_v20, %v18106_v11 }
 0x8d8   :  { %v11953_v60 = vcombine.low %v11944_v37, %v11951_v29  ;;  %v9903_v31 = vrot.slane %v18487_v20, %v18109_v28  ;;  %v11969_v47 = vcombine.low %v9875_v50, %v9879_v45  ;;  %v11970_v8 = vcombine.low %v9883_v62, %v9887_v18 }
 0x8d9   :  { %12780 = vperm.xlu1 %15029, %v11625_v4   ;;  %v11960_v46 = vrot.slane %v11952_v33, %v18112_v21  ;;  %v11971_v36 = vcombine.low %v9891_v14, %v9895_v51  ;;  %v9907_v0 = vrot.slane %v18472_v34, %v18086_v19  ;;  %v9911_v17 = vrot.slane %v18472_v34, %v18089_v38 }
 0x8da   :  { %v11967_v12 = vrot.slane %v11953_v60, %v18112_v21  ;;  %v11972_v39 = vcombine.low %v9899_v13, %v9903_v31  ;;  %v11979_v52 = vrot.slane %v11969_v47, %v18112_v21  ;;  %v11986_v48 = vrot.slane %v11970_v8, %v18112_v21 }
 0x8db   :  { %v11993_v20 = vrot.slane %v11971_v36, %v18112_v21  ;;  %v9915_v44 = vrot.slane %v18472_v34, %v18092_v54  ;;  %v9919_v5 = vrot.slane %v18472_v34, %v18095_v16  ;;  %v9923_v41 = vrot.slane %v18472_v34, %v18098_v22 }
 0x8dc   :  { %v11968_v30 = vcombine.low %v11960_v46, %v11967_v12  ;;  %v12000_v10 = vrot.slane %v11972_v39, %v18112_v21  ;;  %v12001_v27 = vcombine.low %v11979_v52, %v11986_v48  ;;  %v9927_v3 = vrot.slane %v18472_v34, %v18103_v53 }
 0x8dd   :  { %v9931_v50 = vrot.slane %v18472_v34, %v18106_v11  ;;  %v9935_v45 = vrot.slane %v18472_v34, %v18109_v28  ;;  %v12018_v63 = vcombine.low %v9907_v0, %v9911_v17  ;;  %v12019_v55 = vcombine.low %v9915_v44, %v9919_v5 }
 0x8de   :  { %12801 = vperm.xlu1 %15029, %v11968_v30   ;;  %v12002_v58 = vcombine.low %v11993_v20, %v12000_v10  ;;  %v12009_v37 = vrot.slane %v12001_v27, %v18112_v21  ;;  %v12020_v29 = vcombine.low %v9923_v41, %v9927_v3  ;;  %v9939_v62 = vrot.slane %v18522_v9, %v18086_v19 }
 0x8df   :  { %v12021_v18 = vcombine.low %v9931_v50, %v9935_v45  ;;  %v12028_v14 = vrot.slane %v12018_v63, %v18112_v21  ;;  %v12035_v4 = vrot.slane %v12019_v55, %v18112_v21  ;;  %v9943_v33 = vrot.slane %v18522_v9, %v18089_v38 }
 0x8e0   :  { %v12016_v34 = vrot.slane %v12002_v58, %v18112_v21  ;;  %v12042_v51 = vrot.slane %v12020_v29, %v18112_v21  ;;  %v9947_v13 = vrot.slane %v18522_v9, %v18092_v54  ;;  %v9951_v60 = vrot.slane %v18522_v9, %v18095_v16 }
 0x8e1   :  { %v12049_v31 = vrot.slane %v12021_v18, %v18112_v21  ;;  %v12050_v47 = vcombine.low %v12028_v14, %v12035_v4  ;;  %v9955_v8 = vrot.slane %v18522_v9, %v18098_v22  ;;  %v9959_v46 = vrot.slane %v18522_v9, %v18103_v53 }
 0x8e2   :  { %v12017_v36 = vcombine.low %v12009_v37, %v12016_v34  ;;  %v9963_v0 = vrot.slane %v18522_v9, %v18106_v11  ;;  %v9967_v17 = vrot.slane %v18522_v9, %v18109_v28  ;;  %v12067_v12 = vcombine.low %v9939_v62, %v9943_v33 }
 0x8e3   :  { %v12051_v39 = vcombine.low %v12042_v51, %v12049_v31  ;;  %v12058_v52 = vrot.slane %v12050_v47, %v18112_v21  ;;  %v12068_v48 = vcombine.low %v9947_v13, %v9951_v60  ;;  %v12069_v20 = vcombine.low %v9955_v8, %v9959_v46 }
 0x8e4   :  { %12804 = vperm.xlu0 %15030, %v12017_v36   ;;  %v12070_v44 = vcombine.low %v9963_v0, %v9967_v17  ;;  %v12077_v5 = vrot.slane %v12067_v12, %v18112_v21  ;;  %v9971_v41 = vrot.slane %v18515_v24, %v18086_v19  ;;  %v9975_v30 = vrot.slane %v18515_v24, %v18089_v38 }
 0x8e5   :  { %v12065_v10 = vrot.slane %v12051_v39, %v18112_v21  ;;  %v12084_v9 = vrot.slane %v12068_v48, %v18112_v21  ;;  %v12091_v27 = vrot.slane %v12069_v20, %v18112_v21  ;;  %v9979_v3 = vrot.slane %v18515_v24, %v18092_v54 }
 0x8e6   :  { %v12098_v50 = vrot.slane %v12070_v44, %v18112_v21  ;;  %v9983_v45 = vrot.slane %v18515_v24, %v18095_v16  ;;  %v9987_v63 = vrot.slane %v18515_v24, %v18098_v22  ;;  %v9991_v55 = vrot.slane %v18515_v24, %v18103_v53 }
 0x8e7   :  { %v12066_v58 = vcombine.low %v12058_v52, %v12065_v10  ;;  %v12099_v37 = vcombine.low %v12077_v5, %v12084_v9  ;;  %v9995_v29 = vrot.slane %v18515_v24, %v18106_v11  ;;  %v9999_v62 = vrot.slane %v18515_v24, %v18109_v28 }
 0x8e8   :  { %v12100_v18 = vcombine.low %v12091_v27, %v12098_v50  ;;  %v12116_v14 = vcombine.low %v9971_v41, %v9975_v30  ;;  %v12117_v4 = vcombine.low %v9979_v3, %v9983_v45  ;;  %v12118_v33 = vcombine.low %v9987_v63, %v9991_v55 }
 0x8e9   :  { %12807 = vperm.xlu1 %15029, %v12066_v58   ;;  %v12107_v34 = vrot.slane %v12099_v37, %v18112_v21  ;;  %v12119_v51 = vcombine.low %v9995_v29, %v9999_v62  ;;  %v10003_v13 = vrot.slane %v18574_v7, %v18086_v19  ;;  %v10007_v60 = vrot.slane %v18574_v7, %v18089_v38 }
 0x8ea   :  { %v12114_v31 = vrot.slane %v12100_v18, %v18112_v21  ;;  %v12126_v47 = vrot.slane %v12116_v14, %v18112_v21  ;;  %v12133_v24 = vrot.slane %v12117_v4, %v18112_v21  ;;  %v12140_v8 = vrot.slane %v12118_v33, %v18112_v21 }
 0x8eb   :  { %v12147_v46 = vrot.slane %v12119_v51, %v18112_v21  ;;  %v10011_v36 = vrot.slane %v18574_v7, %v18092_v54  ;;  %v10015_v0 = vrot.slane %v18574_v7, %v18095_v16  ;;  %v10019_v17 = vrot.slane %v18574_v7, %v18098_v22 }
 0x8ec   :  { %v12115_v12 = vcombine.low %v12107_v34, %v12114_v31  ;;  %v12148_v39 = vcombine.low %v12126_v47, %v12133_v24  ;;  %v10023_v52 = vrot.slane %v18574_v7, %v18103_v53  ;;  %v10027_v48 = vrot.slane %v18574_v7, %v18106_v11 }
 0x8ed   :  { %v12149_v20 = vcombine.low %v12140_v8, %v12147_v46  ;;  %v10031_v44 = vrot.slane %v18574_v7, %v18109_v28  ;;  %v12165_v5 = vcombine.low %v10003_v13, %v10007_v60  ;;  %v12166_v41 = vcombine.low %v10011_v36, %v10015_v0 }
 0x8ee   :  { %12810 = vperm.xlu0 %15030, %v12115_v12   ;;  %v12156_v30 = vrot.slane %v12148_v39, %v18112_v21  ;;  %v12167_v10 = vcombine.low %v10019_v17, %v10023_v52  ;;  %v10035_v9 = vrot.slane %v18569_v1, %v18086_v19  ;;  %v10039_v27 = vrot.slane %v18569_v1, %v18089_v38 }
 0x8ef   :  { %v12163_v3 = vrot.slane %v12149_v20, %v18112_v21  ;;  %v12168_v50 = vcombine.low %v10027_v48, %v10031_v44  ;;  %v12175_v45 = vrot.slane %v12165_v5, %v18112_v21  ;;  %v12182_v63 = vrot.slane %v12166_v41, %v18112_v21 }
 0x8f0   :  { %v12189_v7 = vrot.slane %v12167_v10, %v18112_v21  ;;  %v10043_v55 = vrot.slane %v18569_v1, %v18092_v54  ;;  %v10047_v58 = vrot.slane %v18569_v1, %v18095_v16  ;;  %v10051_v37 = vrot.slane %v18569_v1, %v18098_v22 }
 0x8f1   :  { %v12164_v29 = vcombine.low %v12156_v30, %v12163_v3  ;;  %v12196_v62 = vrot.slane %v12168_v50, %v18112_v21  ;;  %v12197_v18 = vcombine.low %v12175_v45, %v12182_v63  ;;  %v10055_v14 = vrot.slane %v18569_v1, %v18103_v53 }
 0x8f2   :  { %v10059_v4 = vrot.slane %v18569_v1, %v18106_v11  ;;  %v10063_v33 = vrot.slane %v18569_v1, %v18109_v28  ;;  %v12214_v34 = vcombine.low %v10035_v9, %v10039_v27  ;;  %v12215_v51 = vcombine.low %v10043_v55, %v10047_v58 }
 0x8f3   :  { %12813 = vperm.xlu1 %15029, %v12164_v29   ;;  %v12198_v13 = vcombine.low %v12189_v7, %v12196_v62  ;;  %v12205_v60 = vrot.slane %v12197_v18, %v18112_v21  ;;  %v12216_v31 = vcombine.low %v10051_v37, %v10055_v14  ;;  %v10067_v47 = vrot.slane %v18620_v23, %v18086_v19 }
 0x8f4   :  { %v12217_v24 = vcombine.low %v10059_v4, %v10063_v33  ;;  %v12224_v8 = vrot.slane %v12214_v34, %v18112_v21  ;;  %v12231_v46 = vrot.slane %v12215_v51, %v18112_v21  ;;  %v10071_v36 = vrot.slane %v18620_v23, %v18089_v38 }
 0x8f5   :  { %v12212_v1 = vrot.slane %v12198_v13, %v18112_v21  ;;  %v12238_v0 = vrot.slane %v12216_v31, %v18112_v21  ;;  %v10075_v17 = vrot.slane %v18620_v23, %v18092_v54  ;;  %v10079_v12 = vrot.slane %v18620_v23, %v18095_v16 }
 0x8f6   :  { %v12245_v39 = vrot.slane %v12217_v24, %v18112_v21  ;;  %v12246_v52 = vcombine.low %v12224_v8, %v12231_v46  ;;  %v10083_v48 = vrot.slane %v18620_v23, %v18098_v22  ;;  %v10087_v20 = vrot.slane %v18620_v23, %v18103_v53 }
 0x8f7   :  { %v12213_v44 = vcombine.low %v12205_v60, %v12212_v1  ;;  %v10091_v5 = vrot.slane %v18620_v23, %v18106_v11  ;;  %v10095_v41 = vrot.slane %v18620_v23, %v18109_v28  ;;  %v12263_v30 = vcombine.low %v10067_v47, %v10071_v36 }
 0x8f8   :  { %v12247_v10 = vcombine.low %v12238_v0, %v12245_v39  ;;  %v12254_v9 = vrot.slane %v12246_v52, %v18112_v21  ;;  %v12264_v27 = vcombine.low %v10075_v17, %v10079_v12  ;;  %v12265_v3 = vcombine.low %v10083_v48, %v10087_v20 }
 0x8f9   :  { %12816 = vperm.xlu0 %15030, %v12213_v44   ;;  %v12266_v50 = vcombine.low %v10091_v5, %v10095_v41  ;;  %v12273_v45 = vrot.slane %v12263_v30, %v18112_v21  ;;  %v10099_v63 = vrot.slane %v18613_v2, %v18086_v19  ;;  %v10103_v7 = vrot.slane %v18613_v2, %v18089_v38 }
 0x8fa   :  { %v12261_v55 = vrot.slane %v12247_v10, %v18112_v21  ;;  %v12280_v23 = vrot.slane %v12264_v27, %v18112_v21  ;;  %v12287_v58 = vrot.slane %v12265_v3, %v18112_v21  ;;  %v10107_v37 = vrot.slane %v18613_v2, %v18092_v54 }
 0x8fb   :  { %v12294_v29 = vrot.slane %v12266_v50, %v18112_v21  ;;  %v10111_v62 = vrot.slane %v18613_v2, %v18095_v16  ;;  %v10115_v18 = vrot.slane %v18613_v2, %v18098_v22  ;;  %v10119_v14 = vrot.slane %v18613_v2, %v18103_v53 }
 0x8fc   :  { %v12262_v4 = vcombine.low %v12254_v9, %v12261_v55  ;;  %v12295_v33 = vcombine.low %v12273_v45, %v12280_v23  ;;  %v10123_v34 = vrot.slane %v18613_v2, %v18106_v11  ;;  %v10127_v51 = vrot.slane %v18613_v2, %v18109_v28 }
 0x8fd   :  { %v12296_v13 = vcombine.low %v12287_v58, %v12294_v29  ;;  %v12312_v60 = vcombine.low %v10099_v63, %v10103_v7  ;;  %v12313_v31 = vcombine.low %v10107_v37, %v10111_v62  ;;  %v12314_v47 = vcombine.low %v10115_v18, %v10119_v14 }
 0x8fe   :  { %12819 = vperm.xlu1 %15029, %v12262_v4   ;;  %v12303_v24 = vrot.slane %v12295_v33, %v18112_v21  ;;  %v12315_v8 = vcombine.low %v10123_v34, %v10127_v51  ;;  %v9683_v46 = vrot.slane %v18368_v32, %v18086_v19  ;;  %v9687_v36 = vrot.slane %v18368_v32, %v18089_v38 }
 0x8ff   :  { %v12310_v1 = vrot.slane %v12296_v13, %v18112_v21  ;;  %v12322_v0 = vrot.slane %v12312_v60, %v18112_v21  ;;  %v12329_v2 = vrot.slane %v12313_v31, %v18112_v21  ;;  %v12336_v17 = vrot.slane %v12314_v47, %v18112_v21 }
 0x900   :  { %v12343_v12 = vrot.slane %v12315_v8, %v18112_v21  ;;  %v9691_v39 = vrot.slane %v18368_v32, %v18092_v54  ;;  %v9695_v52 = vrot.slane %v18368_v32, %v18095_v16  ;;  %v9699_v48 = vrot.slane %v18368_v32, %v18098_v22 }
 0x901   :  { %v12311_v20 = vcombine.low %v12303_v24, %v12310_v1  ;;  %v12344_v44 = vcombine.low %v12322_v0, %v12329_v2  ;;  %v9703_v5 = vrot.slane %v18368_v32, %v18103_v53  ;;  %v9707_v41 = vrot.slane %v18368_v32, %v18106_v11 }
 0x902   :  { %v12345_v30 = vcombine.low %v12336_v17, %v12343_v12  ;;  %v9711_v10 = vrot.slane %v18368_v32, %v18109_v28  ;;  %v11675_v9 = vcombine.low %v9683_v46, %v9687_v36  ;;  %v11676_v27 = vcombine.low %v9691_v39, %v9695_v52 }
 0x903   :  { %12822 = vperm.xlu0 %15030, %v12311_v20   ;;  %v12352_v3 = vrot.slane %v12344_v44, %v18112_v21  ;;  %v11677_v50 = vcombine.low %v9699_v48, %v9703_v5  ;;  %v9715_v45 = vrot.slane %v18361_v43, %v18086_v19  ;;  %v9719_v63 = vrot.slane %v18361_v43, %v18089_v38 }
 0x904   :  { %v12359_v7 = vrot.slane %v12345_v30, %v18112_v21  ;;  %v11678_v55 = vcombine.low %v9707_v41, %v9711_v10  ;;  %v11685_v23 = vrot.slane %v11675_v9, %v18112_v21  ;;  %v11692_v58 = vrot.slane %v11676_v27, %v18112_v21 }
 0x905   :  { %v11699_v32 = vrot.slane %v11677_v50, %v18112_v21  ;;  %v9723_v37 = vrot.slane %v18361_v43, %v18092_v54  ;;  %v9727_v29 = vrot.slane %v18361_v43, %v18095_v16  ;;  %v9731_v62 = vrot.slane %v18361_v43, %v18098_v22 }
 0x906   :  { %v12360_v18 = vcombine.low %v12352_v3, %v12359_v7  ;;  %v11706_v14 = vrot.slane %v11678_v55, %v18112_v21  ;;  %v11707_v4 = vcombine.low %v11685_v23, %v11692_v58  ;;  %v9735_v33 = vrot.slane %v18361_v43, %v18103_v53 }
 0x907   :  { %v9739_v34 = vrot.slane %v18361_v43, %v18106_v11  ;;  %v9743_v51 = vrot.slane %v18361_v43, %v18109_v28  ;;  %v11724_v13 = vcombine.low %v9715_v45, %v9719_v63  ;;  %v11725_v60 = vcombine.low %v9723_v37, %v9727_v29 }
 0x908   :  { %12825 = vperm.xlu1 %15029, %v12360_v18   ;;  %v11708_v31 = vcombine.low %v11699_v32, %v11706_v14  ;;  %v11715_v47 = vrot.slane %v11707_v4, %v18112_v21  ;;  %v11726_v24 = vcombine.low %v9731_v62, %v9735_v33  ;;  %v10131_v8 = vrot.slane %v18670_v61, %v18086_v19 }
 0x909   :  { %v11727_v46 = vcombine.low %v9739_v34, %v9743_v51  ;;  %v11734_v36 = vrot.slane %v11724_v13, %v18112_v21  ;;  %v11741_v1 = vrot.slane %v11725_v60, %v18112_v21  ;;  %v10135_v0 = vrot.slane %v18670_v61, %v18089_v38 }
 0x90a   :  { %v11722_v43 = vrot.slane %v11708_v31, %v18112_v21  ;;  %v11748_v2 = vrot.slane %v11726_v24, %v18112_v21  ;;  %v10139_v17 = vrot.slane %v18670_v61, %v18092_v54  ;;  %v10143_v12 = vrot.slane %v18670_v61, %v18095_v16 }
 0x90b   :  { %v11755_v39 = vrot.slane %v11727_v46, %v18112_v21  ;;  %v11756_v52 = vcombine.low %v11734_v36, %v11741_v1  ;;  %v10147_v48 = vrot.slane %v18670_v61, %v18098_v22  ;;  %v10151_v20 = vrot.slane %v18670_v61, %v18103_v53 }
 0x90c   :  { %v11723_v44 = vcombine.low %v11715_v47, %v11722_v43  ;;  %v10155_v5 = vrot.slane %v18670_v61, %v18106_v11  ;;  %v10159_v41 = vrot.slane %v18670_v61, %v18109_v28  ;;  %v12361_v30 = vcombine.low %v10131_v8, %v10135_v0  ;;  %v19112_v0 = vpop.permute.xlu1 %12705 }
 0x90d   :  { %v11757_v10 = vcombine.low %v11748_v2, %v11755_v39  ;;  %v11764_v9 = vrot.slane %v11756_v52, %v18112_v21  ;;  %v12362_v27 = vcombine.low %v10139_v17, %v10143_v12  ;;  %v12363_v3 = vcombine.low %v10147_v48, %v10151_v20 }
 0x90e   :  { %12786 = vperm.xlu0 %15030, %v11723_v44   ;;  %v12364_v50 = vcombine.low %v10155_v5, %v10159_v41  ;;  %v12371_v45 = vrot.slane %v12361_v30, %v18112_v21  ;;  %v9747_v63 = vrot.slane %v18399_v35, %v18086_v19  ;;  %v9751_v7 = vrot.slane %v18399_v35, %v18089_v38 }
 0x90f   :  { %v11771_v55 = vrot.slane %v11757_v10, %v18112_v21  ;;  %v12378_v61 = vrot.slane %v12362_v27, %v18112_v21  ;;  %v12385_v23 = vrot.slane %v12363_v3, %v18112_v21  ;;  %v9755_v58 = vrot.slane %v18399_v35, %v18092_v54 }
 0x910   :  { %v12392_v32 = vrot.slane %v12364_v50, %v18112_v21  ;;  %v9759_v37 = vrot.slane %v18399_v35, %v18095_v16  ;;  %v9763_v29 = vrot.slane %v18399_v35, %v18098_v22  ;;  %v9767_v62 = vrot.slane %v18399_v35, %v18103_v53 }
 0x911   :  { %v11772_v18 = vcombine.low %v11764_v9, %v11771_v55  ;;  %v12393_v14 = vcombine.low %v12371_v45, %v12378_v61  ;;  %v9771_v4 = vrot.slane %v18399_v35, %v18106_v11  ;;  %v9775_v33 = vrot.slane %v18399_v35, %v18109_v28 }
 0x912   :  { %v12394_v34 = vcombine.low %v12385_v23, %v12392_v32  ;;  %v11773_v51 = vcombine.low %v9747_v63, %v9751_v7  ;;  %v11774_v13 = vcombine.low %v9755_v58, %v9759_v37  ;;  %v11775_v60 = vcombine.low %v9763_v29, %v9767_v62  ;;  %v19142_v58 = vpop.permute.xlu1 %12711 }
 0x913   :  { %12789 = vperm.xlu0 %15030, %v11772_v18   ;;  %v12401_v31 = vrot.slane %v12393_v14, %v18112_v21  ;;  %v11776_v47 = vcombine.low %v9771_v4, %v9775_v33  ;;  %v10163_v24 = vrot.slane %v18663_v25, %v18086_v19  ;;  %v10167_v8 = vrot.slane %v18663_v25, %v18089_v38 }
 0x914   :  { %v12408_v46 = vrot.slane %v12394_v34, %v18112_v21  ;;  %v11783_v36 = vrot.slane %v11773_v51, %v18112_v21  ;;  %v11790_v35 = vrot.slane %v11774_v13, %v18112_v21  ;;  %v11797_v1 = vrot.slane %v11775_v60, %v18112_v21 }
 0x915   :  { %v11804_v43 = vrot.slane %v11776_v47, %v18112_v21  ;;  %v10171_v2 = vrot.slane %v18663_v25, %v18092_v54  ;;  %v10175_v17 = vrot.slane %v18663_v25, %v18095_v16  ;;  %v10179_v12 = vrot.slane %v18663_v25, %v18098_v22 }
 0x916   :  { %v12409_v39 = vcombine.low %v12401_v31, %v12408_v46  ;;  %v11805_v52 = vcombine.low %v11783_v36, %v11790_v35  ;;  %v10183_v48 = vrot.slane %v18663_v25, %v18103_v53  ;;  %v10187_v20 = vrot.slane %v18663_v25, %v18106_v11 }
 0x917   :  { %v11806_v44 = vcombine.low %v11797_v1, %v11804_v43  ;;  %v10191_v5 = vrot.slane %v18663_v25, %v18109_v28  ;;  %v12410_v41 = vcombine.low %v10163_v24, %v10167_v8  ;;  %v12411_v30 = vcombine.low %v10171_v2, %v10175_v17 }
 0x918   :  { %12828 = vperm.xlu1 %15029, %v12409_v39   ;;  %v11813_v10 = vrot.slane %v11805_v52, %v18112_v21  ;;  %v12412_v9 = vcombine.low %v10179_v12, %v10183_v48  ;;  %v9779_v27 = vrot.slane %v18390_v6, %v18086_v19  ;;  %v9783_v3 = vrot.slane %v18390_v6, %v18089_v38  ;;  %v19169_v12 = vpop.permute.xlu1 %12714 }
 0x919   :  { %v11820_v50 = vrot.slane %v11806_v44, %v18112_v21  ;;  %v12413_v45 = vcombine.low %v10187_v20, %v10191_v5  ;;  %v12420_v63 = vrot.slane %v12410_v41, %v18112_v21  ;;  %v12427_v7 = vrot.slane %v12411_v30, %v18112_v21 }
 0x91a   :  { %v12434_v25 = vrot.slane %v12412_v9, %v18112_v21  ;;  %v9787_v55 = vrot.slane %v18390_v6, %v18092_v54  ;;  %v9791_v61 = vrot.slane %v18390_v6, %v18095_v16  ;;  %v9795_v23 = vrot.slane %v18390_v6, %v18098_v22 }
 0x91b   :  { %v11821_v32 = vcombine.low %v11813_v10, %v11820_v50  ;;  %v12441_v37 = vrot.slane %v12413_v45, %v18112_v21  ;;  %v12442_v29 = vcombine.low %v12420_v63, %v12427_v7  ;;  %v9799_v62 = vrot.slane %v18390_v6, %v18103_v53 }
 0x91c   :  { %v9803_v18 = vrot.slane %v18390_v6, %v18106_v11  ;;  %v9807_v14 = vrot.slane %v18390_v6, %v18109_v28  ;;  %v11822_v4 = vcombine.low %v9779_v27, %v9783_v3  ;;  %v11823_v33 = vcombine.low %v9787_v55, %v9791_v61 }
 0x91d   :  { %12792 = vperm.xlu0 %15030, %v11821_v32   ;;  %v12443_v34 = vcombine.low %v12434_v25, %v12441_v37  ;;  %v12450_v51 = vrot.slane %v12442_v29, %v18112_v21  ;;  %v11824_v13 = vcombine.low %v9795_v23, %v9799_v62  ;;  %v10195_v60 = vrot.slane %v18723_v59, %v18086_v19  ;;  %v19197_v62 = vpop.permute.xlu1 %12717 }
 0x91e   :  { %v11825_v31 = vcombine.low %v9803_v18, %v9807_v14  ;;  %v11832_v47 = vrot.slane %v11822_v4, %v18112_v21  ;;  %v11839_v24 = vrot.slane %v11823_v33, %v18112_v21  ;;  %v10199_v8 = vrot.slane %v18723_v59, %v18089_v38 }
 0x91f   :  { %v12457_v6 = vrot.slane %v12443_v34, %v18112_v21  ;;  %v11846_v46 = vrot.slane %v11824_v13, %v18112_v21  ;;  %v10203_v36 = vrot.slane %v18723_v59, %v18092_v54  ;;  %v10207_v35 = vrot.slane %v18723_v59, %v18095_v16 }
 0x920   :  { %v11853_v1 = vrot.slane %v11825_v31, %v18112_v21  ;;  %v11854_v43 = vcombine.low %v11832_v47, %v11839_v24  ;;  %v10211_v2 = vrot.slane %v18723_v59, %v18098_v22  ;;  %v10215_v17 = vrot.slane %v18723_v59, %v18103_v53 }
 0x921   :  { %v12458_v39 = vcombine.low %v12450_v51, %v12457_v6  ;;  %v10219_v52 = vrot.slane %v18723_v59, %v18106_v11  ;;  %v10223_v48 = vrot.slane %v18723_v59, %v18109_v28  ;;  %v12459_v20 = vcombine.low %v10195_v60, %v10199_v8 }
 0x922   :  { %v11855_v44 = vcombine.low %v11846_v46, %v11853_v1  ;;  %v11862_v5 = vrot.slane %v11854_v43, %v18112_v21  ;;  %v12460_v41 = vcombine.low %v10203_v36, %v10207_v35  ;;  %v12461_v30 = vcombine.low %v10211_v2, %v10215_v17 }
 0x923   :  { %12831 = vperm.xlu1 %15029, %v12458_v39   ;;  %v12462_v10 = vcombine.low %v10219_v52, %v10223_v48  ;;  %v12469_v9 = vrot.slane %v12459_v20, %v18112_v21  ;;  %v9811_v27 = vrot.slane %v18423_v26, %v18086_v19  ;;  %v9815_v3 = vrot.slane %v18423_v26, %v18089_v38  ;;  %v19221_v20 = vpop.permute.xlu1 %12720 }
 0x924   :  { %v11869_v50 = vrot.slane %v11855_v44, %v18112_v21  ;;  %v12476_v59 = vrot.slane %v12460_v41, %v18112_v21  ;;  %v12483_v45 = vrot.slane %v12461_v30, %v18112_v21  ;;  %v9819_v63 = vrot.slane %v18423_v26, %v18092_v54 }
 0x925   :  { %v12490_v7 = vrot.slane %v12462_v10, %v18112_v21  ;;  %v9823_v25 = vrot.slane %v18423_v26, %v18095_v16  ;;  %v9827_v55 = vrot.slane %v18423_v26, %v18098_v22  ;;  %v9831_v61 = vrot.slane %v18423_v26, %v18103_v53 }
 0x926   :  { %v11870_v23 = vcombine.low %v11862_v5, %v11869_v50  ;;  %v12491_v32 = vcombine.low %v12469_v9, %v12476_v59  ;;  %v9835_v37 = vrot.slane %v18423_v26, %v18106_v11  ;;  %v9839_v29 = vrot.slane %v18423_v26, %v18109_v28 }
 0x927   :  { %v12492_v18 = vcombine.low %v12483_v45, %v12490_v7  ;;  %v11871_v14 = vcombine.low %v9811_v27, %v9815_v3  ;;  %v11872_v4 = vcombine.low %v9819_v63, %v9823_v25  ;;  %v11873_v33 = vcombine.low %v9827_v55, %v9831_v61 }
 0x928   :  { %12795 = vperm.xlu0 %15030, %v11870_v23   ;;  %v12499_v34 = vrot.slane %v12491_v32, %v18112_v21  ;;  %v11874_v51 = vcombine.low %v9835_v37, %v9839_v29  ;;  %v10227_v13 = vrot.slane %v18718_v15, %v18086_v19  ;;  %v10231_v60 = vrot.slane %v18718_v15, %v18089_v38 }
 0x929   :  { %v12506_v31 = vrot.slane %v12492_v18, %v18112_v21  ;;  %v11881_v26 = vrot.slane %v11871_v14, %v18112_v21  ;;  %v11888_v47 = vrot.slane %v11872_v4, %v18112_v21  ;;  %v11895_v24 = vrot.slane %v11873_v33, %v18112_v21  ;;  %v19248_v33 = vpop.permute.xlu1 %12723 }
 0x92a   :  { %v11902_v8 = vrot.slane %v11874_v51, %v18112_v21  ;;  %v10235_v6 = vrot.slane %v18718_v15, %v18092_v54  ;;  %v10239_v46 = vrot.slane %v18718_v15, %v18095_v16  ;;  %v10243_v36 = vrot.slane %v18718_v15, %v18098_v22 }
 0x92b   :  { %v12507_v35 = vcombine.low %v12499_v34, %v12506_v31  ;;  %v11903_v1 = vcombine.low %v11881_v26, %v11888_v47  ;;  %v10247_v43 = vrot.slane %v18718_v15, %v18103_v53  ;;  %v10251_v2 = vrot.slane %v18718_v15, %v18106_v11 }
 0x92c   :  { %v11904_v17 = vcombine.low %v11895_v24, %v11902_v8  ;;  %v10255_v39 = vrot.slane %v18718_v15, %v18109_v28  ;;  %v12508_v52 = vcombine.low %v10227_v13, %v10231_v60  ;;  %v12509_v48 = vcombine.low %v10235_v6, %v10239_v46 }
 0x92d   :  { %12834 = vperm.xlu1 %15029, %v12507_v35   ;;  %v11911_v44 = vrot.slane %v11903_v1, %v18112_v21  ;;  %v12510_v5 = vcombine.low %v10243_v36, %v10247_v43  ;;  %v10291_v41 = vrot.slane %v18771_v56, %v18086_v19  ;;  %v10295_v30 = vrot.slane %v18771_v56, %v18089_v38 }
 0x92e   :  { %v11918_v10 = vrot.slane %v11904_v17, %v18112_v21  ;;  %v12511_v9 = vcombine.low %v10251_v2, %v10255_v39  ;;  %v12518_v27 = vrot.slane %v12508_v52, %v18112_v21  ;;  %v12525_v15 = vrot.slane %v12509_v48, %v18112_v21 }
 0x92f   :  { %v12532_v3 = vrot.slane %v12510_v5, %v18112_v21  ;;  %v10299_v50 = vrot.slane %v18771_v56, %v18092_v54  ;;  %v10303_v59 = vrot.slane %v18771_v56, %v18095_v16  ;;  %v10307_v45 = vrot.slane %v18771_v56, %v18098_v22 }
 0x930   :  { %v11919_v63 = vcombine.low %v11911_v44, %v11918_v10  ;;  %v12539_v7 = vrot.slane %v12511_v9, %v18112_v21  ;;  %v12540_v25 = vcombine.low %v12518_v27, %v12525_v15  ;;  %v10311_v55 = vrot.slane %v18771_v56, %v18103_v53 }
 0x931   :  { %v10315_v61 = vrot.slane %v18771_v56, %v18106_v11  ;;  %v10319_v23 = vrot.slane %v18771_v56, %v18109_v28  ;;  %v12606_v32 = vcombine.low %v10291_v41, %v10295_v30  ;;  %v12607_v37 = vcombine.low %v10299_v50, %v10303_v59  ;;  %v19275_v30 = vpop.permute.xlu1 %12726 }
 0x932   :  { %12798 = vperm.xlu0 %15030, %v11919_v63   ;;  %v12541_v29 = vcombine.low %v12532_v3, %v12539_v7  ;;  %v12548_v18 = vrot.slane %v12540_v25, %v18112_v21  ;;  %v12608_v14 = vcombine.low %v10307_v45, %v10311_v55  ;;  %v10259_v4 = vrot.slane %v18777_v42, %v18086_v19 }
 0x933   :  { %v12609_v34 = vcombine.low %v10315_v61, %v10319_v23  ;;  %v12616_v51 = vrot.slane %v12606_v32, %v18112_v21  ;;  %v12623_v13 = vrot.slane %v12607_v37, %v18112_v21  ;;  %v10263_v56 = vrot.slane %v18777_v42, %v18089_v38 }
 0x934   :  { %v12555_v60 = vrot.slane %v12541_v29, %v18112_v21  ;;  %v12630_v31 = vrot.slane %v12608_v14, %v18112_v21  ;;  %v10267_v26 = vrot.slane %v18777_v42, %v18092_v54  ;;  %v10271_v47 = vrot.slane %v18777_v42, %v18095_v16 }
 0x935   :  { %v12637_v24 = vrot.slane %v12609_v34, %v18112_v21  ;;  %v12638_v8 = vcombine.low %v12616_v51, %v12623_v13  ;;  %v10275_v6 = vrot.slane %v18777_v42, %v18098_v22  ;;  %v10279_v46 = vrot.slane %v18777_v42, %v18103_v53 }
 0x936   :  { %v12556_v36 = vcombine.low %v12548_v18, %v12555_v60  ;;  %v10283_v35 = vrot.slane %v18777_v42, %v18106_v11  ;;  %v10287_v1 = vrot.slane %v18777_v42, %v18109_v28  ;;  %v12557_v43 = vcombine.low %v10259_v4, %v10263_v56  ;;  %v12709_v60 = vpop.permute.xlu0 %12708 }
 0x937   :  { %v12639_v2 = vcombine.low %v12630_v31, %v12637_v24  ;;  %v12646_v17 = vrot.slane %v12638_v8, %v18112_v21  ;;  %v12558_v39 = vcombine.low %v10267_v26, %v10271_v47  ;;  %v12559_v52 = vcombine.low %v10275_v6, %v10279_v46 }
 0x938   :  { %12837 = vperm.xlu1 %15029, %v12556_v36   ;;  %v12560_v48 = vcombine.low %v10283_v35, %v10287_v1  ;;  %v12567_v44 = vrot.slane %v12557_v43, %v18112_v21  ;;  %v10323_v5 = vrot.slane %v18833_v57, %v18086_v19  ;;  %v10327_v41 = vrot.slane %v18833_v57, %v18089_v38 }
 0x939   :  { %v12653_v42 = vrot.slane %v12639_v2, %v18112_v21  ;;  %v12574_v10 = vrot.slane %v12558_v39, %v18112_v21  ;;  %v12581_v9 = vrot.slane %v12559_v52, %v18112_v21  ;;  %v10331_v27 = vrot.slane %v18833_v57, %v18092_v54 }
 0x93a   :  { %v12588_v15 = vrot.slane %v12560_v48, %v18112_v21  ;;  %v10335_v3 = vrot.slane %v18833_v57, %v18095_v16  ;;  %v10339_v19 = vrot.slane %v18833_v57, %v18098_v22  ;;  %v10343_v38 = vrot.slane %v18833_v57, %v18103_v53 }
 0x93b   :  { %v12654_v50 = vcombine.low %v12646_v17, %v12653_v42  ;;  %v12589_v59 = vcombine.low %v12567_v44, %v12574_v10  ;;  %v10347_v45 = vrot.slane %v18833_v57, %v18106_v11  ;;  %v10351_v63 = vrot.slane %v18833_v57, %v18109_v28  ;;  %v19301_v28 = vpop.permute.xlu1 %12729 }
 0x93c   :  { %v12590_v54 = vcombine.low %v12581_v9, %v12588_v15  ;;  %v12655_v7 = vcombine.low %v10323_v5, %v10327_v41  ;;  %v12656_v25 = vcombine.low %v10331_v27, %v10335_v3  ;;  %v12657_v55 = vcombine.low %v10339_v19, %v10343_v38 }
 0x93d   :  { %12843 = vperm.xlu0 %15030, %v12654_v50   ;;  %v12597_v16 = vrot.slane %v12589_v59, %v18112_v21  ;;  %v12658_v61 = vcombine.low %v10347_v45, %v10351_v63  ;;  %v19295_v22 = vand.u32 127, %v8816_v49 }
 0x93e   :  { %v12604_v53 = vrot.slane %v12590_v54, %v18112_v21  ;;  %v12665_v23 = vrot.slane %v12655_v7, %v18112_v21  ;;  %v12672_v11 = vrot.slane %v12656_v25, %v18112_v21  ;;  %v12679_v32 = vrot.slane %v12657_v55, %v18112_v21 }
 0x93f   :  { %v12686_v57 = vrot.slane %v12658_v61, %v18112_v21  ;;  %v12854_v37 = vadd.s32 4294967288, %v19295_v22  ;;  %v12861_v29 = vadd.s32 4294967280, %v19295_v22  ;;  %v12868_v4 = vadd.s32 4294967272, %v19295_v22  ;;  %v12733_v46 = vpop.permute.xlu1 %12732 }
 0x940   :  { %v12605_v18 = vcombine.low %v12597_v16, %v12604_v53  ;;  %v12687_v14 = vcombine.low %v12665_v23, %v12672_v11  ;;  %v19309_v51 = vsub.s32 %v19295_v22, %v18081_v40  ;;  %v12875_v26 = vadd.s32 4294967264, %v19295_v22 }
 0x941   :  { %v12688_v34 = vcombine.low %v12679_v32, %v12686_v57  ;;  %v19312_v13 = vsub.s32 %v12854_v37, %v18081_v40  ;;  %v19316_v31 = vsub.s32 %v12861_v29, %v18081_v40  ;;  %v19321_v24 = vsub.s32 %v12868_v4, %v18081_v40 }
 0x942   :  { %12840 = vperm.xlu1 %15029, %v12605_v18   ;;  %v12695_v56 = vrot.slane %v12687_v14, %v18112_v21  ;;  %v19324_v8 = vsub.s32 %v12875_v26, %v18081_v40  ;;  %v12882_v6 = vadd.s32 4294967256, %v19295_v22  ;;  %v12853_v35 = vrot.slane %v19112_v0, %v19309_v51 }
 0x943   :  { %v12702_v47 = vrot.slane %v12688_v34, %v18112_v21  ;;  %v12858_v1 = vrot.slane %v12709_v60, %v19312_v13  ;;  %v12889_v43 = vadd.s32 4294967248, %v19295_v22  ;;  %v12865_v2 = vrot.slane %v19142_v58, %v19316_v31  ;;  %v12739_v27 = vpop.permute.xlu1 %12738 }
 0x944   :  { %v19334_v17 = vsub.s32 %v12882_v6, %v18081_v40  ;;  %v12872_v39 = vrot.slane %v19169_v12, %v19321_v24  ;;  %v12896_v0 = vadd.s32 4294967240, %v19295_v22  ;;  %v12879_v48 = vrot.slane %v19197_v62, %v19324_v8  ;;  %v12736_v62 = vpop.permute.xlu0 %12735 }
 0x945   :  { %v12703_v36 = vcombine.low %v12695_v56, %v12702_v47  ;;  %v19339_v52 = vsub.s32 %v12889_v43, %v18081_v40  ;;  %v12917_v58 = vadd.s32 4294967216, %v19295_v22  ;;  %v12860_v44 = vsel %vm12859_vm14, %v12858_v1, %v12853_v35 }
 0x946   :  { %v12886_v5 = vrot.slane %v19221_v20, %v19334_v17  ;;  %v19349_v41 = vsub.s32 %v12896_v0, %v18081_v40  ;;  %v12903_v12 = vadd.s32 4294967232, %v19295_v22  ;;  %v12867_v42 = vsel %vm12866_vm15, %v12865_v2, %v12860_v44 }
 0x947   :  { %12846 = vperm.xlu1 %15029, %v12703_v36   ;;  %v12893_v10 = vrot.slane %v19248_v33, %v19339_v52  ;;  %v12931_v9 = vadd.s32 4294967200, %v19295_v22  ;;  %v12874_v15 = vsel %vm12873_vm0, %v12872_v39, %v12867_v42  ;;  %v12910_v19 = vadd.s32 4294967224, %v19295_v22  ;;  %v12745_v11 = vpop.permute.xlu1 %12744 }
 0x948   :  { %v12900_v20 = vrot.slane %v19275_v30, %v19349_v41  ;;  %v19360_v3 = vsub.s32 %v12903_v12, %v18081_v40  ;;  %v12881_v38 = vsel %vm12880_vm1, %v12879_v48, %v12874_v15  ;;  %v19365_v50 = vsub.s32 %v12917_v58, %v18081_v40  ;;  %v12742_v61 = vpop.permute.xlu0 %12741 }
 0x949   :  { %v12888_v33 = vsel %vm12887_vm2, %v12886_v5, %v12881_v38  ;;  %v19371_v45 = vsub.s32 %v12910_v19, %v18081_v40  ;;  %v19375_v63 = vsub.s32 %v12931_v9, %v18081_v40  ;;  %v12924_v54 = vadd.s32 4294967208, %v19295_v22 }
 0x94a   :  { %v12907_v59 = vrot.slane %v19301_v28, %v19360_v3  ;;  %v12895_v30 = vsel %vm12894_vm3, %v12893_v10, %v12888_v33  ;;  %v12938_v55 = vadd.s32 4294967192, %v19295_v22  ;;  %v12921_v16 = vrot.slane %v12736_v62, %v19365_v50 }
 0x94b   :  { %v12902_v7 = vsel %vm12901_vm4, %v12900_v20, %v12895_v30  ;;  %v12914_v25 = vrot.slane %v12733_v46, %v19371_v45  ;;  %v19384_v23 = vsub.s32 %v12924_v54, %v18081_v40  ;;  %v12935_v29 = vrot.slane %v12742_v61, %v19375_v63  ;;  %v19401_v60 = vpop.permute.xlu1 %12750 }
 0x94c   :  { %v12909_v53 = vsel %vm12908_vm5, %v12907_v59, %v12902_v7  ;;  %v19388_v28 = vsub.s32 %v12938_v55, %v18081_v40  ;;  %v19399_v56 = vpop.permute.xlu0 %12747 }
 0x94d   :  { %v12916_v32 = vsel %vm12915_vm6, %v12914_v25, %v12909_v53  ;;  %v12928_v37 = vrot.slane %v12739_v27, %v19384_v23 }
 0x94e   :  { %v12923_v57 = vsel %vm12922_vm7, %v12921_v16, %v12916_v32  ;;  %v12942_v18 = vrot.slane %v12745_v11, %v19388_v28 }
 0x94f   :  { %v12930_v14 = vsel %vm12929_vm8, %v12928_v37, %v12923_v57  ;;  %v12757_v47 = vpop.permute.xlu1 %12756 }
 0x950   :  { %v12937_v4 = vsel %vm12936_vm9, %v12935_v29, %v12930_v14  ;;  %v12754_v26 = vpop.permute.xlu0 %12753  ;;  %v12966_v15 = vrot.slane %v12757_v47, %v19312_v13 }
 0x951   :  { %v19397_v34 = vsel %vm12943_vm10, %v12942_v18, %v12937_v4  ;;  %v12962_v20 = vrot.slane %v12754_v26, %v19309_v51 }
 0x953   :  { %v12763_v46 = vpop.permute.xlu1 %12762  ;;  %v12967_v33 = vsel %vm12859_vm14, %v12966_v15, %v12962_v20 }
 0x954   :  { %v12760_v6 = vpop.permute.xlu0 %12759  ;;  %v12976_v59 = vrot.slane %v12763_v46, %v19321_v24 }
 0x955   :  { %v12971_v30 = vrot.slane %v12760_v6, %v19316_v31 }
 0x957   :  { %v12769_v35 = vpop.permute.xlu1 %12768  ;;  %v12972_v54 = vsel %vm12866_vm15, %v12971_v30, %v12967_v33 }
 0x958   :  { %v12766_v36 = vpop.permute.xlu0 %12765  ;;  %v12977_v7 = vsel %vm12873_vm0, %v12976_v59, %v12972_v54  ;;  %v12986_v25 = vrot.slane %v12769_v35, %v19334_v17 }
 0x959   :  { %v12981_v11 = vrot.slane %v12766_v36, %v19324_v8 }
 0x95b   :  { %v12775_v43 = vpop.permute.xlu1 %12774  ;;  %v12982_v57 = vsel %vm12880_vm1, %v12981_v11, %v12977_v7 }
 0x95c   :  { %v12772_v1 = vpop.permute.xlu0 %12771  ;;  %v12987_v37 = vsel %vm12887_vm2, %v12986_v25, %v12982_v57  ;;  %v12996_v29 = vrot.slane %v12775_v43, %v19349_v41 }
 0x95f   :  { %v12781_v39 = vpop.permute.xlu1 %12780 }
 0x960   :  { %v12778_v2 = vpop.permute.xlu0 %12777  ;;  %v13006_v36 = vrot.slane %v12781_v39, %v19371_v45 }
 0x963   :  { %v12802_v48 = vpop.permute.xlu1 %12801 }
 0x964   :  { %v19403_v0 = vpop.permute.xlu0 %12783  ;;  %v13041_v55 = vrot.slane %v12802_v48, %v19309_v51  ;;  %v12991_v51 = vrot.slane %v12772_v1, %v19339_v52  ;;  %v13001_v1 = vrot.slane %v12778_v2, %v19360_v3  ;;  %v12952_v48 = vadd.s32 4294967176, %v19295_v22 }
 0x965   :  { %v13011_v15 = vrot.slane %v19403_v0, %v19365_v50 }
 0x966   :  { %v12992_v6 = vsel %vm12894_vm3, %v12991_v51, %v12987_v37  ;;  %v12955_v20 = vsub.s32 %v12952_v48, %v18081_v40 }
 0x967   :  { %v12808_v44 = vpop.permute.xlu1 %12807  ;;  %v12997_v46 = vsel %vm12901_vm4, %v12996_v29, %v12992_v6 }
 0x968   :  { %v12805_v58 = vpop.permute.xlu0 %12804  ;;  %v13050_v32 = vrot.slane %v12808_v44, %v19316_v31  ;;  %v12945_v31 = vadd.s32 4294967184, %v19295_v22  ;;  %v13002_v44 = vsel %vm12908_vm5, %v13001_v1, %v12997_v46  ;;  %v12956_v54 = vrot.slane %v19401_v60, %v12955_v20 }
 0x969   :  { %v13045_v16 = vrot.slane %v12805_v58, %v19312_v13 }
 0x96a   :  { %v12948_v58 = vsub.s32 %v12945_v31, %v18081_v40 }
 0x96b   :  { %v13046_v18 = vsel %vm12859_vm14, %v13045_v16, %v13041_v55 }
 0x96c   :  { %v12811_v5 = vpop.permute.xlu0 %12810  ;;  %v13051_v13 = vsel %vm12866_vm15, %v13050_v32, %v13046_v18 }
 0x96d   :  { %v13055_v14 = vrot.slane %v12811_v5, %v19321_v24  ;;  %v13007_v5 = vsel %vm12915_vm6, %v13006_v36, %v13002_v44 }
 0x96e   :  { %v12814_v12 = vpop.permute.xlu1 %12813 }
 0x96f   :  { %v13060_v4 = vrot.slane %v12814_v12, %v19324_v8  ;;  %v13056_v35 = vsel %vm12873_vm0, %v13055_v14, %v13051_v13 }
 0x971   :  { %v13061_v43 = vsel %vm12880_vm1, %v13060_v4, %v13056_v35 }
 0x974   :  { %v12817_v42 = vpop.permute.xlu0 %12816 }
 0x975   :  { %v13065_v24 = vrot.slane %v12817_v42, %v19334_v17 }
 0x977   :  { %v13066_v39 = vsel %vm12887_vm2, %v13065_v24, %v13061_v43 }
 0x979   :  { %v12820_v10 = vpop.permute.xlu1 %12819 }
 0x97a   :  { %v13070_v8 = vrot.slane %v12820_v10, %v19339_v52 }
 0x97c   :  { %v13071_v52 = vsel %vm12894_vm3, %v13070_v8, %v13066_v39 }
 0x97e   :  { %v12823_v62 = vpop.permute.xlu0 %12822 }
 0x97f   :  { %v13075_v12 = vrot.slane %v12823_v62, %v19349_v41  ;;  %v13012_v62 = vsel %vm12922_vm7, %v13011_v15, %v13007_v5 }
 0x981   :  { %v13076_v0 = vsel %vm12901_vm4, %v13075_v12, %v13071_v52 }
 0x983   :  { %v19405_v9 = vpop.permute.xlu1 %12825 }
 0x984   :  { %v13080_v22 = vrot.slane %v19405_v9, %v19360_v3 }
 0x986   :  { %v13081_v40 = vsel %vm12908_vm5, %v13080_v22, %v13076_v0 }
 0x989   :  { %v12787_v27 = vpop.permute.xlu0 %12786 }
 0x98a   :  { %v13016_v17 = vrot.slane %v12787_v27, %v19384_v23 }
 0x98c   :  { %v13017_v30 = vsel %vm12929_vm8, %v13016_v17, %v13012_v62 }
 0x98e   :  { %v12790_v38 = vpop.permute.xlu0 %12789 }
 0x98f   :  { %v13021_v10 = vrot.slane %v12790_v38, %v19375_v63  ;;  %v12949_v38 = vrot.slane %v19399_v56, %v12948_v58 }
 0x993   :  { %v19409_v19 = vpop.permute.xlu1 %12828 }
 0x994   :  { %v13085_v33 = vrot.slane %v19409_v19, %v19371_v45  ;;  %v13022_v45 = vsel %vm12936_vm9, %v13021_v10, %v13017_v30 }
 0x998   :  { %v12793_v53 = vpop.permute.xlu0 %12792 }
 0x999   :  { %v13026_v41 = vrot.slane %v12793_v53, %v19388_v28 }
 0x99b   :  { %v13027_v7 = vsel %vm12943_vm10, %v13026_v41, %v13022_v45 }
 0x99e   :  { %v12832_v61 = vpop.permute.xlu1 %12831 }
 0x99f   :  { %v13090_v27 = vrot.slane %v12832_v61, %v19365_v50  ;;  %v13086_v50 = vsel %vm12915_vm6, %v13085_v33, %v13081_v40 }
 0x9a3   :  { %v12796_v47 = vpop.permute.xlu0 %12795 }
 0x9a4   :  { %v13031_v59 = vrot.slane %v12796_v47, %v12948_v58 }
 0x9a6   :  { %v13032_v56 = vsel %vm12950_vm11, %v13031_v59, %v13027_v7 }
 0x9a8   :  { %v12835_v26 = vpop.permute.xlu1 %12834 }
 0x9a9   :  { %v13095_v3 = vrot.slane %v12835_v26, %v19384_v23  ;;  %v13091_v23 = vsel %vm12922_vm7, %v13090_v27, %v13086_v50 }
 0x9ab   :  { %v13096_v61 = vsel %vm12929_vm8, %v13095_v3, %v13091_v23 }
 0x9ad   :  { %v12799_v2 = vpop.permute.xlu0 %12798 }
 0x9ae   :  { %v13036_v9 = vrot.slane %v12799_v2, %v12955_v20 }
 0x9b0   :  { %v13037_v53 = vsel %vm12957_vm12, %v13036_v9, %v13032_v56 }
 0x9b3   :  { %v12838_v42 = vpop.permute.xlu1 %12837 }
 0x9b4   :  { %v13100_v19 = vrot.slane %v12838_v42, %v19375_v63  ;;  %v12951_v63 = vsel %vm12950_vm11, %v12949_v38, %v19397_v34 }
 0x9b5   :  { %v12958_v32 = vsel %vm12957_vm12, %v12956_v54, %v12951_v63 }
 0x9b6   :  { %v13101_v60 = vsel %vm12936_vm9, %v13100_v19, %v13096_v61  ;;  %v13117_v37 = vcombine.low %v12958_v32, %v13037_v53 }
 0x9b8   :  { %v12844_v55 = vpop.permute.xlu0 %12843  ;;  %v13124_v13 = vrot.slane %v13117_v37, %v18112_v21 }
 0x9b9   :  { %v13110_v11 = vrot.slane %v12844_v55, %v12948_v58 }
 0x9bd   :  { %v12841_v25 = vpop.permute.xlu1 %12840 }
 0x9be   :  { %v13105_v16 = vrot.slane %v12841_v25, %v19388_v28 }
 0x9c0   :  { %v13106_v57 = vsel %vm12943_vm10, %v13105_v16, %v13101_v60 }
 0x9c1   :  { %v13111_v14 = vsel %vm12950_vm11, %v13110_v11, %v13106_v57 }
 0x9c2   :  { %v12847_v29 = vpop.permute.xlu1 %12846 }
 0x9c3   :  { %v13115_v18 = vrot.slane %v12847_v29, %v12955_v20 }
 0x9c5   :  { %v13116_v51 = vsel %vm12957_vm12, %v13115_v18, %v13111_v14 }
 0x9c6   :  { %v13131_v28 = vrot.slane %v13116_v51, %v18112_v21 }
 0x9c8   :  { %v13132_v4 = vcombine.low %v13124_v13, %v13131_v28 }
 0x9ca   :  { %v13139_v34 = vrot.slane %v13132_v4, %v18112_v21 }
 0x9cc   :  { %13145 = vst.msk [vmem:[#allocation5] sm:$0x7] %vm13143_vm13, %v13139_v34 }
 0x9cd   :  { %15263 = shalt.err (!%p15260_p4)
}
 0x9ce   :  { %13155 = dma.vmem_to_hbm [thread:$0]  %s13153_s10, 48, %s19488_s5, [#allocation6]  }
 0x9cf   :  { %15272 = dma.done.wait [#allocation6], 48  }
 0x9d0   :  { %15273 = vsyncadd [#allocation6], 4294967248 }
 0x9d1   :  { %13159 = vsyncpa [#allocation6], 1 }

</bundles_post_ra>
